<compile_context>
chip_gen: v7x
topology: tpu7x:2x2x1
jax: 0.10.0
libtpu: 0.0.40
codegen_flags: <defaults>
</compile_context>

<pallas_src>
import functools

import jax
import jax.numpy as jnp
from jax.experimental import pallas as pl
from jax.experimental.pallas import tpu as pltpu


def _conv_bn_add_relu_kernel(w_ref, x_ref, gb_ref, res_ref, o_ref, *, eps):
    # Per grid step (channels-first / pixels-on-lanes layout):
    #   w_ref:   (Tc, Cin)  1x1 conv weight tile (torch OIHW squeezed)
    #   x_ref:   (Cin, P)   full activation slab, resident across the grid
    #   gb_ref:  (Tc, 2)    packed [gamma | beta] for this channel tile
    #   res_ref: (Tc, P)    residual tile (x70)
    #   o_ref:   (Tc, P)    output tile
    w = w_ref[...]
    x = x_ref[...]

    # 1x1 conv == channel matmul on the MXU: (Tc, Cin) @ (Cin, P) -> (Tc, P).
    y = jnp.dot(w, x, preferred_element_type=jnp.float32)

    # Training-mode BN statistics for this tile's channels over ALL pixels.
    # Single pass: sum & sum-of-squares (lane reductions -> XLU slot), f32.
    inv_p = 1.0 / y.shape[1]
    s1 = jnp.sum(y, axis=1, keepdims=True)                 # (Tc, 1)
    s2 = jnp.sum(y * y, axis=1, keepdims=True)             # (Tc, 1)
    mean = s1 * inv_p
    var = s2 * inv_p - mean * mean                         # biased variance
    var = jnp.maximum(var, 0.0)                            # guard cancellation
    inv_std = jax.lax.rsqrt(var + eps)

    # Fold BN into one per-channel scale/shift; single FMA-like pass over y,
    # fused with residual add and ReLU.
    gamma = gb_ref[:, 0:1]                                 # (Tc, 1)
    beta = gb_ref[:, 1:2]                                  # (Tc, 1)
    scale = gamma * inv_std                                # (Tc, 1)
    shift = beta - mean * scale                            # (Tc, 1)
    o_ref[...] = jnp.maximum(y * scale + shift + res_ref[...],
                             0.0).astype(o_ref.dtype)


def _pick_cout_tile(cout):
    # Prefer 256-wide channel tiles (grid=(2,) at Cout=512): fewest grid steps
    # while still keeping double-buffer overlap and an even megacore split on
    # v7x.  Fall back to smaller divisors, else the full axis.
    for t in (256, 128, 64, 32, 16, 8):
        if cout % t == 0:
            return t
    return cout


@functools.partial(jax.jit, static_argnames=("eps",))
def conv_bn_add_relu(x76, x70, weight, gamma, beta, *, eps=1e-5):
    """x76: (N, Cin, H, W), x70: (N, Cout, H, W), weight: (Cout, Cin, 1, 1)."""
    n, cin, h, wd = x76.shape
    cout = weight.shape[0]
    p = n * h * wd

    if n == 1:
        # Metadata-only reshapes: NCHW with N == 1 is already (C, H*W) laid
        # out channels-major, so XLA emits bitcasts, not transposes.
        x_cf = x76.reshape(cin, p)                              # (Cin,  P)
        r_cf = x70.reshape(cout, p)                             # (Cout, P)
    else:
        # N > 1 fallback: correct, but performs real transposes and needs the
        # whole (Cin, P) / (Tc, P) slabs VMEM-resident (exact batch stats).
        x_cf = jnp.transpose(x76, (1, 0, 2, 3)).reshape(cin, p)
        r_cf = jnp.transpose(x70, (1, 0, 2, 3)).reshape(cout, p)

    w_mat = weight.reshape(cout, cin)                           # (Cout, Cin)
    gb = jnp.stack([gamma, beta], axis=1)                       # (Cout, 2)

    tc = _pick_cout_tile(cout)
    grid = (cout // tc,)

    cost = pl.CostEstimate(
        flops=2 * p * cin * cout + 5 * p * cout,
        transcendentals=cout,
        bytes_accessed=4 * (cin * p + cout * cin + 2 * cout * p + 2 * cout),
    )

    out_cf = pl.pallas_call(
        functools.partial(_conv_bn_add_relu_kernel, eps=eps),
        out_shape=jax.ShapeDtypeStruct((cout, p), jnp.float32),
        grid=grid,
        in_specs=[
            pl.BlockSpec((tc, cin), lambda j: (j, 0)),   # weight tile
            pl.BlockSpec((cin, p), lambda j: (0, 0)),    # x: resident, 1 DMA
            pl.BlockSpec((tc, 2), lambda j: (j, 0)),     # packed gamma/beta
            pl.BlockSpec((tc, p), lambda j: (j, 0)),     # residual tile
        ],
        out_specs=pl.BlockSpec((tc, p), lambda j: (j, 0)),
        compiler_params=pltpu.CompilerParams(
            dimension_semantics=("parallel",)),
        cost_estimate=cost,
    )(w_mat, x_cf, gb, r_cf)

    if n == 1:
        return out_cf.reshape(1, cout, h, wd)            # metadata-only
    return jnp.transpose(out_cf.reshape(cout, n, h, wd), (1, 0, 2, 3))


def _reference(x76, x70, weight, gamma, beta, eps=1e-5):
    # Pure-JAX reference of the same training-mode-BN forward pass.
    n, cin, h, wd = x76.shape
    cout = weight.shape[0]
    x_cf = jnp.transpose(x76, (1, 0, 2, 3)).reshape(cin, -1)
    y = jnp.dot(weight.reshape(cout, cin), x_cf,
                preferred_element_type=jnp.float32)
    mean = jnp.mean(y, axis=1, keepdims=True)
    var = jnp.mean((y - mean) ** 2, axis=1, keepdims=True)
    y = (y - mean) / jnp.sqrt(var + eps) * gamma[:, None] + beta[:, None]
    y = jnp.transpose(y.reshape(cout, n, h, wd), (1, 0, 2, 3)) + x70
    return jnp.maximum(y, 0.0)


if __name__ == "__main__":
    # Exact module shapes: 1x1 conv 128 -> 512 on a 28x28 feature map.
    N, CIN, COUT, H, W = 1, 128, 512, 28, 28

    key = jax.random.PRNGKey(0)
    k1, k2, k3, k4, k5 = jax.random.split(key, 5)

    x76 = jax.random.normal(k1, (N, CIN, H, W), dtype=jnp.float32)
    x70 = jax.random.normal(k2, (N, COUT, H, W), dtype=jnp.float32)
    weight = jax.random.normal(k3, (COUT, CIN, 1, 1), dtype=jnp.float32) * 0.05
    gamma = jax.random.normal(k4, (COUT,), dtype=jnp.float32) * 0.1 + 1.0
    beta = jax.random.normal(k5, (COUT,), dtype=jnp.float32) * 0.1

    out = jax.block_until_ready(conv_bn_add_relu(x76, x70, weight, gamma, beta))

    ref = _reference(x76, x70, weight, gamma, beta)
    assert out.shape == (N, COUT, H, W)
    assert jnp.allclose(out, ref, atol=1e-3, rtol=1e-3), "mismatch vs reference"

    print("KERNEL_OK")
</pallas_src>

<mosaic_0001>
module attributes {stable_mosaic.version = 11 : i64} {
  func.func @_conv_bn_add_relu_kernel(%arg0: i32, %arg1: memref<256x128xf32, #tpu.memory_space<vmem>>, %arg2: memref<128x784xf32, #tpu.memory_space<vmem>>, %arg3: memref<256x2xf32, #tpu.memory_space<vmem>>, %arg4: memref<256x784xf32, #tpu.memory_space<vmem>>, %arg5: memref<256x784xf32, #tpu.memory_space<vmem>>) attributes {dimension_semantics = [#tpu.dimension_semantics<parallel>], iteration_bounds = array<i64: 2>, scalar_prefetch = 0 : i64, scratch_operands = 0 : i64, tpu.core_type = #tpu.core_type<tc>, window_params = [{transform_indices = @transform_0, window_bounds = array<i64: 256, 128>}, {pipeline_mode = #tpu.pipeline_mode<synchronous>, transform_indices = @transform_1, window_bounds = array<i64: 128, 784>}, {transform_indices = @transform_2, window_bounds = array<i64: 256, 2>}, {transform_indices = @transform_3, window_bounds = array<i64: 256, 784>}, {transform_indices = @transform_4, window_bounds = array<i64: 256, 784>}]} {
    %c0 = arith.constant 0 : index
    %c0_0 = arith.constant 0 : index
    %0 = vector.load %arg1[%c0, %c0_0] : memref<256x128xf32, #tpu.memory_space<vmem>>, vector<256x128xf32>
    %c0_1 = arith.constant 0 : index
    %c0_2 = arith.constant 0 : index
    %1 = vector.load %arg2[%c0_1, %c0_2] : memref<128x784xf32, #tpu.memory_space<vmem>>, vector<128x784xf32>
    %cst = arith.constant dense<0.000000e+00> : vector<256x784xf32>
    %2 = tpu.matmul %0, %1, %cst {dimension_numbers = #tpu.dot_dimension_numbers<[1], [0], [0], [1], [0, 0, 1, 1], [], []>} : vector<256x128xf32>, vector<128x784xf32>, vector<256x784xf32> -> vector<256x784xf32>
    %cst_3 = arith.constant dense<0.000000e+00> : vector<256xf32>
    %3 = vector.multi_reduction <add>, %2, %cst_3 [1] : vector<256x784xf32> to vector<256xf32>
    %4 = vector.shape_cast %3 : vector<256xf32> to vector<256x1xf32>
    %5 = arith.mulf %2, %2 : vector<256x784xf32>
    %cst_4 = arith.constant dense<0.000000e+00> : vector<256xf32>
    %6 = vector.multi_reduction <add>, %5, %cst_4 [1] : vector<256x784xf32> to vector<256xf32>
    %7 = vector.shape_cast %6 : vector<256xf32> to vector<256x1xf32>
    %cst_5 = arith.constant 0.00127551018 : f32
    %8 = vector.broadcast %cst_5 : f32 to vector<256x1xf32>
    %9 = arith.mulf %4, %8 : vector<256x1xf32>
    %cst_6 = arith.constant 0.00127551018 : f32
    %10 = vector.broadcast %cst_6 : f32 to vector<256x1xf32>
    %11 = arith.mulf %7, %10 : vector<256x1xf32>
    %12 = arith.mulf %9, %9 : vector<256x1xf32>
    %13 = arith.subf %11, %12 : vector<256x1xf32>
    %cst_7 = arith.constant 0.000000e+00 : f32
    %14 = vector.broadcast %cst_7 : f32 to vector<256x1xf32>
    %15 = arith.maximumf %13, %14 : vector<256x1xf32>
    %cst_8 = arith.constant 9.99999974E-6 : f32
    %16 = vector.broadcast %cst_8 : f32 to vector<256x1xf32>
    %17 = arith.addf %15, %16 : vector<256x1xf32>
    %18 = math.rsqrt %17 : vector<256x1xf32>
    %c0_9 = arith.constant 0 : index
    %c0_10 = arith.constant 0 : index
    %19 = vector.load %arg3[%c0_9, %c0_10] : memref<256x2xf32, #tpu.memory_space<vmem>>, vector<256x1xf32>
    %c0_11 = arith.constant 0 : index
    %c1 = arith.constant 1 : index
    %20 = vector.load %arg3[%c0_11, %c1] : memref<256x2xf32, #tpu.memory_space<vmem>>, vector<256x1xf32>
    %21 = arith.mulf %19, %18 : vector<256x1xf32>
    %22 = arith.mulf %9, %21 : vector<256x1xf32>
    %23 = arith.subf %20, %22 : vector<256x1xf32>
    %24 = vector.broadcast %21 : vector<256x1xf32> to vector<256x784xf32>
    %25 = arith.mulf %2, %24 : vector<256x784xf32>
    %26 = vector.broadcast %23 : vector<256x1xf32> to vector<256x784xf32>
    %27 = arith.addf %25, %26 : vector<256x784xf32>
    %c0_12 = arith.constant 0 : index
    %c0_13 = arith.constant 0 : index
    %28 = vector.load %arg4[%c0_12, %c0_13] : memref<256x784xf32, #tpu.memory_space<vmem>>, vector<256x784xf32>
    %29 = arith.addf %27, %28 : vector<256x784xf32>
    %cst_14 = arith.constant 0.000000e+00 : f32
    %30 = vector.broadcast %cst_14 : f32 to vector<256x784xf32>
    %31 = arith.maximumf %29, %30 : vector<256x784xf32>
    %c0_15 = arith.constant 0 : index
    %c0_16 = arith.constant 0 : index
    %32 = vector.load %arg5[%c0_15, %c0_16] : memref<256x784xf32, #tpu.memory_space<vmem>>, vector<256x784xf32>
    tpu.vector_store %arg5[%c0_15, %c0_16], %31 {strides = array<i32>} : memref<256x784xf32, #tpu.memory_space<vmem>>, vector<256x784xf32>,
    return
  }
  func.func @transform_0(%arg0: i32) -> (i32, i32) {
    %c0_i32 = arith.constant 0 : i32
    %c0_i32_0 = arith.constant 0 : i32
    return %arg0, %c0_i32 : i32, i32
  }
  func.func @transform_1(%arg0: i32) -> (i32, i32) {
    %c0_i32 = arith.constant 0 : i32
    %c0_i32_0 = arith.constant 0 : i32
    %c0_i32_1 = arith.constant 0 : i32
    return %c0_i32, %c0_i32_0 : i32, i32
  }
  func.func @transform_2(%arg0: i32) -> (i32, i32) {
    %c0_i32 = arith.constant 0 : i32
    %c0_i32_0 = arith.constant 0 : i32
    return %arg0, %c0_i32 : i32, i32
  }
  func.func @transform_3(%arg0: i32) -> (i32, i32) {
    %c0_i32 = arith.constant 0 : i32
    %c0_i32_0 = arith.constant 0 : i32
    return %arg0, %c0_i32 : i32, i32
  }
  func.func @transform_4(%arg0: i32) -> (i32, i32) {
    %c0_i32 = arith.constant 0 : i32
    %c0_i32_0 = arith.constant 0 : i32
    return %arg0, %c0_i32 : i32, i32
  }
}

</mosaic_0001>

<bundles_post_ra>
// kernel: conv_bn_add_relu.1
= control target key start
LH: loop header
LB: loop body
LE: loop exit
PB: predicated region body
PF: predicated region fallthrough
CT: control target
= control target key end

     0   :  { %s4822_s15 = smov 0   ;;  %s9077_s0 = inlined_call_operand.vmem [shape: f32[512,128], index: 0, kind: input, shape index: {}]   ;;  %s9078_s1 = inlined_call_operand.vmem [shape: f32[128,784], index: 1, kind: input, shape index: {}]   ;;  %s9079_s2 = inlined_call_operand.vmem [shape: f32[512,2], index: 2, kind: input, shape index: {}]   ;;  %s9080_s3 = inlined_call_operand.vmem [shape: f32[512,784], index: 3, kind: input, shape index: {}]   ;;  %s9081_s4 = inlined_call_operand.vmem [shape: f32[512,784], index: 4, kind: output, shape index: {}]  }
   0x1 LB: > { %s4417_s16 = sadd.s32 4294967295, %s4791_s15   ;;  %p4421_p0 = scmp.ge.s32.totalorder %s4791_s15, 1  ;;  %s4791_s15 = sphi %s4822_s15, %s14_s15  }
   0x2   : > { %p186_p1 = scmp.lt.s32.totalorder %s4791_s15, 3 }
   0x4   : > { %p187_p2 = pnand %p4421_p0, %p186_p1 }
   0x6   : > { %190 = sbr.rel (%p187_p2) target bundleno = 1049 (0x419), region = 36 }
   0xd   : > { %v283_v0 = vld [vmem:[%s9078_s1 + $0x8] sm:$0xff]  ;;  %v290_v1 = vld [vmem:[%s9078_s1 + $0x40] sm:$0xff]  ;;  %v289_v4 = vld [vmem:[%s9078_s1 + $0x38] sm:$0xff]  ;;  %v4793_v7 = vmov 0.0   ;;  %s4422_s11 = sshll.u32 %s4417_s16, 5  ;;  %vm1395_vm0 = vcmask 130048  }
   0xe   : > { %v282_v2 = vld [vmem:[%s9078_s1] sm:$0xff]  ;;  %v4560_v3 = vpack.c.bf16 %v290_v1, %v283_v0  ;;  %v297_v5 = vld [vmem:[%s9078_s1 + $0x78] sm:$0xff]  ;;  %v304_v6 = vld [vmem:[%s9078_s1 + $0xb0] sm:$0xff]  ;;  %458 = vmatprep.mubr.f32.mxu0 %v4793_v7  ;;  %602 = vmatprep.mubr.f32.mxu1 %v4793_v7  ;;  %p225_p3 = scmp.lt.s32.totalorder %s4422_s11, 63 }
   0xf   : > { %v4562_v8 = vpack.c.bf16 %v289_v4, %v282_v2  ;;  %v4564_v9 = vpack.c.bf16 %v304_v6, %v297_v5  ;;  %v296_v10 = vld [vmem:[%s9078_s1 + $0x70] sm:$0xff]  ;;  %v303_v11 = vld [vmem:[%s9078_s1 + $0xa8] sm:$0xff]  ;;  %v318_v13 = vld [vmem:[%s9078_s1 + $0x120] sm:$0xff] }
  0x10   : > { %v311_v12 = vld [vmem:[%s9078_s1 + $0xe8] sm:$0xff]  ;;  %4561 = vmatprep.subr.bf16.mxu0 %v4560_v3  ;;  %4688 = vmatprep.subr.bf16.mxu1 %v4560_v3  ;;  %v4566_v14 = vpack.c.bf16 %v303_v11, %v296_v10  ;;  %v310_v16 = vld [vmem:[%s9078_s1 + $0xe0] sm:$0xff]  ;;  %v317_v17 = vld [vmem:[%s9078_s1 + $0x118] sm:$0xff]  ;;  %s10139_s11 = smov (!%p225_p3, %s4422_s11), 63 }
  0x11   : > { %4563 = vmatpush1.bf16.msra.mxu0 %v4562_v8  ;;  %4696 = vmatpush1.bf16.msra.mxu1 %v4562_v8  ;;  %v4568_v15 = vpack.c.bf16 %v318_v13, %v311_v12  ;;  %v325_v18 = vld [vmem:[%s9078_s1 + $0x158] sm:$0xff]  ;;  %v332_v19 = vld [vmem:[%s9078_s1 + $0x190] sm:$0xff]  ;;  %v4570_v20 = vpack.c.bf16 %v317_v17, %v310_v16  ;;  %v331_v23 = vld [vmem:[%s9078_s1 + $0x188] sm:$0xff]  ;;  %s4423_s7 = sshll.u32 %s10139_s11, 3  ;;  %s4704_s21 = smul.u32 56, %s10139_s11 }
  0x12   : > { %4565 = vmatprep.subr.bf16.mxu0 %v4564_v9  ;;  %4689 = vmatprep.subr.bf16.mxu1 %v4564_v9  ;;  %v4572_v21 = vpack.c.bf16 %v332_v19, %v325_v18  ;;  %v324_v22 = vld [vmem:[%s9078_s1 + $0x150] sm:$0xff]  ;;  %v339_v24 = vld [vmem:[%s9078_s1 + $0x1c8] sm:$0xff]  ;;  %v346_v25 = vld [vmem:[%s9078_s1 + $0x200] sm:$0xff]  ;;  %s4944_s17 = scalar_lea.vmem %s9077_s0, %s4423_s7  ;;  %s7370_s16 = scalar_lea.vmem %s9079_s2, %s4423_s7 }
  0x13   : > { %v4574_v26 = vpack.c.bf16 %v331_v23, %v324_v22  ;;  %v4576_v27 = vpack.c.bf16 %v346_v25, %v339_v24  ;;  %v338_v28 = vld [vmem:[%s9078_s1 + $0x1c0] sm:$0xff]  ;;  %v345_v29 = vld [vmem:[%s9078_s1 + $0x1f8] sm:$0xff]  ;;  %v360_v31 = vld [vmem:[%s9078_s1 + $0x270] sm:$0xff]  ;;  %s4795_s7 = smov 1   ;;  %s8344_s24 = scalar_lea.vmem %s9080_s3, %s4704_s21 }
  0x14   : > { %v353_v30 = vld [vmem:[%s9078_s1 + $0x238] sm:$0xff]  ;;  %v4578_v32 = vpack.c.bf16 %v345_v29, %v338_v28  ;;  %v352_v34 = vld [vmem:[%s9078_s1 + $0x230] sm:$0xff]  ;;  %v359_v35 = vld [vmem:[%s9078_s1 + $0x268] sm:$0xff]  ;;  %s8382_s27 = scalar_lea.vmem %s9081_s4, %s4704_s21 }
  0x15   : > { %4567 = vmatpush1.bf16.msra.mxu0 %v4566_v14  ;;  %4697 = vmatpush1.bf16.msra.mxu1 %v4566_v14  ;;  %v4580_v33 = vpack.c.bf16 %v360_v31, %v353_v30  ;;  %v367_v36 = vld [vmem:[%s9078_s1 + $0x2a8] sm:$0xff]  ;;  %v374_v37 = vld [vmem:[%s9078_s1 + $0x2e0] sm:$0xff]  ;;  %v4582_v38 = vpack.c.bf16 %v359_v35, %v352_v34  ;;  %v373_v41 = vld [vmem:[%s9078_s1 + $0x2d8] sm:$0xff] }
  0x16   : > { %4569 = vmatprep.subr.bf16.mxu0 %v4568_v15  ;;  %4690 = vmatprep.subr.bf16.mxu1 %v4568_v15  ;;  %v4584_v39 = vpack.c.bf16 %v374_v37, %v367_v36  ;;  %v366_v40 = vld [vmem:[%s9078_s1 + $0x2a0] sm:$0xff]  ;;  %v381_v42 = vld [vmem:[%s9078_s1 + $0x318] sm:$0xff]  ;;  %v388_v43 = vld [vmem:[%s9078_s1 + $0x350] sm:$0xff] }
  0x17   : > { %v4586_v44 = vpack.c.bf16 %v373_v41, %v366_v40  ;;  %v4588_v45 = vpack.c.bf16 %v388_v43, %v381_v42  ;;  %v380_v46 = vld [vmem:[%s9078_s1 + $0x310] sm:$0xff]  ;;  %v387_v47 = vld [vmem:[%s9078_s1 + $0x348] sm:$0xff]  ;;  %v285_v48 = vld [vmem:[%s9078_s1 + $0x18] sm:$0xff] }
  0x18   : > { %v292_v49 = vld [vmem:[%s9078_s1 + $0x50] sm:$0xff]  ;;  %v4590_v50 = vpack.c.bf16 %v387_v47, %v380_v46  ;;  %v291_v53 = vld [vmem:[%s9078_s1 + $0x48] sm:$0xff]  ;;  %v306_v55 = vld [vmem:[%s9078_s1 + $0xc0] sm:$0xff] }
  0x19   : > { %4571 = vmatpush1.bf16.msra.mxu0 %v4570_v20  ;;  %4698 = vmatpush1.bf16.msra.mxu1 %v4570_v20  ;;  %v4592_v51 = vpack.c.bf16 %v292_v49, %v285_v48  ;;  %v284_v52 = vld [vmem:[%s9078_s1 + $0x10] sm:$0xff]  ;;  %v299_v54 = vld [vmem:[%s9078_s1 + $0x88] sm:$0xff]  ;;  %v294_v57 = vld [vmem:[%s9078_s1 + $0x60] sm:$0xff] }
  0x1a   : > { %4573 = vmatprep.subr.bf16.mxu0 %v4572_v21  ;;  %4691 = vmatprep.subr.bf16.mxu1 %v4572_v21  ;;  %v287_v56 = vld [vmem:[%s9078_s1 + $0x28] sm:$0xff]  ;;  %v286_v59 = vld [vmem:[%s9078_s1 + $0x20] sm:$0xff]  ;;  %v293_v60 = vld [vmem:[%s9078_s1 + $0x58] sm:$0xff]  ;;  %v4594_v63 = vpack.c.bf16 %v291_v53, %v284_v52  ;;  %v4596_v0 = vpack.c.bf16 %v306_v55, %v299_v54 }
  0x1b   : > { %v4624_v58 = vpack.c.bf16 %v294_v57, %v287_v56  ;;  %v4971_v61 = vld [vmem:[%s4944_s17] sm:$0xff]  ;;  %v305_v2 = vld [vmem:[%s9078_s1 + $0xb8] sm:$0xff]  ;;  %v320_v4 = vld [vmem:[%s9078_s1 + $0x130] sm:$0xff]  ;;  %v4626_v5 = vpack.c.bf16 %v293_v60, %v286_v59 }
  0x1c   : > { %v4974_v62 = vld [vmem:[%s4944_s17 + $0xc0] sm:$0xff]  ;;  %v313_v3 = vld [vmem:[%s9078_s1 + $0xf8] sm:$0xff]  ;;  %v308_v8 = vld [vmem:[%s9078_s1 + $0xd0] sm:$0xff] }
  0x1d   : > { %4575 = vmatpush1.bf16.msra.mxu0 %v4574_v26  ;;  %4699 = vmatpush1.bf16.msra.mxu1 %v4574_v26  ;;  %v298_v1 = vld [vmem:[%s9078_s1 + $0x80] sm:$0xff]  ;;  %v301_v6 = vld [vmem:[%s9078_s1 + $0x98] sm:$0xff]  ;;  %v4998_v9 = vld [vmem:[%s4944_s17 + $0x8] sm:$0xff]  ;;  %v4600_v12 = vpack.c.bf16 %v320_v4, %v313_v3 }
  0x1e   : > { %4577 = vmatprep.subr.bf16.mxu0 %v4576_v27  ;;  %4692 = vmatprep.subr.bf16.mxu1 %v4576_v27  ;;  %v5001_v10 = vld [vmem:[%s4944_s17 + $0xc8] sm:$0xff]  ;;  %v4598_v11 = vpack.c.bf16 %v305_v2, %v298_v1  ;;  %v312_v13 = vld [vmem:[%s9078_s1 + $0xf0] sm:$0xff]  ;;  %v334_v16 = vld [vmem:[%s9078_s1 + $0x1a0] sm:$0xff]  ;;  %v4628_v17 = vpack.c.bf16 %v308_v8, %v301_v6 }
  0x1f   : > { %v319_v14 = vld [vmem:[%s9078_s1 + $0x128] sm:$0xff]  ;;  %v300_v18 = vld [vmem:[%s9078_s1 + $0x90] sm:$0xff]  ;;  %v326_v24 = vld [vmem:[%s9078_s1 + $0x160] sm:$0xff] }
  0x20   : > { %v327_v15 = vld [vmem:[%s9078_s1 + $0x168] sm:$0xff]  ;;  %v5026_v20 = vld [vmem:[%s4944_s17 + $0x10] sm:$0xff]  ;;  %v4602_v22 = vpack.c.bf16 %v319_v14, %v312_v13  ;;  %v333_v25 = vld [vmem:[%s9078_s1 + $0x198] sm:$0xff] }
  0x21   : > { %4579 = vmatpush1.bf16.msra.mxu0 %v4578_v32  ;;  %4700 = vmatpush1.bf16.msra.mxu1 %v4578_v32  ;;  %v307_v19 = vld [vmem:[%s9078_s1 + $0xc8] sm:$0xff]  ;;  %v5029_v21 = vld [vmem:[%s4944_s17 + $0xd0] sm:$0xff]  ;;  %v4604_v23 = vpack.c.bf16 %v334_v16, %v327_v15  ;;  %v341_v26 = vld [vmem:[%s9078_s1 + $0x1d8] sm:$0xff] }
  0x22   : > { %4581 = vmatprep.subr.bf16.mxu0 %v4580_v33  ;;  %4693 = vmatprep.subr.bf16.mxu1 %v4580_v33  ;;  %v348_v27 = vld [vmem:[%s9078_s1 + $0x210] sm:$0xff]  ;;  %v4630_v28 = vpack.c.bf16 %v307_v19, %v300_v18  ;;  %v315_v29 = vld [vmem:[%s9078_s1 + $0x108] sm:$0xff]  ;;  %v322_v30 = vld [vmem:[%s9078_s1 + $0x140] sm:$0xff]  ;;  %v4606_v33 = vpack.c.bf16 %v333_v25, %v326_v24 }
  0x23   : > { %v5054_v31 = vld [vmem:[%s4944_s17 + $0x18] sm:$0xff]  ;;  %v4608_v34 = vpack.c.bf16 %v348_v27, %v341_v26  ;;  %v340_v35 = vld [vmem:[%s9078_s1 + $0x1d0] sm:$0xff]  ;;  %v347_v36 = vld [vmem:[%s9078_s1 + $0x208] sm:$0xff] }
  0x24   : > { %v5057_v32 = vld [vmem:[%s4944_s17 + $0xd8] sm:$0xff]  ;;  %v355_v37 = vld [vmem:[%s9078_s1 + $0x248] sm:$0xff]  ;;  %v314_v40 = vld [vmem:[%s9078_s1 + $0x100] sm:$0xff] }
  0x25   : > { %4583 = vmatpush1.bf16.msra.mxu0 %v4582_v38  ;;  %4701 = vmatpush1.bf16.msra.mxu1 %v4582_v38  ;;  %v362_v38 = vld [vmem:[%s9078_s1 + $0x280] sm:$0xff]  ;;  %v321_v41 = vld [vmem:[%s9078_s1 + $0x138] sm:$0xff]  ;;  %v376_v49 = vld [vmem:[%s9078_s1 + $0x2f0] sm:$0xff] }
  0x26   : > { %4585 = vmatprep.subr.bf16.mxu0 %v4584_v39  ;;  %4694 = vmatprep.subr.bf16.mxu1 %v4584_v39  ;;  %v4632_v39 = vpack.c.bf16 %v322_v30, %v315_v29  ;;  %v5082_v42 = vld [vmem:[%s4944_s17 + $0x20] sm:$0xff]  ;;  %v361_v47 = vld [vmem:[%s9078_s1 + $0x278] sm:$0xff]  ;;  %v336_v52 = vld [vmem:[%s9078_s1 + $0x1b0] sm:$0xff] }
  0x27   : > { %v5085_v43 = vld [vmem:[%s4944_s17 + $0xe0] sm:$0xff]  ;;  %v369_v48 = vld [vmem:[%s9078_s1 + $0x2b8] sm:$0xff]  ;;  %v5110_v53 = vld [vmem:[%s4944_s17 + $0x28] sm:$0xff] }
  0x28   : > { %v354_v46 = vld [vmem:[%s9078_s1 + $0x240] sm:$0xff]  ;;  %v5113_v54 = vld [vmem:[%s4944_s17 + $0xe8] sm:$0xff]  ;;  %v4616_v56 = vpack.c.bf16 %v376_v49, %v369_v48  ;;  %v368_v57 = vld [vmem:[%s9078_s1 + $0x2b0] sm:$0xff] }
  0x29   : > { %4587 = vmatpush1.bf16.msra.mxu0 %v4586_v44  ;;  %4702 = vmatpush1.bf16.msra.mxu1 %v4586_v44  ;;  %v4610_v44 = vpack.c.bf16 %v347_v36, %v340_v35  ;;  %v4614_v55 = vpack.c.bf16 %v361_v47, %v354_v46  ;;  %v383_v59 = vld [vmem:[%s9078_s1 + $0x328] sm:$0xff]  ;;  %v390_v60 = vld [vmem:[%s9078_s1 + $0x360] sm:$0xff]  ;;  %v5138_v2 = vld [vmem:[%s4944_s17 + $0x30] sm:$0xff] }
  0x2a   : > { %4589 = vmatprep.subr.bf16.mxu0 %v4588_v45  ;;  %4695 = vmatprep.subr.bf16.mxu1 %v4588_v45  ;;  %v4612_v45 = vpack.c.bf16 %v362_v38, %v355_v37  ;;  %v335_v1 = vld [vmem:[%s9078_s1 + $0x1a8] sm:$0xff]  ;;  %v5141_v3 = vld [vmem:[%s4944_s17 + $0xf0] sm:$0xff]  ;;  %v382_v6 = vld [vmem:[%s9078_s1 + $0x320] sm:$0xff] }
  0x2b   : > { %v389_v8 = vld [vmem:[%s9078_s1 + $0x358] sm:$0xff]  ;;  %v343_v14 = vld [vmem:[%s9078_s1 + $0x1e8] sm:$0xff]  ;;  %v350_v15 = vld [vmem:[%s9078_s1 + $0x220] sm:$0xff] }
  0x2c   : > { %v5166_v16 = vld [vmem:[%s4944_s17 + $0x38] sm:$0xff]  ;;  %v4622_v18 = vpack.c.bf16 %v389_v8, %v382_v6  ;;  %v4640_v24 = vpack.c.bf16 %v350_v15, %v343_v14  ;;  %v342_v25 = vld [vmem:[%s9078_s1 + $0x1e0] sm:$0xff]  ;;  %v316_v29 = vld [vmem:[%s9078_s1 + $0x110] sm:$0xff] }
  0x2d   : > { %4591 = vmatpush1.bf16.msra.mxu0 %v4590_v50  ;;  %4703 = vmatpush1.bf16.msra.mxu1 %v4590_v50  ;;  %v4634_v50 = vpack.c.bf16 %v321_v41, %v314_v40  ;;  %v349_v26 = vld [vmem:[%s9078_s1 + $0x218] sm:$0xff]  ;;  %v5188_v27 = vld [vmem:[%s4944_s17 + $0x40] sm:$0xff]  ;;  %v323_v35 = vld [vmem:[%s9078_s1 + $0x148] sm:$0xff] }
  0x2e   : > { %4593 = vmatprep.subr.bf16.mxu1 %v4592_v51  ;;  %4625 = vmatprep.subr.bf16.mxu0 %v4624_v58  ;;  %v329_v51 = vld [vmem:[%s9078_s1 + $0x178] sm:$0xff]  ;;  %v375_v58 = vld [vmem:[%s9078_s1 + $0x2e8] sm:$0xff]  ;;  %v4642_v30 = vpack.c.bf16 %v349_v26, %v342_v25  ;;  %v356_v36 = vld [vmem:[%s9078_s1 + $0x250] sm:$0xff]  ;;  %v4664_v40 = vpack.c.bf16 %v323_v35, %v316_v29 }
  0x2f   : > { %v4618_v4 = vpack.c.bf16 %v375_v58, %v368_v57  ;;  %v363_v37 = vld [vmem:[%s9078_s1 + $0x288] sm:$0xff]  ;;  %v330_v41 = vld [vmem:[%s9078_s1 + $0x180] sm:$0xff]  ;;  %v337_v47 = vld [vmem:[%s9078_s1 + $0x1b8] sm:$0xff] }
  0x30   : > { %459 = vmatmul.mubr.f32.vlgmr.msra.gmra.mrb[0].mxu0 %v4971_v61  ;;  %603 = vmatmul.mubr.f32.vlgmr.msra.gmra.mrb[0].mxu1 %v4974_v62  ;;  %v5213_v38 = vld [vmem:[%s4944_s17 + $0x48] sm:$0xff]  ;;  %v378_v46 = vld [vmem:[%s9078_s1 + $0x300] sm:$0xff]  ;;  %v377_v49 = vld [vmem:[%s9078_s1 + $0x2f8] sm:$0xff] }
  0x31   : > { %4595 = vmatpush1.bf16.msra.mxu1 %v4594_v63  ;;  %464 = vmatprep.mubr.f32.mxu0 %v4793_v7  ;;  %v4636_v63 = vpack.c.bf16 %v336_v52, %v329_v51  ;;  %v370_v48 = vld [vmem:[%s9078_s1 + $0x2c0] sm:$0xff]  ;;  %v4668_v52 = vpack.c.bf16 %v337_v47, %v330_v41  ;;  %v392_v57 = vld [vmem:[%s9078_s1 + $0x370] sm:$0xff]  ;;  %v365_v8 = vld [vmem:[%s9078_s1 + $0x298] sm:$0xff] }
  0x32   : > { %608 = vmatprep.mubr.f32.mxu1 %v4793_v7  ;;  %4597 = vmatprep.subr.bf16.mxu1 %v4596_v0  ;;  %v328_v0 = vld [vmem:[%s9078_s1 + $0x170] sm:$0xff]  ;;  %v358_v6 = vld [vmem:[%s9078_s1 + $0x260] sm:$0xff]  ;;  %v379_v14 = vld [vmem:[%s9078_s1 + $0x308] sm:$0xff] }
  0x33   : > { %4627 = vmatpush1.bf16.msra.mxu0 %v4626_v5  ;;  %v4620_v5 = vpack.c.bf16 %v390_v60, %v383_v59  ;;  %v4638_v13 = vpack.c.bf16 %v335_v1, %v328_v0  ;;  %v384_v58 = vld [vmem:[%s9078_s1 + $0x330] sm:$0xff]  ;;  %v391_v59 = vld [vmem:[%s9078_s1 + $0x368] sm:$0xff]  ;;  %v5264_v0 = vld [vmem:[%s4944_s17 + $0x58] sm:$0xff] }
  0x34   : > { %465 = vmatmul.mubr.f32.gmra.mrb[2].mxu0 %v4998_v9  ;;  %609 = vmatmul.mubr.f32.gmra.mrb[2].mxu1 %v5001_v10  ;;  %v344_v60 = vld [vmem:[%s9078_s1 + $0x1f0] sm:$0xff]  ;;  %v5290_v15 = vld [vmem:[%s4944_s17 + $0x68] sm:$0xff]  ;;  %v5310_v25 = vld [vmem:[%s4944_s17 + $0x78] sm:$0xff] }
  0x35   : > { %4599 = vmatpush1.bf16.msra.mxu1 %v4598_v11  ;;  %470 = vmatprep.mubr.f32.mxu0 %v4793_v7  ;;  %v288_v11 = vld [vmem:[%s9078_s1 + $0x30] sm:$0xff]  ;;  %v5317_v26 = vld [vmem:[%s4944_s17 + $0x80] sm:$0xff] }
  0x36   : > { %614 = vmatprep.mubr.f32.mxu1 %v4793_v7  ;;  %4601 = vmatprep.subr.bf16.mxu1 %v4600_v12  ;;  %v295_v12 = vld [vmem:[%s9078_s1 + $0x68] sm:$0xff]  ;;  %v5331_v29 = vld [vmem:[%s4944_s17 + $0x90] sm:$0xff] }
  0x37   : > { %4629 = vmatprep.subr.bf16.mxu0 %v4628_v17  ;;  %v5169_v17 = vld [vmem:[%s4944_s17 + $0xf8] sm:$0xff]  ;;  %v4656_v19 = vpack.c.bf16 %v295_v12, %v288_v11  ;;  %v5277_v11 = vld [vmem:[%s4944_s17 + $0x60] sm:$0xff]  ;;  %v4676_v12 = vpack.c.bf16 %v365_v8, %v358_v6  ;;  %v5359_v35 = vld [vmem:[%s4944_s17 + $0xb0] sm:$0xff] }
  0x38   : > { %471 = vmatmul.mubr.f32.gmra.mrb[4].mxu0 %v5026_v20  ;;  %615 = vmatmul.mubr.f32.gmra.mrb[4].mxu1 %v5029_v21 }
  0x39   : > { %4603 = vmatpush1.bf16.msra.mxu1 %v4602_v22  ;;  %476 = vmatprep.mubr.f32.mxu0 %v4793_v7  ;;  %v302_v22 = vld [vmem:[%s9078_s1 + $0xa0] sm:$0xff] }
  0x3a   : > { %620 = vmatprep.mubr.f32.mxu1 %v4793_v7  ;;  %4605 = vmatprep.subr.bf16.mxu1 %v4604_v23  ;;  %v309_v23 = vld [vmem:[%s9078_s1 + $0xd8] sm:$0xff] }
  0x3b   : > { %4631 = vmatpush1.bf16.msra.mxu0 %v4630_v28  ;;  %v4660_v28 = vpack.c.bf16 %v309_v23, %v302_v22  ;;  %v393_v22 = vld [vmem:[%s9078_s1 + $0x378] sm:$0xff]  ;;  %v5303_v23 = vld [vmem:[%s4944_s17 + $0x70] sm:$0xff] }
  0x3c   : > { %477 = vmatmul.mubr.f32.gmra.mrb[6].mxu0 %v5054_v31  ;;  %621 = vmatmul.mubr.f32.gmra.mrb[6].mxu1 %v5057_v32 }
  0x3d   : > { %4607 = vmatpush1.bf16.msra.mxu1 %v4606_v33  ;;  %482 = vmatprep.mubr.f32.mxu0 %v4793_v7  ;;  %v357_v33 = vld [vmem:[%s9078_s1 + $0x258] sm:$0xff] }
  0x3e   : > { %626 = vmatprep.mubr.f32.mxu1 %v4793_v7  ;;  %4609 = vmatprep.subr.bf16.mxu1 %v4608_v34  ;;  %v364_v34 = vld [vmem:[%s9078_s1 + $0x290] sm:$0xff] }
  0x3f   : > { %4633 = vmatprep.subr.bf16.mxu0 %v4632_v39  ;;  %v4644_v39 = vpack.c.bf16 %v364_v34, %v357_v33  ;;  %v5345_v33 = vld [vmem:[%s4944_s17 + $0xa0] sm:$0xff]  ;;  %v5352_v34 = vld [vmem:[%s4944_s17 + $0xa8] sm:$0xff] }
  0x40   : > { %483 = vmatmul.mubr.f32.gmra.mrb[8].mxu0 %v5082_v42  ;;  %627 = vmatmul.mubr.f32.gmra.mrb[8].mxu1 %v5085_v43 }
  0x41   : > { %4611 = vmatpush1.bf16.msra.mxu1 %v4610_v44  ;;  %488 = vmatprep.mubr.f32.mxu0 %v4793_v7  ;;  %v4646_v44 = vpack.c.bf16 %v363_v37, %v356_v36  ;;  %v5366_v36 = vld [vmem:[%s4944_s17 + $0xb8] sm:$0xff] }
  0x42   : > { %632 = vmatprep.mubr.f32.mxu1 %v4793_v7  ;;  %4613 = vmatprep.subr.bf16.mxu1 %v4612_v45  ;;  %v371_v45 = vld [vmem:[%s9078_s1 + $0x2c8] sm:$0xff] }
  0x43   : > { %4635 = vmatpush1.bf16.msra.mxu0 %v4634_v50  ;;  %v5239_v50 = vld [vmem:[%s4944_s17 + $0x50] sm:$0xff]  ;;  %v4648_v51 = vpack.c.bf16 %v378_v46, %v371_v45 }
  0x44   : > { %489 = vmatmul.mubr.f32.gmra.mrb[10].mxu0 %v5110_v53  ;;  %633 = vmatmul.mubr.f32.gmra.mrb[10].mxu1 %v5113_v54 }
  0x45   : > { %4615 = vmatpush1.bf16.msra.mxu1 %v4614_v55  ;;  %494 = vmatprep.mubr.f32.mxu0 %v4793_v7  ;;  %v4650_v55 = vpack.c.bf16 %v377_v49, %v370_v48 }
  0x46   : > { %638 = vmatprep.mubr.f32.mxu1 %v4793_v7  ;;  %4617 = vmatprep.subr.bf16.mxu1 %v4616_v56  ;;  %v385_v56 = vld [vmem:[%s9078_s1 + $0x338] sm:$0xff] }
  0x47   : > { %4637 = vmatprep.subr.bf16.mxu0 %v4636_v63  ;;  %v351_v63 = vld [vmem:[%s9078_s1 + $0x228] sm:$0xff]  ;;  %v4652_v1 = vpack.c.bf16 %v392_v57, %v385_v56 }
  0x48   : > { %495 = vmatmul.mubr.f32.gmra.mrb[12].mxu0 %v5138_v2  ;;  %639 = vmatmul.mubr.f32.gmra.mrb[12].mxu1 %v5141_v3 }
  0x49   : > { %4619 = vmatpush1.bf16.msra.mxu1 %v4618_v4  ;;  %500 = vmatprep.mubr.f32.mxu0 %v4793_v7  ;;  %v4654_v4 = vpack.c.bf16 %v391_v59, %v384_v58 }
  0x4a   : > { %644 = vmatprep.mubr.f32.mxu1 %v4793_v7  ;;  %4621 = vmatprep.subr.bf16.mxu1 %v4620_v5  ;;  %v4672_v5 = vpack.c.bf16 %v351_v63, %v344_v60 }
  0x4b   : > { %4639 = vmatpush1.bf16.msra.mxu0 %v4638_v13  ;;  %v372_v13 = vld [vmem:[%s9078_s1 + $0x2d0] sm:$0xff] }
  0x4c   : > { %501 = vmatmul.mubr.f32.gmra.mrb[14].mxu0 %v5166_v16  ;;  %645 = vmatmul.mubr.f32.gmra.mrb[14].mxu1 %v5169_v17 }
  0x4d   : > { %4623 = vmatpush1.bf16.msra.mxu1 %v4622_v18  ;;  %506 = vmatprep.mubr.f32.mxu0 %v4793_v7  ;;  %v4680_v18 = vpack.c.bf16 %v379_v14, %v372_v13 }
  0x4e   : > { %715 = vmatprep.mubr.f32.mxu1 %v4793_v7  ;;  %4657 = vmatprep.subr.bf16.mxu1 %v4656_v19 }
  0x4f   : > { %4641 = vmatprep.subr.bf16.mxu0 %v4640_v24 }
  0x50   : > { %507 = vmatmul.mubr.f32.gmra.mrb[16].mxu0 %v5188_v27  ;;  %716 = vmatmul.mubr.f32.vlgmr.msra.gmra.mrb[16].mxu1 %v4971_v61 }
  0x51   : > { %4659 = vmatpush3.bf16.msra.mxu1 %v4656_v19  ;;  %512 = vmatprep.mubr.f32.mxu0 %v4793_v7  ;;  %v386_v19 = vld [vmem:[%s9078_s1 + $0x340] sm:$0xff] }
  0x52   : > { %721 = vmatprep.mubr.f32.mxu1 %v4793_v7  ;;  %4661 = vmatprep.subr.bf16.mxu1 %v4660_v28  ;;  %v4684_v24 = vpack.c.bf16 %v393_v22, %v386_v19 }
  0x53   : > { %4643 = vmatpush1.bf16.msra.mxu0 %v4642_v30  ;;  %v5338_v30 = vld [vmem:[%s4944_s17 + $0x98] sm:$0xff] }
  0x54   : > { %513 = vmatmul.mubr.f32.gmra.mrb[18].mxu0 %v5213_v38  ;;  %722 = vmatmul.mubr.f32.gmra.mrb[18].mxu1 %v4998_v9 }
  0x55   : > { %518 = vmatprep.mubr.f32.mxu0 %v4793_v7  ;;  %727 = vmatprep.mubr.f32.mxu1 %v4793_v7 }
  0x56   : > { %4663 = vmatpush3.bf16.msra.mxu1 %v4660_v28  ;;  %4645 = vmatprep.subr.bf16.mxu0 %v4644_v39  ;;  %v5324_v28 = vld [vmem:[%s4944_s17 + $0x88] sm:$0xff] }
  0x57   : > { %4665 = vmatprep.subr.bf16.mxu1 %v4664_v40  ;;  %4647 = vmatpush1.bf16.msra.mxu0 %v4646_v44 }
  0x58   : > { %519 = vmatmul.mubr.f32.gmra.mrb[20].mxu0 %v5239_v50  ;;  %728 = vmatmul.mubr.f32.gmra.mrb[20].mxu1 %v5026_v20 }
  0x59   : > { %524 = vmatprep.mubr.f32.mxu0 %v4793_v7  ;;  %733 = vmatprep.mubr.f32.mxu1 %v4793_v7 }
  0x5a   : > { %4667 = vmatpush3.bf16.msra.mxu1 %v4664_v40  ;;  %4649 = vmatprep.subr.bf16.mxu0 %v4648_v51 }
  0x5b   : > { %4669 = vmatprep.subr.bf16.mxu1 %v4668_v52  ;;  %4651 = vmatpush1.bf16.msra.mxu0 %v4650_v55 }
  0x5c   : > { %525 = vmatmul.mubr.f32.gmra.mrb[22].mxu0 %v5264_v0  ;;  %734 = vmatmul.mubr.f32.gmra.mrb[22].mxu1 %v5054_v31 }
  0x5d   : > { %530 = vmatprep.mubr.f32.mxu0 %v4793_v7  ;;  %739 = vmatprep.mubr.f32.mxu1 %v4793_v7 }
  0x5e   : > { %4671 = vmatpush3.bf16.msra.mxu1 %v4668_v52  ;;  %4653 = vmatprep.subr.bf16.mxu0 %v4652_v1 }
  0x5f   : > { %4655 = vmatpush1.bf16.msra.mxu0 %v4654_v4  ;;  %4673 = vmatprep.subr.bf16.mxu1 %v4672_v5 }
  0x60   : > { %531 = vmatmul.mubr.f32.gmra.mrb[24].mxu0 %v5277_v11  ;;  %740 = vmatmul.mubr.f32.gmra.mrb[24].mxu1 %v5082_v42 }
  0x61   : > { %536 = vmatprep.mubr.f32.mxu0 %v4793_v7  ;;  %745 = vmatprep.mubr.f32.mxu1 %v4793_v7 }
  0x62   : > { %4675 = vmatpush3.bf16.msra.mxu1 %v4672_v5 }
  0x63   : > { %4677 = vmatprep.subr.bf16.mxu1 %v4676_v12 }
  0x64   : > { %537 = vmatmul.mubr.f32.gmra.mrb[26].mxu0 %v5290_v15  ;;  %746 = vmatmul.mubr.f32.gmra.mrb[26].mxu1 %v5110_v53 }
  0x65   : > { %542 = vmatprep.mubr.f32.mxu0 %v4793_v7  ;;  %751 = vmatprep.mubr.f32.mxu1 %v4793_v7 }
  0x66   : > { %4679 = vmatpush3.bf16.msra.mxu1 %v4676_v12 }
  0x67   : > { %4681 = vmatprep.subr.bf16.mxu1 %v4680_v18 }
  0x68   : > { %543 = vmatmul.mubr.f32.gmra.mrb[28].mxu0 %v5303_v23  ;;  %752 = vmatmul.mubr.f32.gmra.mrb[28].mxu1 %v5138_v2 }
  0x69   : > { %548 = vmatprep.mubr.f32.mxu0 %v4793_v7  ;;  %757 = vmatprep.mubr.f32.mxu1 %v4793_v7 }
  0x6a   : > { %4683 = vmatpush3.bf16.msra.mxu1 %v4680_v18 }
  0x6b   : > { %4685 = vmatprep.subr.bf16.mxu1 %v4684_v24 }
  0x6c   : > { %549 = vmatmul.mubr.f32.gmra.mrb[30].mxu0 %v5310_v25  ;;  %758 = vmatmul.mubr.f32.gmra.mrb[30].mxu1 %v5166_v16 }
  0x6d   : > { %554 = vmatprep.mubr.f32.mxu0 %v4793_v7  ;;  %763 = vmatprep.mubr.f32.mxu1 %v4793_v7 }
  0x6e   : > { %4687 = vmatpush3.bf16.msra.mxu1 %v4684_v24 }
  0x70   : > { %555 = vmatmul.mubr.f32.gmra.mrb[32].mxu0 %v5317_v26  ;;  %764 = vmatmul.mubr.f32.gmra.mrb[32].mxu1 %v5188_v27 }
  0x71   : > { %560 = vmatprep.mubr.f32.mxu0 %v4793_v7  ;;  %769 = vmatprep.mubr.f32.mxu1 %v4793_v7 }
  0x74   : > { %561 = vmatmul.mubr.f32.gmra.mrb[34].mxu0 %v5324_v28  ;;  %770 = vmatmul.mubr.f32.gmra.mrb[34].mxu1 %v5213_v38 }
  0x75   : > { %566 = vmatprep.mubr.f32.mxu0 %v4793_v7  ;;  %775 = vmatprep.mubr.f32.mxu1 %v4793_v7 }
  0x78   : > { %567 = vmatmul.mubr.f32.gmra.mrb[36].mxu0 %v5331_v29  ;;  %776 = vmatmul.mubr.f32.gmra.mrb[36].mxu1 %v5239_v50 }
  0x79   : > { %572 = vmatprep.mubr.f32.mxu0 %v4793_v7  ;;  %781 = vmatprep.mubr.f32.mxu1 %v4793_v7 }
  0x7c   : > { %573 = vmatmul.mubr.f32.gmra.mrb[38].mxu0 %v5338_v30  ;;  %782 = vmatmul.mubr.f32.gmra.mrb[38].mxu1 %v5264_v0 }
  0x7d   : > { %578 = vmatprep.mubr.f32.mxu0 %v4793_v7  ;;  %787 = vmatprep.mubr.f32.mxu1 %v4793_v7 }
  0x80   : > { %579 = vmatmul.mubr.f32.gmra.mrb[40].mxu0 %v5345_v33  ;;  %788 = vmatmul.mubr.f32.gmra.mrb[40].mxu1 %v5277_v11 }
  0x81   : > { %584 = vmatprep.mubr.f32.mxu0 %v4793_v7  ;;  %793 = vmatprep.mubr.f32.mxu1 %v4793_v7 }
  0x84   : > { %585 = vmatmul.mubr.f32.gmra.mrb[42].mxu0 %v5352_v34  ;;  %794 = vmatmul.mubr.f32.gmra.mrb[42].mxu1 %v5290_v15 }
  0x85   : > { %590 = vmatprep.mubr.f32.mxu0 %v4793_v7  ;;  %799 = vmatprep.mubr.f32.mxu1 %v4793_v7 }
  0x88   : > { %591 = vmatmul.mubr.f32.gmra.mrb[44].mxu0 %v5359_v35  ;;  %800 = vmatmul.mubr.f32.gmra.mrb[44].mxu1 %v5303_v23 }
  0x89   : > { %596 = vmatprep.mubr.f32.mxu0 %v4793_v7  ;;  %805 = vmatprep.mubr.f32.mxu1 %v4793_v7 }
  0x8c   : > { %597 = vmatmul.mubr.f32.gmra.mrb[46].mxu0 %v5366_v36  ;;  %806 = vmatmul.mubr.f32.gmra.mrb[46].mxu1 %v5310_v25 }
  0x8d   : > { %811 = vmatprep.mubr.f32.mxu1 %v4793_v7  ;;  %972 = vmatprep.mubr.f32.mxu0 %v4793_v7 }
  0x90   : > { %812 = vmatmul.mubr.f32.gmra.mrb[48].mxu1 %v5317_v26  ;;  %973 = vmatmul.mubr.f32.vlgmr.msra.gmra.mrb[48].mxu0 %v4971_v61 }
  0x91   : > { %817 = vmatprep.mubr.f32.mxu1 %v4793_v7  ;;  %978 = vmatprep.mubr.f32.mxu0 %v4793_v7 }
  0x94   : > { %818 = vmatmul.mubr.f32.gmra.mrb[50].mxu1 %v5324_v28  ;;  %979 = vmatmul.mubr.f32.gmra.mrb[50].mxu0 %v4998_v9 }
  0x95   : > { %823 = vmatprep.mubr.f32.mxu1 %v4793_v7  ;;  %984 = vmatprep.mubr.f32.mxu0 %v4793_v7 }
  0x98   : > { %824 = vmatmul.mubr.f32.gmra.mrb[52].mxu1 %v5331_v29  ;;  %985 = vmatmul.mubr.f32.gmra.mrb[52].mxu0 %v5026_v20 }
  0x99   : > { %829 = vmatprep.mubr.f32.mxu1 %v4793_v7  ;;  %990 = vmatprep.mubr.f32.mxu0 %v4793_v7 }
  0x9c   : > { %830 = vmatmul.mubr.f32.gmra.mrb[54].mxu1 %v5338_v30  ;;  %991 = vmatmul.mubr.f32.gmra.mrb[54].mxu0 %v5054_v31 }
  0x9d   : > { %835 = vmatprep.mubr.f32.mxu1 %v4793_v7  ;;  %996 = vmatprep.mubr.f32.mxu0 %v4793_v7 }
  0xa0   : > { %836 = vmatmul.mubr.f32.gmra.mrb[56].mxu1 %v5345_v33  ;;  %997 = vmatmul.mubr.f32.gmra.mrb[56].mxu0 %v5082_v42 }
  0xa1   : > { %841 = vmatprep.mubr.f32.mxu1 %v4793_v7  ;;  %1002 = vmatprep.mubr.f32.mxu0 %v4793_v7 }
  0xa4   : > { %842 = vmatmul.mubr.f32.gmra.mrb[58].mxu1 %v5352_v34  ;;  %1003 = vmatmul.mubr.f32.gmra.mrb[58].mxu0 %v5110_v53 }
  0xa5   : > { %847 = vmatprep.mubr.f32.mxu1 %v4793_v7  ;;  %1008 = vmatprep.mubr.f32.mxu0 %v4793_v7 }
  0xa8   : > { %848 = vmatmul.mubr.f32.gmra.mrb[60].mxu1 %v5359_v35  ;;  %1009 = vmatmul.mubr.f32.gmra.mrb[60].mxu0 %v5138_v2 }
  0xa9   : > { %853 = vmatprep.mubr.f32.mxu1 %v4793_v7  ;;  %1014 = vmatprep.mubr.f32.mxu0 %v4793_v7 }
  0xac   : > { %854 = vmatmul.mubr.f32.gmra.mrb[62].mxu1 %v5366_v36  ;;  %1015 = vmatmul.mubr.f32.gmra.mrb[62].mxu0 %v5166_v16 }
  0xad   : > { %859 = vmatprep.mubr.f32.mxu1 %v4793_v7  ;;  %1020 = vmatprep.mubr.f32.mxu0 %v4793_v7 }
  0xb0   : > { %860 = vmatmul.mubr.f32.gmra.mrb[64].mxu1 %v4974_v62  ;;  %1021 = vmatmul.mubr.f32.gmra.mrb[64].mxu0 %v5188_v27 }
  0xb1   : > { %865 = vmatprep.mubr.f32.mxu1 %v4793_v7  ;;  %1026 = vmatprep.mubr.f32.mxu0 %v4793_v7 }
  0xb4   : > { %866 = vmatmul.mubr.f32.gmra.mrb[66].mxu1 %v5001_v10  ;;  %1027 = vmatmul.mubr.f32.gmra.mrb[66].mxu0 %v5213_v38 }
  0xb5   : > { %871 = vmatprep.mubr.f32.mxu1 %v4793_v7  ;;  %1032 = vmatprep.mubr.f32.mxu0 %v4793_v7 }
  0xb8   : > { %872 = vmatmul.mubr.f32.gmra.mrb[68].mxu1 %v5029_v21  ;;  %1033 = vmatmul.mubr.f32.gmra.mrb[68].mxu0 %v5239_v50 }
  0xb9   : > { %877 = vmatprep.mubr.f32.mxu1 %v4793_v7  ;;  %1038 = vmatprep.mubr.f32.mxu0 %v4793_v7 }
  0xbc   : > { %878 = vmatmul.mubr.f32.gmra.mrb[70].mxu1 %v5057_v32  ;;  %1039 = vmatmul.mubr.f32.gmra.mrb[70].mxu0 %v5264_v0 }
  0xbd   : > { %883 = vmatprep.mubr.f32.mxu1 %v4793_v7  ;;  %1044 = vmatprep.mubr.f32.mxu0 %v4793_v7 }
  0xc0   : > { %884 = vmatmul.mubr.f32.gmra.mrb[72].mxu1 %v5085_v43  ;;  %1045 = vmatmul.mubr.f32.gmra.mrb[72].mxu0 %v5277_v11 }
  0xc1   : > { %889 = vmatprep.mubr.f32.mxu1 %v4793_v7  ;;  %1050 = vmatprep.mubr.f32.mxu0 %v4793_v7 }
  0xc4   : > { %890 = vmatmul.mubr.f32.gmra.mrb[74].mxu1 %v5113_v54  ;;  %1051 = vmatmul.mubr.f32.gmra.mrb[74].mxu0 %v5290_v15 }
  0xc5   : > { %895 = vmatprep.mubr.f32.mxu1 %v4793_v7  ;;  %1056 = vmatprep.mubr.f32.mxu0 %v4793_v7 }
  0xc8   : > { %896 = vmatmul.mubr.f32.gmra.mrb[76].mxu1 %v5141_v3  ;;  %1057 = vmatmul.mubr.f32.gmra.mrb[76].mxu0 %v5303_v23 }
  0xc9   : > { %901 = vmatprep.mubr.f32.mxu1 %v4793_v7  ;;  %1062 = vmatprep.mubr.f32.mxu0 %v4793_v7 }
  0xcc   : > { %902 = vmatmul.mubr.f32.gmra.mrb[78].mxu1 %v5169_v17  ;;  %1063 = vmatmul.mubr.f32.gmra.mrb[78].mxu0 %v5310_v25 }
  0xcd   : > { %1068 = vmatprep.mubr.f32.mxu0 %v4793_v7  ;;  %4512 = vmatprep.mubr.f32.mxu1 %v4971_v61 }
  0xd0   : > { %1069 = vmatmul.mubr.f32.gmra.mrb[80].mxu0 %v5317_v26  ;;  %4513 = vmatmul.mubr.f32.vlgmr.msra.gmra.mrb[80].mxu1 %v4998_v9 }
  0xd1   : > { %1074 = vmatprep.mubr.f32.mxu0 %v4793_v7  ;;  %4515 = vmatprep.mubr.f32.mxu1 %v5026_v20 }
  0xd4   : > { %1075 = vmatmul.mubr.f32.gmra.mrb[82].mxu0 %v5324_v28  ;;  %4516 = vmatmul.mubr.f32.gmra.mrb[82].mxu1 %v5054_v31 }
  0xd5   : > { %1080 = vmatprep.mubr.f32.mxu0 %v4793_v7  ;;  %4518 = vmatprep.mubr.f32.mxu1 %v5082_v42 }
  0xd8   : > { %1081 = vmatmul.mubr.f32.gmra.mrb[84].mxu0 %v5331_v29  ;;  %4519 = vmatmul.mubr.f32.gmra.mrb[84].mxu1 %v5110_v53 }
  0xd9   : > { %1086 = vmatprep.mubr.f32.mxu0 %v4793_v7  ;;  %4521 = vmatprep.mubr.f32.mxu1 %v5138_v2 }
  0xdc   : > { %1087 = vmatmul.mubr.f32.gmra.mrb[86].mxu0 %v5338_v30  ;;  %4522 = vmatmul.mubr.f32.gmra.mrb[86].mxu1 %v5166_v16 }
  0xdd   : > { %1092 = vmatprep.mubr.f32.mxu0 %v4793_v7  ;;  %4524 = vmatprep.mubr.f32.mxu1 %v5188_v27 }
  0xe0   : > { %1093 = vmatmul.mubr.f32.gmra.mrb[88].mxu0 %v5345_v33  ;;  %4525 = vmatmul.mubr.f32.gmra.mrb[88].mxu1 %v5213_v38 }
  0xe1   : > { %1098 = vmatprep.mubr.f32.mxu0 %v4793_v7  ;;  %4527 = vmatprep.mubr.f32.mxu1 %v5239_v50 }
  0xe4   : > { %1099 = vmatmul.mubr.f32.gmra.mrb[90].mxu0 %v5352_v34  ;;  %4528 = vmatmul.mubr.f32.gmra.mrb[90].mxu1 %v5264_v0 }
  0xe5   : > { %1104 = vmatprep.mubr.f32.mxu0 %v4793_v7  ;;  %4530 = vmatprep.mubr.f32.mxu1 %v5277_v11 }
  0xe8   : > { %1105 = vmatmul.mubr.f32.gmra.mrb[92].mxu0 %v5359_v35  ;;  %4531 = vmatmul.mubr.f32.gmra.mrb[92].mxu1 %v5290_v15 }
  0xe9   : > { %1110 = vmatprep.mubr.f32.mxu0 %v4793_v7  ;;  %4533 = vmatprep.mubr.f32.mxu1 %v5303_v23 }
  0xec   : > { %1111 = vmatmul.mubr.f32.gmra.mrb[94].mxu0 %v5366_v36  ;;  %4534 = vmatmul.mubr.f32.gmra.mrb[94].mxu1 %v5310_v25 }
  0xed   : > { %1116 = vmatprep.mubr.f32.mxu0 %v4793_v7  ;;  %4536 = vmatprep.mubr.f32.mxu1 %v5317_v26 }
  0xf0   : > { %1117 = vmatmul.mubr.f32.gmra.mrb[96].mxu0 %v4974_v62  ;;  %4537 = vmatmul.mubr.f32.gmra.mrb[96].mxu1 %v5324_v28 }
  0xf1   : > { %1122 = vmatprep.mubr.f32.mxu0 %v4793_v7  ;;  %4539 = vmatprep.mubr.f32.mxu1 %v5331_v29 }
  0xf4   : > { %1123 = vmatmul.mubr.f32.gmra.mrb[98].mxu0 %v5001_v10  ;;  %4540 = vmatmul.mubr.f32.gmra.mrb[98].mxu1 %v5338_v30 }
  0xf5   : > { %1128 = vmatprep.mubr.f32.mxu0 %v4793_v7  ;;  %4542 = vmatprep.mubr.f32.mxu1 %v5345_v33 }
  0xf8   : > { %1129 = vmatmul.mubr.f32.gmra.mrb[100].mxu0 %v5029_v21  ;;  %4543 = vmatmul.mubr.f32.gmra.mrb[100].mxu1 %v5352_v34 }
  0xf9   : > { %1134 = vmatprep.mubr.f32.mxu0 %v4793_v7  ;;  %4545 = vmatprep.mubr.f32.mxu1 %v5359_v35 }
  0xfc   : > { %1135 = vmatmul.mubr.f32.gmra.mrb[102].mxu0 %v5057_v32  ;;  %4546 = vmatmul.mubr.f32.gmra.mrb[102].mxu1 %v5366_v36 }
  0xfd   : > { %1140 = vmatprep.mubr.f32.mxu0 %v4793_v7  ;;  %4548 = vmatprep.mubr.f32.mxu1 %v4974_v62 }
 0x100   : > { %1141 = vmatmul.mubr.f32.gmra.mrb[104].mxu0 %v5085_v43  ;;  %4549 = vmatmul.mubr.f32.gmra.mrb[104].mxu1 %v5001_v10 }
 0x101   : > { %1146 = vmatprep.mubr.f32.mxu0 %v4793_v7  ;;  %4551 = vmatprep.mubr.f32.mxu1 %v5029_v21 }
 0x103   : > { %v5488_v61 = vpop.f32.mrb[0].mxu1  ;;  %v5490_v9 = vpop.f32.mrb[0].mxu0 }
 0x104   : > { %9294 = vst [vmem:[#allocation2_spill] sm:$0xff] %v5488_v61  ;;  %9295 = vst [vmem:[#allocation3_spill] sm:$0xff] %v5490_v9  ;;  %v1847_v20 = vmul.f32 %v5488_v61, %v5488_v61  ;;  %v5494_v31 = vpop.f32.mrb[1].mxu1  ;;  %1147 = vmatmul.mubr.f32.gmra.mrb[106].mxu0 %v5113_v54  ;;  %4552 = vmatmul.mubr.f32.gmra.mrb[106].mxu1 %v5057_v32  ;;  %v1679_v62 = vmul.f32 %v5490_v9, %v5490_v9  ;;  %v5500_v10 = vpop.f32.mrb[1].mxu0 }
 0x105   : > { %9296 = vst [vmem:[#allocation4_spill] sm:$0xff] %v5494_v31  ;;  %9297 = vst [vmem:[#allocation5_spill] sm:$0xff] %v5500_v10  ;;  %v5504_v21 = vadd.f32 %v5494_v31, %v5488_v61  ;;  %v1848_v42 = vmul.f32 %v5494_v31, %v5494_v31  ;;  %1152 = vmatprep.mubr.f32.mxu0 %v4793_v7  ;;  %4554 = vmatprep.mubr.f32.mxu1 %v5085_v43 }
 0x106   : > { %v5512_v53 = vadd.f32 %v5500_v10, %v5490_v9  ;;  %v1680_v32 = vmul.f32 %v5500_v10, %v5500_v10 }
 0x107   : > { %v5516_v2 = vadd.f32 %v1848_v42, %v1847_v20  ;;  %v5518_v16 = vpop.f32.mrb[2].mxu1  ;;  %v5520_v27 = vpop.f32.mrb[2].mxu0 }
 0x108   : > { %9298 = vst [vmem:[#allocation6_spill] sm:$0xff] %v5518_v16  ;;  %9299 = vst [vmem:[#allocation7_spill] sm:$0xff] %v5520_v27  ;;  %v1854_v37 = vmul.f32 %v5518_v16, %v5518_v16  ;;  %v5524_v38 = vpop.f32.mrb[3].mxu1  ;;  %1153 = vmatmul.mubr.f32.gmra.mrb[108].mxu0 %v5141_v3  ;;  %4555 = vmatmul.mubr.f32.gmra.mrb[108].mxu1 %v5113_v54  ;;  %v5528_v43 = vadd.f32 %v1680_v32, %v1679_v62  ;;  %v5532_v40 = vpop.f32.mrb[3].mxu0 }
 0x109   : > { %9300 = vst [vmem:[#allocation8_spill] sm:$0xff] %v5524_v38  ;;  %v1686_v39 = vmul.f32 %v5520_v27, %v5520_v27  ;;  %9301 = vst [vmem:[#allocation9_spill] sm:$0xff] %v5532_v40  ;;  %v5536_v41 = vadd.f32 %v5524_v38, %v5518_v16  ;;  %v1855_v44 = vmul.f32 %v5524_v38, %v5524_v38  ;;  %1158 = vmatprep.mubr.f32.mxu0 %v4793_v7 }
 0x10a   : > { %4557 = vmatprep.mubr.f32.mxu1 %v5141_v3  ;;  %v5544_v54 = vadd.f32 %v5532_v40, %v5520_v27  ;;  %v1687_v45 = vmul.f32 %v5532_v40, %v5532_v40 }
 0x10b   : > { %v5548_v46 = vadd.f32 %v1855_v44, %v1854_v37  ;;  %v5550_v47 = vpop.f32.mrb[4].mxu1  ;;  %v5552_v48 = vpop.f32.mrb[4].mxu0 }
 0x10c   : > { %9302 = vst [vmem:[#allocation10_spill] sm:$0xff] %v5550_v47  ;;  %9303 = vst [vmem:[#allocation11_spill] sm:$0xff] %v5552_v48  ;;  %v1861_v49 = vmul.f32 %v5550_v47, %v5550_v47  ;;  %v5556_v50 = vpop.f32.mrb[5].mxu1  ;;  %1159 = vmatmul.mubr.f32.gmra.mrb[110].mxu0 %v5169_v17  ;;  %4558 = vmatmul.mubr.f32.gmra.mrb[110].mxu1 %v5169_v17  ;;  %v5560_v7 = vadd.f32 %v1687_v45, %v1686_v39  ;;  %v5564_v51 = vpop.f32.mrb[5].mxu0 }
 0x10d   : > { %9304 = vst [vmem:[#allocation12_spill] sm:$0xff] %v5556_v50  ;;  %v1693_v3 = vmul.f32 %v5552_v48, %v5552_v48  ;;  %9305 = vst [vmem:[#allocation13_spill] sm:$0xff] %v5564_v51  ;;  %v5568_v52 = vadd.f32 %v5556_v50, %v5550_v47  ;;  %v1862_v55 = vmul.f32 %v5556_v50, %v5556_v50 }
 0x10e   : > { %v5574_v56 = vadd.f32 %v5564_v51, %v5552_v48  ;;  %v1694_v17 = vmul.f32 %v5564_v51, %v5564_v51 }
 0x10f   : > { %v5578_v57 = vadd.f32 %v1862_v55, %v1861_v49  ;;  %v5580_v58 = vpop.f32.mrb[6].mxu1  ;;  %v5584_v60 = vpop.f32.mrb[6].mxu0 }
 0x110   : > { %9306 = vst [vmem:[#allocation14_spill] sm:$0xff] %v5580_v58  ;;  %v5582_v59 = vadd.f32 %v1694_v17, %v1693_v3  ;;  %9307 = vst [vmem:[#allocation15_spill] sm:$0xff] %v5584_v60  ;;  %v1868_v63 = vmul.f32 %v5580_v58, %v5580_v58  ;;  %v5588_v0 = vpop.f32.mrb[7].mxu1  ;;  %v1700_v1 = vmul.f32 %v5584_v60, %v5584_v60  ;;  %v5592_v4 = vpop.f32.mrb[7].mxu0 }
 0x111   : > { %9308 = vst [vmem:[#allocation16_spill] sm:$0xff] %v5588_v0  ;;  %9309 = vst [vmem:[#allocation17_spill] sm:$0xff] %v5592_v4  ;;  %v5596_v5 = vadd.f32 %v5588_v0, %v5580_v58  ;;  %v1869_v6 = vmul.f32 %v5588_v0, %v5588_v0  ;;  %v5602_v8 = vadd.f32 %v5592_v4, %v5584_v60 }
 0x112   : > { %v1701_v11 = vmul.f32 %v5592_v4, %v5592_v4 }
 0x113   : > { %v5606_v12 = vadd.f32 %v1869_v6, %v1868_v63  ;;  %v5608_v13 = vpop.f32.mrb[8].mxu1  ;;  %v5612_v15 = vpop.f32.mrb[8].mxu0 }
 0x114   : > { %9310 = vst [vmem:[#allocation18_spill] sm:$0xff] %v5608_v13  ;;  %v5610_v14 = vadd.f32 %v1701_v11, %v1700_v1  ;;  %9311 = vst [vmem:[#allocation19_spill] sm:$0xff] %v5612_v15  ;;  %v1875_v18 = vmul.f32 %v5608_v13, %v5608_v13  ;;  %v5616_v19 = vpop.f32.mrb[9].mxu1  ;;  %v1707_v22 = vmul.f32 %v5612_v15, %v5612_v15  ;;  %v5620_v23 = vpop.f32.mrb[9].mxu0 }
 0x115   : > { %9312 = vst [vmem:[#allocation20_spill] sm:$0xff] %v5616_v19  ;;  %9313 = vst [vmem:[#allocation21_spill] sm:$0xff] %v5620_v23  ;;  %v5624_v24 = vadd.f32 %v5616_v19, %v5608_v13  ;;  %v1876_v25 = vmul.f32 %v5616_v19, %v5616_v19  ;;  %v5630_v26 = vadd.f32 %v5620_v23, %v5612_v15 }
 0x116   : > { %v1708_v28 = vmul.f32 %v5620_v23, %v5620_v23 }
 0x117   : > { %v5634_v29 = vadd.f32 %v1876_v25, %v1875_v18  ;;  %v5636_v30 = vpop.f32.mrb[10].mxu1  ;;  %v5640_v34 = vpop.f32.mrb[10].mxu0 }
 0x118   : > { %9315 = vst [vmem:[#allocation23_spill] sm:$0xff] %v5636_v30  ;;  %v5638_v33 = vadd.f32 %v1708_v28, %v1707_v22  ;;  %9316 = vst [vmem:[#allocation24_spill] sm:$0xff] %v5640_v34  ;;  %v1882_v35 = vmul.f32 %v5636_v30, %v5636_v30  ;;  %v5644_v36 = vpop.f32.mrb[11].mxu1  ;;  %v1714_v20 = vmul.f32 %v5640_v34, %v5640_v34  ;;  %v5648_v62 = vpop.f32.mrb[11].mxu0 }
 0x119   : > { %9314 = vst [vmem:[#allocation22_spill] sm:$0xff] %v5634_v29  ;;  %9317 = vst [vmem:[#allocation25_spill] sm:$0xff] %v5644_v36  ;;  %v5652_v42 = vadd.f32 %v5644_v36, %v5636_v30  ;;  %v1883_v32 = vmul.f32 %v5644_v36, %v5644_v36  ;;  %v5658_v37 = vadd.f32 %v5648_v62, %v5640_v34 }
 0x11a   : > { %9318 = vst [vmem:[#allocation26_spill] sm:$0xff] %v5648_v62  ;;  %v1715_v39 = vmul.f32 %v5648_v62, %v5648_v62 }
 0x11b   : > { %9319 = vst [vmem:[#allocation27_spill] sm:$0xff] %v5652_v42  ;;  %v5662_v44 = vadd.f32 %v1883_v32, %v1882_v35  ;;  %v5664_v45 = vpop.f32.mrb[12].mxu1  ;;  %v5668_v3 = vpop.f32.mrb[12].mxu0 }
 0x11c   : > { %9321 = vst [vmem:[#allocation29_spill] sm:$0xff] %v5664_v45  ;;  %v5666_v49 = vadd.f32 %v1715_v39, %v1714_v20  ;;  %9322 = vst [vmem:[#allocation30_spill] sm:$0xff] %v5668_v3  ;;  %v1889_v55 = vmul.f32 %v5664_v45, %v5664_v45  ;;  %v5672_v17 = vpop.f32.mrb[13].mxu1  ;;  %v1721_v63 = vmul.f32 %v5668_v3, %v5668_v3  ;;  %v5676_v1 = vpop.f32.mrb[13].mxu0 }
 0x11d   : > { %9320 = vst [vmem:[#allocation28_spill] sm:$0xff] %v5662_v44  ;;  %9323 = vst [vmem:[#allocation31_spill] sm:$0xff] %v5672_v17  ;;  %v5680_v6 = vadd.f32 %v5672_v17, %v5664_v45  ;;  %v1890_v11 = vmul.f32 %v5672_v17, %v5672_v17  ;;  %v5686_v18 = vadd.f32 %v5676_v1, %v5668_v3 }
 0x11e   : > { %9324 = vst [vmem:[#allocation32_spill] sm:$0xff] %v5676_v1  ;;  %v1722_v22 = vmul.f32 %v5676_v1, %v5676_v1 }
 0x11f   : > { %9325 = vst [vmem:[#allocation33_spill] sm:$0xff] %v5680_v6  ;;  %v5690_v25 = vadd.f32 %v1890_v11, %v1889_v55  ;;  %v5692_v28 = vpop.f32.mrb[14].mxu1  ;;  %v5696_v20 = vpop.f32.mrb[14].mxu0 }
 0x120   : > { %9327 = vst [vmem:[#allocation35_spill] sm:$0xff] %v5692_v28  ;;  %v5694_v35 = vadd.f32 %v1722_v22, %v1721_v63  ;;  %9328 = vst [vmem:[#allocation36_spill] sm:$0xff] %v5696_v20  ;;  %v1896_v32 = vmul.f32 %v5692_v28, %v5692_v28  ;;  %v5700_v39 = vpop.f32.mrb[15].mxu1  ;;  %v1728_v40 = vmul.f32 %v5696_v20, %v5696_v20  ;;  %v5704_v27 = vpop.f32.mrb[15].mxu0 }
 0x121   : > { %9326 = vst [vmem:[#allocation34_spill] sm:$0xff] %v5690_v25  ;;  %9329 = vst [vmem:[#allocation37_spill] sm:$0xff] %v5700_v39  ;;  %v5708_v55 = vadd.f32 %v5700_v39, %v5692_v28  ;;  %v1897_v63 = vmul.f32 %v5700_v39, %v5700_v39  ;;  %v5714_v11 = vadd.f32 %v5704_v27, %v5696_v20 }
 0x122   : > { %9330 = vst [vmem:[#allocation38_spill] sm:$0xff] %v5704_v27  ;;  %v1729_v22 = vmul.f32 %v5704_v27, %v5704_v27 }
 0x123   : > { %9331 = vst [vmem:[#allocation39_spill] sm:$0xff] %v5708_v55  ;;  %v5718_v17 = vadd.f32 %v1897_v63, %v1896_v32  ;;  %v5720_v45 = vpop.f32.mrb[16].mxu1  ;;  %v5724_v13 = vpop.f32.mrb[16].mxu0 }
 0x124   : > { %9333 = vst [vmem:[#allocation41_spill] sm:$0xff] %v5720_v45  ;;  %v5722_v19 = vadd.f32 %v1729_v22, %v1728_v40  ;;  %9334 = vst [vmem:[#allocation42_spill] sm:$0xff] %v5724_v13  ;;  %v1391_v28 = vadd.f32 %v5512_v53, %v5720_v45  ;;  %v1681_v39 = vmul.f32 %v5720_v45, %v5720_v45  ;;  %v5730_v36 = vpop.f32.mrb[17].mxu1  ;;  %v5734_v50 = vpop.f32.mrb[17].mxu0 }
 0x125   : > { %9332 = vst [vmem:[#allocation40_spill] sm:$0xff] %v5718_v17  ;;  %9335 = vst [vmem:[#allocation43_spill] sm:$0xff] %v5730_v36  ;;  %v1735_v30 = vmul.f32 %v5724_v13, %v5724_v13  ;;  %v1682_v32 = vmul.f32 %v5730_v36, %v5730_v36  ;;  %v5740_v40 = vadd.f32 %v5734_v50, %v5724_v13 }
 0x126   : > { %9336 = vst [vmem:[#allocation44_spill] sm:$0xff] %v5734_v50  ;;  %v1736_v53 = vmul.f32 %v5734_v50, %v5734_v50  ;;  %v1904_v63 = vadd.f32 %v5528_v43, %v1681_v39  ;;  %v5746_v22 = vadd.f32 %v1391_v28, %v5730_v36 }
 0x127   : > { %v5748_v47 = vpop.f32.mrb[18].mxu1  ;;  %v5752_v58 = vpop.f32.mrb[18].mxu0 }
 0x128   : > { %9337 = vst [vmem:[#allocation45_spill] sm:$0xff] %v5748_v47  ;;  %v5750_v0 = vadd.f32 %v1736_v53, %v1735_v30  ;;  %9338 = vst [vmem:[#allocation46_spill] sm:$0xff] %v5752_v58  ;;  %v5754_v31 = vadd.f32 %v1904_v63, %v1682_v32  ;;  %v1401_v61 = vadd.f32 %v5544_v54, %v5748_v47  ;;  %v5760_v16 = vpop.f32.mrb[19].mxu1  ;;  %v5764_v28 = vpop.f32.mrb[19].mxu0 }
 0x129   : > { %v1688_v38 = vmul.f32 %v5748_v47, %v5748_v47  ;;  %9339 = vst [vmem:[#allocation47_spill] sm:$0xff] %v5760_v16  ;;  %v1742_v43 = vmul.f32 %v5752_v58, %v5752_v58  ;;  %9340 = vst [vmem:[#allocation48_spill] sm:$0xff] %v5764_v28  ;;  %v1689_v30 = vmul.f32 %v5760_v16, %v5760_v16 }
 0x12a   : > { %v5770_v39 = vadd.f32 %v5764_v28, %v5752_v58  ;;  %v1743_v54 = vmul.f32 %v5764_v28, %v5764_v28  ;;  %v5776_v53 = vadd.f32 %v1401_v61, %v5760_v16 }
 0x12b   : > { %v1913_v32 = vadd.f32 %v5560_v7, %v1688_v38  ;;  %v5778_v63 = vpop.f32.mrb[20].mxu1  ;;  %v5782_v50 = vpop.f32.mrb[20].mxu0 }
 0x12c   : > { %9341 = vst [vmem:[#allocation49_spill] sm:$0xff] %v5778_v63  ;;  %v5780_v47 = vadd.f32 %v1743_v54, %v1742_v43  ;;  %9342 = vst [vmem:[#allocation50_spill] sm:$0xff] %v5782_v50  ;;  %v1410_v58 = vadd.f32 %v5574_v56, %v5778_v63  ;;  %v1695_v1 = vmul.f32 %v5778_v63, %v5778_v63  ;;  %v5790_v28 = vpop.f32.mrb[21].mxu1  ;;  %v5794_v38 = vpop.f32.mrb[21].mxu0 }
 0x12d   : > { %v5784_v13 = vadd.f32 %v1913_v32, %v1689_v30  ;;  %9343 = vst [vmem:[#allocation51_spill] sm:$0xff] %v5790_v28  ;;  %v1749_v61 = vmul.f32 %v5782_v50, %v5782_v50  ;;  %9344 = vst [vmem:[#allocation52_spill] sm:$0xff] %v5794_v38  ;;  %v1696_v7 = vmul.f32 %v5790_v28, %v5790_v28 }
 0x12e   : > { %v5800_v43 = vadd.f32 %v5794_v38, %v5782_v50  ;;  %v1750_v56 = vmul.f32 %v5794_v38, %v5794_v38  ;;  %v1922_v30 = vadd.f32 %v5582_v59, %v1695_v1  ;;  %v5806_v54 = vadd.f32 %v1410_v58, %v5790_v28 }
 0x12f   : > { %v5808_v32 = vpop.f32.mrb[22].mxu1  ;;  %v5812_v3 = vpop.f32.mrb[22].mxu0 }
 0x130   : > { %9345 = vst [vmem:[#allocation53_spill] sm:$0xff] %v5808_v32  ;;  %v5810_v16 = vadd.f32 %v1750_v56, %v1749_v61  ;;  %9346 = vst [vmem:[#allocation54_spill] sm:$0xff] %v5812_v3  ;;  %v5814_v27 = vadd.f32 %v1922_v30, %v1696_v7  ;;  %v1419_v50 = vadd.f32 %v5602_v8, %v5808_v32  ;;  %v5820_v38 = vpop.f32.mrb[23].mxu1  ;;  %v5824_v59 = vpop.f32.mrb[23].mxu0 }
 0x131   : > { %v1702_v20 = vmul.f32 %v5808_v32, %v5808_v32  ;;  %9347 = vst [vmem:[#allocation55_spill] sm:$0xff] %v5820_v38  ;;  %v1756_v58 = vmul.f32 %v5812_v3, %v5812_v3  ;;  %9348 = vst [vmem:[#allocation56_spill] sm:$0xff] %v5824_v59  ;;  %v1703_v1 = vmul.f32 %v5820_v38, %v5820_v38 }
 0x132   : > { %v5830_v61 = vadd.f32 %v5824_v59, %v5812_v3  ;;  %v1757_v8 = vmul.f32 %v5824_v59, %v5824_v59  ;;  %v5836_v56 = vadd.f32 %v1419_v50, %v5820_v38 }
 0x133   : > { %v1931_v7 = vadd.f32 %v5610_v14, %v1702_v20  ;;  %v5838_v30 = vpop.f32.mrb[24].mxu1  ;;  %v5842_v15 = vpop.f32.mrb[24].mxu0 }
 0x134   : > { %9349 = vst [vmem:[#allocation57_spill] sm:$0xff] %v5838_v30  ;;  %v5840_v23 = vadd.f32 %v1757_v8, %v1756_v58  ;;  %9350 = vst [vmem:[#allocation58_spill] sm:$0xff] %v5842_v15  ;;  %v1428_v3 = vadd.f32 %v5630_v26, %v5838_v30  ;;  %v1709_v34 = vmul.f32 %v5838_v30, %v5838_v30  ;;  %v5850_v59 = vpop.f32.mrb[25].mxu1  ;;  %v5854_v14 = vpop.f32.mrb[25].mxu0 }
 0x135   : > { %v5844_v62 = vadd.f32 %v1931_v7, %v1703_v1  ;;  %9351 = vst [vmem:[#allocation59_spill] sm:$0xff] %v5850_v59  ;;  %v1763_v50 = vmul.f32 %v5842_v15, %v5842_v15  ;;  %9352 = vst [vmem:[#allocation60_spill] sm:$0xff] %v5854_v14  ;;  %v1710_v20 = vmul.f32 %v5850_v59, %v5850_v59 }
 0x136   : > { %v5860_v58 = vadd.f32 %v5854_v14, %v5842_v15  ;;  %v1764_v26 = vmul.f32 %v5854_v14, %v5854_v14  ;;  %v1940_v1 = vadd.f32 %v5638_v33, %v1709_v34  ;;  %v5866_v8 = vadd.f32 %v1428_v3, %v5850_v59 }
 0x137   : > { %v5868_v7 = vpop.f32.mrb[26].mxu1  ;;  %v5872_v38 = vpop.f32.mrb[26].mxu0 }
 0x138   : > { %9353 = vst [vmem:[#allocation61_spill] sm:$0xff] %v5868_v7  ;;  %v5870_v30 = vadd.f32 %v1764_v26, %v1763_v50  ;;  %9354 = vst [vmem:[#allocation62_spill] sm:$0xff] %v5872_v38  ;;  %v5874_v32 = vadd.f32 %v1940_v1, %v1710_v20  ;;  %v1437_v15 = vadd.f32 %v5658_v37, %v5868_v7  ;;  %v5880_v14 = vpop.f32.mrb[27].mxu1  ;;  %v5884_v34 = vpop.f32.mrb[27].mxu0 }
 0x139   : > { %v1716_v4 = vmul.f32 %v5868_v7, %v5868_v7  ;;  %9355 = vst [vmem:[#allocation63_spill] sm:$0xff] %v5880_v14  ;;  %v1770_v33 = vmul.f32 %v5872_v38, %v5872_v38  ;;  %9356 = vst [vmem:[#allocation64_spill] sm:$0xff] %v5884_v34  ;;  %v1717_v3 = vmul.f32 %v5880_v14, %v5880_v14 }
 0x13a   : > { %v5890_v50 = vadd.f32 %v5884_v34, %v5872_v38  ;;  %v1771_v37 = vmul.f32 %v5884_v34, %v5884_v34  ;;  %v5896_v26 = vadd.f32 %v1437_v15, %v5880_v14 }
 0x13b   : > { %v1949_v20 = vadd.f32 %v5666_v49, %v1716_v4  ;;  %v5898_v1 = vpop.f32.mrb[28].mxu1  ;;  %v5902_v7 = vpop.f32.mrb[28].mxu0 }
 0x13c   : > { %9357 = vst [vmem:[#allocation65_spill] sm:$0xff] %v5898_v1  ;;  %v5900_v59 = vadd.f32 %v1771_v37, %v1770_v33  ;;  %9358 = vst [vmem:[#allocation66_spill] sm:$0xff] %v5902_v7  ;;  %v1446_v38 = vadd.f32 %v5686_v18, %v5898_v1  ;;  %v1723_v28 = vmul.f32 %v5898_v1, %v5898_v1  ;;  %v5910_v34 = vpop.f32.mrb[29].mxu1  ;;  %v5914_v15 = vpop.f32.mrb[29].mxu0 }
 0x13d   : > { %v5904_v60 = vadd.f32 %v1949_v20, %v1717_v3  ;;  %9359 = vst [vmem:[#allocation67_spill] sm:$0xff] %v5910_v34  ;;  %v1777_v4 = vmul.f32 %v5902_v7, %v5902_v7  ;;  %9360 = vst [vmem:[#allocation68_spill] sm:$0xff] %v5914_v15  ;;  %v1724_v49 = vmul.f32 %v5910_v34, %v5910_v34 }
 0x13e   : > { %v5920_v33 = vadd.f32 %v5914_v15, %v5902_v7  ;;  %v1778_v18 = vmul.f32 %v5914_v15, %v5914_v15  ;;  %v1958_v3 = vadd.f32 %v5694_v35, %v1723_v28  ;;  %v5926_v37 = vadd.f32 %v1446_v38, %v5910_v34 }
 0x13f   : > { %v5928_v20 = vpop.f32.mrb[30].mxu1  ;;  %v5932_v14 = vpop.f32.mrb[30].mxu0 }
 0x140   : > { %9361 = vst [vmem:[#allocation69_spill] sm:$0xff] %v5928_v20  ;;  %v5930_v1 = vadd.f32 %v1778_v18, %v1777_v4  ;;  %9362 = vst [vmem:[#allocation70_spill] sm:$0xff] %v5932_v14  ;;  %v5934_v63 = vadd.f32 %v1958_v3, %v1724_v49  ;;  %v1455_v7 = vadd.f32 %v5714_v11, %v5928_v20  ;;  %v5940_v15 = vpop.f32.mrb[31].mxu1  ;;  %v5944_v28 = vpop.f32.mrb[31].mxu0 }
 0x141   : > { %v1730_v51 = vmul.f32 %v5928_v20, %v5928_v20  ;;  %9363 = vst [vmem:[#allocation71_spill] sm:$0xff] %v5940_v15  ;;  %v1784_v35 = vmul.f32 %v5932_v14, %v5932_v14  ;;  %9364 = vst [vmem:[#allocation72_spill] sm:$0xff] %v5944_v28  ;;  %v1731_v38 = vmul.f32 %v5940_v15, %v5940_v15 }
 0x142   : > { %v5950_v4 = vadd.f32 %v5944_v28, %v5932_v14  ;;  %v1785_v11 = vmul.f32 %v5944_v28, %v5944_v28  ;;  %v5956_v18 = vadd.f32 %v1455_v7, %v5940_v15 }
 0x143   : > { %v1967_v49 = vadd.f32 %v5722_v19, %v1730_v51  ;;  %v5958_v3 = vpop.f32.mrb[32].mxu1  ;;  %v5962_v20 = vpop.f32.mrb[32].mxu0 }
 0x144   : > { %9365 = vst [vmem:[#allocation73_spill] sm:$0xff] %v5958_v3  ;;  %v5960_v34 = vadd.f32 %v1785_v11, %v1784_v35  ;;  %9366 = vst [vmem:[#allocation74_spill] sm:$0xff] %v5962_v20  ;;  %v1464_v14 = vadd.f32 %v5740_v40, %v5958_v3  ;;  %v1737_v36 = vmul.f32 %v5958_v3, %v5958_v3  ;;  %v5970_v28 = vpop.f32.mrb[33].mxu1  ;;  %v5974_v19 = vpop.f32.mrb[33].mxu0 }
 0x145   : > { %v5964_v48 = vadd.f32 %v1967_v49, %v1731_v38  ;;  %9367 = vst [vmem:[#allocation75_spill] sm:$0xff] %v5970_v28  ;;  %v1791_v51 = vmul.f32 %v5962_v20, %v5962_v20  ;;  %9368 = vst [vmem:[#allocation76_spill] sm:$0xff] %v5974_v19  ;;  %v1738_v7 = vmul.f32 %v5970_v28, %v5970_v28 }
 0x146   : > { %v5980_v35 = vadd.f32 %v5974_v19, %v5962_v20  ;;  %v1792_v40 = vmul.f32 %v5974_v19, %v5974_v19  ;;  %v1976_v38 = vadd.f32 %v5750_v0, %v1737_v36  ;;  %v5986_v11 = vadd.f32 %v1464_v14, %v5970_v28 }
 0x147   : > { %v5988_v49 = vpop.f32.mrb[34].mxu1  ;;  %v5992_v15 = vpop.f32.mrb[34].mxu0 }
 0x148   : > { %9369 = vst [vmem:[#allocation77_spill] sm:$0xff] %v5988_v49  ;;  %v5990_v3 = vadd.f32 %v1792_v40, %v1791_v51  ;;  %9370 = vst [vmem:[#allocation78_spill] sm:$0xff] %v5992_v15  ;;  %v5994_v45 = vadd.f32 %v1976_v38, %v1738_v7  ;;  %v1473_v20 = vadd.f32 %v5770_v39, %v5988_v49  ;;  %v6000_v19 = vpop.f32.mrb[35].mxu1  ;;  %v6004_v36 = vpop.f32.mrb[35].mxu0 }
 0x149   : > { %v1744_v10 = vmul.f32 %v5988_v49, %v5988_v49  ;;  %9371 = vst [vmem:[#allocation79_spill] sm:$0xff] %v6000_v19  ;;  %v1798_v0 = vmul.f32 %v5992_v15, %v5992_v15  ;;  %9372 = vst [vmem:[#allocation80_spill] sm:$0xff] %v6004_v36  ;;  %v1745_v14 = vmul.f32 %v6000_v19, %v6000_v19 }
 0x14a   : > { %v6010_v51 = vadd.f32 %v6004_v36, %v5992_v15  ;;  %v1799_v39 = vmul.f32 %v6004_v36, %v6004_v36  ;;  %v6016_v40 = vadd.f32 %v1473_v20, %v6000_v19 }
 0x14b   : > { %v1985_v7 = vadd.f32 %v5780_v47, %v1744_v10  ;;  %v6018_v38 = vpop.f32.mrb[36].mxu1  ;;  %v6022_v49 = vpop.f32.mrb[36].mxu0 }
 0x14c   : > { %9373 = vst [vmem:[#allocation81_spill] sm:$0xff] %v6018_v38  ;;  %v6020_v28 = vadd.f32 %v1799_v39, %v1798_v0  ;;  %9374 = vst [vmem:[#allocation82_spill] sm:$0xff] %v6022_v49  ;;  %v1482_v15 = vadd.f32 %v5800_v43, %v6018_v38  ;;  %v1751_v17 = vmul.f32 %v6018_v38, %v6018_v38  ;;  %v6030_v36 = vpop.f32.mrb[37].mxu1  ;;  %v6034_v47 = vpop.f32.mrb[37].mxu0 }
 0x14d   : > { %v6024_v9 = vadd.f32 %v1985_v7, %v1745_v14  ;;  %9375 = vst [vmem:[#allocation83_spill] sm:$0xff] %v6030_v36  ;;  %v1805_v10 = vmul.f32 %v6022_v49, %v6022_v49  ;;  %9376 = vst [vmem:[#allocation84_spill] sm:$0xff] %v6034_v47  ;;  %v1752_v20 = vmul.f32 %v6030_v36, %v6030_v36 }
 0x14e   : > { %v6040_v0 = vadd.f32 %v6034_v47, %v6022_v49  ;;  %v1806_v43 = vmul.f32 %v6034_v47, %v6034_v47  ;;  %v1994_v14 = vadd.f32 %v5810_v16, %v1751_v17  ;;  %v6046_v39 = vadd.f32 %v1482_v15, %v6030_v36 }
 0x14f   : > { %v6048_v7 = vpop.f32.mrb[38].mxu1  ;;  %v6052_v19 = vpop.f32.mrb[38].mxu0 }
 0x150   : > { %9377 = vst [vmem:[#allocation85_spill] sm:$0xff] %v6048_v7  ;;  %v6050_v38 = vadd.f32 %v1806_v43, %v1805_v10  ;;  %9378 = vst [vmem:[#allocation86_spill] sm:$0xff] %v6052_v19  ;;  %v6054_v55 = vadd.f32 %v1994_v14, %v1752_v20  ;;  %v1491_v49 = vadd.f32 %v5830_v61, %v6048_v7  ;;  %v6060_v47 = vpop.f32.mrb[39].mxu1  ;;  %v6064_v17 = vpop.f32.mrb[39].mxu0 }
 0x151   : > { %v1758_v25 = vmul.f32 %v6048_v7, %v6048_v7  ;;  %9379 = vst [vmem:[#allocation87_spill] sm:$0xff] %v6060_v47  ;;  %v1812_v16 = vmul.f32 %v6052_v19, %v6052_v19  ;;  %9380 = vst [vmem:[#allocation88_spill] sm:$0xff] %v6064_v17  ;;  %v1759_v15 = vmul.f32 %v6060_v47, %v6060_v47 }
 0x152   : > { %v6070_v10 = vadd.f32 %v6064_v17, %v6052_v19  ;;  %v1813_v61 = vmul.f32 %v6064_v17, %v6064_v17  ;;  %v6076_v43 = vadd.f32 %v1491_v49, %v6060_v47 }
 0x153   : > { %v2003_v20 = vadd.f32 %v5840_v23, %v1758_v25  ;;  %v6078_v14 = vpop.f32.mrb[40].mxu1  ;;  %v6082_v7 = vpop.f32.mrb[40].mxu0 }
 0x154   : > { %9381 = vst [vmem:[#allocation89_spill] sm:$0xff] %v6078_v14  ;;  %v6080_v36 = vadd.f32 %v1813_v61, %v1812_v16  ;;  %9382 = vst [vmem:[#allocation90_spill] sm:$0xff] %v6082_v7  ;;  %v1500_v19 = vadd.f32 %v5860_v58, %v6078_v14  ;;  %v1765_v44 = vmul.f32 %v6078_v14, %v6078_v14  ;;  %v6090_v17 = vpop.f32.mrb[41].mxu1  ;;  %v6094_v25 = vpop.f32.mrb[41].mxu0 }
 0x155   : > { %v6084_v6 = vadd.f32 %v2003_v20, %v1759_v15  ;;  %9383 = vst [vmem:[#allocation91_spill] sm:$0xff] %v6090_v17  ;;  %v1819_v23 = vmul.f32 %v6082_v7, %v6082_v7  ;;  %9384 = vst [vmem:[#allocation92_spill] sm:$0xff] %v6094_v25  ;;  %v1766_v49 = vmul.f32 %v6090_v17, %v6090_v17 }
 0x156   : > { %v6100_v16 = vadd.f32 %v6094_v25, %v6082_v7  ;;  %v1820_v58 = vmul.f32 %v6094_v25, %v6094_v25  ;;  %v2012_v15 = vadd.f32 %v5870_v30, %v1765_v44  ;;  %v6106_v61 = vadd.f32 %v1500_v19, %v6090_v17 }
 0x157   : > { %v6108_v20 = vpop.f32.mrb[42].mxu1  ;;  %v6112_v47 = vpop.f32.mrb[42].mxu0 }
 0x158   : > { %9385 = vst [vmem:[#allocation93_spill] sm:$0xff] %v6106_v61  ;;  %9386 = vst [vmem:[#allocation94_spill] sm:$0xff] %v6108_v20  ;;  %v6110_v14 = vadd.f32 %v1820_v58, %v1819_v23  ;;  %v6114_v42 = vadd.f32 %v2012_v15, %v1766_v49  ;;  %v1509_v7 = vadd.f32 %v5890_v50, %v6108_v20  ;;  %v6120_v25 = vpop.f32.mrb[43].mxu1  ;;  %v6124_v30 = vpop.f32.mrb[43].mxu0 }
 0x159   : > { %9387 = vst [vmem:[#allocation95_spill] sm:$0xff] %v6112_v47  ;;  %v1772_v29 = vmul.f32 %v6108_v20, %v6108_v20  ;;  %9389 = vst [vmem:[#allocation97_spill] sm:$0xff] %v6120_v25  ;;  %v1826_v44 = vmul.f32 %v6112_v47, %v6112_v47  ;;  %v1773_v19 = vmul.f32 %v6120_v25, %v6120_v25 }
 0x15a   : > { %9388 = vst [vmem:[#allocation96_spill] sm:$0xff] %v6114_v42  ;;  %9390 = vst [vmem:[#allocation98_spill] sm:$0xff] %v6124_v30  ;;  %v6130_v23 = vadd.f32 %v6124_v30, %v6112_v47  ;;  %v1827_v50 = vmul.f32 %v6124_v30, %v6124_v30  ;;  %v6136_v58 = vadd.f32 %v1509_v7, %v6120_v25 }
 0x15b   : > { %v2021_v49 = vadd.f32 %v5900_v59, %v1772_v29  ;;  %v6138_v15 = vpop.f32.mrb[44].mxu1  ;;  %v6142_v20 = vpop.f32.mrb[44].mxu0 }
 0x15c   : > { %9391 = vst [vmem:[#allocation99_spill] sm:$0xff] %v6136_v58  ;;  %9392 = vst [vmem:[#allocation100_spill] sm:$0xff] %v6138_v15  ;;  %v6140_v17 = vadd.f32 %v1827_v50, %v1826_v44  ;;  %v1518_v47 = vadd.f32 %v5920_v33, %v6138_v15  ;;  %v1779_v61 = vmul.f32 %v6138_v15, %v6138_v15  ;;  %v6150_v30 = vpop.f32.mrb[45].mxu1  ;;  %v6154_v59 = vpop.f32.mrb[45].mxu0 }
 0x15d   : > { %9393 = vst [vmem:[#allocation101_spill] sm:$0xff] %v6142_v20  ;;  %v6144_v42 = vadd.f32 %v2021_v49, %v1773_v19  ;;  %9395 = vst [vmem:[#allocation103_spill] sm:$0xff] %v6150_v30  ;;  %v1833_v29 = vmul.f32 %v6142_v20, %v6142_v20  ;;  %v1780_v7 = vmul.f32 %v6150_v30, %v6150_v30 }
 0x15e   : > { %9396 = vst [vmem:[#allocation104_spill] sm:$0xff] %v6154_v59  ;;  %v6160_v44 = vadd.f32 %v6154_v59, %v6142_v20  ;;  %v1834_v33 = vmul.f32 %v6154_v59, %v6154_v59  ;;  %v2030_v19 = vadd.f32 %v5930_v1, %v1779_v61  ;;  %v6166_v50 = vadd.f32 %v1518_v47, %v6150_v30 }
 0x15f   : > { %9394 = vst [vmem:[#allocation102_spill] sm:$0xff] %v6144_v42  ;;  %v6168_v49 = vpop.f32.mrb[46].mxu1  ;;  %v6172_v25 = vpop.f32.mrb[46].mxu0 }
 0x160   : > { %9397 = vst [vmem:[#allocation105_spill] sm:$0xff] %v6166_v50  ;;  %9398 = vst [vmem:[#allocation106_spill] sm:$0xff] %v6168_v49  ;;  %v6170_v15 = vadd.f32 %v1834_v33, %v1833_v29  ;;  %v6174_v42 = vadd.f32 %v2030_v19, %v1780_v7  ;;  %v1527_v20 = vadd.f32 %v5950_v4, %v6168_v49  ;;  %v6180_v59 = vpop.f32.mrb[47].mxu1  ;;  %v6184_v47 = vpop.f32.mrb[47].mxu0 }
 0x161   : > { %9399 = vst [vmem:[#allocation107_spill] sm:$0xff] %v6172_v25  ;;  %v1786_v58 = vmul.f32 %v6168_v49, %v6168_v49  ;;  %9401 = vst [vmem:[#allocation109_spill] sm:$0xff] %v6180_v59  ;;  %v1840_v1 = vmul.f32 %v6172_v25, %v6172_v25  ;;  %v1787_v61 = vmul.f32 %v6180_v59, %v6180_v59 }
 0x162   : > { %9400 = vst [vmem:[#allocation108_spill] sm:$0xff] %v6174_v42  ;;  %9402 = vst [vmem:[#allocation110_spill] sm:$0xff] %v6184_v47  ;;  %v6190_v29 = vadd.f32 %v6184_v47, %v6172_v25  ;;  %v1841_v4 = vmul.f32 %v6184_v47, %v6184_v47  ;;  %v6196_v33 = vadd.f32 %v1527_v20, %v6180_v59 }
 0x163   : > { %v2039_v7 = vadd.f32 %v5960_v34, %v1786_v58  ;;  %v6200_v30 = vpop.f32.mrb[48].mxu1  ;;  %v6202_v49 = vpop.f32.mrb[48].mxu0 }
 0x164   : > { %v6198_v19 = vadd.f32 %v1841_v4, %v1840_v1  ;;  %9403 = vst [vmem:[#allocation111_spill] sm:$0xff] %v6200_v30  ;;  %9404 = vst [vmem:[#allocation112_spill] sm:$0xff] %v6202_v49  ;;  %v1536_v25 = vadd.f32 %v5980_v35, %v6200_v30  ;;  %v1793_v50 = vmul.f32 %v6200_v30, %v6200_v30  ;;  %v6212_v58 = vpop.f32.mrb[49].mxu1  ;;  %v6214_v20 = vpop.f32.mrb[49].mxu0 }
 0x165   : > { %v6204_v42 = vadd.f32 %v2039_v7, %v1787_v61  ;;  %v1393_v34 = vadd.f32 %v5746_v22, %v6202_v49  ;;  %9406 = vst [vmem:[#allocation114_spill] sm:$0xff] %v6212_v58  ;;  %9407 = vst [vmem:[#allocation115_spill] sm:$0xff] %v6214_v20  ;;  %v1683_v1 = vmul.f32 %v6202_v49, %v6202_v49 }
 0x166   : > { %v1794_v61 = vmul.f32 %v6212_v58, %v6212_v58  ;;  %v1684_v4 = vmul.f32 %v6214_v20, %v6214_v20  ;;  %v2048_v35 = vadd.f32 %v5990_v3, %v1793_v50  ;;  %v6224_v7 = vadd.f32 %v1536_v25, %v6212_v58 }
 0x167   : > { %9405 = vst [vmem:[#allocation113_spill] sm:$0xff] %v6204_v42  ;;  %v6227_v22 = vadd.f32 %v1393_v34, %v6214_v20  ;;  %v6229_v47 = vpop.f32.mrb[50].mxu1  ;;  %v6231_v30 = vpop.f32.mrb[50].mxu0  ;;  %v1906_v59 = vadd.f32 %v5754_v31, %v1683_v1 }
 0x168   : > { %9409 = vst [vmem:[#allocation117_spill] sm:$0xff] %v6229_v47  ;;  %9410 = vst [vmem:[#allocation118_spill] sm:$0xff] %v6231_v30  ;;  %v6234_v49 = vadd.f32 %v2048_v35, %v1794_v61  ;;  %v1545_v42 = vadd.f32 %v6010_v51, %v6229_v47  ;;  %v1800_v3 = vmul.f32 %v6229_v47, %v6229_v47  ;;  %v6242_v50 = vpop.f32.mrb[51].mxu1  ;;  %v6244_v34 = vpop.f32.mrb[51].mxu0 }
 0x169   : > { %9408 = vst [vmem:[#allocation116_spill] sm:$0xff] %v6227_v22  ;;  %v1403_v25 = vadd.f32 %v5776_v53, %v6231_v30  ;;  %9411 = vst [vmem:[#allocation119_spill] sm:$0xff] %v6242_v50  ;;  %v1690_v58 = vmul.f32 %v6231_v30, %v6231_v30  ;;  %v1801_v31 = vmul.f32 %v6242_v50, %v6242_v50 }
 0x16a   : > { %9412 = vst [vmem:[#allocation120_spill] sm:$0xff] %v6244_v34  ;;  %v1691_v1 = vmul.f32 %v6244_v34, %v6244_v34  ;;  %v6252_v51 = vadd.f32 %v1906_v59, %v1684_v4  ;;  %v2057_v61 = vadd.f32 %v6020_v28, %v1800_v3  ;;  %v6256_v35 = vadd.f32 %v1545_v42, %v6242_v50 }
 0x16b   : > { %v6259_v53 = vadd.f32 %v1403_v25, %v6244_v34  ;;  %v6261_v47 = vpop.f32.mrb[52].mxu1  ;;  %v6263_v20 = vpop.f32.mrb[52].mxu0  ;;  %v1915_v30 = vadd.f32 %v5784_v13, %v1690_v58 }
 0x16c   : > { %9413 = vst [vmem:[#allocation121_spill] sm:$0xff] %v6261_v47  ;;  %9414 = vst [vmem:[#allocation122_spill] sm:$0xff] %v6263_v20  ;;  %v6266_v22 = vadd.f32 %v2057_v61, %v1801_v31  ;;  %v1554_v59 = vadd.f32 %v6040_v0, %v6261_v47  ;;  %v1807_v28 = vmul.f32 %v6261_v47, %v6261_v47  ;;  %v6274_v4 = vpop.f32.mrb[53].mxu1  ;;  %v6276_v3 = vpop.f32.mrb[53].mxu0 }
 0x16d   : > { %v1412_v42 = vadd.f32 %v5806_v54, %v6263_v20  ;;  %9415 = vst [vmem:[#allocation123_spill] sm:$0xff] %v6274_v4  ;;  %9416 = vst [vmem:[#allocation124_spill] sm:$0xff] %v6276_v3  ;;  %v1697_v25 = vmul.f32 %v6263_v20, %v6263_v20  ;;  %v1808_v13 = vmul.f32 %v6274_v4, %v6274_v4 }
 0x16e   : > { %v1698_v58 = vmul.f32 %v6276_v3, %v6276_v3  ;;  %v6284_v0 = vadd.f32 %v1915_v30, %v1691_v1  ;;  %v2066_v31 = vadd.f32 %v6050_v38, %v1807_v28  ;;  %v6288_v61 = vadd.f32 %v1554_v59, %v6274_v4 }
 0x16f   : > { %v6291_v54 = vadd.f32 %v1412_v42, %v6276_v3  ;;  %v6293_v34 = vpop.f32.mrb[54].mxu1  ;;  %v6295_v47 = vpop.f32.mrb[54].mxu0  ;;  %v1924_v50 = vadd.f32 %v5814_v27, %v1697_v25 }
 0x170   : > { %9417 = vst [vmem:[#allocation125_spill] sm:$0xff] %v6293_v34  ;;  %9418 = vst [vmem:[#allocation126_spill] sm:$0xff] %v6295_v47  ;;  %v6298_v20 = vadd.f32 %v2066_v31, %v1808_v13  ;;  %v1563_v30 = vadd.f32 %v6070_v10, %v6293_v34  ;;  %v1814_v38 = vmul.f32 %v6293_v34, %v6293_v34  ;;  %v6306_v59 = vpop.f32.mrb[55].mxu1  ;;  %v6308_v28 = vpop.f32.mrb[55].mxu0 }
 0x171   : > { %v1421_v1 = vadd.f32 %v5836_v56, %v6295_v47  ;;  %9419 = vst [vmem:[#allocation127_spill] sm:$0xff] %v6306_v59  ;;  %9420 = vst [vmem:[#allocation128_spill] sm:$0xff] %v6308_v28  ;;  %v1704_v42 = vmul.f32 %v6295_v47, %v6295_v47  ;;  %v1815_v27 = vmul.f32 %v6306_v59, %v6306_v59 }
 0x172   : > { %v1705_v25 = vmul.f32 %v6308_v28, %v6308_v28  ;;  %v6316_v10 = vadd.f32 %v1924_v50, %v1698_v58  ;;  %v2075_v13 = vadd.f32 %v6080_v36, %v1814_v38  ;;  %v6320_v31 = vadd.f32 %v1563_v30, %v6306_v59 }
 0x173   : > { %v6323_v56 = vadd.f32 %v1421_v1, %v6308_v28  ;;  %v6325_v4 = vpop.f32.mrb[56].mxu1  ;;  %v6327_v34 = vpop.f32.mrb[56].mxu0  ;;  %v1933_v47 = vadd.f32 %v5844_v62, %v1704_v42 }
 0x174   : > { %9421 = vst [vmem:[#allocation129_spill] sm:$0xff] %v6325_v4  ;;  %9422 = vst [vmem:[#allocation130_spill] sm:$0xff] %v6327_v34  ;;  %v6330_v3 = vadd.f32 %v2075_v13, %v1815_v27  ;;  %v1572_v50 = vadd.f32 %v6100_v16, %v6325_v4  ;;  %v1821_v36 = vmul.f32 %v6325_v4, %v6325_v4  ;;  %v6338_v30 = vpop.f32.mrb[57].mxu1  ;;  %v6340_v38 = vpop.f32.mrb[57].mxu0 }
 0x175   : > { %v1430_v58 = vadd.f32 %v5866_v8, %v6327_v34  ;;  %9423 = vst [vmem:[#allocation131_spill] sm:$0xff] %v6338_v30  ;;  %9424 = vst [vmem:[#allocation132_spill] sm:$0xff] %v6340_v38  ;;  %v1711_v1 = vmul.f32 %v6327_v34, %v6327_v34  ;;  %v1822_v62 = vmul.f32 %v6338_v30, %v6338_v30 }
 0x176   : > { %v1712_v42 = vmul.f32 %v6340_v38, %v6340_v38  ;;  %v6348_v16 = vadd.f32 %v1933_v47, %v1705_v25  ;;  %v2084_v27 = vadd.f32 %v6110_v14, %v1821_v36  ;;  %v6352_v13 = vadd.f32 %v1572_v50, %v6338_v30 }
 0x177   : > { %v6355_v8 = vadd.f32 %v1430_v58, %v6340_v38  ;;  %v6357_v4 = vpop.f32.mrb[58].mxu1  ;;  %v6359_v59 = vpop.f32.mrb[58].mxu0  ;;  %v1942_v34 = vadd.f32 %v5874_v32, %v1711_v1 }
 0x178   : > { %9425 = vst [vmem:[#allocation133_spill] sm:$0xff] %v6357_v4  ;;  %9426 = vst [vmem:[#allocation134_spill] sm:$0xff] %v6359_v59  ;;  %v6362_v28 = vadd.f32 %v2084_v27, %v1822_v62  ;;  %v1581_v47 = vadd.f32 %v6130_v23, %v6357_v4  ;;  %v1828_v14 = vmul.f32 %v6357_v4, %v6357_v4  ;;  %v6370_v50 = vpop.f32.mrb[59].mxu1  ;;  %v6372_v36 = vpop.f32.mrb[59].mxu0 }
 0x179   : > { %v1439_v25 = vadd.f32 %v5896_v26, %v6359_v59  ;;  %9427 = vst [vmem:[#allocation135_spill] sm:$0xff] %v6370_v50  ;;  %9428 = vst [vmem:[#allocation136_spill] sm:$0xff] %v6372_v36  ;;  %v1718_v58 = vmul.f32 %v6359_v59, %v6359_v59  ;;  %v1829_v32 = vmul.f32 %v6370_v50, %v6370_v50 }
 0x17a   : > { %v1719_v1 = vmul.f32 %v6372_v36, %v6372_v36  ;;  %v6380_v23 = vadd.f32 %v1942_v34, %v1712_v42  ;;  %v2093_v62 = vadd.f32 %v6140_v17, %v1828_v14  ;;  %v6384_v27 = vadd.f32 %v1581_v47, %v6370_v50 }
 0x17b   : > { %v6387_v26 = vadd.f32 %v1439_v25, %v6372_v36  ;;  %v6389_v30 = vpop.f32.mrb[60].mxu1  ;;  %v6391_v4 = vpop.f32.mrb[60].mxu0  ;;  %v1951_v38 = vadd.f32 %v5904_v60, %v1718_v58 }
 0x17c   : > { %9429 = vst [vmem:[#allocation137_spill] sm:$0xff] %v6389_v30  ;;  %9430 = vst [vmem:[#allocation138_spill] sm:$0xff] %v6391_v4  ;;  %v6394_v59 = vadd.f32 %v2093_v62, %v1829_v32  ;;  %v1590_v34 = vadd.f32 %v6160_v44, %v6389_v30  ;;  %v1835_v17 = vmul.f32 %v6389_v30, %v6389_v30  ;;  %v6402_v47 = vpop.f32.mrb[61].mxu1  ;;  %v6404_v14 = vpop.f32.mrb[61].mxu0 }
 0x17d   : > { %v1448_v42 = vadd.f32 %v5926_v37, %v6391_v4  ;;  %9431 = vst [vmem:[#allocation139_spill] sm:$0xff] %v6402_v47  ;;  %9432 = vst [vmem:[#allocation140_spill] sm:$0xff] %v6404_v14  ;;  %v1725_v25 = vmul.f32 %v6391_v4, %v6391_v4  ;;  %v1836_v60 = vmul.f32 %v6402_v47, %v6402_v47 }
 0x17e   : > { %v1726_v58 = vmul.f32 %v6404_v14, %v6404_v14  ;;  %v6412_v44 = vadd.f32 %v1951_v38, %v1719_v1  ;;  %v2102_v32 = vadd.f32 %v6170_v15, %v1835_v17  ;;  %v6416_v62 = vadd.f32 %v1590_v34, %v6402_v47 }
 0x17f   : > { %v6419_v37 = vadd.f32 %v1448_v42, %v6404_v14  ;;  %v6421_v30 = vpop.f32.mrb[62].mxu1  ;;  %v6423_v50 = vpop.f32.mrb[62].mxu0  ;;  %v1960_v4 = vadd.f32 %v5934_v63, %v1725_v25 }
 0x180   : > { %9433 = vst [vmem:[#allocation141_spill] sm:$0xff] %v6421_v30  ;;  %9434 = vst [vmem:[#allocation142_spill] sm:$0xff] %v6423_v50  ;;  %v6426_v36 = vadd.f32 %v2102_v32, %v1836_v60  ;;  %v1599_v38 = vadd.f32 %v6190_v29, %v6421_v30  ;;  %v1842_v15 = vmul.f32 %v6421_v30, %v6421_v30  ;;  %v6434_v34 = vpop.f32.mrb[63].mxu1  ;;  %v6436_v17 = vpop.f32.mrb[63].mxu0 }
 0x181   : > { %v1457_v1 = vadd.f32 %v5956_v18, %v6423_v50  ;;  %9435 = vst [vmem:[#allocation143_spill] sm:$0xff] %v6434_v34  ;;  %9436 = vst [vmem:[#allocation144_spill] sm:$0xff] %v6436_v17  ;;  %v1732_v42 = vmul.f32 %v6423_v50, %v6423_v50  ;;  %v1843_v63 = vmul.f32 %v6434_v34, %v6434_v34 }
 0x182   : > { %v1733_v25 = vmul.f32 %v6436_v17, %v6436_v17  ;;  %v6444_v29 = vadd.f32 %v1960_v4, %v1726_v58  ;;  %v2111_v60 = vadd.f32 %v6198_v19, %v1842_v15  ;;  %v6448_v32 = vadd.f32 %v1599_v38, %v6434_v34 }
 0x183   : > { %v6451_v18 = vadd.f32 %v1457_v1, %v6436_v17  ;;  %v6453_v47 = vpop.f32.mrb[64].mxu1  ;;  %v6455_v30 = vpop.f32.mrb[64].mxu0  ;;  %v1969_v14 = vadd.f32 %v5964_v48, %v1732_v42 }
 0x184   : > { %9437 = vst [vmem:[#allocation145_spill] sm:$0xff] %v6453_v47  ;;  %9438 = vst [vmem:[#allocation146_spill] sm:$0xff] %v6455_v30  ;;  %v6458_v50 = vadd.f32 %v2111_v60, %v1843_v63  ;;  %v1608_v4 = vadd.f32 %v5504_v21, %v6453_v47  ;;  %v1849_v19 = vmul.f32 %v6453_v47, %v6453_v47  ;;  %v6466_v38 = vpop.f32.mrb[65].mxu1  ;;  %v6468_v15 = vpop.f32.mrb[65].mxu0 }
 0x185   : > { %v1466_v58 = vadd.f32 %v5986_v11, %v6455_v30  ;;  %9440 = vst [vmem:[#allocation148_spill] sm:$0xff] %v6466_v38  ;;  %9441 = vst [vmem:[#allocation149_spill] sm:$0xff] %v6468_v15  ;;  %v1739_v1 = vmul.f32 %v6455_v30, %v6455_v30  ;;  %v1850_v48 = vmul.f32 %v6466_v38, %v6466_v38 }
 0x186   : > { %9439 = vst [vmem:[#allocation147_spill] sm:$0xff] %v6458_v50  ;;  %v1740_v42 = vmul.f32 %v6468_v15, %v6468_v15  ;;  %v6476_v21 = vadd.f32 %v1969_v14, %v1733_v25  ;;  %v2120_v63 = vadd.f32 %v5516_v2, %v1849_v19  ;;  %v6480_v60 = vadd.f32 %v1608_v4, %v6466_v38  ;;  %v9492_v50 = vld [vmem:[#allocation39_spill] sm:$0xff] }
 0x187   : > { %v6483_v11 = vadd.f32 %v1466_v58, %v6468_v15  ;;  %v6485_v47 = vpop.f32.mrb[66].mxu1  ;;  %v6487_v34 = vpop.f32.mrb[66].mxu0  ;;  %v1978_v30 = vadd.f32 %v5994_v45, %v1739_v1 }
 0x188   : > { %9442 = vst [vmem:[#allocation150_spill] sm:$0xff] %v6485_v47  ;;  %9443 = vst [vmem:[#allocation151_spill] sm:$0xff] %v6487_v34  ;;  %v6490_v17 = vadd.f32 %v2120_v63, %v1850_v48  ;;  %v1617_v14 = vadd.f32 %v5536_v41, %v6485_v47  ;;  %v1856_v2 = vmul.f32 %v6485_v47, %v6485_v47  ;;  %v6498_v4 = vpop.f32.mrb[67].mxu1  ;;  %v6500_v19 = vpop.f32.mrb[67].mxu0 }
 0x189   : > { %v1475_v25 = vadd.f32 %v6016_v40, %v6487_v34  ;;  %9445 = vst [vmem:[#allocation153_spill] sm:$0xff] %v6498_v4  ;;  %9446 = vst [vmem:[#allocation154_spill] sm:$0xff] %v6500_v19  ;;  %v1746_v58 = vmul.f32 %v6487_v34, %v6487_v34  ;;  %v1857_v45 = vmul.f32 %v6498_v4, %v6498_v4 }
 0x18a   : > { %9444 = vst [vmem:[#allocation152_spill] sm:$0xff] %v6490_v17  ;;  %v1747_v1 = vmul.f32 %v6500_v19, %v6500_v19  ;;  %v6508_v41 = vadd.f32 %v1978_v30, %v1740_v42  ;;  %v2129_v48 = vadd.f32 %v5548_v46, %v1856_v2  ;;  %v6512_v63 = vadd.f32 %v1617_v14, %v6498_v4 }
 0x18b   : > { %v6515_v40 = vadd.f32 %v1475_v25, %v6500_v19  ;;  %v6517_v38 = vpop.f32.mrb[68].mxu1  ;;  %v6519_v47 = vpop.f32.mrb[68].mxu0  ;;  %v1987_v15 = vadd.f32 %v6024_v9, %v1746_v58 }
 0x18c   : > { %9447 = vst [vmem:[#allocation155_spill] sm:$0xff] %v6512_v63  ;;  %9448 = vst [vmem:[#allocation156_spill] sm:$0xff] %v6517_v38  ;;  %v6522_v34 = vadd.f32 %v2129_v48, %v1857_v45  ;;  %v1626_v30 = vadd.f32 %v5568_v52, %v6517_v38  ;;  %v1863_v46 = vmul.f32 %v6517_v38, %v6517_v38  ;;  %v6530_v14 = vpop.f32.mrb[69].mxu1  ;;  %v6532_v2 = vpop.f32.mrb[69].mxu0  ;;  %v9482_v63 = vld [vmem:[#allocation33_spill] sm:$0xff] }
 0x18d   : > { %9449 = vst [vmem:[#allocation157_spill] sm:$0xff] %v6519_v47  ;;  %v1484_v42 = vadd.f32 %v6046_v39, %v6519_v47  ;;  %9451 = vst [vmem:[#allocation159_spill] sm:$0xff] %v6530_v14  ;;  %v1753_v25 = vmul.f32 %v6519_v47, %v6519_v47  ;;  %v1864_v9 = vmul.f32 %v6530_v14, %v6530_v14 }
 0x18e   : > { %9450 = vst [vmem:[#allocation158_spill] sm:$0xff] %v6522_v34  ;;  %9452 = vst [vmem:[#allocation160_spill] sm:$0xff] %v6532_v2  ;;  %v1754_v58 = vmul.f32 %v6532_v2, %v6532_v2  ;;  %v6540_v52 = vadd.f32 %v1987_v15, %v1747_v1  ;;  %v2138_v45 = vadd.f32 %v5578_v57, %v1863_v46  ;;  %v9472_v34 = vld [vmem:[#allocation27_spill] sm:$0xff] }
 0x18f   : > { %v6544_v48 = vadd.f32 %v1626_v30, %v6530_v14  ;;  %v6547_v39 = vadd.f32 %v1484_v42, %v6532_v2  ;;  %v6549_v38 = vpop.f32.mrb[70].mxu1  ;;  %v6551_v4 = vpop.f32.mrb[70].mxu0  ;;  %v1996_v47 = vadd.f32 %v6054_v55, %v1753_v25 }
 0x190   : > { %9454 = vst [vmem:[#allocation162_spill] sm:$0xff] %v6549_v38  ;;  %9455 = vst [vmem:[#allocation163_spill] sm:$0xff] %v6551_v4  ;;  %v6554_v19 = vadd.f32 %v2138_v45, %v1864_v9  ;;  %v1635_v15 = vadd.f32 %v5596_v5, %v6549_v38  ;;  %v1870_v57 = vmul.f32 %v6549_v38, %v6549_v38  ;;  %v6562_v30 = vpop.f32.mrb[71].mxu1  ;;  %v6564_v46 = vpop.f32.mrb[71].mxu0 }
 0x191   : > { %9453 = vst [vmem:[#allocation161_spill] sm:$0xff] %v6544_v48  ;;  %v1493_v1 = vadd.f32 %v6076_v43, %v6551_v4  ;;  %9457 = vst [vmem:[#allocation165_spill] sm:$0xff] %v6562_v30  ;;  %v1760_v42 = vmul.f32 %v6551_v4, %v6551_v4  ;;  %v1871_v55 = vmul.f32 %v6562_v30, %v6562_v30 }
 0x192   : > { %9456 = vst [vmem:[#allocation164_spill] sm:$0xff] %v6554_v19  ;;  %9458 = vst [vmem:[#allocation166_spill] sm:$0xff] %v6564_v46  ;;  %v1761_v25 = vmul.f32 %v6564_v46, %v6564_v46  ;;  %v6572_v5 = vadd.f32 %v1996_v47, %v1754_v58  ;;  %v2147_v9 = vadd.f32 %v5606_v12, %v1870_v57  ;;  %v9463_v58 = vld [vmem:[#allocation93_spill] sm:$0xff] }
 0x193   : > { %v6576_v45 = vadd.f32 %v1635_v15, %v6562_v30  ;;  %v6579_v43 = vadd.f32 %v1493_v1, %v6564_v46  ;;  %v6581_v14 = vpop.f32.mrb[72].mxu1  ;;  %v6583_v38 = vpop.f32.mrb[72].mxu0  ;;  %v2005_v2 = vadd.f32 %v6084_v6, %v1760_v42 }
 0x194   : > { %9460 = vst [vmem:[#allocation168_spill] sm:$0xff] %v6581_v14  ;;  %9461 = vst [vmem:[#allocation169_spill] sm:$0xff] %v6583_v38  ;;  %v6586_v4 = vadd.f32 %v2147_v9, %v1871_v55  ;;  %v1644_v47 = vadd.f32 %v5624_v24, %v6581_v14  ;;  %v1877_v12 = vmul.f32 %v6581_v14, %v6581_v14  ;;  %v6594_v57 = vpop.f32.mrb[73].mxu1  ;;  %v6596_v1 = vpop.f32.mrb[73].mxu0  ;;  %v9466_v55 = vld [vmem:[#allocation22_spill] sm:$0xff] }
 0x195   : > { %9459 = vst [vmem:[#allocation167_spill] sm:$0xff] %v6576_v45  ;;  %v1502_v15 = vadd.f32 %v9463_v58, %v6583_v38  ;;  %9464 = vst [vmem:[#allocation93_spill] sm:$0xff] %v6594_v57  ;;  %v1767_v30 = vmul.f32 %v6583_v38, %v6583_v38  ;;  %v1878_v6 = vmul.f32 %v6594_v57, %v6594_v57  ;;  %v9470_v38 = vld [vmem:[#allocation96_spill] sm:$0xff] }
 0x196   : > { %9462 = vst [vmem:[#allocation170_spill] sm:$0xff] %v6586_v4  ;;  %9465 = vst [vmem:[#allocation171_spill] sm:$0xff] %v6596_v1  ;;  %v1768_v42 = vmul.f32 %v6596_v1, %v6596_v1  ;;  %v6604_v24 = vadd.f32 %v2005_v2, %v1761_v25  ;;  %v2156_v9 = vadd.f32 %v9466_v55, %v1877_v12 }
 0x197   : > { %v6608_v14 = vadd.f32 %v1644_v47, %v6594_v57  ;;  %v6611_v58 = vadd.f32 %v1502_v15, %v6596_v1  ;;  %v6613_v46 = vpop.f32.mrb[74].mxu1  ;;  %v6615_v4 = vpop.f32.mrb[74].mxu0  ;;  %v2014_v45 = vadd.f32 %v9470_v38, %v1767_v30  ;;  %v9473_v47 = vld [vmem:[#allocation99_spill] sm:$0xff] }
 0x198   : > { %9468 = vst [vmem:[#allocation172_spill] sm:$0xff] %v6613_v46  ;;  %9469 = vst [vmem:[#allocation173_spill] sm:$0xff] %v6615_v4  ;;  %v6618_v19 = vadd.f32 %v2156_v9, %v1878_v6  ;;  %v1653_v2 = vadd.f32 %v9472_v34, %v6613_v46  ;;  %v1884_v25 = vmul.f32 %v6613_v46, %v6613_v46  ;;  %v6626_v55 = vpop.f32.mrb[75].mxu1  ;;  %v6628_v15 = vpop.f32.mrb[75].mxu0  ;;  %v9476_v6 = vld [vmem:[#allocation28_spill] sm:$0xff] }
 0x199   : > { %9467 = vst [vmem:[#allocation22_spill] sm:$0xff] %v6608_v14  ;;  %v1511_v12 = vadd.f32 %v9473_v47, %v6615_v4  ;;  %9474 = vst [vmem:[#allocation27_spill] sm:$0xff] %v6626_v55  ;;  %v1774_v57 = vmul.f32 %v6615_v4, %v6615_v4  ;;  %v1885_v38 = vmul.f32 %v6626_v55, %v6626_v55  ;;  %v9480_v4 = vld [vmem:[#allocation102_spill] sm:$0xff] }
 0x19a   : > { %9471 = vst [vmem:[#allocation96_spill] sm:$0xff] %v6618_v19  ;;  %9475 = vst [vmem:[#allocation99_spill] sm:$0xff] %v6628_v15  ;;  %v1775_v30 = vmul.f32 %v6628_v15, %v6628_v15  ;;  %v6636_v34 = vadd.f32 %v2014_v45, %v1768_v42  ;;  %v2165_v9 = vadd.f32 %v9476_v6, %v1884_v25 }
 0x19b   : > { %v6640_v46 = vadd.f32 %v1653_v2, %v6626_v55  ;;  %v6643_v47 = vadd.f32 %v1511_v12, %v6628_v15  ;;  %v6645_v1 = vpop.f32.mrb[76].mxu1  ;;  %v6647_v19 = vpop.f32.mrb[76].mxu0  ;;  %v2023_v14 = vadd.f32 %v9480_v4, %v1774_v57  ;;  %v9483_v2 = vld [vmem:[#allocation105_spill] sm:$0xff] }
 0x19c   : > { %9478 = vst [vmem:[#allocation174_spill] sm:$0xff] %v6645_v1  ;;  %9479 = vst [vmem:[#allocation175_spill] sm:$0xff] %v6647_v19  ;;  %v6650_v48 = vadd.f32 %v2165_v9, %v1885_v38  ;;  %v1662_v45 = vadd.f32 %v9482_v63, %v6645_v1  ;;  %v1891_v42 = vmul.f32 %v6645_v1, %v6645_v1  ;;  %v6658_v6 = vpop.f32.mrb[77].mxu1  ;;  %v6660_v12 = vpop.f32.mrb[77].mxu0  ;;  %v9486_v38 = vld [vmem:[#allocation34_spill] sm:$0xff] }
 0x19d   : > { %9477 = vst [vmem:[#allocation28_spill] sm:$0xff] %v6640_v46  ;;  %v1520_v25 = vadd.f32 %v9483_v2, %v6647_v19  ;;  %9484 = vst [vmem:[#allocation33_spill] sm:$0xff] %v6658_v6  ;;  %v1781_v55 = vmul.f32 %v6647_v19, %v6647_v19  ;;  %v1892_v4 = vmul.f32 %v6658_v6, %v6658_v6  ;;  %v9490_v19 = vld [vmem:[#allocation108_spill] sm:$0xff] }
 0x19e   : > { %9481 = vst [vmem:[#allocation102_spill] sm:$0xff] %v6650_v48  ;;  %9485 = vst [vmem:[#allocation105_spill] sm:$0xff] %v6660_v12  ;;  %v1782_v57 = vmul.f32 %v6660_v12, %v6660_v12  ;;  %v6668_v63 = vadd.f32 %v2023_v14, %v1775_v30  ;;  %v2174_v9 = vadd.f32 %v9486_v38, %v1891_v42 }
 0x19f   : > { %v6672_v1 = vadd.f32 %v1662_v45, %v6658_v6  ;;  %v6675_v2 = vadd.f32 %v1520_v25, %v6660_v12  ;;  %v6677_v15 = vpop.f32.mrb[78].mxu1  ;;  %v6679_v48 = vpop.f32.mrb[78].mxu0  ;;  %v2032_v46 = vadd.f32 %v9490_v19, %v1781_v55 }
 0x1a0   : > { %9488 = vst [vmem:[#allocation176_spill] sm:$0xff] %v6677_v15  ;;  %9489 = vst [vmem:[#allocation177_spill] sm:$0xff] %v6679_v48  ;;  %v6682_v17 = vadd.f32 %v2174_v9, %v1892_v4  ;;  %v1671_v14 = vadd.f32 %v9492_v50, %v6677_v15  ;;  %v1898_v30 = vmul.f32 %v6677_v15, %v6677_v15  ;;  %v6690_v42 = vpop.f32.mrb[79].mxu1  ;;  %v6692_v25 = vpop.f32.mrb[79].mxu0  ;;  %v9495_v50 = vld [vmem:[#allocation40_spill] sm:$0xff] }
 0x1a1   : > { %9487 = vst [vmem:[#allocation34_spill] sm:$0xff] %v6672_v1  ;;  %v1529_v45 = vadd.f32 %v6196_v33, %v6679_v48  ;;  %9493 = vst [vmem:[#allocation39_spill] sm:$0xff] %v6690_v42  ;;  %v1788_v38 = vmul.f32 %v6679_v48, %v6679_v48  ;;  %v1899_v19 = vmul.f32 %v6690_v42, %v6690_v42  ;;  %v9499_v48 = vld [vmem:[#allocation113_spill] sm:$0xff] }
 0x1a2   : > { %9491 = vst [vmem:[#allocation108_spill] sm:$0xff] %v6682_v17  ;;  %9494 = vst [vmem:[#allocation178_spill] sm:$0xff] %v6692_v25  ;;  %v6698_v55 = vadd.f32 %v2032_v46, %v1782_v57  ;;  %v2183_v4 = vadd.f32 %v9495_v50, %v1898_v30  ;;  %v6702_v9 = vadd.f32 %v1671_v14, %v6690_v42 }
 0x1a3   : > { %v1789_v33 = vmul.f32 %v6692_v25, %v6692_v25  ;;  %v6707_v15 = vadd.f32 %v1529_v45, %v6692_v25  ;;  %v6709_v6 = vpop.f32.mrb[80].mxu0  ;;  %v6711_v12 = vpop.f32.mrb[80].mxu1  ;;  %v2041_v17 = vadd.f32 %v9499_v48, %v1788_v38 }
 0x1a4   : > { %9496 = vst [vmem:[#allocation40_spill] sm:$0xff] %v6702_v9  ;;  %9497 = vst [vmem:[#allocation179_spill] sm:$0xff] %v6709_v6  ;;  %v6714_v1 = vadd.f32 %v2183_v4, %v1899_v19  ;;  %v1538_v46 = vadd.f32 %v6224_v7, %v6709_v6  ;;  %v1795_v57 = vmul.f32 %v6709_v6, %v6709_v6  ;;  %v6720_v14 = vpop.f32.mrb[81].mxu1  ;;  %v6722_v30 = vpop.f32.mrb[81].mxu0  ;;  %v1405_v45 = vsel %vm1395_vm0, %v6711_v12, 0.0 }
 0x1a5   : > { %9498 = vst [vmem:[#allocation180_spill] sm:$0xff] %v6711_v12  ;;  %9501 = vst [vmem:[#allocation181_spill] sm:$0xff] %v6720_v14  ;;  %v1685_v50 = vmul.f32 %v6720_v14, %v6720_v14  ;;  %v1406_v48 = vadd.f32 %v1405_v45, %v6259_v53  ;;  %v1692_v38 = vmul.f32 %v6711_v12, %v6711_v12  ;;  %v1396_v7 = vsel %vm1395_vm0, %v6720_v14, 0.0  ;;  %v9505_v12 = vld [vmem:[#allocation116_spill] sm:$0xff] }
 0x1a6   : > { %9500 = vst [vmem:[#allocation113_spill] sm:$0xff] %v6714_v1  ;;  %9502 = vst [vmem:[#allocation182_spill] sm:$0xff] %v6722_v30  ;;  %v6733_v19 = vadd.f32 %v2041_v17, %v1789_v33  ;;  %v6736_v4 = vadd.f32 %v1538_v46, %v6722_v30  ;;  %v2050_v42 = vadd.f32 %v6234_v49, %v1795_v57 }
 0x1a7   : > { %v1796_v6 = vmul.f32 %v6722_v30, %v6722_v30  ;;  %v6741_v25 = vpop.f32.mrb[82].mxu1  ;;  %1407 = vadd.xlane.f32.xlu0 %v1406_v48  ;;  %v6743_v53 = vpop.f32.mrb[82].mxu0  ;;  %v1917_v45 = vsel %vm1395_vm0, %v1692_v38, 0.0  ;;  %v1397_v1 = vadd.f32 %v1396_v7, %v9505_v12  ;;  %v1908_v17 = vsel %vm1395_vm0, %v1685_v50, 0.0 }
 0x1a8   : > { %9503 = vst [vmem:[#allocation183_spill] sm:$0xff] %v6741_v25  ;;  %9504 = vst [vmem:[#allocation184_spill] sm:$0xff] %v6743_v53  ;;  %v1706_v33 = vmul.f32 %v6741_v25, %v6741_v25  ;;  %v1547_v49 = vadd.f32 %v6256_v35, %v6743_v53  ;;  %v1802_v46 = vmul.f32 %v6743_v53, %v6743_v53  ;;  %v6754_v57 = vpop.f32.mrb[83].mxu1  ;;  %v6757_v30 = vpop.f32.mrb[83].mxu0  ;;  %v1423_v38 = vsel %vm1395_vm0, %v6741_v25, 0.0 }
 0x1a9   : > { %v1918_v48 = vadd.f32 %v1917_v45, %v6284_v0  ;;  %9506 = vst [vmem:[#allocation116_spill] sm:$0xff] %v6757_v30  ;;  %v1699_v12 = vmul.f32 %v6754_v57, %v6754_v57  ;;  %v1803_v50 = vmul.f32 %v6757_v30, %v6757_v30  ;;  %v1909_v35 = vadd.f32 %v1908_v17, %v6252_v51 }
 0x1aa   : > { %v1424_v7 = vadd.f32 %v1423_v38, %v6323_v56  ;;  %v1414_v53 = vsel %vm1395_vm0, %v6754_v57, 0.0  ;;  %v1935_v0 = vsel %vm1395_vm0, %v1706_v33, 0.0  ;;  %v6771_v45 = vadd.f32 %v1547_v49, %v6757_v30 }
 0x1ab   : > { %1919 = vadd.xlane.f32.xlu1 %v1918_v48  ;;  %v6773_v14 = vpop.f32.mrb[84].mxu1  ;;  %1398 = vadd.xlane.f32.xlu0 %v1397_v1  ;;  %v6775_v9 = vpop.f32.mrb[84].mxu0  ;;  %v1415_v25 = vadd.f32 %v1414_v53, %v6291_v54  ;;  %v1926_v51 = vsel %vm1395_vm0, %v1699_v12, 0.0  ;;  %v1936_v17 = vadd.f32 %v1935_v0, %v6348_v16  ;;  %v6780_v56 = vadd.f32 %v2050_v42, %v1796_v6 }
 0x1ac   : > { %9507 = vst [vmem:[#allocation185_spill] sm:$0xff] %v6775_v9  ;;  %v1720_v48 = vmul.f32 %v6773_v14, %v6773_v14  ;;  %v1556_v33 = vadd.f32 %v6288_v61, %v6775_v9  ;;  %v1809_v49 = vmul.f32 %v6775_v9, %v6775_v9  ;;  %v6788_v1 = vpop.f32.mrb[85].mxu1  ;;  %v6790_v38 = vpop.f32.mrb[85].mxu0  ;;  %v1927_v54 = vadd.f32 %v1926_v51, %v6316_v10 }
 0x1ad   : > { %9508 = vst [vmem:[#allocation186_spill] sm:$0xff] %v6788_v1  ;;  %9509 = vst [vmem:[#allocation187_spill] sm:$0xff] %v6790_v38  ;;  %v1713_v16 = vmul.f32 %v6788_v1, %v6788_v1  ;;  %v1810_v6 = vmul.f32 %v6790_v38, %v6790_v38  ;;  %v1432_v42 = vsel %vm1395_vm0, %v6788_v1, 0.0  ;;  %v1441_v61 = vsel %vm1395_vm0, %v6773_v14, 0.0 }
 0x1ae   : > { %v1433_v53 = vadd.f32 %v1432_v42, %v6355_v8  ;;  %v6803_v12 = vadd.f32 %v1441_v61, %v6387_v26  ;;  %v1953_v10 = vsel %vm1395_vm0, %v1720_v48, 0.0  ;;  %v2059_v0 = vadd.f32 %v6266_v22, %v1802_v46 }
 0x1af   : > { %1425 = vadd.xlane.f32.xlu1 %v1424_v7  ;;  %v6807_v51 = vpop.f32.mrb[86].mxu1  ;;  %1910 = vadd.xlane.f32.xlu0 %v1909_v35  ;;  %v6809_v9 = vpop.f32.mrb[86].mxu0  ;;  %v1944_v30 = vsel %vm1395_vm0, %v1713_v16, 0.0  ;;  %v6813_v1 = vadd.f32 %v1953_v10, %v6412_v44  ;;  %v6816_v7 = vadd.f32 %v1556_v33, %v6790_v38  ;;  %v2068_v8 = vadd.f32 %v6298_v20, %v1809_v49 }
 0x1b0   : > { %9510 = vst [vmem:[#allocation188_spill] sm:$0xff] %v6809_v9  ;;  %v1734_v26 = vmul.f32 %v6807_v51, %v6807_v51  ;;  %v1565_v22 = vadd.f32 %v6320_v31, %v6809_v9  ;;  %v1816_v46 = vmul.f32 %v6809_v9, %v6809_v9  ;;  %v6825_v35 = vpop.f32.mrb[87].mxu1  ;;  %v6827_v48 = vpop.f32.mrb[87].mxu0  ;;  %v1945_v44 = vadd.f32 %v1944_v30, %v6380_v23 }
 0x1b1   : > { %9511 = vst [vmem:[#allocation189_spill] sm:$0xff] %v6827_v48  ;;  %v1727_v33 = vmul.f32 %v6825_v35, %v6825_v35  ;;  %v1817_v20 = vmul.f32 %v6827_v48, %v6827_v48  ;;  %v1450_v49 = vsel %vm1395_vm0, %v6825_v35, 0.0  ;;  %v1459_v31 = vsel %vm1395_vm0, %v6807_v51, 0.0 }
 0x1b2   : > { %v6839_v16 = vadd.f32 %v1450_v49, %v6419_v37  ;;  %v6842_v42 = vadd.f32 %v1459_v31, %v6451_v18  ;;  %v1971_v23 = vsel %vm1395_vm0, %v1734_v26, 0.0  ;;  %v6845_v30 = vadd.f32 %v2059_v0, %v1803_v50 }
 0x1b3   : > { %1416 = vadd.xlane.f32.xlu1 %v1415_v25  ;;  %v6847_v61 = vpop.f32.mrb[88].mxu1  ;;  %1928 = vadd.xlane.f32.xlu0 %v1927_v54  ;;  %v6849_v10 = vpop.f32.mrb[88].mxu0  ;;  %v1962_v38 = vsel %vm1395_vm0, %v1727_v33, 0.0  ;;  %v6853_v9 = vadd.f32 %v1971_v23, %v6476_v21  ;;  %v6856_v37 = vadd.f32 %v1565_v22, %v6827_v48  ;;  %v6858_v25 = vadd.f32 %v2068_v8, %v1810_v6 }
 0x1b4   : > { %9512 = vst [vmem:[#allocation190_spill] sm:$0xff] %v6849_v10  ;;  %v1748_v18 = vmul.f32 %v6847_v61, %v6847_v61  ;;  %v1574_v50 = vadd.f32 %v6352_v13, %v6849_v10  ;;  %v1823_v54 = vmul.f32 %v6849_v10, %v6849_v10  ;;  %v6866_v0 = vpop.f32.mrb[89].mxu1  ;;  %v6868_v26 = vpop.f32.mrb[89].mxu0  ;;  %v6871_v21 = vadd.f32 %v1962_v38, %v6444_v29 }
 0x1b5   : > { %9513 = vst [vmem:[#allocation191_spill] sm:$0xff] %v6868_v26  ;;  %v1741_v6 = vmul.f32 %v6866_v0, %v6866_v0  ;;  %v1824_v8 = vmul.f32 %v6868_v26, %v6868_v26  ;;  %v1468_v22 = vsel %vm1395_vm0, %v6866_v0, 0.0  ;;  %v1477_v13 = vsel %vm1395_vm0, %v6847_v61, 0.0 }
 0x1b6   : > { %v6882_v33 = vadd.f32 %v1468_v22, %v6483_v11  ;;  %v6885_v49 = vadd.f32 %v1477_v13, %v6515_v40  ;;  %v1989_v29 = vsel %vm1395_vm0, %v1748_v18, 0.0  ;;  %v2077_v38 = vadd.f32 %v6330_v3, %v1816_v46 }
 0x1b7   : > { %1937 = vadd.xlane.f32.xlu1 %v1936_v17  ;;  %v6889_v31 = vpop.f32.mrb[90].mxu1  ;;  %1434 = vadd.xlane.f32.xlu0 %v1433_v53  ;;  %v6891_v23 = vpop.f32.mrb[90].mxu0  ;;  %v1980_v10 = vsel %vm1395_vm0, %v1741_v6, 0.0  ;;  %v6895_v48 = vadd.f32 %v1989_v29, %v6540_v52  ;;  %v6898_v11 = vadd.f32 %v1574_v50, %v6868_v26  ;;  %v2086_v40 = vadd.f32 %v6362_v28, %v1823_v54 }
 0x1b8   : > { %9514 = vst [vmem:[#allocation192_spill] sm:$0xff] %v6891_v23  ;;  %v1762_v17 = vmul.f32 %v6889_v31, %v6889_v31  ;;  %v1583_v3 = vadd.f32 %v6384_v27, %v6891_v23  ;;  %v1830_v53 = vmul.f32 %v6891_v23, %v6891_v23  ;;  %v6907_v46 = vpop.f32.mrb[91].mxu1  ;;  %v6909_v18 = vpop.f32.mrb[91].mxu0  ;;  %v6912_v52 = vadd.f32 %v1980_v10, %v6508_v41 }
 0x1b9   : > { %9515 = vst [vmem:[#allocation193_spill] sm:$0xff] %v6909_v18  ;;  %v1755_v50 = vmul.f32 %v6907_v46, %v6907_v46  ;;  %v1831_v28 = vmul.f32 %v6909_v18, %v6909_v18  ;;  %v1486_v54 = vsel %vm1395_vm0, %v6907_v46, 0.0  ;;  %v1495_v27 = vsel %vm1395_vm0, %v6889_v31, 0.0 }
 0x1ba   : > { %v6924_v6 = vadd.f32 %v1486_v54, %v6547_v39  ;;  %v6927_v41 = vadd.f32 %v1495_v27, %v6579_v43  ;;  %v2007_v10 = vsel %vm1395_vm0, %v1762_v17, 0.0  ;;  %v6930_v22 = vadd.f32 %v2077_v38, %v1817_v20 }
 0x1bb   : > { %1443 = vadd.xlane.f32.xlu1 %v6803_v12  ;;  %v6932_v13 = vpop.f32.mrb[92].mxu1  ;;  %1946 = vadd.xlane.f32.xlu0 %v1945_v44  ;;  %v6934_v29 = vpop.f32.mrb[92].mxu0  ;;  %v1998_v26 = vsel %vm1395_vm0, %v1755_v50, 0.0  ;;  %v6938_v23 = vadd.f32 %v2007_v10, %v6604_v24  ;;  %v6941_v39 = vadd.f32 %v1583_v3, %v6909_v18  ;;  %v6943_v12 = vadd.f32 %v2086_v40, %v1824_v8 }
 0x1bc   : > { %9516 = vst [vmem:[#allocation194_spill] sm:$0xff] %v6934_v29  ;;  %v1776_v43 = vmul.f32 %v6932_v13, %v6932_v13  ;;  %v1592_v20 = vadd.f32 %v6416_v62, %v6934_v29  ;;  %v1837_v44 = vmul.f32 %v6934_v29, %v6934_v29  ;;  %v6951_v38 = vpop.f32.mrb[93].mxu1  ;;  %v6953_v17 = vpop.f32.mrb[93].mxu0  ;;  %v6956_v24 = vadd.f32 %v1998_v26, %v6572_v5 }
 0x1bd   : > { %9517 = vst [vmem:[#allocation195_spill] sm:$0xff] %v6953_v17  ;;  %v1769_v8 = vmul.f32 %v6951_v38, %v6951_v38  ;;  %v1838_v40 = vmul.f32 %v6953_v17, %v6953_v17  ;;  %v1504_v3 = vsel %vm1395_vm0, %v6951_v38, 0.0  ;;  %v1513_v62 = vsel %vm1395_vm0, %v6932_v13, 0.0 }
 0x1be   : > { %v6968_v50 = vadd.f32 %v1504_v3, %v6611_v58  ;;  %v6971_v5 = vadd.f32 %v1513_v62, %v6643_v47  ;;  %v2025_v26 = vsel %vm1395_vm0, %v1776_v43, 0.0  ;;  %v2095_v54 = vadd.f32 %v6394_v59, %v1830_v53 }
 0x1bf   : > { %1955 = vadd.xlane.f32.xlu1 %v6813_v1  ;;  %v6975_v27 = vpop.f32.mrb[94].mxu1  ;;  %1452 = vadd.xlane.f32.xlu0 %v6839_v16  ;;  %v6978_v10 = vpop.f32.mrb[94].mxu0  ;;  %v2016_v29 = vsel %vm1395_vm0, %v1769_v8, 0.0  ;;  %v6982_v1 = vadd.f32 %v2025_v26, %v6668_v63  ;;  %v6985_v58 = vadd.f32 %v1592_v20, %v6953_v17  ;;  %v2104_v47 = vadd.f32 %v6426_v36, %v1837_v44 }
 0x1c0   : > { %9518 = vst [vmem:[#allocation196_spill] sm:$0xff] %v6975_v27  ;;  %9519 = vst [vmem:[#allocation197_spill] sm:$0xff] %v6978_v10  ;;  %v1790_v43 = vmul.f32 %v6975_v27, %v6975_v27  ;;  %v1601_v59 = vadd.f32 %v6448_v32, %v6978_v10  ;;  %v1844_v16 = vmul.f32 %v6978_v10, %v6978_v10  ;;  %v6994_v53 = vpop.f32.mrb[95].mxu1  ;;  %v6996_v8 = vpop.f32.mrb[95].mxu0  ;;  %v1531_v32 = vsel %vm1395_vm0, %v6975_v27, 0.0 }
 0x1c1   : > { %9520 = vst [vmem:[#allocation198_spill] sm:$0xff] %v6994_v53  ;;  %9521 = vst [vmem:[#allocation199_spill] sm:$0xff] %v6996_v8  ;;  %v6999_v63 = vadd.f32 %v2016_v29, %v6636_v34  ;;  %v1783_v20 = vmul.f32 %v6994_v53, %v6994_v53  ;;  %v1845_v36 = vmul.f32 %v6996_v8, %v6996_v8  ;;  %v1522_v44 = vsel %vm1395_vm0, %v6994_v53, 0.0  ;;  %v9559_v53 = vld [vmem:[#allocation102_spill] sm:$0xff] }
 0x1c2   : > { %v7011_v3 = vadd.f32 %v1522_v44, %v6675_v2  ;;  %v7014_v34 = vadd.f32 %v1531_v32, %v6707_v15  ;;  %v2043_v29 = vsel %vm1395_vm0, %v1790_v43, 0.0  ;;  %v7017_v62 = vadd.f32 %v2095_v54, %v1831_v28  ;;  %v9526_v32 = vld [vmem:[#allocation147_spill] sm:$0xff] }
 0x1c3   : > { %1461 = vadd.xlane.f32.xlu1 %v6842_v42  ;;  %v7019_v26 = vpop.f32.mrb[96].mxu1  ;;  %1964 = vadd.xlane.f32.xlu0 %v6871_v21  ;;  %v7022_v17 = vpop.f32.mrb[96].mxu0  ;;  %v2034_v10 = vsel %vm1395_vm0, %v1783_v20, 0.0  ;;  %v7026_v42 = vadd.f32 %v2043_v29, %v6733_v19  ;;  %v7029_v2 = vadd.f32 %v1601_v59, %v6996_v8  ;;  %v7031_v15 = vadd.f32 %v2104_v47, %v1838_v40 }
 0x1c4   : > { %9522 = vst [vmem:[#allocation200_spill] sm:$0xff] %v7019_v26  ;;  %9523 = vst [vmem:[#allocation201_spill] sm:$0xff] %v7022_v17  ;;  %v1804_v28 = vmul.f32 %v7019_v26, %v7019_v26  ;;  %v1610_v54 = vadd.f32 %v6480_v60, %v7022_v17  ;;  %v1851_v21 = vmul.f32 %v7022_v17, %v7022_v17  ;;  %v7039_v43 = vpop.f32.mrb[97].mxu1  ;;  %v7041_v20 = vpop.f32.mrb[97].mxu0  ;;  %v1549_v60 = vsel %vm1395_vm0, %v7019_v26, 0.0 }
 0x1c5   : > { %9524 = vst [vmem:[#allocation202_spill] sm:$0xff] %v7039_v43  ;;  %9525 = vst [vmem:[#allocation203_spill] sm:$0xff] %v7041_v20  ;;  %v7044_v19 = vadd.f32 %v2034_v10, %v6698_v55  ;;  %v1797_v40 = vmul.f32 %v7039_v43, %v7039_v43  ;;  %v1852_v47 = vmul.f32 %v7041_v20, %v7041_v20  ;;  %v1540_v59 = vsel %vm1395_vm0, %v7039_v43, 0.0 }
 0x1c6   : > { %v7056_v44 = vadd.f32 %v1540_v59, %v6736_v4  ;;  %v7059_v55 = vadd.f32 %v1549_v60, %v6771_v45  ;;  %v2061_v10 = vsel %vm1395_vm0, %v1804_v28, 0.0  ;;  %v2113_v29 = vadd.f32 %v9526_v32, %v1844_v16  ;;  %v9529_v45 = vld [vmem:[#allocation152_spill] sm:$0xff]  ;;  %v9530_v16 = vld [vmem:[#allocation155_spill] sm:$0xff] }
 0x1c7   : > { %1973 = vadd.xlane.f32.xlu1 %v6853_v9  ;;  %v7063_v17 = vpop.f32.mrb[98].mxu1  ;;  %1470 = vadd.xlane.f32.xlu0 %v6882_v33  ;;  %v7066_v8 = vpop.f32.mrb[98].mxu0  ;;  %v2052_v18 = vsel %vm1395_vm0, %v1797_v40, 0.0  ;;  %v7070_v9 = vadd.f32 %v2061_v10, %v6845_v30  ;;  %v7073_v4 = vadd.f32 %v1610_v54, %v7041_v20  ;;  %v2122_v59 = vadd.f32 %v9529_v45, %v1851_v21 }
 0x1c8   : > { %9527 = vst [vmem:[#allocation147_spill] sm:$0xff] %v7063_v17  ;;  %9528 = vst [vmem:[#allocation204_spill] sm:$0xff] %v7066_v8  ;;  %v1818_v28 = vmul.f32 %v7063_v17, %v7063_v17  ;;  %v1619_v60 = vadd.f32 %v9530_v16, %v7066_v8  ;;  %v1858_v33 = vmul.f32 %v7066_v8, %v7066_v8  ;;  %v7082_v32 = vpop.f32.mrb[99].mxu1  ;;  %v7084_v40 = vpop.f32.mrb[99].mxu0  ;;  %v1567_v45 = vsel %vm1395_vm0, %v7063_v17, 0.0 }
 0x1c9   : > { %9531 = vst [vmem:[#allocation152_spill] sm:$0xff] %v7082_v32  ;;  %9532 = vst [vmem:[#allocation155_spill] sm:$0xff] %v7084_v40  ;;  %v7087_v30 = vadd.f32 %v2052_v18, %v6780_v56  ;;  %v1811_v54 = vmul.f32 %v7082_v32, %v7082_v32  ;;  %v1859_v21 = vmul.f32 %v7084_v40, %v7084_v40  ;;  %v1558_v10 = vsel %vm1395_vm0, %v7082_v32, 0.0 }
 0x1ca   : > { %v7099_v16 = vadd.f32 %v1558_v10, %v6816_v7  ;;  %v7102_v56 = vadd.f32 %v1567_v45, %v6856_v37  ;;  %v2079_v18 = vsel %vm1395_vm0, %v1818_v28, 0.0  ;;  %v2114_v20 = vadd.f32 %v2113_v29, %v1845_v36  ;;  %v9535_v36 = vld [vmem:[#allocation161_spill] sm:$0xff] }
 0x1cb   : > { %1479 = vadd.xlane.f32.xlu1 %v6885_v49  ;;  %v7105_v8 = vpop.f32.mrb[100].mxu1  ;;  %1982 = vadd.xlane.f32.xlu0 %v6912_v52  ;;  %v7108_v43 = vpop.f32.mrb[100].mxu0  ;;  %v2070_v32 = vsel %vm1395_vm0, %v1811_v54, 0.0  ;;  %v7112_v17 = vadd.f32 %v2079_v18, %v6930_v22  ;;  %v1620_v7 = vadd.f32 %v1619_v60, %v7084_v40  ;;  %v7115_v49 = vadd.f32 %v2122_v59, %v1852_v47  ;;  %v9538_v18 = vld [vmem:[#allocation158_spill] sm:$0xff] }
 0x1cc   : > { %9533 = vst [vmem:[#allocation205_spill] sm:$0xff] %v7105_v8  ;;  %9534 = vst [vmem:[#allocation206_spill] sm:$0xff] %v7108_v43  ;;  %v1832_v37 = vmul.f32 %v7105_v8, %v7105_v8  ;;  %v1628_v29 = vadd.f32 %v9535_v36, %v7108_v43  ;;  %v1865_v52 = vmul.f32 %v7108_v43, %v7108_v43  ;;  %v7123_v28 = vpop.f32.mrb[101].mxu1  ;;  %v7125_v10 = vpop.f32.mrb[101].mxu0  ;;  %v1585_v54 = vsel %vm1395_vm0, %v7105_v8, 0.0 }
 0x1cd   : > { %9536 = vst [vmem:[#allocation161_spill] sm:$0xff] %v7123_v28  ;;  %9537 = vst [vmem:[#allocation207_spill] sm:$0xff] %v7125_v10  ;;  %v7128_v22 = vadd.f32 %v2070_v32, %v6858_v25  ;;  %v1825_v47 = vmul.f32 %v7123_v28, %v7123_v28  ;;  %v1866_v59 = vmul.f32 %v7125_v10, %v7125_v10  ;;  %v1576_v60 = vsel %vm1395_vm0, %v7123_v28, 0.0 }
 0x1ce   : > { %v7140_v45 = vadd.f32 %v1576_v60, %v6898_v11  ;;  %v7143_v25 = vadd.f32 %v1585_v54, %v6941_v39  ;;  %v2097_v32 = vsel %vm1395_vm0, %v1832_v37, 0.0  ;;  %v2131_v36 = vadd.f32 %v9538_v18, %v1858_v33  ;;  %v9541_v60 = vld [vmem:[#allocation164_spill] sm:$0xff]  ;;  %v9542_v33 = vld [vmem:[#allocation167_spill] sm:$0xff] }
 0x1cf   : > { %1991 = vadd.xlane.f32.xlu1 %v6895_v48  ;;  %v7147_v43 = vpop.f32.mrb[102].mxu1  ;;  %1488 = vadd.xlane.f32.xlu0 %v6924_v6  ;;  %v7150_v40 = vpop.f32.mrb[102].mxu0  ;;  %v2088_v28 = vsel %vm1395_vm0, %v1825_v47, 0.0  ;;  %v7154_v48 = vadd.f32 %v2097_v32, %v7017_v62  ;;  %v1629_v11 = vadd.f32 %v1628_v29, %v7125_v10  ;;  %v2140_v39 = vadd.f32 %v9541_v60, %v1865_v52 }
 0x1d0   : > { %9539 = vst [vmem:[#allocation158_spill] sm:$0xff] %v7147_v43  ;;  %9540 = vst [vmem:[#allocation208_spill] sm:$0xff] %v7150_v40  ;;  %v1846_v37 = vmul.f32 %v7147_v43, %v7147_v43  ;;  %v1637_v54 = vadd.f32 %v9542_v33, %v7150_v40  ;;  %v1872_v6 = vmul.f32 %v7150_v40, %v7150_v40  ;;  %v7164_v18 = vpop.f32.mrb[103].mxu1  ;;  %v7166_v8 = vpop.f32.mrb[103].mxu0  ;;  %v1603_v32 = vsel %vm1395_vm0, %v7147_v43, 0.0 }
 0x1d1   : > { %9543 = vst [vmem:[#allocation164_spill] sm:$0xff] %v7164_v18  ;;  %9544 = vst [vmem:[#allocation167_spill] sm:$0xff] %v7166_v8  ;;  %v7169_v62 = vadd.f32 %v2088_v28, %v6943_v12  ;;  %v1839_v29 = vmul.f32 %v7164_v18, %v7164_v18  ;;  %v1873_v52 = vmul.f32 %v7166_v8, %v7166_v8  ;;  %v1594_v47 = vsel %vm1395_vm0, %v7164_v18, 0.0 }
 0x1d2   : > { %v7181_v60 = vadd.f32 %v1594_v47, %v6985_v58  ;;  %v7184_v12 = vadd.f32 %v1603_v32, %v7029_v2  ;;  %v2115_v28 = vsel %vm1395_vm0, %v1846_v37, 0.0  ;;  %v2132_v33 = vadd.f32 %v2131_v36, %v1859_v21  ;;  %v9547_v47 = vld [vmem:[#allocation22_spill] sm:$0xff] }
 0x1d3   : > { %1497 = vadd.xlane.f32.xlu1 %v6927_v41  ;;  %v7187_v10 = vpop.f32.mrb[104].mxu1  ;;  %2000 = vadd.xlane.f32.xlu0 %v6956_v24  ;;  %v7190_v40 = vpop.f32.mrb[104].mxu0  ;;  %v2106_v18 = vsel %vm1395_vm0, %v1839_v29, 0.0  ;;  %v7193_v43 = vadd.f32 %v2115_v28, %v2114_v20  ;;  %v1638_v41 = vadd.f32 %v1637_v54, %v7166_v8  ;;  %v2141_v58 = vadd.f32 %v2140_v39, %v1866_v59 }
 0x1d4   : > { %9545 = vst [vmem:[#allocation209_spill] sm:$0xff] %v7187_v10  ;;  %9546 = vst [vmem:[#allocation210_spill] sm:$0xff] %v7190_v40  ;;  %v1860_v2 = vmul.f32 %v7187_v10, %v7187_v10  ;;  %v1646_v37 = vadd.f32 %v9547_v47, %v7190_v40  ;;  %v1879_v21 = vmul.f32 %v7190_v40, %v7190_v40  ;;  %v7202_v36 = vpop.f32.mrb[105].mxu1  ;;  %v7204_v24 = vpop.f32.mrb[105].mxu0  ;;  %v1621_v54 = vsel %vm1395_vm0, %v7187_v10, 0.0 }
 0x1d5   : > { %9548 = vst [vmem:[#allocation22_spill] sm:$0xff] %v7202_v36  ;;  %9549 = vst [vmem:[#allocation211_spill] sm:$0xff] %v7204_v24  ;;  %v7207_v29 = vadd.f32 %v2106_v18, %v7031_v15  ;;  %v1853_v20 = vmul.f32 %v7202_v36, %v7202_v36  ;;  %v1880_v59 = vmul.f32 %v7204_v24, %v7204_v24  ;;  %v1612_v39 = vsel %vm1395_vm0, %v7202_v36, 0.0  ;;  %v9550_v18 = vld [vmem:[#allocation170_spill] sm:$0xff] }
 0x1d6   : > { %v7219_v32 = vadd.f32 %v1612_v39, %v7073_v4  ;;  %v7221_v28 = vadd.f32 %v1621_v54, %v1620_v7  ;;  %v2133_v15 = vsel %vm1395_vm0, %v1860_v2, 0.0  ;;  %v2149_v47 = vadd.f32 %v9550_v18, %v1872_v6  ;;  %v9553_v4 = vld [vmem:[#allocation96_spill] sm:$0xff] }
 0x1d7   : > { %2009 = vadd.xlane.f32.xlu1 %v6938_v23  ;;  %v7225_v40 = vpop.f32.mrb[106].mxu1  ;;  %1506 = vadd.xlane.f32.xlu0 %v6968_v50  ;;  %v7228_v8 = vpop.f32.mrb[106].mxu0  ;;  %v2124_v36 = vsel %vm1395_vm0, %v1853_v20, 0.0  ;;  %v7231_v10 = vadd.f32 %v2133_v15, %v2132_v33  ;;  %v1647_v23 = vadd.f32 %v1646_v37, %v7204_v24  ;;  %v2158_v39 = vadd.f32 %v9553_v4, %v1879_v21  ;;  %v9554_v2 = vld [vmem:[#allocation28_spill] sm:$0xff] }
 0x1d8   : > { %9551 = vst [vmem:[#allocation170_spill] sm:$0xff] %v7225_v40  ;;  %9552 = vst [vmem:[#allocation212_spill] sm:$0xff] %v7228_v8  ;;  %v1874_v7 = vmul.f32 %v7225_v40, %v7225_v40  ;;  %v1655_v6 = vadd.f32 %v9554_v2, %v7228_v8  ;;  %v1886_v54 = vmul.f32 %v7228_v8, %v7228_v8  ;;  %v7241_v50 = vpop.f32.mrb[107].mxu1  ;;  %v7243_v18 = vpop.f32.mrb[107].mxu0  ;;  %v1639_v15 = vsel %vm1395_vm0, %v7225_v40, 0.0 }
 0x1d9   : > { %9555 = vst [vmem:[#allocation96_spill] sm:$0xff] %v7241_v50  ;;  %9556 = vst [vmem:[#allocation28_spill] sm:$0xff] %v7243_v18  ;;  %v7246_v33 = vadd.f32 %v2124_v36, %v7115_v49  ;;  %v1867_v37 = vmul.f32 %v7241_v50, %v7241_v50  ;;  %v1887_v21 = vmul.f32 %v7243_v18, %v7243_v18  ;;  %v1630_v20 = vsel %vm1395_vm0, %v7241_v50, 0.0 }
 0x1da   : > { %v7257_v4 = vadd.f32 %v1630_v20, %v1629_v11  ;;  %v7259_v2 = vadd.f32 %v1639_v15, %v1638_v41  ;;  %v2150_v49 = vadd.f32 %v2149_v47, %v1873_v52  ;;  %v2151_v36 = vsel %vm1395_vm0, %v1874_v7, 0.0  ;;  %v9560_v52 = vld [vmem:[#allocation34_spill] sm:$0xff] }
 0x1db   : > { %1515 = vadd.xlane.f32.xlu1 %v6971_v5  ;;  %v7262_v24 = vpop.f32.mrb[108].mxu1  ;;  %2018 = vadd.xlane.f32.xlu0 %v6999_v63  ;;  %v7265_v8 = vpop.f32.mrb[108].mxu0  ;;  %v2142_v50 = vsel %vm1395_vm0, %v1867_v37, 0.0  ;;  %v1656_v26 = vadd.f32 %v1655_v6, %v7243_v18  ;;  %v2159_v40 = vadd.f32 %v2158_v39, %v1880_v59  ;;  %v2167_v5 = vadd.f32 %v9559_v53, %v1886_v54 }
 0x1dc   : > { %9557 = vst [vmem:[#allocation213_spill] sm:$0xff] %v7262_v24  ;;  %9558 = vst [vmem:[#allocation214_spill] sm:$0xff] %v7265_v8  ;;  %v1888_v11 = vmul.f32 %v7262_v24, %v7262_v24  ;;  %v1664_v41 = vadd.f32 %v9560_v52, %v7265_v8  ;;  %v1893_v47 = vmul.f32 %v7265_v8, %v7265_v8  ;;  %v7276_v7 = vpop.f32.mrb[109].mxu1  ;;  %v7278_v63 = vpop.f32.mrb[109].mxu0  ;;  %v1657_v37 = vsel %vm1395_vm0, %v7262_v24, 0.0 }
 0x1dd   : > { %9561 = vst [vmem:[#allocation102_spill] sm:$0xff] %v7276_v7  ;;  %9562 = vst [vmem:[#allocation34_spill] sm:$0xff] %v7278_v63  ;;  %v7280_v20 = vadd.f32 %v2142_v50, %v2141_v58  ;;  %v1881_v59 = vmul.f32 %v7276_v7, %v7276_v7  ;;  %v1894_v53 = vmul.f32 %v7278_v63, %v7278_v63  ;;  %v1648_v6 = vsel %vm1395_vm0, %v7276_v7, 0.0  ;;  %v9564_v7 = vld [vmem:[#allocation108_spill] sm:$0xff] }
 0x1de   : > { %v7286_v39 = vadd.f32 %v2151_v36, %v2150_v49  ;;  %v1649_v54 = vadd.f32 %v1648_v6, %v1647_v23  ;;  %v2168_v15 = vadd.f32 %v2167_v5, %v1887_v21  ;;  %v2169_v58 = vsel %vm1395_vm0, %v1888_v11, 0.0  ;;  %v9565_v21 = vld [vmem:[#allocation40_spill] sm:$0xff] }
 0x1df   : > { %2027 = vadd.xlane.f32.xlu1 %v6982_v1  ;;  %v7294_v50 = vpop.f32.mrb[110].mxu1  ;;  %1524 = vadd.xlane.f32.xlu0 %v7011_v3  ;;  %v7297_v52 = vpop.f32.mrb[110].mxu0  ;;  %v1658_v49 = vadd.f32 %v1657_v37, %v1656_v26  ;;  %v2160_v36 = vsel %vm1395_vm0, %v1881_v59, 0.0  ;;  %v1665_v8 = vadd.f32 %v1664_v41, %v7278_v63  ;;  %v2176_v1 = vadd.f32 %v9564_v7, %v1893_v47 }
 0x1e0   : > { %9563 = vst [vmem:[#allocation215_spill] sm:$0xff] %v7297_v52  ;;  %v1902_v23 = vmul.f32 %v7294_v50, %v7294_v50  ;;  %v1673_v5 = vadd.f32 %v9565_v21, %v7297_v52  ;;  %v1900_v11 = vmul.f32 %v7297_v52, %v7297_v52  ;;  %v7308_v6 = vpop.f32.mrb[111].mxu1  ;;  %v7310_v3 = vpop.f32.mrb[111].mxu0  ;;  %v2161_v26 = vadd.f32 %v2160_v36, %v2159_v40  ;;  %v9567_v36 = vld [vmem:[#allocation113_spill] sm:$0xff] }
 0x1e1   : > { %9566 = vst [vmem:[#allocation108_spill] sm:$0xff] %v7308_v6  ;;  %v1666_v59 = vsel %vm1395_vm0, %v7308_v6, 0.0  ;;  %v1895_v41 = vmul.f32 %v7308_v6, %v7308_v6  ;;  %v1901_v47 = vmul.f32 %v7310_v3, %v7310_v3  ;;  %v2170_v7 = vadd.f32 %v2169_v58, %v2168_v15 }
 0x1e2   : > { %v1674_v37 = vadd.f32 %v1673_v5, %v7310_v3  ;;  %v1667_v21 = vadd.f32 %v1666_v59, %v1665_v8  ;;  %v1675_v52 = vsel %vm1395_vm0, %v7294_v50, 0.0  ;;  %v2177_v63 = vadd.f32 %v2176_v1, %v1894_v53 }
 0x1e3   : > { %1533 = vadd.xlane.f32.xlu1 %v7014_v34  ;;  %2036 = vadd.xlane.f32.xlu0 %v7044_v19  ;;  %v2178_v40 = vsel %vm1395_vm0, %v1895_v41, 0.0  ;;  %v2185_v24 = vadd.f32 %v9567_v36, %v1900_v11  ;;  %v2187_v27 = vsel %vm1395_vm0, %v1902_v23, 0.0  ;;  %v4794_v15 = vmov 0   ;;  %v7375_v23 = vld [vmem:[%s7370_s16 + $0x8] sm:$0xff] }
 0x1e4   : > { %v1676_v6 = vadd.f32 %v1675_v52, %v1674_v37  ;;  %v2179_v18 = vadd.f32 %v2178_v40, %v2177_v63  ;;  %4717 = vset.pattern.permute.xlu1 %v4794_v15  ;;  %4718 = vset.pattern.permute.xlu0 %v4794_v15  ;;  %v7385_v15 = vld [vmem:[%s7370_s16] sm:$0xff] }
 0x1e5   : > { %v2186_v34 = vadd.f32 %v2185_v24, %v1901_v47 }
 0x1e7   : > { %2045 = vadd.xlane.f32.xlu1 %v7026_v42  ;;  %1542 = vadd.xlane.f32.xlu0 %v7056_v44  ;;  %v2188_v8 = vadd.f32 %v2187_v27, %v2186_v34 }
 0x1eb   : > { %1551 = vadd.xlane.f32.xlu1 %v7059_v55  ;;  %2054 = vadd.xlane.f32.xlu0 %v7087_v30 }
 0x1ef   : > { %2063 = vadd.xlane.f32.xlu1 %v7070_v9  ;;  %1560 = vadd.xlane.f32.xlu0 %v7099_v16 }
 0x1f3   : > { %1569 = vadd.xlane.f32.xlu1 %v7102_v56  ;;  %2072 = vadd.xlane.f32.xlu0 %v7128_v22 }
 0x1f7   : > { %2081 = vadd.xlane.f32.xlu1 %v7112_v17  ;;  %1578 = vadd.xlane.f32.xlu0 %v7140_v45 }
 0x1fb   : > { %1587 = vadd.xlane.f32.xlu1 %v7143_v25  ;;  %2090 = vadd.xlane.f32.xlu0 %v7169_v62 }
 0x1ff   : > { %2099 = vadd.xlane.f32.xlu1 %v7154_v48  ;;  %1596 = vadd.xlane.f32.xlu0 %v7181_v60 }
 0x203   : > { %1605 = vadd.xlane.f32.xlu1 %v7184_v12  ;;  %2108 = vadd.xlane.f32.xlu0 %v7207_v29 }
 0x207   : > { %2117 = vadd.xlane.f32.xlu1 %v7193_v43  ;;  %1614 = vadd.xlane.f32.xlu0 %v7219_v32 }
 0x20b   : > { %1623 = vadd.xlane.f32.xlu1 %v7221_v28  ;;  %2126 = vadd.xlane.f32.xlu0 %v7246_v33 }
 0x20f   : > { %2135 = vadd.xlane.f32.xlu1 %v7231_v10  ;;  %1632 = vadd.xlane.f32.xlu0 %v7257_v4 }
 0x213   : > { %1641 = vadd.xlane.f32.xlu1 %v7259_v2  ;;  %2144 = vadd.xlane.f32.xlu0 %v7280_v20 }
 0x217   : > { %2153 = vadd.xlane.f32.xlu1 %v7286_v39  ;;  %1650 = vadd.xlane.f32.xlu0 %v1649_v54 }
 0x21b   : > { %1659 = vadd.xlane.f32.xlu1 %v1658_v49  ;;  %2162 = vadd.xlane.f32.xlu0 %v2161_v26 }
 0x21f   : > { %2171 = vadd.xlane.f32.xlu1 %v2170_v7  ;;  %1668 = vadd.xlane.f32.xlu0 %v1667_v21 }
 0x223   : > { %1677 = vadd.xlane.f32.xlu1 %v1676_v6  ;;  %2180 = vadd.xlane.f32.xlu0 %v2179_v18 }
 0x227   : > { %2189 = vadd.xlane.f32.xlu1 %v2188_v8 }
 0x234   : > { %v1408_v17 = vpop.xlane.xlu0 %1407 }
 0x235   : > { %v2192_v27 = vmul.f32 0.0012755102, %v1408_v17 }
 0x237   : > { %v2256_v42 = vmul.f32 %v2192_v27, %v2192_v27 }
 0x238   : > { %v1920_v43 = vpop.xlane.xlu1 %1919  ;;  %v1399_v44 = vpop.xlane.xlu0 %1398 }
 0x239   : > { %v2224_v19 = vmul.f32 0.0012755102, %v1920_v43  ;;  %v7351_v55 = vmul.f32 0.0012755102, %v1399_v44 }
 0x23b   : > { %v2288_v9 = vsub.f32 %v2224_v19, %v2256_v42  ;;  %v2255_v10 = vmul.f32 %v7351_v55, %v7351_v55 }
 0x23c   : > { %v1426_v30 = vpop.xlane.xlu1 %1425  ;;  %v1911_v56 = vpop.xlane.xlu0 %1910 }
 0x23d   : > { %v2320_v16 = vmax.f32 %v2288_v9, 0.0  ;;  %v2223_v22 = vmul.f32 0.0012755102, %v1911_v56  ;;  %v7355_v62 = vmul.f32 0.0012755102, %v1426_v30 }
 0x23f   : > { %v2352_v45 = vadd.f32 1e-05, %v2320_v16  ;;  %v2287_v25 = vsub.f32 %v2223_v22, %v2255_v10  ;;  %v2258_v33 = vmul.f32 %v7355_v62, %v7355_v62  ;;  %v7394_v22 = vld [vmem:[%s7370_s16 + $0x10] sm:$0xff] }
 0x240   : > { %v1417_v48 = vpop.xlane.xlu1 %1416  ;;  %v1929_v12 = vpop.xlane.xlu0 %1928 }
 0x241   : > { %4721 = vrsqrt.f32 %v2352_v45  ;;  %v7357_v60 = vmul.f32 0.0012755102, %v1417_v48  ;;  %v2319_v24 = vmax.f32 %v2287_v25, 0.0  ;;  %v2225_v29 = vmul.f32 0.0012755102, %v1929_v12 }
 0x243   : > { %v2257_v32 = vmul.f32 %v7357_v60, %v7357_v60  ;;  %v2351_v28 = vadd.f32 1e-05, %v2319_v24 }
 0x244   : > { %v1938_v18 = vpop.xlane.xlu1 %1937  ;;  %v1435_v63 = vpop.xlane.xlu0 %1434 }
 0x245   : > { %v2289_v4 = vsub.f32 %v2225_v29, %v2257_v32  ;;  %v2226_v2 = vmul.f32 0.0012755102, %v1938_v18  ;;  %4723 = vrsqrt.f32 %v2351_v28  ;;  %v7363_v20 = vmul.f32 0.0012755102, %v1435_v63  ;;  %v7400_v32 = vld [vmem:[%s7370_s16 + $0x18] sm:$0xff] }
 0x247   : > { %v2321_v53 = vmax.f32 %v2289_v4, 0.0  ;;  %v2290_v39 = vsub.f32 %v2226_v2, %v2258_v33  ;;  %v2259_v5 = vmul.f32 %v7363_v20, %v7363_v20 }
 0x248   : > { %v1444_v54 = vpop.xlane.xlu1 %1443  ;;  %v1947_v1 = vpop.xlane.xlu0 %1946 }
 0x249   : > { %v2353_v58 = vadd.f32 1e-05, %v2321_v53  ;;  %v2322_v52 = vmax.f32 %v2290_v39, 0.0  ;;  %v7372_v49 = vmul.f32 0.0012755102, %v1444_v54 }
 0x24a   : > { %v2227_v11 = vmul.f32 0.0012755102, %v1947_v1 }
 0x24b   : > { %v4722_v6 = vpop.eup %4721  ;;  %4725 = vrsqrt.f32 %v2353_v58  ;;  %v2354_v26 = vadd.f32 1e-05, %v2322_v52  ;;  %v2260_v7 = vmul.f32 %v7372_v49, %v7372_v49 }
 0x24c   : > { %v2291_v59 = vsub.f32 %v2227_v11, %v2259_v5  ;;  %v1956_v41 = vpop.xlane.xlu1 %1955  ;;  %v2448_v47 = vmul.f32 %v4722_v6, %v7375_v23  ;;  %v1453_v21 = vpop.xlane.xlu0 %1452 }
 0x24d   : > { %4727 = vrsqrt.f32 %v2354_v26  ;;  %v2228_v37 = vmul.f32 0.0012755102, %v1956_v41  ;;  %v7382_v36 = vmul.f32 0.0012755102, %v1453_v21  ;;  %v7419_v21 = vld [vmem:[%s7370_s16 + $0x20] sm:$0xff] }
 0x24e   : > { %v2323_v40 = vmax.f32 %v2291_v59, 0.0  ;;  %2678 = vperm.xlu1 %4717, %v2448_v47   ;;  %v2480_v43 = vmul.f32 %v2448_v47, %v2192_v27 }
 0x24f   : > { %v2292_v34 = vsub.f32 %v2228_v37, %v2260_v7  ;;  %v4724_v8 = vpop.eup %4723  ;;  %v2261_v16 = vmul.f32 %v7382_v36, %v7382_v36  ;;  %v7416_v37 = vld [vmem:[%s7370_s16 + $0x28] sm:$0xff] }
 0x250   : > { %v2355_v17 = vadd.f32 1e-05, %v2323_v40  ;;  %v1462_v42 = vpop.xlane.xlu1 %1461  ;;  %v1965_v9 = vpop.xlane.xlu0 %1964  ;;  %v2447_v30 = vmul.f32 %v4724_v8, %v7385_v15 }
 0x251   : > { %v2324_v19 = vmax.f32 %v2292_v34, 0.0  ;;  %v7387_v44 = vmul.f32 0.0012755102, %v1462_v42  ;;  %v2229_v56 = vmul.f32 0.0012755102, %v1965_v9 }
 0x252   : > { %2545 = vrot.lane.b32.xlu1 %v2480_v43, %s4795_s7  ;;  %4729 = vrsqrt.f32 %v2355_v17  ;;  %2673 = vperm.xlu0 %4718, %v2447_v30   ;;  %v2479_v29 = vmul.f32 %v2447_v30, %v7351_v55 }
 0x253   : > { %v2356_v10 = vadd.f32 1e-05, %v2324_v19  ;;  %v2293_v27 = vsub.f32 %v2229_v56, %v2261_v16  ;;  %v2262_v48 = vmul.f32 %v7387_v44, %v7387_v44 }
 0x254   : > { %v1974_v45 = vpop.xlane.xlu1 %1973  ;;  %v1471_v24 = vpop.xlane.xlu0 %1470 }
 0x255   : > { %v4726_v25 = vpop.eup %4725  ;;  %4731 = vrsqrt.f32 %v2356_v10  ;;  %v2230_v12 = vmul.f32 0.0012755102, %v1974_v45  ;;  %v2325_v28 = vmax.f32 %v2293_v27, 0.0  ;;  %v7402_v18 = vmul.f32 0.0012755102, %v1471_v24 }
 0x256   : > { %v2449_v33 = vmul.f32 %v4726_v25, %v7394_v22  ;;  %2543 = vrot.lane.b32.xlu0 %v2479_v29, %s4795_s7 }
 0x257   : > { %v4728_v4 = vpop.eup %4727  ;;  %v2294_v2 = vsub.f32 %v2230_v12, %v2262_v48  ;;  %v2357_v63 = vadd.f32 1e-05, %v2325_v28  ;;  %v2263_v52 = vmul.f32 %v7402_v18, %v7402_v18 }
 0x258   : > { %v1480_v53 = vpop.xlane.xlu1 %1479  ;;  %2683 = vperm.xlu1 %4717, %v2449_v33   ;;  %v2450_v39 = vmul.f32 %v4728_v4, %v7400_v32  ;;  %v1983_v55 = vpop.xlane.xlu0 %1982  ;;  %v2481_v34 = vmul.f32 %v2449_v33, %v7357_v60  ;;  %v7435_v33 = vld [vmem:[%s7370_s16 + $0x38] sm:$0xff]  ;;  %v7438_v4 = vld [vmem:[%s7370_s16 + $0x30] sm:$0xff] }
 0x259   : > { %v2326_v54 = vmax.f32 %v2294_v2, 0.0  ;;  %v7407_v58 = vmul.f32 0.0012755102, %v1480_v53  ;;  %v2231_v1 = vmul.f32 0.0012755102, %v1983_v55  ;;  %4733 = vrsqrt.f32 %v2357_v63 }
 0x25a   : > { %v2482_v5 = vmul.f32 %v2450_v39, %v7355_v62  ;;  %2688 = vperm.xlu0 %4718, %v2450_v39  }
 0x25b   : > { %v2358_v11 = vadd.f32 1e-05, %v2326_v54  ;;  %v2295_v6 = vsub.f32 %v2231_v1, %v2263_v52  ;;  %v2264_v41 = vmul.f32 %v7407_v58, %v7407_v58 }
 0x25c   : > { %v1992_v26 = vpop.xlane.xlu1 %1991  ;;  %2549 = vrot.lane.b32.xlu1 %v2482_v5, %s4795_s7  ;;  %v4730_v59 = vpop.eup %4729 }
 0x25d   : > { %4735 = vrsqrt.f32 %v2358_v11  ;;  %v2232_v47 = vmul.f32 0.0012755102, %v1992_v26  ;;  %v1489_v7 = vpop.xlane.xlu0 %1488  ;;  %v2327_v40 = vmax.f32 %v2295_v6, 0.0  ;;  %v2451_v9 = vmul.f32 %v4730_v59, %v7419_v21 }
 0x25e   : > { %v7421_v62 = vmul.f32 0.0012755102, %v1489_v7 }
 0x25f   : > { %v4732_v8 = vpop.eup %4731  ;;  %v2296_v17 = vsub.f32 %v2232_v47, %v2264_v41  ;;  %v2359_v42 = vadd.f32 1e-05, %v2327_v40  ;;  %v2483_v48 = vmul.f32 %v2451_v9, %v7363_v20 }
 0x260   : > { %v1498_v43 = vpop.xlane.xlu1 %1497  ;;  %2547 = vrot.lane.b32.xlu1 %v2481_v34, %s4795_s7  ;;  %v2452_v19 = vmul.f32 %v4732_v8, %v7416_v37  ;;  %v2265_v10 = vmul.f32 %v7421_v62, %v7421_v62 }
 0x261   : > { %v2328_v30 = vmax.f32 %v2296_v17, 0.0  ;;  %v7427_v16 = vmul.f32 0.0012755102, %v1498_v43  ;;  %v2001_v56 = vpop.xlane.xlu0 %2000  ;;  %4737 = vrsqrt.f32 %v2359_v42  ;;  %v7455_v42 = vld [vmem:[%s7370_s16 + $0x48] sm:$0xff]  ;;  %v7458_v43 = vld [vmem:[%s7370_s16 + $0x40] sm:$0xff] }
 0x262   : > { %v2233_v60 = vmul.f32 0.0012755102, %v2001_v56  ;;  %2698 = vperm.xlu0 %4718, %v2452_v19   ;;  %v2484_v53 = vmul.f32 %v2452_v19, %v7372_v49 }
 0x263   : > { %v2360_v27 = vadd.f32 1e-05, %v2328_v30  ;;  %v4734_v12 = vpop.eup %4733  ;;  %v2266_v24 = vmul.f32 %v7427_v16, %v7427_v16 }
 0x264   : > { %v2297_v45 = vsub.f32 %v2233_v60, %v2265_v10  ;;  %v2010_v25 = vpop.xlane.xlu1 %2009  ;;  %2693 = vperm.xlu1 %4717, %v2451_v9   ;;  %v2453_v1 = vmul.f32 %v4734_v12, %v7438_v4 }
 0x265   : > { %4739 = vrsqrt.f32 %v2360_v27  ;;  %v2234_v29 = vmul.f32 0.0012755102, %v2010_v25  ;;  %v1507_v28 = vpop.xlane.xlu0 %1506 }
 0x266   : > { %v2329_v2 = vmax.f32 %v2297_v45, 0.0  ;;  %v7440_v63 = vmul.f32 0.0012755102, %v1507_v28  ;;  %2551 = vrot.lane.b32.xlu0 %v2483_v48, %s4795_s7  ;;  %v2485_v7 = vmul.f32 %v2453_v1, %v7382_v36 }
 0x267   : > { %v4736_v39 = vpop.eup %4735  ;;  %v2298_v20 = vsub.f32 %v2234_v29, %v2266_v24 }
 0x268   : > { %v2361_v54 = vadd.f32 1e-05, %v2329_v2  ;;  %v1516_v55 = vpop.xlane.xlu1 %1515  ;;  %2553 = vrot.lane.b32.xlu1 %v2484_v53, %s4795_s7  ;;  %v2454_v52 = vmul.f32 %v4736_v39, %v7435_v33  ;;  %v2267_v26 = vmul.f32 %v7440_v63, %v7440_v63 }
 0x269   : > { %v2330_v5 = vmax.f32 %v2298_v20, 0.0  ;;  %v7447_v11 = vmul.f32 0.0012755102, %v1516_v55  ;;  %v2019_v6 = vpop.xlane.xlu0 %2018 }
 0x26a   : > { %v2235_v49 = vmul.f32 0.0012755102, %v2019_v6  ;;  %2708 = vperm.xlu0 %4718, %v2454_v52   ;;  %4741 = vrsqrt.f32 %v2361_v54  ;;  %v2486_v30 = vmul.f32 %v2454_v52, %v7387_v44  ;;  %v7475_v52 = vld [vmem:[%s7370_s16 + $0x58] sm:$0xff] }
 0x26b   : > { %v2362_v59 = vadd.f32 1e-05, %v2330_v5  ;;  %v4738_v40 = vpop.eup %4737  ;;  %v2268_v34 = vmul.f32 %v7447_v11, %v7447_v11 }
 0x26c   : > { %v2299_v41 = vsub.f32 %v2235_v49, %v2267_v26  ;;  %v2028_v47 = vpop.xlane.xlu1 %2027  ;;  %2703 = vperm.xlu1 %4717, %v2453_v1   ;;  %v2455_v45 = vmul.f32 %v4738_v40, %v7458_v43  ;;  %v7478_v1 = vld [vmem:[%s7370_s16 + $0x50] sm:$0xff] }
 0x26d   : > { %4743 = vrsqrt.f32 %v2362_v59  ;;  %v2236_v8 = vmul.f32 0.0012755102, %v2028_v47  ;;  %v1525_v17 = vpop.xlane.xlu0 %1524 }
 0x26e   : > { %v2331_v19 = vmax.f32 %v2299_v41, 0.0  ;;  %v7460_v9 = vmul.f32 0.0012755102, %v1525_v17  ;;  %2555 = vrot.lane.b32.xlu0 %v2485_v7, %s4795_s7  ;;  %v2487_v53 = vmul.f32 %v2455_v45, %v7402_v18 }
 0x26f   : > { %v4740_v56 = vpop.eup %4739  ;;  %v2300_v36 = vsub.f32 %v2236_v8, %v2268_v34 }
 0x270   : > { %v2363_v10 = vadd.f32 1e-05, %v2331_v19  ;;  %v1534_v60 = vpop.xlane.xlu1 %1533  ;;  %2557 = vrot.lane.b32.xlu1 %v2486_v30, %s4795_s7  ;;  %v2456_v27 = vmul.f32 %v4740_v56, %v7455_v42  ;;  %v2269_v24 = vmul.f32 %v7460_v9, %v7460_v9 }
 0x271   : > { %v2332_v25 = vmax.f32 %v2300_v36, 0.0  ;;  %v7467_v48 = vmul.f32 0.0012755102, %v1534_v60  ;;  %v2037_v12 = vpop.xlane.xlu0 %2036 }
 0x272   : > { %v2237_v44 = vmul.f32 0.0012755102, %v2037_v12  ;;  %2718 = vperm.xlu0 %4718, %v2456_v27   ;;  %4745 = vrsqrt.f32 %v2363_v10  ;;  %v2488_v26 = vmul.f32 %v2456_v27, %v7407_v58  ;;  %v7498_v12 = vld [vmem:[%s7370_s16 + $0x60] sm:$0xff] }
 0x273   : > { %v2364_v29 = vadd.f32 1e-05, %v2332_v25  ;;  %v2270_v20 = vmul.f32 %v7467_v48, %v7467_v48  ;;  %v7495_v25 = vld [vmem:[%s7370_s16 + $0x68] sm:$0xff] }
 0x274   : > { %v2301_v28 = vsub.f32 %v2237_v44, %v2269_v24  ;;  %v2046_v2 = vpop.xlane.xlu1 %2045  ;;  %2713 = vperm.xlu1 %4717, %v2455_v45   ;;  %v4742_v39 = vpop.eup %4741 }
 0x275   : > { %4747 = vrsqrt.f32 %v2364_v29  ;;  %v2238_v54 = vmul.f32 0.0012755102, %v2046_v2  ;;  %v1543_v55 = vpop.xlane.xlu0 %1542  ;;  %v2457_v7 = vmul.f32 %v4742_v39, %v7478_v1 }
 0x276   : > { %v2333_v5 = vmax.f32 %v2301_v28, 0.0  ;;  %v7480_v6 = vmul.f32 0.0012755102, %v1543_v55  ;;  %2559 = vrot.lane.b32.xlu0 %v2487_v53, %s4795_s7 }
 0x277   : > { %v4744_v49 = vpop.eup %4743  ;;  %v2302_v18 = vsub.f32 %v2238_v54, %v2270_v20  ;;  %v2489_v36 = vmul.f32 %v2457_v7, %v7421_v62 }
 0x278   : > { %v2365_v59 = vadd.f32 1e-05, %v2333_v5  ;;  %v1552_v41 = vpop.xlane.xlu1 %1551  ;;  %2561 = vrot.lane.b32.xlu1 %v2488_v26, %s4795_s7  ;;  %v2458_v47 = vmul.f32 %v4744_v49, %v7475_v52  ;;  %v2271_v17 = vmul.f32 %v7480_v6, %v7480_v6 }
 0x279   : > { %v2334_v40 = vmax.f32 %v2302_v18, 0.0  ;;  %v7487_v34 = vmul.f32 0.0012755102, %v1552_v41  ;;  %v2055_v8 = vpop.xlane.xlu0 %2054 }
 0x27a   : > { %v2239_v58 = vmul.f32 0.0012755102, %v2055_v8  ;;  %2728 = vperm.xlu0 %4718, %v2458_v47   ;;  %4749 = vrsqrt.f32 %v2365_v59  ;;  %v2490_v29 = vmul.f32 %v2458_v47, %v7427_v16 }
 0x27b   : > { %v2366_v19 = vadd.f32 1e-05, %v2334_v40  ;;  %v2272_v60 = vmul.f32 %v7487_v34, %v7487_v34 }
 0x27c   : > { %v2303_v30 = vsub.f32 %v2239_v58, %v2271_v17  ;;  %v2064_v56 = vpop.xlane.xlu1 %2063  ;;  %2723 = vperm.xlu1 %4717, %v2457_v7   ;;  %v4746_v10 = vpop.eup %4745  ;;  %v7515_v17 = vld [vmem:[%s7370_s16 + $0x78] sm:$0xff]  ;;  %v7518_v58 = vld [vmem:[%s7370_s16 + $0x70] sm:$0xff] }
 0x27d   : > { %4751 = vrsqrt.f32 %v2366_v19  ;;  %v2240_v27 = vmul.f32 0.0012755102, %v2064_v56  ;;  %v1561_v45 = vpop.xlane.xlu0 %1560  ;;  %v2459_v20 = vmul.f32 %v4746_v10, %v7498_v12 }
 0x27e   : > { %v2335_v24 = vmax.f32 %v2303_v30, 0.0  ;;  %v7500_v44 = vmul.f32 0.0012755102, %v1561_v45  ;;  %2563 = vrot.lane.b32.xlu0 %v2489_v36, %s4795_s7 }
 0x27f   : > { %v4748_v28 = vpop.eup %4747  ;;  %v2304_v62 = vsub.f32 %v2240_v27, %v2272_v60  ;;  %v2491_v41 = vmul.f32 %v2459_v20, %v7440_v63 }
 0x280   : > { %v2367_v2 = vadd.f32 1e-05, %v2335_v24  ;;  %v1570_v53 = vpop.xlane.xlu1 %1569  ;;  %2565 = vrot.lane.b32.xlu1 %v2490_v29, %s4795_s7  ;;  %v2460_v39 = vmul.f32 %v4748_v28, %v7495_v25  ;;  %v2273_v26 = vmul.f32 %v7500_v44, %v7500_v44 }
 0x281   : > { %v2336_v54 = vmax.f32 %v2304_v62, 0.0  ;;  %v7507_v55 = vmul.f32 0.0012755102, %v1570_v53  ;;  %v2073_v5 = vpop.xlane.xlu0 %2072 }
 0x282   : > { %v2241_v16 = vmul.f32 0.0012755102, %v2073_v5  ;;  %2738 = vperm.xlu0 %4718, %v2460_v39   ;;  %4753 = vrsqrt.f32 %v2367_v2  ;;  %v2492_v56 = vmul.f32 %v2460_v39, %v7447_v11 }
 0x283   : > { %v2368_v49 = vadd.f32 1e-05, %v2336_v54  ;;  %v2274_v7 = vmul.f32 %v7507_v55, %v7507_v55 }
 0x284   : > { %v2305_v18 = vsub.f32 %v2241_v16, %v2273_v26  ;;  %v2082_v59 = vpop.xlane.xlu1 %2081  ;;  %2733 = vperm.xlu1 %4717, %v2459_v20   ;;  %v4750_v47 = vpop.eup %4749 }
 0x285   : > { %4755 = vrsqrt.f32 %v2368_v49  ;;  %v2242_v40 = vmul.f32 0.0012755102, %v2082_v59  ;;  %v1579_v8 = vpop.xlane.xlu0 %1578  ;;  %v2461_v45 = vmul.f32 %v4750_v47, %v7518_v58  ;;  %v7535_v49 = vld [vmem:[%s7370_s16 + $0x88] sm:$0xff] }
 0x286   : > { %v2337_v19 = vmax.f32 %v2305_v18, 0.0  ;;  %v7520_v30 = vmul.f32 0.0012755102, %v1579_v8  ;;  %2567 = vrot.lane.b32.xlu0 %v2491_v41, %s4795_s7  ;;  %v7538_v18 = vld [vmem:[%s7370_s16 + $0x80] sm:$0xff] }
 0x287   : > { %v4752_v36 = vpop.eup %4751  ;;  %v2306_v63 = vsub.f32 %v2242_v40, %v2274_v7  ;;  %v2493_v20 = vmul.f32 %v2461_v45, %v7460_v9 }
 0x288   : > { %v2369_v10 = vadd.f32 1e-05, %v2337_v19  ;;  %v1588_v60 = vpop.xlane.xlu1 %1587  ;;  %2569 = vrot.lane.b32.xlu1 %v2492_v56, %s4795_s7  ;;  %v2462_v27 = vmul.f32 %v4752_v36, %v7515_v17  ;;  %v2275_v62 = vmul.f32 %v7520_v30, %v7520_v30 }
 0x289   : > { %v2338_v24 = vmax.f32 %v2306_v63, 0.0  ;;  %v7527_v29 = vmul.f32 0.0012755102, %v1588_v60  ;;  %v2091_v28 = vpop.xlane.xlu0 %2090 }
 0x28a   : > { %v2243_v11 = vmul.f32 0.0012755102, %v2091_v28  ;;  %2748 = vperm.xlu0 %4718, %v2462_v27   ;;  %4757 = vrsqrt.f32 %v2369_v10  ;;  %v2494_v47 = vmul.f32 %v2462_v27, %v7467_v48 }
 0x28b   : > { %v2370_v2 = vadd.f32 1e-05, %v2338_v24  ;;  %v2276_v5 = vmul.f32 %v7527_v29, %v7527_v29 }
 0x28c   : > { %v2307_v53 = vsub.f32 %v2243_v11, %v2275_v62  ;;  %v2100_v39 = vpop.xlane.xlu1 %2099  ;;  %2743 = vperm.xlu1 %4717, %v2461_v45   ;;  %v4754_v54 = vpop.eup %4753 }
 0x28d   : > { %4759 = vrsqrt.f32 %v2370_v2  ;;  %v2244_v26 = vmul.f32 0.0012755102, %v2100_v39  ;;  %v1597_v16 = vpop.xlane.xlu0 %1596  ;;  %v2463_v56 = vmul.f32 %v4754_v54, %v7538_v18  ;;  %v7555_v39 = vld [vmem:[%s7370_s16 + $0x98] sm:$0xff] }
 0x28e   : > { %v2339_v59 = vmax.f32 %v2307_v53, 0.0  ;;  %v7540_v41 = vmul.f32 0.0012755102, %v1597_v16  ;;  %2571 = vrot.lane.b32.xlu0 %v2493_v20, %s4795_s7  ;;  %v7558_v20 = vld [vmem:[%s7370_s16 + $0x90] sm:$0xff] }
 0x28f   : > { %v4756_v7 = vpop.eup %4755  ;;  %v2308_v9 = vsub.f32 %v2244_v26, %v2276_v5  ;;  %v2495_v28 = vmul.f32 %v2463_v56, %v7480_v6 }
 0x290   : > { %v2371_v40 = vadd.f32 1e-05, %v2339_v59  ;;  %v1606_v8 = vpop.xlane.xlu1 %1605  ;;  %2573 = vrot.lane.b32.xlu1 %v2494_v47, %s4795_s7  ;;  %v2464_v19 = vmul.f32 %v4756_v7, %v7535_v49  ;;  %v2277_v60 = vmul.f32 %v7540_v41, %v7540_v41 }
 0x291   : > { %v2340_v36 = vmax.f32 %v2308_v9, 0.0  ;;  %v7547_v63 = vmul.f32 0.0012755102, %v1606_v8  ;;  %v2109_v10 = vpop.xlane.xlu0 %2108 }
 0x292   : > { %v2245_v48 = vmul.f32 0.0012755102, %v2109_v10  ;;  %2758 = vperm.xlu0 %4718, %v2464_v19   ;;  %4761 = vrsqrt.f32 %v2371_v40  ;;  %v2496_v5 = vmul.f32 %v2464_v19, %v7487_v34 }
 0x293   : > { %v2372_v27 = vadd.f32 1e-05, %v2340_v36  ;;  %v2278_v11 = vmul.f32 %v7547_v63, %v7547_v63 }
 0x294   : > { %v2309_v45 = vsub.f32 %v2245_v48, %v2277_v60  ;;  %v2118_v24 = vpop.xlane.xlu1 %2117  ;;  %2753 = vperm.xlu1 %4717, %v2463_v56   ;;  %v4758_v62 = vpop.eup %4757 }
 0x295   : > { %4763 = vrsqrt.f32 %v2372_v27  ;;  %v2246_v2 = vmul.f32 0.0012755102, %v2118_v24  ;;  %v1615_v53 = vpop.xlane.xlu0 %1614  ;;  %v2465_v9 = vmul.f32 %v4758_v62, %v7558_v20  ;;  %v7575_v62 = vld [vmem:[%s7370_s16 + $0xa8] sm:$0xff] }
 0x296   : > { %v2341_v54 = vmax.f32 %v2309_v45, 0.0  ;;  %v7561_v26 = vmul.f32 0.0012755102, %v1615_v53  ;;  %2575 = vrot.lane.b32.xlu0 %v2495_v28, %s4795_s7 }
 0x297   : > { %v4760_v16 = vpop.eup %4759  ;;  %v2310_v6 = vsub.f32 %v2246_v2, %v2278_v11  ;;  %v2497_v48 = vmul.f32 %v2465_v9, %v7500_v44  ;;  %v7578_v11 = vld [vmem:[%s7370_s16 + $0xa0] sm:$0xff] }
 0x298   : > { %v2373_v59 = vadd.f32 1e-05, %v2341_v54  ;;  %v1624_v47 = vpop.xlane.xlu1 %1623  ;;  %2577 = vrot.lane.b32.xlu1 %v2496_v5, %s4795_s7  ;;  %v2466_v7 = vmul.f32 %v4760_v16, %v7555_v39  ;;  %v2279_v34 = vmul.f32 %v7561_v26, %v7561_v26 }
 0x299   : > { %v2342_v40 = vmax.f32 %v2310_v6, 0.0  ;;  %v7567_v8 = vmul.f32 0.0012755102, %v1624_v47  ;;  %v2127_v56 = vpop.xlane.xlu0 %2126 }
 0x29a   : > { %v2247_v19 = vmul.f32 0.0012755102, %v2127_v56  ;;  %2768 = vperm.xlu0 %4718, %v2466_v7   ;;  %4765 = vrsqrt.f32 %v2373_v59  ;;  %v2498_v54 = vmul.f32 %v2466_v7, %v7507_v55 }
 0x29b   : > { %v2374_v36 = vadd.f32 1e-05, %v2342_v40  ;;  %v2280_v45 = vmul.f32 %v7567_v8, %v7567_v8 }
 0x29c   : > { %v2311_v10 = vsub.f32 %v2247_v19, %v2279_v34  ;;  %v2136_v60 = vpop.xlane.xlu1 %2135  ;;  %2763 = vperm.xlu1 %4717, %v2465_v9   ;;  %v4762_v27 = vpop.eup %4761 }
 0x29d   : > { %4767 = vrsqrt.f32 %v2374_v36  ;;  %v2248_v24 = vmul.f32 0.0012755102, %v2136_v60  ;;  %v1633_v28 = vpop.xlane.xlu0 %1632  ;;  %v2467_v47 = vmul.f32 %v4762_v27, %v7578_v11 }
 0x29e   : > { %v2343_v2 = vmax.f32 %v2311_v10, 0.0  ;;  %v7580_v53 = vmul.f32 0.0012755102, %v1633_v28  ;;  %2579 = vrot.lane.b32.xlu0 %v2497_v48, %s4795_s7  ;;  %v7598_v28 = vld [vmem:[%s7370_s16 + $0xb0] sm:$0xff] }
 0x29f   : > { %v4764_v5 = vpop.eup %4763  ;;  %v2312_v44 = vsub.f32 %v2248_v24, %v2280_v45  ;;  %v2499_v10 = vmul.f32 %v2467_v47, %v7520_v30  ;;  %v7595_v24 = vld [vmem:[%s7370_s16 + $0xb8] sm:$0xff] }
 0x2a0   : > { %v2375_v16 = vadd.f32 1e-05, %v2343_v2  ;;  %v1642_v6 = vpop.xlane.xlu1 %1641  ;;  %2581 = vrot.lane.b32.xlu1 %v2498_v54, %s4795_s7  ;;  %v2468_v59 = vmul.f32 %v4764_v5, %v7575_v62  ;;  %v2281_v34 = vmul.f32 %v7580_v53, %v7580_v53 }
 0x2a1   : > { %v2344_v9 = vmax.f32 %v2312_v44, 0.0  ;;  %v7587_v40 = vmul.f32 0.0012755102, %v1642_v6  ;;  %v2145_v56 = vpop.xlane.xlu0 %2144 }
 0x2a2   : > { %v2249_v55 = vmul.f32 0.0012755102, %v2145_v56  ;;  %2778 = vperm.xlu0 %4718, %v2468_v59   ;;  %4769 = vrsqrt.f32 %v2375_v16  ;;  %v2500_v5 = vmul.f32 %v2468_v59, %v7527_v29 }
 0x2a3   : > { %v2376_v7 = vadd.f32 1e-05, %v2344_v9  ;;  %v2282_v48 = vmul.f32 %v7587_v40, %v7587_v40 }
 0x2a4   : > { %v2313_v19 = vsub.f32 %v2249_v55, %v2281_v34  ;;  %v2154_v36 = vpop.xlane.xlu1 %2153  ;;  %2773 = vperm.xlu1 %4717, %v2467_v47   ;;  %v4766_v60 = vpop.eup %4765 }
 0x2a5   : > { %4771 = vrsqrt.f32 %v2376_v7  ;;  %v2250_v27 = vmul.f32 0.0012755102, %v2154_v36  ;;  %v1651_v45 = vpop.xlane.xlu0 %1650  ;;  %v2469_v9 = vmul.f32 %v4766_v60, %v7598_v28 }
 0x2a6   : > { %v2345_v2 = vmax.f32 %v2313_v19, 0.0  ;;  %v7600_v54 = vmul.f32 0.0012755102, %v1651_v45  ;;  %2583 = vrot.lane.b32.xlu0 %v2499_v10, %s4795_s7 }
 0x2a7   : > { %v4768_v44 = vpop.eup %4767  ;;  %v2314_v30 = vsub.f32 %v2250_v27, %v2282_v48  ;;  %v2501_v10 = vmul.f32 %v2469_v9, %v7540_v41 }
 0x2a8   : > { %v2377_v16 = vadd.f32 1e-05, %v2345_v2  ;;  %v1660_v6 = vpop.xlane.xlu1 %1659  ;;  %2585 = vrot.lane.b32.xlu1 %v2500_v5, %s4795_s7  ;;  %v2470_v47 = vmul.f32 %v4768_v44, %v7595_v24  ;;  %v2283_v7 = vmul.f32 %v7600_v54, %v7600_v54  ;;  %v7615_v2 = vld [vmem:[%s7370_s16 + $0xc8] sm:$0xff]  ;;  %v7618_v5 = vld [vmem:[%s7370_s16 + $0xc0] sm:$0xff] }
 0x2a9   : > { %v2346_v56 = vmax.f32 %v2314_v30, 0.0  ;;  %v7607_v34 = vmul.f32 0.0012755102, %v1660_v6  ;;  %v2163_v55 = vpop.xlane.xlu0 %2162 }
 0x2aa   : > { %v2251_v29 = vmul.f32 0.0012755102, %v2163_v55  ;;  %2788 = vperm.xlu0 %4718, %v2470_v47   ;;  %4773 = vrsqrt.f32 %v2377_v16  ;;  %v2502_v16 = vmul.f32 %v2470_v47, %v7547_v63 }
 0x2ab   : > { %v2378_v59 = vadd.f32 1e-05, %v2346_v56  ;;  %v2284_v60 = vmul.f32 %v7607_v34, %v7607_v34 }
 0x2ac   : > { %v2315_v19 = vsub.f32 %v2251_v29, %v2283_v7  ;;  %v2172_v36 = vpop.xlane.xlu1 %2171  ;;  %2783 = vperm.xlu1 %4717, %v2469_v9   ;;  %v4770_v48 = vpop.eup %4769 }
 0x2ad   : > { %4775 = vrsqrt.f32 %v2378_v59  ;;  %v2252_v27 = vmul.f32 0.0012755102, %v2172_v36  ;;  %v1669_v45 = vpop.xlane.xlu0 %1668  ;;  %v2471_v7 = vmul.f32 %v4770_v48, %v7618_v5  ;;  %v7627_v48 = vld [vmem:[%s7370_s16 + $0xd8] sm:$0xff] }
 0x2ae   : > { %v2347_v44 = vmax.f32 %v2315_v19, 0.0  ;;  %2587 = vrot.lane.b32.xlu0 %v2501_v10, %s4795_s7  ;;  %v2221_v30 = vmul.f32 0.0012755102, %v1669_v45 }
 0x2af   : > { %v4772_v6 = vpop.eup %4771  ;;  %v2316_v56 = vsub.f32 %v2252_v27, %v2284_v60  ;;  %v2503_v27 = vmul.f32 %v2471_v7, %v7561_v26 }
 0x2b0   : > { %v2379_v41 = vadd.f32 1e-05, %v2347_v44  ;;  %2589 = vrot.lane.b32.xlu1 %v2502_v16, %s4795_s7  ;;  %v1678_v9 = vpop.xlane.xlu1 %1677  ;;  %v2472_v55 = vmul.f32 %v4772_v6, %v7615_v2  ;;  %v2285_v36 = vmul.f32 %v2221_v30, %v2221_v30  ;;  %v7630_v6 = vld [vmem:[%s7370_s16 + $0xd0] sm:$0xff] }
 0x2b1   : > { %v2348_v29 = vmax.f32 %v2316_v56, 0.0  ;;  %v2222_v59 = vmul.f32 0.0012755102, %v1678_v9  ;;  %v2181_v19 = vpop.xlane.xlu0 %2180 }
 0x2b2   : > { %2798 = vperm.xlu0 %4718, %v2472_v55   ;;  %v2253_v10 = vmul.f32 0.0012755102, %v2181_v19  ;;  %4777 = vrsqrt.f32 %v2379_v41  ;;  %v2504_v41 = vmul.f32 %v2472_v55, %v7567_v8  ;;  %v7639_v8 = vld [vmem:[%s7370_s16 + $0xe8] sm:$0xff]  ;;  %v7642_v55 = vld [vmem:[%s7370_s16 + $0xe0] sm:$0xff] }
 0x2b3   : > { %v2380_v63 = vadd.f32 1e-05, %v2348_v29  ;;  %v2286_v44 = vmul.f32 %v2222_v59, %v2222_v59 }
 0x2b4   : > { %v2317_v47 = vsub.f32 %v2253_v10, %v2285_v36  ;;  %2793 = vperm.xlu1 %4717, %v2471_v7   ;;  %v2190_v60 = vpop.xlane.xlu1 %2189  ;;  %v4774_v45 = vpop.eup %4773 }
 0x2b5   : > { %4779 = vrsqrt.f32 %v2380_v63  ;;  %v2254_v16 = vmul.f32 0.0012755102, %v2190_v60  ;;  %v2473_v7 = vmul.f32 %v4774_v45, %v7630_v6 }
 0x2b6   : > { %v2349_v56 = vmax.f32 %v2317_v47, 0.0  ;;  %2591 = vrot.lane.b32.xlu0 %v2503_v27, %s4795_s7 }
 0x2b7   : > { %v4776_v9 = vpop.eup %4775  ;;  %v2318_v29 = vsub.f32 %v2254_v16, %v2286_v44  ;;  %v2505_v63 = vmul.f32 %v2473_v7, %v7580_v53  ;;  %v7650_v53 = vld [vmem:[%s7370_s16 + $0xf0] sm:$0xff] }
 0x2b8   : > { %v2381_v19 = vadd.f32 1e-05, %v2349_v56  ;;  %2593 = vrot.lane.b32.xlu1 %v2504_v41, %s4795_s7  ;;  %v2474_v26 = vmul.f32 %v4776_v9, %v7627_v48 }
 0x2b9   : > { %v2350_v36 = vmax.f32 %v2318_v29, 0.0 }
 0x2ba   : > { %4781 = vrsqrt.f32 %v2381_v19  ;;  %2808 = vperm.xlu0 %4718, %v2474_v26   ;;  %v2506_v60 = vmul.f32 %v2474_v26, %v7587_v40  ;;  %v7657_v19 = vld [vmem:[%s7370_s16 + $0xf8] sm:$0xff] }
 0x2bb   : > { %v2382_v10 = vadd.f32 1e-05, %v2350_v36 }
 0x2bc   : > { %2803 = vperm.xlu1 %4717, %v2473_v7   ;;  %v4778_v47 = vpop.eup %4777 }
 0x2bd   : > { %4783 = vrsqrt.f32 %v2382_v10  ;;  %v2475_v44 = vmul.f32 %v4778_v47, %v7642_v55  ;;  %v4796_v10 = vmov 1  }
 0x2be   : > { %2595 = vrot.lane.b32.xlu0 %v2505_v63, %s4795_s7  ;;  %v9568_v63 = vld [vmem:[#allocation3_spill] sm:$0xff] }
 0x2bf   : > { %v4780_v27 = vpop.eup %4779  ;;  %v2507_v56 = vmul.f32 %v2475_v44, %v7600_v54 }
 0x2c0   : > { %2597 = vrot.lane.b32.xlu1 %v2506_v60, %s4795_s7  ;;  %v2476_v45 = vmul.f32 %v4780_v27, %v7639_v8  ;;  %v9569_v60 = vld [vmem:[#allocation5_spill] sm:$0xff] }
 0x2c2   : > { %2818 = vperm.xlu0 %4718, %v2476_v45   ;;  %v2508_v40 = vmul.f32 %v2476_v45, %v7607_v34  ;;  %v9570_v45 = vld [vmem:[#allocation41_spill] sm:$0xff] }
 0x2c4   : > { %v4782_v16 = vpop.eup %4781  ;;  %2813 = vperm.xlu1 %4717, %v2475_v44  }
 0x2c5   : > { %v2477_v41 = vmul.f32 %v4782_v16, %v7650_v53  ;;  %v9571_v16 = vld [vmem:[#allocation43_spill] sm:$0xff] }
 0x2c6   : > { %2599 = vrot.lane.b32.xlu0 %v2507_v56, %s4795_s7  ;;  %v9572_v56 = vld [vmem:[#allocation112_spill] sm:$0xff] }
 0x2c7   : > { %v4784_v9 = vpop.eup %4783  ;;  %v2509_v29 = vmul.f32 %v2477_v41, %v2221_v30 }
 0x2c8   : > { %2601 = vrot.lane.b32.xlu1 %v2508_v40, %s4795_s7  ;;  %v2478_v26 = vmul.f32 %v4784_v9, %v7657_v19  ;;  %v9574_v40 = vld [vmem:[#allocation115_spill] sm:$0xff] }
 0x2ca   : > { %2603 = vrot.lane.b32.xlu0 %v2509_v29, %s4795_s7  ;;  %v2510_v54 = vmul.f32 %v2478_v26, %v2222_v59 }
 0x2cc   : > { %2823 = vperm.xlu1 %4717, %v2477_v41  }
 0x2cd   : > { %v7662_v7 = vpop.permute.xlu1 %2678 }
 0x2ce   : > { %2828 = vperm.xlu0 %4718, %v2478_v26  }
 0x2d0   : > { %2605 = vrot.lane.b32.xlu1 %v2510_v54, %s4795_s7 }
 0x2d1   : > { %v2546_v36 = vpop.permute.xlu1 %2545  ;;  %4720 = vset.pattern.permute.xlu1 %v4796_v10  ;;  %v2674_v30 = vpop.permute.xlu0 %2673 }
 0x2d2   : > { %v2640_v34 = vsub.f32 %v7375_v23, %v2546_v36  ;;  %4719 = vset.pattern.permute.xlu0 %v4796_v10  ;;  %v7667_v47 = vmul.f32 %v2674_v30, %v9568_v63  ;;  %v7670_v27 = vmul.f32 %v2674_v30, %v9569_v60  ;;  %v7673_v44 = vmul.f32 %v2674_v30, %v9570_v45  ;;  %v9576_v23 = vld [vmem:[#allocation181_spill] sm:$0xff]  ;;  %v9577_v10 = vld [vmem:[#allocation11_spill] sm:$0xff] }
 0x2d3   : > { %v7676_v59 = vmul.f32 %v2674_v30, %v9571_v16  ;;  %v7679_v41 = vmul.f32 %v2674_v30, %v9572_v56  ;;  %v7682_v9 = vmul.f32 %v2674_v30, %v9574_v40  ;;  %v7685_v29 = vmul.f32 %v2674_v30, %v9576_v23  ;;  %v9579_v60 = vld [vmem:[#allocation13_spill] sm:$0xff] }
 0x2d4   : > { %3062 = vperm.xlu0 %4719, %v2640_v34   ;;  %v9581_v16 = vld [vmem:[#allocation49_spill] sm:$0xff]  ;;  %v9587_v34 = vld [vmem:[#allocation124_spill] sm:$0xff] }
 0x2d5   : > { %9573 = vst [vmem:[#allocation40_spill] sm:$0xff] %v7679_v41  ;;  %9575 = vst [vmem:[#allocation113_spill] sm:$0xff] %v7682_v9  ;;  %v2544_v26 = vpop.permute.xlu0 %2543  ;;  %v9583_v41 = vld [vmem:[#allocation51_spill] sm:$0xff]  ;;  %v9585_v9 = vld [vmem:[#allocation122_spill] sm:$0xff] }
 0x2d6   : > { %v2639_v54 = vsub.f32 %v7385_v15, %v2544_v26 }
 0x2d7   : > { %v2684_v36 = vpop.permute.xlu1 %2683 }
 0x2d8   : > { %v7689_v63 = vmul.f32 %v2684_v36, %v9577_v10  ;;  %v7692_v45 = vmul.f32 %v2684_v36, %v9579_v60  ;;  %v7695_v56 = vmul.f32 %v2684_v36, %v9581_v16  ;;  %v7698_v40 = vmul.f32 %v2684_v36, %v9583_v41  ;;  %3057 = vperm.xlu1 %4720, %v2639_v54   ;;  %v9590_v10 = vld [vmem:[#allocation15_spill] sm:$0xff] }
 0x2d9   : > { %v7701_v30 = vmul.f32 %v2684_v36, %v9585_v9  ;;  %v7704_v23 = vmul.f32 %v2684_v36, %v9587_v34  ;;  %v7707_v15 = vmul.f32 %v2684_v36, %v6754_v57  ;;  %v2689_v26 = vpop.permute.xlu0 %2688  ;;  %v9597_v34 = vld [vmem:[#allocation126_spill] sm:$0xff]  ;;  %v9599_v57 = vld [vmem:[#allocation128_spill] sm:$0xff]  ;;  %v9601_v54 = vld [vmem:[#allocation183_spill] sm:$0xff] }
 0x2da   : > { %9578 = vst [vmem:[#allocation3_spill] sm:$0xff] %v7689_v63  ;;  %9580 = vst [vmem:[#allocation5_spill] sm:$0xff] %v7692_v45  ;;  %v7710_v60 = vmul.f32 %v2689_v26, %v9590_v10  ;;  %v9591_v45 = vld [vmem:[#allocation17_spill] sm:$0xff]  ;;  %v7725_v36 = vmul.f32 %v2689_v26, %v9599_v57  ;;  %v9608_v57 = vld [vmem:[#allocation63_spill] sm:$0xff] }
 0x2db   : > { %9582 = vst [vmem:[#allocation41_spill] sm:$0xff] %v7695_v56  ;;  %9584 = vst [vmem:[#allocation43_spill] sm:$0xff] %v7698_v40  ;;  %v7713_v16 = vmul.f32 %v2689_v26, %v9591_v45  ;;  %v9593_v56 = vld [vmem:[#allocation53_spill] sm:$0xff]  ;;  %v9595_v40 = vld [vmem:[#allocation55_spill] sm:$0xff] }
 0x2dc   : > { %9586 = vst [vmem:[#allocation112_spill] sm:$0xff] %v7701_v30  ;;  %9588 = vst [vmem:[#allocation115_spill] sm:$0xff] %v7704_v23  ;;  %v7716_v41 = vmul.f32 %v2689_v26, %v9593_v56  ;;  %v7719_v9 = vmul.f32 %v2689_v26, %v9595_v40  ;;  %v2550_v30 = vpop.permute.xlu1 %2549  ;;  %v7722_v23 = vmul.f32 %v2689_v26, %v9597_v34  ;;  %v9606_v34 = vld [vmem:[#allocation61_spill] sm:$0xff] }
 0x2dd   : > { %9589 = vst [vmem:[#allocation181_spill] sm:$0xff] %v7707_v15  ;;  %9592 = vst [vmem:[#allocation11_spill] sm:$0xff] %v7713_v16  ;;  %v7728_v15 = vmul.f32 %v9601_v54, %v2689_v26  ;;  %v2642_v10 = vsub.f32 %v7400_v32, %v2550_v30  ;;  %v9610_v26 = vld [vmem:[#allocation134_spill] sm:$0xff]  ;;  %v9612_v30 = vld [vmem:[#allocation136_spill] sm:$0xff] }
 0x2de   : > { %9594 = vst [vmem:[#allocation13_spill] sm:$0xff] %v7716_v41  ;;  %9596 = vst [vmem:[#allocation49_spill] sm:$0xff] %v7719_v9  ;;  %v9602_v41 = vld [vmem:[#allocation24_spill] sm:$0xff]  ;;  %v9604_v9 = vld [vmem:[#allocation26_spill] sm:$0xff] }
 0x2df   : > { %9598 = vst [vmem:[#allocation51_spill] sm:$0xff] %v7722_v23  ;;  %9600 = vst [vmem:[#allocation122_spill] sm:$0xff] %v7725_v36  ;;  %3072 = vperm.xlu1 %4720, %v2642_v10   ;;  %v9615_v10 = vld [vmem:[#allocation19_spill] sm:$0xff] }
 0x2e0   : > { %v2548_v45 = vpop.permute.xlu1 %2547 }
 0x2e1   : > { %v2641_v56 = vsub.f32 %v7394_v22, %v2548_v45  ;;  %v2699_v63 = vpop.permute.xlu0 %2698  ;;  %v9616_v45 = vld [vmem:[#allocation21_spill] sm:$0xff] }
 0x2e2   : > { %v7733_v40 = vmul.f32 %v2699_v63, %v9602_v41  ;;  %v7736_v16 = vmul.f32 %v2699_v63, %v9604_v9  ;;  %v7739_v23 = vmul.f32 %v2699_v63, %v9606_v34  ;;  %v7742_v36 = vmul.f32 %v2699_v63, %v9608_v57 }
 0x2e3   : > { %3067 = vperm.xlu1 %4720, %v2641_v56   ;;  %v7745_v32 = vmul.f32 %v2699_v63, %v9610_v26  ;;  %v7748_v54 = vmul.f32 %v2699_v63, %v9612_v30  ;;  %v7751_v22 = vmul.f32 %v6773_v14, %v2699_v63  ;;  %v9618_v56 = vld [vmem:[#allocation59_spill] sm:$0xff]  ;;  %v9620_v26 = vld [vmem:[#allocation130_spill] sm:$0xff]  ;;  %v9622_v30 = vld [vmem:[#allocation132_spill] sm:$0xff] }
 0x2e4   : > { %9603 = vst [vmem:[#allocation124_spill] sm:$0xff] %v7733_v40  ;;  %9605 = vst [vmem:[#allocation15_spill] sm:$0xff] %v7736_v16  ;;  %v2694_v41 = vpop.permute.xlu1 %2693  ;;  %v9624_v14 = vld [vmem:[#allocation186_spill] sm:$0xff]  ;;  %v9625_v40 = vld [vmem:[#allocation36_spill] sm:$0xff] }
 0x2e5   : > { %9607 = vst [vmem:[#allocation17_spill] sm:$0xff] %v7739_v23  ;;  %9609 = vst [vmem:[#allocation53_spill] sm:$0xff] %v7742_v36  ;;  %v7754_v9 = vmul.f32 %v2694_v41, %v9615_v10  ;;  %v7757_v34 = vmul.f32 %v2694_v41, %v9616_v45  ;;  %v9617_v23 = vld [vmem:[#allocation57_spill] sm:$0xff]  ;;  %v7763_v36 = vmul.f32 %v2694_v41, %v9618_v56  ;;  %v2552_v10 = vpop.permute.xlu0 %2551 }
 0x2e6   : > { %9611 = vst [vmem:[#allocation55_spill] sm:$0xff] %v7745_v32  ;;  %9613 = vst [vmem:[#allocation126_spill] sm:$0xff] %v7748_v54  ;;  %v7760_v57 = vmul.f32 %v2694_v41, %v9617_v23  ;;  %v7766_v32 = vmul.f32 %v2694_v41, %v9620_v26  ;;  %v7769_v54 = vmul.f32 %v2694_v41, %v9622_v30 }
 0x2e7   : > { %9614 = vst [vmem:[#allocation128_spill] sm:$0xff] %v7751_v22  ;;  %9619 = vst [vmem:[#allocation183_spill] sm:$0xff] %v7763_v36  ;;  %v7772_v63 = vmul.f32 %v2694_v41, %v9624_v14  ;;  %v2643_v22 = vsub.f32 %v7419_v21, %v2552_v10  ;;  %v9627_v36 = vld [vmem:[#allocation38_spill] sm:$0xff]  ;;  %v9635_v10 = vld [vmem:[#allocation144_spill] sm:$0xff] }
 0x2e8   : > { %9621 = vst [vmem:[#allocation24_spill] sm:$0xff] %v7766_v32  ;;  %9623 = vst [vmem:[#allocation26_spill] sm:$0xff] %v7769_v54  ;;  %v2554_v45 = vpop.permute.xlu1 %2553  ;;  %v9629_v32 = vld [vmem:[#allocation69_spill] sm:$0xff]  ;;  %v9631_v54 = vld [vmem:[#allocation71_spill] sm:$0xff] }
 0x2e9   : > { %v2644_v16 = vsub.f32 %v7416_v37, %v2554_v45  ;;  %3077 = vperm.xlu0 %4719, %v2643_v22   ;;  %v2709_v23 = vpop.permute.xlu0 %2708  ;;  %v9633_v14 = vld [vmem:[#allocation142_spill] sm:$0xff] }
 0x2ea   : > { %v7777_v56 = vmul.f32 %v2709_v23, %v9625_v40  ;;  %v7780_v26 = vmul.f32 %v2709_v23, %v9627_v36  ;;  %v7783_v30 = vmul.f32 %v2709_v23, %v9629_v32  ;;  %v7786_v41 = vmul.f32 %v2709_v23, %v9631_v54  ;;  %v9638_v45 = vld [vmem:[#allocation30_spill] sm:$0xff] }
 0x2eb   : > { %3082 = vperm.xlu1 %4720, %v2644_v16   ;;  %v7789_v21 = vmul.f32 %v2709_v23, %v9633_v14  ;;  %v7792_v37 = vmul.f32 %v2709_v23, %v9635_v10  ;;  %v7795_v22 = vmul.f32 %v6807_v51, %v2709_v23  ;;  %v9641_v16 = vld [vmem:[#allocation67_spill] sm:$0xff]  ;;  %v9643_v14 = vld [vmem:[#allocation138_spill] sm:$0xff]  ;;  %v9645_v10 = vld [vmem:[#allocation140_spill] sm:$0xff] }
 0x2ec   : > { %9626 = vst [vmem:[#allocation61_spill] sm:$0xff] %v7777_v56  ;;  %9628 = vst [vmem:[#allocation63_spill] sm:$0xff] %v7780_v26  ;;  %v2704_v40 = vpop.permute.xlu1 %2703  ;;  %v9639_v26 = vld [vmem:[#allocation32_spill] sm:$0xff]  ;;  %v9647_v56 = vld [vmem:[#allocation46_spill] sm:$0xff] }
 0x2ed   : > { %9630 = vst [vmem:[#allocation134_spill] sm:$0xff] %v7783_v30  ;;  %9632 = vst [vmem:[#allocation136_spill] sm:$0xff] %v7786_v41  ;;  %v7798_v36 = vmul.f32 %v2704_v40, %v9638_v45  ;;  %v7801_v32 = vmul.f32 %v2704_v40, %v9639_v26  ;;  %v9640_v30 = vld [vmem:[#allocation65_spill] sm:$0xff]  ;;  %v7807_v41 = vmul.f32 %v2704_v40, %v9641_v16  ;;  %v2556_v23 = vpop.permute.xlu0 %2555 }
 0x2ee   : > { %9634 = vst [vmem:[#allocation19_spill] sm:$0xff] %v7789_v21  ;;  %9636 = vst [vmem:[#allocation21_spill] sm:$0xff] %v7792_v37  ;;  %v7804_v54 = vmul.f32 %v2704_v40, %v9640_v30  ;;  %v7810_v21 = vmul.f32 %v2704_v40, %v9643_v14  ;;  %v7813_v37 = vmul.f32 %v2704_v40, %v9645_v10 }
 0x2ef   : > { %9637 = vst [vmem:[#allocation57_spill] sm:$0xff] %v7795_v22  ;;  %9642 = vst [vmem:[#allocation59_spill] sm:$0xff] %v7807_v41  ;;  %v7816_v51 = vmul.f32 %v2704_v40, %v6825_v35  ;;  %v2645_v45 = vsub.f32 %v7438_v4, %v2556_v23  ;;  %v9649_v41 = vld [vmem:[#allocation48_spill] sm:$0xff]  ;;  %v9655_v40 = vld [vmem:[#allocation151_spill] sm:$0xff] }
 0x2f0   : > { %9644 = vst [vmem:[#allocation130_spill] sm:$0xff] %v7810_v21  ;;  %9646 = vst [vmem:[#allocation132_spill] sm:$0xff] %v7813_v37  ;;  %v2558_v26 = vpop.permute.xlu1 %2557  ;;  %v9651_v21 = vld [vmem:[#allocation77_spill] sm:$0xff]  ;;  %v9653_v37 = vld [vmem:[#allocation79_spill] sm:$0xff] }
 0x2f1   : > { %v2646_v22 = vsub.f32 %v7435_v33, %v2558_v26  ;;  %3087 = vperm.xlu0 %4719, %v2645_v45   ;;  %v2719_v30 = vpop.permute.xlu0 %2718  ;;  %v9657_v23 = vld [vmem:[#allocation154_spill] sm:$0xff] }
 0x2f2   : > { %v7821_v16 = vmul.f32 %v2719_v30, %v9647_v56  ;;  %v7824_v14 = vmul.f32 %v2719_v30, %v9649_v41  ;;  %v7827_v10 = vmul.f32 %v2719_v30, %v9651_v21  ;;  %v7830_v35 = vmul.f32 %v2719_v30, %v9653_v37  ;;  %v9660_v26 = vld [vmem:[#allocation42_spill] sm:$0xff] }
 0x2f3   : > { %3092 = vperm.xlu1 %4720, %v2646_v22   ;;  %v7833_v4 = vmul.f32 %v2719_v30, %v9655_v40  ;;  %v7836_v33 = vmul.f32 %v2719_v30, %v9657_v23  ;;  %v7839_v45 = vmul.f32 %v6847_v61, %v2719_v30  ;;  %v9663_v22 = vld [vmem:[#allocation75_spill] sm:$0xff]  ;;  %v9665_v40 = vld [vmem:[#allocation146_spill] sm:$0xff]  ;;  %v9667_v23 = vld [vmem:[#allocation149_spill] sm:$0xff] }
 0x2f4   : > { %9648 = vst [vmem:[#allocation186_spill] sm:$0xff] %v7821_v16  ;;  %9650 = vst [vmem:[#allocation36_spill] sm:$0xff] %v7824_v14  ;;  %v2714_v56 = vpop.permute.xlu1 %2713  ;;  %v9661_v14 = vld [vmem:[#allocation44_spill] sm:$0xff]  ;;  %v9669_v16 = vld [vmem:[#allocation54_spill] sm:$0xff] }
 0x2f5   : > { %9652 = vst [vmem:[#allocation38_spill] sm:$0xff] %v7827_v10  ;;  %9654 = vst [vmem:[#allocation69_spill] sm:$0xff] %v7830_v35  ;;  %v7842_v41 = vmul.f32 %v2714_v56, %v9660_v26  ;;  %v7845_v21 = vmul.f32 %v2714_v56, %v9661_v14  ;;  %v9662_v10 = vld [vmem:[#allocation73_spill] sm:$0xff]  ;;  %v7851_v35 = vmul.f32 %v2714_v56, %v9663_v22  ;;  %v2560_v30 = vpop.permute.xlu0 %2559 }
 0x2f6   : > { %9656 = vst [vmem:[#allocation71_spill] sm:$0xff] %v7833_v4  ;;  %9658 = vst [vmem:[#allocation142_spill] sm:$0xff] %v7836_v33  ;;  %v7848_v37 = vmul.f32 %v2714_v56, %v9662_v10  ;;  %v7854_v4 = vmul.f32 %v2714_v56, %v9665_v40  ;;  %v7857_v33 = vmul.f32 %v2714_v56, %v9667_v23 }
 0x2f7   : > { %9659 = vst [vmem:[#allocation144_spill] sm:$0xff] %v7839_v45  ;;  %9664 = vst [vmem:[#allocation30_spill] sm:$0xff] %v7851_v35  ;;  %v7860_v61 = vmul.f32 %v2714_v56, %v6866_v0  ;;  %v2647_v26 = vsub.f32 %v7458_v43, %v2560_v30  ;;  %v9671_v35 = vld [vmem:[#allocation56_spill] sm:$0xff]  ;;  %v9677_v56 = vld [vmem:[#allocation163_spill] sm:$0xff] }
 0x2f8   : > { %9666 = vst [vmem:[#allocation32_spill] sm:$0xff] %v7854_v4  ;;  %9668 = vst [vmem:[#allocation65_spill] sm:$0xff] %v7857_v33  ;;  %v2562_v14 = vpop.permute.xlu1 %2561  ;;  %v9673_v4 = vld [vmem:[#allocation85_spill] sm:$0xff]  ;;  %v9675_v33 = vld [vmem:[#allocation87_spill] sm:$0xff] }
 0x2f9   : > { %v2648_v45 = vsub.f32 %v7455_v42, %v2562_v14  ;;  %3097 = vperm.xlu0 %4719, %v2647_v26   ;;  %v2729_v10 = vpop.permute.xlu0 %2728  ;;  %v9679_v30 = vld [vmem:[#allocation166_spill] sm:$0xff] }
 0x2fa   : > { %v7865_v22 = vmul.f32 %v2729_v10, %v9669_v16  ;;  %v7868_v40 = vmul.f32 %v2729_v10, %v9671_v35  ;;  %v7871_v23 = vmul.f32 %v2729_v10, %v9673_v4  ;;  %v7874_v0 = vmul.f32 %v2729_v10, %v9675_v33  ;;  %v9682_v14 = vld [vmem:[#allocation50_spill] sm:$0xff] }
 0x2fb   : > { %3102 = vperm.xlu1 %4720, %v2648_v45   ;;  %v7877_v43 = vmul.f32 %v2729_v10, %v9677_v56  ;;  %v7880_v42 = vmul.f32 %v2729_v10, %v9679_v30  ;;  %v7883_v26 = vmul.f32 %v6889_v31, %v2729_v10  ;;  %v9685_v45 = vld [vmem:[#allocation83_spill] sm:$0xff]  ;;  %v9687_v56 = vld [vmem:[#allocation157_spill] sm:$0xff]  ;;  %v9689_v30 = vld [vmem:[#allocation160_spill] sm:$0xff] }
 0x2fc   : > { %9670 = vst [vmem:[#allocation67_spill] sm:$0xff] %v7865_v22  ;;  %9672 = vst [vmem:[#allocation138_spill] sm:$0xff] %v7868_v40  ;;  %v2724_v16 = vpop.permute.xlu1 %2723  ;;  %v9683_v40 = vld [vmem:[#allocation52_spill] sm:$0xff]  ;;  %v9691_v22 = vld [vmem:[#allocation62_spill] sm:$0xff] }
 0x2fd   : > { %9674 = vst [vmem:[#allocation140_spill] sm:$0xff] %v7871_v23  ;;  %9676 = vst [vmem:[#allocation46_spill] sm:$0xff] %v7874_v0  ;;  %v7886_v35 = vmul.f32 %v2724_v16, %v9682_v14  ;;  %v7889_v4 = vmul.f32 %v2724_v16, %v9683_v40  ;;  %v9684_v23 = vld [vmem:[#allocation81_spill] sm:$0xff]  ;;  %v7895_v0 = vmul.f32 %v2724_v16, %v9685_v45  ;;  %v2564_v10 = vpop.permute.xlu0 %2563 }
 0x2fe   : > { %9678 = vst [vmem:[#allocation48_spill] sm:$0xff] %v7877_v43  ;;  %9680 = vst [vmem:[#allocation77_spill] sm:$0xff] %v7880_v42  ;;  %v7892_v33 = vmul.f32 %v2724_v16, %v9684_v23  ;;  %v7898_v43 = vmul.f32 %v2724_v16, %v9687_v56  ;;  %v7901_v42 = vmul.f32 %v2724_v16, %v9689_v30 }
 0x2ff   : > { %9681 = vst [vmem:[#allocation79_spill] sm:$0xff] %v7883_v26  ;;  %9686 = vst [vmem:[#allocation151_spill] sm:$0xff] %v7895_v0  ;;  %v7904_v31 = vmul.f32 %v2724_v16, %v6907_v46  ;;  %v2649_v14 = vsub.f32 %v7478_v1, %v2564_v10  ;;  %v9693_v0 = vld [vmem:[#allocation64_spill] sm:$0xff]  ;;  %v9699_v16 = vld [vmem:[#allocation173_spill] sm:$0xff] }
 0x300   : > { %9688 = vst [vmem:[#allocation154_spill] sm:$0xff] %v7898_v43  ;;  %9690 = vst [vmem:[#allocation42_spill] sm:$0xff] %v7901_v42  ;;  %v2566_v40 = vpop.permute.xlu1 %2565  ;;  %v9695_v43 = vld [vmem:[#allocation94_spill] sm:$0xff]  ;;  %v9697_v42 = vld [vmem:[#allocation97_spill] sm:$0xff] }
 0x301   : > { %v2650_v26 = vsub.f32 %v7475_v52, %v2566_v40  ;;  %3107 = vperm.xlu0 %4719, %v2649_v14   ;;  %v2739_v23 = vpop.permute.xlu0 %2738  ;;  %v9701_v10 = vld [vmem:[#allocation99_spill] sm:$0xff]  ;;  %v9704_v40 = vld [vmem:[#allocation58_spill] sm:$0xff] }
 0x302   : > { %v7909_v45 = vmul.f32 %v2739_v23, %v9691_v22  ;;  %v7912_v56 = vmul.f32 %v2739_v23, %v9693_v0  ;;  %v7915_v30 = vmul.f32 %v2739_v23, %v9695_v43  ;;  %v7918_v46 = vmul.f32 %v2739_v23, %v9697_v42 }
 0x303   : > { %3112 = vperm.xlu1 %4720, %v2650_v26   ;;  %v7921_v1 = vmul.f32 %v2739_v23, %v9699_v16  ;;  %v7924_v52 = vmul.f32 %v2739_v23, %v9701_v10  ;;  %v7927_v14 = vmul.f32 %v6932_v13, %v2739_v23  ;;  %v9707_v26 = vld [vmem:[#allocation91_spill] sm:$0xff]  ;;  %v9709_v16 = vld [vmem:[#allocation169_spill] sm:$0xff] }
 0x304   : > { %9692 = vst [vmem:[#allocation44_spill] sm:$0xff] %v7909_v45  ;;  %9694 = vst [vmem:[#allocation73_spill] sm:$0xff] %v7912_v56  ;;  %v2734_v22 = vpop.permute.xlu1 %2733  ;;  %v9705_v56 = vld [vmem:[#allocation60_spill] sm:$0xff]  ;;  %v9711_v10 = vld [vmem:[#allocation171_spill] sm:$0xff] }
 0x305   : > { %9696 = vst [vmem:[#allocation75_spill] sm:$0xff] %v7915_v30  ;;  %9698 = vst [vmem:[#allocation146_spill] sm:$0xff] %v7918_v46  ;;  %v7930_v0 = vmul.f32 %v2734_v22, %v9704_v40  ;;  %v7933_v43 = vmul.f32 %v2734_v22, %v9705_v56  ;;  %v9706_v30 = vld [vmem:[#allocation89_spill] sm:$0xff]  ;;  %v7939_v46 = vmul.f32 %v2734_v22, %v9707_v26  ;;  %v2568_v23 = vpop.permute.xlu0 %2567  ;;  %v9713_v45 = vld [vmem:[#allocation70_spill] sm:$0xff] }
 0x306   : > { %9700 = vst [vmem:[#allocation149_spill] sm:$0xff] %v7921_v1  ;;  %9702 = vst [vmem:[#allocation54_spill] sm:$0xff] %v7924_v52  ;;  %v7936_v42 = vmul.f32 %v2734_v22, %v9706_v30  ;;  %v7942_v1 = vmul.f32 %v2734_v22, %v9709_v16  ;;  %v7945_v52 = vmul.f32 %v2734_v22, %v9711_v10 }
 0x307   : > { %9703 = vst [vmem:[#allocation56_spill] sm:$0xff] %v7927_v14  ;;  %9708 = vst [vmem:[#allocation85_spill] sm:$0xff] %v7939_v46  ;;  %v7948_v13 = vmul.f32 %v2734_v22, %v6951_v38  ;;  %v2651_v40 = vsub.f32 %v7498_v12, %v2568_v23  ;;  %v9715_v46 = vld [vmem:[#allocation72_spill] sm:$0xff]  ;;  %v9721_v22 = vld [vmem:[#allocation177_spill] sm:$0xff] }
 0x308   : > { %9710 = vst [vmem:[#allocation87_spill] sm:$0xff] %v7942_v1  ;;  %9712 = vst [vmem:[#allocation163_spill] sm:$0xff] %v7945_v52  ;;  %v2570_v56 = vpop.permute.xlu1 %2569  ;;  %v9717_v1 = vld [vmem:[#allocation106_spill] sm:$0xff]  ;;  %v9719_v52 = vld [vmem:[#allocation109_spill] sm:$0xff] }
 0x309   : > { %v2652_v14 = vsub.f32 %v7495_v25, %v2570_v56  ;;  %3117 = vperm.xlu0 %4719, %v2651_v40   ;;  %v2749_v30 = vpop.permute.xlu0 %2748  ;;  %v9723_v23 = vld [vmem:[#allocation178_spill] sm:$0xff]  ;;  %v9725_v40 = vld [vmem:[#allocation196_spill] sm:$0xff] }
 0x30a   : > { %v7953_v26 = vmul.f32 %v2749_v30, %v9713_v45  ;;  %v7956_v16 = vmul.f32 %v2749_v30, %v9715_v46  ;;  %v7959_v10 = vmul.f32 %v2749_v30, %v9717_v1  ;;  %v7962_v38 = vmul.f32 %v2749_v30, %v9719_v52 }
 0x30b   : > { %3122 = vperm.xlu1 %4720, %v2652_v14   ;;  %v7965_v12 = vmul.f32 %v2749_v30, %v9721_v22  ;;  %v7968_v25 = vmul.f32 %v2749_v30, %v9723_v23  ;;  %v7971_v56 = vmul.f32 %v9725_v40, %v2749_v30  ;;  %v9732_v14 = vld [vmem:[#allocation103_spill] sm:$0xff]  ;;  %v9736_v23 = vld [vmem:[#allocation105_spill] sm:$0xff]  ;;  %v9738_v30 = vld [vmem:[#allocation198_spill] sm:$0xff] }
 0x30c   : > { %9714 = vst [vmem:[#allocation166_spill] sm:$0xff] %v7953_v26  ;;  %9716 = vst [vmem:[#allocation50_spill] sm:$0xff] %v7956_v16  ;;  %v2744_v45 = vpop.permute.xlu1 %2743  ;;  %v9727_v26 = vld [vmem:[#allocation66_spill] sm:$0xff]  ;;  %v9728_v16 = vld [vmem:[#allocation68_spill] sm:$0xff] }
 0x30d   : > { %9718 = vst [vmem:[#allocation52_spill] sm:$0xff] %v7959_v10  ;;  %9720 = vst [vmem:[#allocation81_spill] sm:$0xff] %v7962_v38  ;;  %v7974_v46 = vmul.f32 %v2744_v45, %v9727_v26  ;;  %v7977_v1 = vmul.f32 %v2744_v45, %v9728_v16  ;;  %v9730_v10 = vld [vmem:[#allocation100_spill] sm:$0xff]  ;;  %v7983_v38 = vmul.f32 %v2744_v45, %v9732_v14  ;;  %v9734_v22 = vld [vmem:[#allocation175_spill] sm:$0xff]  ;;  %v2572_v26 = vpop.permute.xlu0 %2571 }
 0x30e   : > { %9722 = vst [vmem:[#allocation83_spill] sm:$0xff] %v7965_v12  ;;  %9724 = vst [vmem:[#allocation157_spill] sm:$0xff] %v7968_v25  ;;  %v7980_v52 = vmul.f32 %v2744_v45, %v9730_v10  ;;  %v7986_v12 = vmul.f32 %v2744_v45, %v9734_v22  ;;  %v7989_v25 = vmul.f32 %v2744_v45, %v9736_v23 }
 0x30f   : > { %9726 = vst [vmem:[#allocation160_spill] sm:$0xff] %v7971_v56  ;;  %9729 = vst [vmem:[#allocation62_spill] sm:$0xff] %v7977_v1  ;;  %v7992_v40 = vmul.f32 %v2744_v45, %v9738_v30  ;;  %v2653_v56 = vsub.f32 %v7518_v58, %v2572_v26  ;;  %v9747_v30 = vld [vmem:[#allocation184_spill] sm:$0xff] }
 0x310   : > { %9731 = vst [vmem:[#allocation64_spill] sm:$0xff] %v7980_v52  ;;  %9733 = vst [vmem:[#allocation94_spill] sm:$0xff] %v7983_v38  ;;  %v2574_v16 = vpop.permute.xlu1 %2573  ;;  %v9739_v52 = vld [vmem:[#allocation78_spill] sm:$0xff]  ;;  %v9741_v38 = vld [vmem:[#allocation80_spill] sm:$0xff] }
 0x311   : > { %9735 = vst [vmem:[#allocation97_spill] sm:$0xff] %v7986_v12  ;;  %9737 = vst [vmem:[#allocation173_spill] sm:$0xff] %v7989_v25  ;;  %v2654_v1 = vsub.f32 %v7515_v17, %v2574_v16  ;;  %3127 = vperm.xlu0 %4719, %v2653_v56   ;;  %v2759_v10 = vpop.permute.xlu0 %2758  ;;  %v9743_v12 = vld [vmem:[#allocation117_spill] sm:$0xff]  ;;  %v9745_v25 = vld [vmem:[#allocation119_spill] sm:$0xff] }
 0x312   : > { %v7997_v14 = vmul.f32 %v2759_v10, %v9739_v52  ;;  %v8000_v22 = vmul.f32 %v2759_v10, %v9741_v38  ;;  %v8003_v23 = vmul.f32 %v2759_v10, %v9743_v12  ;;  %v8006_v45 = vmul.f32 %v2759_v10, %v9745_v25  ;;  %v9749_v26 = vld [vmem:[#allocation116_spill] sm:$0xff] }
 0x313   : > { %3132 = vperm.xlu1 %4720, %v2654_v1   ;;  %v8009_v58 = vmul.f32 %v2759_v10, %v9747_v30  ;;  %v8012_v17 = vmul.f32 %v2759_v10, %v9749_v26  ;;  %v9751_v56 = vld [vmem:[#allocation200_spill] sm:$0xff]  ;;  %v9758_v1 = vld [vmem:[#allocation114_spill] sm:$0xff]  ;;  %v9760_v30 = vld [vmem:[#allocation179_spill] sm:$0xff] }
 0x314   : > { %9740 = vst [vmem:[#allocation99_spill] sm:$0xff] %v7997_v14  ;;  %9742 = vst [vmem:[#allocation58_spill] sm:$0xff] %v8000_v22  ;;  %v8015_v16 = vmul.f32 %v9751_v56, %v2759_v10  ;;  %v2754_v52 = vpop.permute.xlu1 %2753  ;;  %v9753_v14 = vld [vmem:[#allocation74_spill] sm:$0xff]  ;;  %v9754_v22 = vld [vmem:[#allocation76_spill] sm:$0xff] }
 0x315   : > { %9744 = vst [vmem:[#allocation60_spill] sm:$0xff] %v8003_v23  ;;  %9746 = vst [vmem:[#allocation89_spill] sm:$0xff] %v8006_v45  ;;  %v8018_v38 = vmul.f32 %v2754_v52, %v9753_v14  ;;  %v8021_v12 = vmul.f32 %v2754_v52, %v9754_v22  ;;  %v9756_v23 = vld [vmem:[#allocation111_spill] sm:$0xff]  ;;  %v8027_v45 = vmul.f32 %v2754_v52, %v9758_v1  ;;  %v9762_v26 = vld [vmem:[#allocation182_spill] sm:$0xff]  ;;  %v2576_v14 = vpop.permute.xlu0 %2575 }
 0x316   : > { %9748 = vst [vmem:[#allocation91_spill] sm:$0xff] %v8009_v58  ;;  %9750 = vst [vmem:[#allocation169_spill] sm:$0xff] %v8012_v17  ;;  %v8024_v25 = vmul.f32 %v2754_v52, %v9756_v23  ;;  %v8030_v58 = vmul.f32 %v2754_v52, %v9760_v30  ;;  %v8033_v17 = vmul.f32 %v2754_v52, %v9762_v26  ;;  %v9764_v10 = vld [vmem:[#allocation202_spill] sm:$0xff] }
 0x317   : > { %9752 = vst [vmem:[#allocation171_spill] sm:$0xff] %v8015_v16  ;;  %9755 = vst [vmem:[#allocation70_spill] sm:$0xff] %v8021_v12  ;;  %v8036_v56 = vmul.f32 %v2754_v52, %v9764_v10  ;;  %v2655_v16 = vsub.f32 %v7538_v18, %v2576_v14  ;;  %v9773_v10 = vld [vmem:[#allocation188_spill] sm:$0xff]  ;;  %v9775_v14 = vld [vmem:[#allocation189_spill] sm:$0xff] }
 0x318   : > { %9757 = vst [vmem:[#allocation72_spill] sm:$0xff] %v8024_v25  ;;  %9759 = vst [vmem:[#allocation106_spill] sm:$0xff] %v8027_v45  ;;  %v2578_v22 = vpop.permute.xlu1 %2577  ;;  %v9765_v25 = vld [vmem:[#allocation86_spill] sm:$0xff]  ;;  %v9767_v45 = vld [vmem:[#allocation88_spill] sm:$0xff] }
 0x319   : > { %9761 = vst [vmem:[#allocation109_spill] sm:$0xff] %v8030_v58  ;;  %9763 = vst [vmem:[#allocation177_spill] sm:$0xff] %v8033_v17  ;;  %v2656_v12 = vsub.f32 %v7535_v49, %v2578_v22  ;;  %3137 = vperm.xlu0 %4719, %v2655_v16   ;;  %v2769_v23 = vpop.permute.xlu0 %2768  ;;  %v9769_v58 = vld [vmem:[#allocation125_spill] sm:$0xff]  ;;  %v9771_v17 = vld [vmem:[#allocation127_spill] sm:$0xff] }
 0x31a   : > { %v8041_v1 = vmul.f32 %v2769_v23, %v9765_v25  ;;  %v8044_v30 = vmul.f32 %v2769_v23, %v9767_v45  ;;  %v8047_v26 = vmul.f32 %v2769_v23, %v9769_v58  ;;  %v8050_v52 = vmul.f32 %v2769_v23, %v9771_v17  ;;  %v9777_v16 = vld [vmem:[#allocation147_spill] sm:$0xff] }
 0x31b   : > { %3142 = vperm.xlu1 %4720, %v2656_v12   ;;  %v8053_v18 = vmul.f32 %v2769_v23, %v9773_v10  ;;  %v8056_v49 = vmul.f32 %v2769_v23, %v9775_v14  ;;  %v8059_v22 = vmul.f32 %v9777_v16, %v2769_v23  ;;  %v9784_v12 = vld [vmem:[#allocation123_spill] sm:$0xff]  ;;  %v9786_v10 = vld [vmem:[#allocation185_spill] sm:$0xff]  ;;  %v9790_v23 = vld [vmem:[#allocation152_spill] sm:$0xff] }
 0x31c   : > { %9766 = vst [vmem:[#allocation178_spill] sm:$0xff] %v8041_v1  ;;  %9768 = vst [vmem:[#allocation196_spill] sm:$0xff] %v8044_v30  ;;  %v2764_v25 = vpop.permute.xlu1 %2763  ;;  %v9779_v1 = vld [vmem:[#allocation82_spill] sm:$0xff]  ;;  %v9780_v30 = vld [vmem:[#allocation84_spill] sm:$0xff] }
 0x31d   : > { %9770 = vst [vmem:[#allocation66_spill] sm:$0xff] %v8047_v26  ;;  %9772 = vst [vmem:[#allocation68_spill] sm:$0xff] %v8050_v52  ;;  %v8062_v45 = vmul.f32 %v2764_v25, %v9779_v1  ;;  %v8065_v58 = vmul.f32 %v2764_v25, %v9780_v30  ;;  %v9782_v26 = vld [vmem:[#allocation121_spill] sm:$0xff]  ;;  %v8071_v52 = vmul.f32 %v2764_v25, %v9784_v12  ;;  %v9788_v14 = vld [vmem:[#allocation187_spill] sm:$0xff]  ;;  %v2580_v1 = vpop.permute.xlu0 %2579 }
 0x31e   : > { %9774 = vst [vmem:[#allocation100_spill] sm:$0xff] %v8053_v18  ;;  %9776 = vst [vmem:[#allocation103_spill] sm:$0xff] %v8056_v49  ;;  %v8068_v17 = vmul.f32 %v2764_v25, %v9782_v26  ;;  %v8074_v18 = vmul.f32 %v2764_v25, %v9786_v10  ;;  %v8077_v49 = vmul.f32 %v2764_v25, %v9788_v14 }
 0x31f   : > { %9778 = vst [vmem:[#allocation175_spill] sm:$0xff] %v8059_v22  ;;  %9781 = vst [vmem:[#allocation105_spill] sm:$0xff] %v8065_v58  ;;  %v8080_v16 = vmul.f32 %v2764_v25, %v9790_v23  ;;  %v2657_v22 = vsub.f32 %v7558_v20, %v2580_v1  ;;  %v9799_v23 = vld [vmem:[#allocation192_spill] sm:$0xff]  ;;  %v9801_v1 = vld [vmem:[#allocation193_spill] sm:$0xff] }
 0x320   : > { %9783 = vst [vmem:[#allocation198_spill] sm:$0xff] %v8068_v17  ;;  %9785 = vst [vmem:[#allocation78_spill] sm:$0xff] %v8071_v52  ;;  %v2582_v30 = vpop.permute.xlu1 %2581  ;;  %v9791_v17 = vld [vmem:[#allocation95_spill] sm:$0xff]  ;;  %v9793_v52 = vld [vmem:[#allocation98_spill] sm:$0xff] }
 0x321   : > { %9787 = vst [vmem:[#allocation80_spill] sm:$0xff] %v8074_v18  ;;  %9789 = vst [vmem:[#allocation117_spill] sm:$0xff] %v8077_v49  ;;  %v2658_v58 = vsub.f32 %v7555_v39, %v2582_v30  ;;  %3147 = vperm.xlu0 %4719, %v2657_v22   ;;  %v2779_v26 = vpop.permute.xlu0 %2778  ;;  %v9795_v18 = vld [vmem:[#allocation133_spill] sm:$0xff]  ;;  %v9797_v49 = vld [vmem:[#allocation135_spill] sm:$0xff] }
 0x322   : > { %v8085_v12 = vmul.f32 %v2779_v26, %v9791_v17  ;;  %v8088_v10 = vmul.f32 %v2779_v26, %v9793_v52  ;;  %v8091_v14 = vmul.f32 %v2779_v26, %v9795_v18  ;;  %v8094_v25 = vmul.f32 %v2779_v26, %v9797_v49  ;;  %v9803_v22 = vld [vmem:[#allocation205_spill] sm:$0xff] }
 0x323   : > { %3152 = vperm.xlu1 %4720, %v2658_v58   ;;  %v8097_v20 = vmul.f32 %v2779_v26, %v9799_v23  ;;  %v8100_v39 = vmul.f32 %v2779_v26, %v9801_v1  ;;  %v8103_v30 = vmul.f32 %v9803_v22, %v2779_v26  ;;  %v9810_v58 = vld [vmem:[#allocation131_spill] sm:$0xff]  ;;  %v9812_v23 = vld [vmem:[#allocation190_spill] sm:$0xff]  ;;  %v9816_v26 = vld [vmem:[#allocation161_spill] sm:$0xff] }
 0x324   : > { %9792 = vst [vmem:[#allocation119_spill] sm:$0xff] %v8085_v12  ;;  %9794 = vst [vmem:[#allocation184_spill] sm:$0xff] %v8088_v10  ;;  %v2774_v17 = vpop.permute.xlu1 %2773  ;;  %v9805_v12 = vld [vmem:[#allocation90_spill] sm:$0xff]  ;;  %v9806_v10 = vld [vmem:[#allocation92_spill] sm:$0xff] }
 0x325   : > { %9796 = vst [vmem:[#allocation116_spill] sm:$0xff] %v8091_v14  ;;  %9798 = vst [vmem:[#allocation200_spill] sm:$0xff] %v8094_v25  ;;  %v8106_v52 = vmul.f32 %v2774_v17, %v9805_v12  ;;  %v8109_v18 = vmul.f32 %v2774_v17, %v9806_v10  ;;  %v9808_v14 = vld [vmem:[#allocation129_spill] sm:$0xff]  ;;  %v8115_v25 = vmul.f32 %v2774_v17, %v9810_v58  ;;  %v9814_v1 = vld [vmem:[#allocation191_spill] sm:$0xff]  ;;  %v2584_v12 = vpop.permute.xlu0 %2583 }
 0x326   : > { %9800 = vst [vmem:[#allocation74_spill] sm:$0xff] %v8097_v20  ;;  %9802 = vst [vmem:[#allocation76_spill] sm:$0xff] %v8100_v39  ;;  %v8112_v49 = vmul.f32 %v2774_v17, %v9808_v14  ;;  %v8118_v20 = vmul.f32 %v2774_v17, %v9812_v23  ;;  %v8121_v39 = vmul.f32 %v2774_v17, %v9814_v1 }
 0x327   : > { %9804 = vst [vmem:[#allocation111_spill] sm:$0xff] %v8103_v30  ;;  %9807 = vst [vmem:[#allocation114_spill] sm:$0xff] %v8109_v18  ;;  %v8124_v22 = vmul.f32 %v2774_v17, %v9816_v26  ;;  %v2659_v30 = vsub.f32 %v7578_v11, %v2584_v12  ;;  %v9825_v26 = vld [vmem:[#allocation197_spill] sm:$0xff]  ;;  %v9827_v12 = vld [vmem:[#allocation199_spill] sm:$0xff] }
 0x328   : > { %9809 = vst [vmem:[#allocation179_spill] sm:$0xff] %v8112_v49  ;;  %9811 = vst [vmem:[#allocation182_spill] sm:$0xff] %v8115_v25  ;;  %v2586_v10 = vpop.permute.xlu1 %2585  ;;  %v9817_v49 = vld [vmem:[#allocation107_spill] sm:$0xff]  ;;  %v9819_v25 = vld [vmem:[#allocation110_spill] sm:$0xff] }
 0x329   : > { %9813 = vst [vmem:[#allocation202_spill] sm:$0xff] %v8118_v20  ;;  %9815 = vst [vmem:[#allocation86_spill] sm:$0xff] %v8121_v39  ;;  %v2660_v18 = vsub.f32 %v7575_v62, %v2586_v10  ;;  %3157 = vperm.xlu0 %4719, %v2659_v30   ;;  %v2789_v14 = vpop.permute.xlu0 %2788  ;;  %v9821_v20 = vld [vmem:[#allocation141_spill] sm:$0xff]  ;;  %v9823_v39 = vld [vmem:[#allocation143_spill] sm:$0xff] }
 0x32a   : > { %v8129_v58 = vmul.f32 %v2789_v14, %v9817_v49  ;;  %v8132_v23 = vmul.f32 %v2789_v14, %v9819_v25  ;;  %v8135_v1 = vmul.f32 %v2789_v14, %v9821_v20  ;;  %v8138_v17 = vmul.f32 %v2789_v14, %v9823_v39  ;;  %v9829_v30 = vld [vmem:[#allocation158_spill] sm:$0xff] }
 0x32b   : > { %3162 = vperm.xlu1 %4720, %v2660_v18   ;;  %v8141_v11 = vmul.f32 %v2789_v14, %v9825_v26  ;;  %v8144_v62 = vmul.f32 %v2789_v14, %v9827_v12  ;;  %v8147_v10 = vmul.f32 %v9829_v30, %v2789_v14  ;;  %v9836_v18 = vld [vmem:[#allocation139_spill] sm:$0xff]  ;;  %v9838_v26 = vld [vmem:[#allocation194_spill] sm:$0xff]  ;;  %v9842_v14 = vld [vmem:[#allocation164_spill] sm:$0xff] }
 0x32c   : > { %9818 = vst [vmem:[#allocation88_spill] sm:$0xff] %v8129_v58  ;;  %9820 = vst [vmem:[#allocation125_spill] sm:$0xff] %v8132_v23  ;;  %v2784_v49 = vpop.permute.xlu1 %2783  ;;  %v9831_v58 = vld [vmem:[#allocation101_spill] sm:$0xff]  ;;  %v9832_v23 = vld [vmem:[#allocation104_spill] sm:$0xff] }
 0x32d   : > { %9822 = vst [vmem:[#allocation127_spill] sm:$0xff] %v8135_v1  ;;  %9824 = vst [vmem:[#allocation188_spill] sm:$0xff] %v8138_v17  ;;  %v8150_v25 = vmul.f32 %v2784_v49, %v9831_v58  ;;  %v8153_v20 = vmul.f32 %v2784_v49, %v9832_v23  ;;  %v9834_v1 = vld [vmem:[#allocation137_spill] sm:$0xff]  ;;  %v8159_v17 = vmul.f32 %v2784_v49, %v9836_v18  ;;  %v9840_v12 = vld [vmem:[#allocation195_spill] sm:$0xff]  ;;  %v2588_v58 = vpop.permute.xlu0 %2587 }
 0x32e   : > { %9826 = vst [vmem:[#allocation189_spill] sm:$0xff] %v8141_v11  ;;  %9828 = vst [vmem:[#allocation147_spill] sm:$0xff] %v8144_v62  ;;  %v8156_v39 = vmul.f32 %v2784_v49, %v9834_v1  ;;  %v8162_v11 = vmul.f32 %v2784_v49, %v9838_v26  ;;  %v8165_v62 = vmul.f32 %v2784_v49, %v9840_v12 }
 0x32f   : > { %9830 = vst [vmem:[#allocation82_spill] sm:$0xff] %v8147_v10  ;;  %9833 = vst [vmem:[#allocation84_spill] sm:$0xff] %v8153_v20  ;;  %v8168_v30 = vmul.f32 %v2784_v49, %v9842_v14  ;;  %v2661_v10 = vsub.f32 %v7598_v28, %v2588_v58  ;;  %v9851_v14 = vld [vmem:[#allocation204_spill] sm:$0xff]  ;;  %v9853_v58 = vld [vmem:[#allocation155_spill] sm:$0xff] }
 0x330   : > { %9835 = vst [vmem:[#allocation121_spill] sm:$0xff] %v8156_v39  ;;  %9837 = vst [vmem:[#allocation123_spill] sm:$0xff] %v8159_v17  ;;  %v2590_v23 = vpop.permute.xlu1 %2589  ;;  %v9843_v39 = vld [vmem:[#allocation6_spill] sm:$0xff]  ;;  %v9845_v17 = vld [vmem:[#allocation8_spill] sm:$0xff] }
 0x331   : > { %9839 = vst [vmem:[#allocation185_spill] sm:$0xff] %v8162_v11  ;;  %9841 = vst [vmem:[#allocation187_spill] sm:$0xff] %v8165_v62  ;;  %v2662_v20 = vsub.f32 %v7595_v24, %v2590_v23  ;;  %3167 = vperm.xlu0 %4719, %v2661_v10   ;;  %v2799_v1 = vpop.permute.xlu0 %2798  ;;  %v9847_v11 = vld [vmem:[#allocation150_spill] sm:$0xff]  ;;  %v9849_v62 = vld [vmem:[#allocation153_spill] sm:$0xff] }
 0x332   : > { %v8173_v18 = vmul.f32 %v2799_v1, %v9843_v39  ;;  %v8176_v26 = vmul.f32 %v2799_v1, %v9845_v17  ;;  %v8179_v12 = vmul.f32 %v2799_v1, %v9847_v11  ;;  %v8182_v49 = vmul.f32 %v2799_v1, %v9849_v62  ;;  %v9855_v10 = vld [vmem:[#allocation209_spill] sm:$0xff] }
 0x333   : > { %3172 = vperm.xlu1 %4720, %v2662_v20   ;;  %v8185_v28 = vmul.f32 %v2799_v1, %v9851_v14  ;;  %v8188_v24 = vmul.f32 %v2799_v1, %v9853_v58  ;;  %v8191_v23 = vmul.f32 %v9855_v10, %v2799_v1  ;;  %v9862_v20 = vld [vmem:[#allocation148_spill] sm:$0xff]  ;;  %v9864_v14 = vld [vmem:[#allocation201_spill] sm:$0xff]  ;;  %v9866_v58 = vld [vmem:[#allocation203_spill] sm:$0xff] }
 0x334   : > { %9844 = vst [vmem:[#allocation152_spill] sm:$0xff] %v8173_v18  ;;  %9846 = vst [vmem:[#allocation95_spill] sm:$0xff] %v8176_v26  ;;  %v2794_v39 = vpop.permute.xlu1 %2793  ;;  %v9857_v18 = vld [vmem:[#allocation2_spill] sm:$0xff]  ;;  %v9858_v26 = vld [vmem:[#allocation4_spill] sm:$0xff] }
 0x335   : > { %9848 = vst [vmem:[#allocation98_spill] sm:$0xff] %v8179_v12  ;;  %9850 = vst [vmem:[#allocation133_spill] sm:$0xff] %v8182_v49  ;;  %v8194_v17 = vmul.f32 %v2794_v39, %v9857_v18  ;;  %v8197_v11 = vmul.f32 %v2794_v39, %v9858_v26  ;;  %v9860_v12 = vld [vmem:[#allocation145_spill] sm:$0xff]  ;;  %v8203_v49 = vmul.f32 %v2794_v39, %v9862_v20  ;;  %v9868_v1 = vld [vmem:[#allocation22_spill] sm:$0xff]  ;;  %v2592_v18 = vpop.permute.xlu0 %2591 }
 0x336   : > { %9852 = vst [vmem:[#allocation135_spill] sm:$0xff] %v8185_v28  ;;  %9854 = vst [vmem:[#allocation192_spill] sm:$0xff] %v8188_v24  ;;  %v8200_v62 = vmul.f32 %v2794_v39, %v9860_v12  ;;  %v8206_v28 = vmul.f32 %v2794_v39, %v9864_v14  ;;  %v8209_v24 = vmul.f32 %v2794_v39, %v9866_v58 }
 0x337   : > { %9856 = vst [vmem:[#allocation193_spill] sm:$0xff] %v8191_v23  ;;  %9859 = vst [vmem:[#allocation205_spill] sm:$0xff] %v8197_v11  ;;  %v8212_v10 = vmul.f32 %v2794_v39, %v9868_v1  ;;  %v2663_v23 = vsub.f32 %v7618_v5, %v2592_v18  ;;  %v9878_v1 = vld [vmem:[#allocation208_spill] sm:$0xff]  ;;  %v9880_v18 = vld [vmem:[#allocation167_spill] sm:$0xff] }
 0x338   : > { %9861 = vst [vmem:[#allocation90_spill] sm:$0xff] %v8200_v62  ;;  %9863 = vst [vmem:[#allocation92_spill] sm:$0xff] %v8203_v49  ;;  %v2594_v26 = vpop.permute.xlu1 %2593  ;;  %v9870_v62 = vld [vmem:[#allocation14_spill] sm:$0xff]  ;;  %v9872_v49 = vld [vmem:[#allocation16_spill] sm:$0xff] }
 0x339   : > { %9865 = vst [vmem:[#allocation129_spill] sm:$0xff] %v8206_v28  ;;  %9867 = vst [vmem:[#allocation131_spill] sm:$0xff] %v8209_v24  ;;  %v2664_v11 = vsub.f32 %v7615_v2, %v2594_v26  ;;  %3177 = vperm.xlu0 %4719, %v2663_v23   ;;  %v2809_v12 = vpop.permute.xlu0 %2808  ;;  %v9874_v28 = vld [vmem:[#allocation162_spill] sm:$0xff]  ;;  %v9876_v24 = vld [vmem:[#allocation165_spill] sm:$0xff] }
 0x33a   : > { %9869 = vst [vmem:[#allocation190_spill] sm:$0xff] %v8212_v10  ;;  %v8217_v20 = vmul.f32 %v2809_v12, %v9870_v62  ;;  %v8220_v14 = vmul.f32 %v2809_v12, %v9872_v49  ;;  %v8223_v58 = vmul.f32 %v2809_v12, %v9874_v28  ;;  %v8226_v39 = vmul.f32 %v2809_v12, %v9876_v24  ;;  %v9882_v23 = vld [vmem:[#allocation170_spill] sm:$0xff] }
 0x33b   : > { %3182 = vperm.xlu1 %4720, %v2664_v11   ;;  %v8229_v5 = vmul.f32 %v2809_v12, %v9878_v1  ;;  %v8232_v2 = vmul.f32 %v2809_v12, %v9880_v18  ;;  %v8235_v26 = vmul.f32 %v9882_v23, %v2809_v12  ;;  %v9890_v11 = vld [vmem:[#allocation159_spill] sm:$0xff]  ;;  %v9892_v1 = vld [vmem:[#allocation206_spill] sm:$0xff]  ;;  %v9896_v12 = vld [vmem:[#allocation96_spill] sm:$0xff] }
 0x33c   : > { %9871 = vst [vmem:[#allocation191_spill] sm:$0xff] %v8217_v20  ;;  %9873 = vst [vmem:[#allocation161_spill] sm:$0xff] %v8220_v14  ;;  %v2804_v62 = vpop.permute.xlu1 %2803  ;;  %v9884_v20 = vld [vmem:[#allocation10_spill] sm:$0xff]  ;;  %v9886_v14 = vld [vmem:[#allocation12_spill] sm:$0xff] }
 0x33d   : > { %9875 = vst [vmem:[#allocation107_spill] sm:$0xff] %v8223_v58  ;;  %9877 = vst [vmem:[#allocation110_spill] sm:$0xff] %v8226_v39  ;;  %v8238_v49 = vmul.f32 %v2804_v62, %v9884_v20  ;;  %v8241_v28 = vmul.f32 %v2804_v62, %v9886_v14  ;;  %v9888_v58 = vld [vmem:[#allocation156_spill] sm:$0xff]  ;;  %v8247_v39 = vmul.f32 %v2804_v62, %v9890_v11  ;;  %v9894_v18 = vld [vmem:[#allocation207_spill] sm:$0xff]  ;;  %v2596_v20 = vpop.permute.xlu0 %2595 }
 0x33e   : > { %9879 = vst [vmem:[#allocation141_spill] sm:$0xff] %v8229_v5  ;;  %9881 = vst [vmem:[#allocation143_spill] sm:$0xff] %v8232_v2  ;;  %v8244_v24 = vmul.f32 %v2804_v62, %v9888_v58  ;;  %v8250_v5 = vmul.f32 %v2804_v62, %v9892_v1  ;;  %v8253_v2 = vmul.f32 %v2804_v62, %v9894_v18 }
 0x33f   : > { %9883 = vst [vmem:[#allocation197_spill] sm:$0xff] %v8235_v26  ;;  %9885 = vst [vmem:[#allocation199_spill] sm:$0xff] %v8238_v49  ;;  %v8256_v23 = vmul.f32 %v2804_v62, %v9896_v12  ;;  %v2665_v26 = vsub.f32 %v7630_v6, %v2596_v20  ;;  %v9906_v12 = vld [vmem:[#allocation212_spill] sm:$0xff] }
 0x340   : > { %9887 = vst [vmem:[#allocation158_spill] sm:$0xff] %v8241_v28  ;;  %9889 = vst [vmem:[#allocation101_spill] sm:$0xff] %v8244_v24  ;;  %v2598_v14 = vpop.permute.xlu1 %2597  ;;  %v9898_v24 = vld [vmem:[#allocation23_spill] sm:$0xff]  ;;  %v9908_v20 = vld [vmem:[#allocation28_spill] sm:$0xff] }
 0x341   : > { %9891 = vst [vmem:[#allocation104_spill] sm:$0xff] %v8247_v39  ;;  %9893 = vst [vmem:[#allocation137_spill] sm:$0xff] %v8250_v5  ;;  %v2666_v28 = vsub.f32 %v7627_v48, %v2598_v14  ;;  %3187 = vperm.xlu0 %4719, %v2665_v26   ;;  %v2819_v58 = vpop.permute.xlu0 %2818  ;;  %v9900_v39 = vld [vmem:[#allocation25_spill] sm:$0xff]  ;;  %v9902_v5 = vld [vmem:[#allocation172_spill] sm:$0xff] }
 0x342   : > { %9895 = vst [vmem:[#allocation139_spill] sm:$0xff] %v8253_v2  ;;  %9897 = vst [vmem:[#allocation194_spill] sm:$0xff] %v8256_v23  ;;  %v8261_v11 = vmul.f32 %v2819_v58, %v9898_v24  ;;  %v8264_v1 = vmul.f32 %v2819_v58, %v9900_v39  ;;  %v8267_v18 = vmul.f32 %v2819_v58, %v9902_v5  ;;  %v9904_v2 = vld [vmem:[#allocation27_spill] sm:$0xff]  ;;  %v9910_v26 = vld [vmem:[#allocation213_spill] sm:$0xff] }
 0x343   : > { %v8270_v62 = vmul.f32 %v2819_v58, %v9904_v2  ;;  %3192 = vperm.xlu1 %4720, %v2666_v28   ;;  %v8273_v6 = vmul.f32 %v2819_v58, %v9906_v12  ;;  %v8276_v48 = vmul.f32 %v2819_v58, %v9908_v20  ;;  %v8279_v14 = vmul.f32 %v9910_v26, %v2819_v58  ;;  %v9914_v5 = vld [vmem:[#allocation20_spill] sm:$0xff]  ;;  %v9918_v28 = vld [vmem:[#allocation93_spill] sm:$0xff]  ;;  %v9924_v26 = vld [vmem:[#allocation102_spill] sm:$0xff] }
 0x344   : > { %9899 = vst [vmem:[#allocation195_spill] sm:$0xff] %v8261_v11  ;;  %9901 = vst [vmem:[#allocation164_spill] sm:$0xff] %v8264_v1  ;;  %v2814_v24 = vpop.permute.xlu1 %2813  ;;  %v9912_v11 = vld [vmem:[#allocation18_spill] sm:$0xff]  ;;  %v9916_v2 = vld [vmem:[#allocation168_spill] sm:$0xff] }
 0x345   : > { %9903 = vst [vmem:[#allocation6_spill] sm:$0xff] %v8267_v18  ;;  %9905 = vst [vmem:[#allocation8_spill] sm:$0xff] %v8270_v62  ;;  %v8282_v39 = vmul.f32 %v2814_v24, %v9912_v11  ;;  %v8285_v18 = vmul.f32 %v2814_v24, %v9914_v5  ;;  %v8288_v62 = vmul.f32 %v2814_v24, %v9916_v2  ;;  %v2600_v11 = vpop.permute.xlu0 %2599 }
 0x346   : > { %9907 = vst [vmem:[#allocation150_spill] sm:$0xff] %v8273_v6  ;;  %9909 = vst [vmem:[#allocation153_spill] sm:$0xff] %v8276_v48  ;;  %v8291_v12 = vmul.f32 %v2814_v24, %v9918_v28  ;;  %v9920_v6 = vld [vmem:[#allocation210_spill] sm:$0xff]  ;;  %v9922_v48 = vld [vmem:[#allocation211_spill] sm:$0xff]  ;;  %v2667_v1 = vsub.f32 %v7642_v55, %v2600_v11 }
 0x347   : > { %9911 = vst [vmem:[#allocation204_spill] sm:$0xff] %v8279_v14  ;;  %9913 = vst [vmem:[#allocation155_spill] sm:$0xff] %v8282_v39  ;;  %v8294_v20 = vmul.f32 %v2814_v24, %v9920_v6  ;;  %v8297_v58 = vmul.f32 %v2814_v24, %v9922_v48  ;;  %v8300_v14 = vmul.f32 %v2814_v24, %v9924_v26  ;;  %v9926_v48 = vld [vmem:[#allocation29_spill] sm:$0xff]  ;;  %v9928_v24 = vld [vmem:[#allocation31_spill] sm:$0xff] }
 0x348   : > { %9915 = vst [vmem:[#allocation209_spill] sm:$0xff] %v8285_v18  ;;  %9917 = vst [vmem:[#allocation2_spill] sm:$0xff] %v8288_v62  ;;  %v2602_v5 = vpop.permute.xlu1 %2601  ;;  %3197 = vperm.xlu0 %4719, %v2667_v1   ;;  %v9932_v11 = vld [vmem:[#allocation33_spill] sm:$0xff] }
 0x349   : > { %9919 = vst [vmem:[#allocation4_spill] sm:$0xff] %v8291_v12  ;;  %9921 = vst [vmem:[#allocation145_spill] sm:$0xff] %v8294_v20  ;;  %v2668_v18 = vsub.f32 %v7639_v8, %v2602_v5  ;;  %v2604_v2 = vpop.permute.xlu0 %2603  ;;  %v9934_v5 = vld [vmem:[#allocation214_spill] sm:$0xff] }
 0x34a   : > { %9923 = vst [vmem:[#allocation148_spill] sm:$0xff] %v8297_v58  ;;  %9925 = vst [vmem:[#allocation201_spill] sm:$0xff] %v8300_v14  ;;  %v2669_v28 = vsub.f32 %v7650_v53, %v2604_v2  ;;  %v9930_v14 = vld [vmem:[#allocation174_spill] sm:$0xff] }
 0x34b   : > { %3202 = vperm.xlu1 %4720, %v2668_v18   ;;  %v9936_v18 = vld [vmem:[#allocation34_spill] sm:$0xff] }
 0x34c   : > { %v2824_v6 = vpop.permute.xlu1 %2823  ;;  %3207 = vperm.xlu0 %4719, %v2669_v28   ;;  %v9938_v28 = vld [vmem:[#allocation108_spill] sm:$0xff] }
 0x34d   : > { %v8307_v58 = vmul.f32 %v2824_v6, %v9926_v48  ;;  %v8310_v26 = vmul.f32 %v2824_v6, %v9928_v24  ;;  %v8313_v55 = vmul.f32 %v2824_v6, %v9930_v14  ;;  %v8316_v8 = vmul.f32 %v2824_v6, %v9932_v11  ;;  %v2829_v1 = vpop.permute.xlu0 %2828  ;;  %v9940_v48 = vld [vmem:[#allocation35_spill] sm:$0xff]  ;;  %v9942_v24 = vld [vmem:[#allocation37_spill] sm:$0xff]  ;;  %v9944_v14 = vld [vmem:[#allocation176_spill] sm:$0xff] }
 0x34e   : > { %v8319_v53 = vmul.f32 %v2824_v6, %v9934_v5  ;;  %v8322_v2 = vmul.f32 %v2824_v6, %v9936_v18  ;;  %v8325_v20 = vmul.f32 %v2824_v6, %v9938_v28  ;;  %v9946_v11 = vld [vmem:[#allocation39_spill] sm:$0xff]  ;;  %v8350_v28 = vmul.f32 %v2829_v1, %v7310_v3 }
 0x34f   : > { %9927 = vst [vmem:[#allocation203_spill] sm:$0xff] %v8307_v58  ;;  %9929 = vst [vmem:[#allocation22_spill] sm:$0xff] %v8310_v26  ;;  %v8328_v58 = vmul.f32 %v2829_v1, %v9940_v48  ;;  %v8331_v26 = vmul.f32 %v2829_v1, %v9942_v24  ;;  %v9948_v5 = vld [vmem:[#allocation215_spill] sm:$0xff]  ;;  %v8353_v48 = vmul.f32 %v7294_v50, %v2829_v1  ;;  %v9956_v50 = vld [vmem:[#allocation118_spill] sm:$0xff] }
 0x350   : > { %9931 = vst [vmem:[#allocation14_spill] sm:$0xff] %v8313_v55  ;;  %9933 = vst [vmem:[#allocation16_spill] sm:$0xff] %v8316_v8  ;;  %v8334_v55 = vmul.f32 %v2829_v1, %v9944_v14  ;;  %v8337_v8 = vmul.f32 %v2829_v1, %v9946_v11  ;;  %v2606_v6 = vpop.permute.xlu1 %2605  ;;  %v8347_v18 = vmul.f32 %v2829_v1, %v9948_v5  ;;  %v9952_v14 = vld [vmem:[#allocation7_spill] sm:$0xff]  ;;  %v9954_v5 = vld [vmem:[#allocation45_spill] sm:$0xff] }
 0x351   : > { %9935 = vst [vmem:[#allocation162_spill] sm:$0xff] %v8319_v53  ;;  %9937 = vst [vmem:[#allocation165_spill] sm:$0xff] %v8322_v2  ;;  %v2670_v24 = vsub.f32 %v7657_v19, %v2606_v6  ;;  %v2838_v11 = vmul.f32 %v7662_v7, %v9952_v14  ;;  %v9955_v3 = vld [vmem:[#allocation47_spill] sm:$0xff]  ;;  %v2842_v1 = vmul.f32 %v7662_v7, %v9956_v50  ;;  %v9958_v6 = vld [vmem:[#allocation180_spill] sm:$0xff] }
 0x352   : > { %9939 = vst [vmem:[#allocation208_spill] sm:$0xff] %v8325_v20  ;;  %9941 = vst [vmem:[#allocation167_spill] sm:$0xff] %v8328_v58  ;;  %v3447_v14 = vld [vmem:[%s8344_s24 + $0x40] sm:$0xff]  ;;  %v3448_v58 = vld [vmem:[%s8344_s24 + $0x48] sm:$0xff] }
 0x353   : > { %9943 = vst [vmem:[#allocation170_spill] sm:$0xff] %v8331_v26  ;;  %9945 = vst [vmem:[#allocation10_spill] sm:$0xff] %v8334_v55  ;;  %3212 = vperm.xlu1 %4720, %v2670_v24   ;;  %v3446_v26 = vld [vmem:[%s8344_s24 + $0x38] sm:$0xff]  ;;  %v2844_v24 = vmul.f32 %v9958_v6, %v7662_v7  ;;  %v3449_v20 = vld [vmem:[%s8344_s24 + $0x50] sm:$0xff] }
 0x354   : > { %9947 = vst [vmem:[#allocation12_spill] sm:$0xff] %v8337_v8  ;;  %9949 = vst [vmem:[#allocation156_spill] sm:$0xff] %v8347_v18  ;;  %v9953_v8 = vld [vmem:[#allocation9_spill] sm:$0xff]  ;;  %v2840_v18 = vmul.f32 %v7662_v7, %v9954_v5  ;;  %v3451_v5 = vld [vmem:[%s8344_s24 + $0x60] sm:$0xff] }
 0x355   : > { %9950 = vst [vmem:[#allocation159_spill] sm:$0xff] %v8350_v28  ;;  %9951 = vst [vmem:[#allocation206_spill] sm:$0xff] %v8353_v48  ;;  %v2839_v55 = vmul.f32 %v7662_v7, %v9953_v8  ;;  %v2841_v28 = vmul.f32 %v7662_v7, %v9955_v3  ;;  %v9957_v48 = vld [vmem:[#allocation120_spill] sm:$0xff]  ;;  %v3063_v8 = vpop.permute.xlu0 %3062  ;;  %v3450_v2 = vld [vmem:[%s8344_s24 + $0x58] sm:$0xff] }
 0x356   : > { %v2843_v19 = vmul.f32 %v7662_v7, %v9957_v48  ;;  %v3452_v53 = vld [vmem:[%s8344_s24 + $0x68] sm:$0xff]  ;;  %v3222_v12 = vadd.f32 %v3063_v8, %v2838_v11  ;;  %v3224_v62 = vadd.f32 %v3063_v8, %v2840_v18  ;;  %v3226_v50 = vadd.f32 %v3063_v8, %v2842_v1 }
 0x357   : > { %v3223_v3 = vadd.f32 %v3063_v8, %v2839_v55  ;;  %v3225_v39 = vadd.f32 %v3063_v8, %v2841_v28  ;;  %v3228_v48 = vadd.f32 %v3063_v8, %v2844_v24 }
 0x358   : > { %v3227_v23 = vadd.f32 %v3063_v8, %v2843_v19  ;;  %v3670_v49 = vadd.f32 %v3446_v26, %v3222_v12  ;;  %v3672_v7 = vadd.f32 %v3448_v58, %v3224_v62  ;;  %v3674_v55 = vadd.f32 %v3450_v2, %v3226_v50  ;;  %v3440_v58 = vld [vmem:[%s8344_s24 + $0x8] sm:$0xff]  ;;  %v3058_v26 = vpop.permute.xlu1 %3057  ;;  %v3443_v2 = vld [vmem:[%s8344_s24 + $0x20] sm:$0xff]  ;;  %v9959_v50 = vld [vmem:[#allocation40_spill] sm:$0xff] }
 0x359   : > { %v3671_v10 = vadd.f32 %v3447_v14, %v3223_v3  ;;  %v3673_v6 = vadd.f32 %v3449_v20, %v3225_v39  ;;  %v3676_v28 = vadd.f32 %v3452_v53, %v3228_v48  ;;  %v3439_v20 = vld [vmem:[%s8344_s24] sm:$0xff]  ;;  %v3442_v53 = vld [vmem:[%s8344_s24 + $0x18] sm:$0xff]  ;;  %v3445_v14 = vld [vmem:[%s8344_s24 + $0x30] sm:$0xff]  ;;  %v3216_v8 = vadd.f32 %v3058_v26, %v7670_v27 }
 0x35a   : > { %v3675_v18 = vadd.f32 %v3451_v5, %v3227_v23  ;;  %v3894_v11 = vmax.f32 %v3670_v49, 0.0  ;;  %v3896_v62 = vmax.f32 %v3672_v7, 0.0  ;;  %v3898_v1 = vmax.f32 %v3674_v55, 0.0  ;;  %v3441_v23 = vld [vmem:[%s8344_s24 + $0x10] sm:$0xff] }
 0x35b   : > { %v3895_v12 = vmax.f32 %v3671_v10, 0.0  ;;  %v3897_v39 = vmax.f32 %v3673_v6, 0.0  ;;  %v3900_v24 = vmax.f32 %v3676_v28, 0.0  ;;  %v3215_v49 = vadd.f32 %v3058_v26, %v7667_v47  ;;  %v3444_v10 = vld [vmem:[%s8344_s24 + $0x28] sm:$0xff]  ;;  %v9960_v47 = vld [vmem:[#allocation113_spill] sm:$0xff] }
 0x35c   : > { %v3899_v19 = vmax.f32 %v3675_v18, 0.0  ;;  %4118 = vst [vmem:[%s8382_s27 + $0x38] sm:$0xff] %v3894_v11  ;;  %4120 = vst [vmem:[%s8382_s27 + $0x48] sm:$0xff] %v3896_v62  ;;  %v3217_v5 = vadd.f32 %v3058_v26, %v7673_v44  ;;  %v3218_v3 = vadd.f32 %v3058_v26, %v7676_v59  ;;  %v3219_v48 = vadd.f32 %v3058_v26, %v9959_v50  ;;  %v3460_v62 = vld [vmem:[%s8344_s24 + $0xa8] sm:$0xff] }
 0x35d   : > { %4119 = vst [vmem:[%s8382_s27 + $0x40] sm:$0xff] %v3895_v12  ;;  %4121 = vst [vmem:[%s8382_s27 + $0x50] sm:$0xff] %v3897_v39  ;;  %v3220_v7 = vadd.f32 %v3058_v26, %v9960_v47  ;;  %v3221_v6 = vadd.f32 %v3058_v26, %v7685_v29  ;;  %v3663_v55 = vadd.f32 %v3439_v20, %v3215_v49  ;;  %v3461_v26 = vld [vmem:[%s8344_s24 + $0xb0] sm:$0xff] }
 0x35e   : > { %4122 = vst [vmem:[%s8382_s27 + $0x58] sm:$0xff] %v3898_v1  ;;  %4123 = vst [vmem:[%s8382_s27 + $0x60] sm:$0xff] %v3899_v19  ;;  %v3664_v18 = vadd.f32 %v3440_v58, %v3216_v8  ;;  %v3665_v27 = vadd.f32 %v3441_v23, %v3217_v5  ;;  %v3666_v44 = vadd.f32 %v3442_v53, %v3218_v3  ;;  %v3073_v39 = vpop.permute.xlu1 %3072  ;;  %v3462_v19 = vld [vmem:[%s8344_s24 + $0xb8] sm:$0xff]  ;;  %v3463_v53 = vld [vmem:[%s8344_s24 + $0xc0] sm:$0xff] }
 0x35f   : > { %4124 = vst.msk [vmem:[%s8382_s27 + $0x68] sm:$0xff] %vm1395_vm0, %v3900_v24  ;;  %v3667_v28 = vadd.f32 %v3443_v2, %v3219_v48  ;;  %v3668_v59 = vadd.f32 %v3444_v10, %v3220_v7  ;;  %v3669_v11 = vadd.f32 %v3445_v14, %v3221_v6  ;;  %v3887_v12 = vmax.f32 %v3663_v55, 0.0  ;;  %v3464_v2 = vld [vmem:[%s8344_s24 + $0xc8] sm:$0xff]  ;;  %v3465_v49 = vld [vmem:[%s8344_s24 + $0xd0] sm:$0xff]  ;;  %v3466_v5 = vld [vmem:[%s8344_s24 + $0xd8] sm:$0xff] }
 0x360   : > { %v3888_v1 = vmax.f32 %v3664_v18, 0.0  ;;  %v3889_v29 = vmax.f32 %v3665_v27, 0.0  ;;  %v3890_v20 = vmax.f32 %v3666_v44, 0.0  ;;  %v3236_v10 = vadd.f32 %v3073_v39, %v7710_v60  ;;  %v9961_v14 = vld [vmem:[#allocation11_spill] sm:$0xff]  ;;  %v9962_v3 = vld [vmem:[#allocation13_spill] sm:$0xff]  ;;  %v9965_v55 = vld [vmem:[#allocation122_spill] sm:$0xff] }
 0x361   : > { %v3891_v58 = vmax.f32 %v3667_v28, 0.0  ;;  %v3892_v24 = vmax.f32 %v3668_v59, 0.0  ;;  %v3893_v23 = vmax.f32 %v3669_v11, 0.0  ;;  %4111 = vst [vmem:[%s8382_s27] sm:$0xff] %v3887_v12  ;;  %v3237_v8 = vadd.f32 %v3073_v39, %v9961_v14  ;;  %v9963_v48 = vld [vmem:[#allocation49_spill] sm:$0xff]  ;;  %v9964_v7 = vld [vmem:[#allocation51_spill] sm:$0xff]  ;;  %v3457_v14 = vld [vmem:[%s8344_s24 + $0x90] sm:$0xff] }
 0x362   : > { %4112 = vst [vmem:[%s8382_s27 + $0x8] sm:$0xff] %v3888_v1  ;;  %4113 = vst [vmem:[%s8382_s27 + $0x10] sm:$0xff] %v3889_v29  ;;  %v3238_v50 = vadd.f32 %v3073_v39, %v9962_v3  ;;  %v3239_v47 = vadd.f32 %v3073_v39, %v9963_v48  ;;  %v3240_v6 = vadd.f32 %v3073_v39, %v9964_v7  ;;  %v3068_v28 = vpop.permute.xlu1 %3067  ;;  %v9967_v3 = vld [vmem:[#allocation5_spill] sm:$0xff]  ;;  %v9969_v7 = vld [vmem:[#allocation43_spill] sm:$0xff] }
 0x363   : > { %4114 = vst [vmem:[%s8382_s27 + $0x18] sm:$0xff] %v3890_v20  ;;  %4115 = vst [vmem:[%s8382_s27 + $0x20] sm:$0xff] %v3891_v58  ;;  %v3241_v18 = vadd.f32 %v3073_v39, %v9965_v55  ;;  %v3242_v60 = vadd.f32 %v3073_v39, %v7728_v15  ;;  %v3684_v27 = vadd.f32 %v3460_v62, %v3236_v10  ;;  %v9966_v15 = vld [vmem:[#allocation3_spill] sm:$0xff]  ;;  %v9968_v48 = vld [vmem:[#allocation41_spill] sm:$0xff] }
 0x364   : > { %4116 = vst [vmem:[%s8382_s27 + $0x28] sm:$0xff] %v3892_v24  ;;  %4117 = vst.msk [vmem:[%s8382_s27 + $0x30] sm:$0xff] %vm1395_vm0, %v3893_v23  ;;  %v3685_v44 = vadd.f32 %v3461_v26, %v3237_v8  ;;  %v3686_v59 = vadd.f32 %v3462_v19, %v3238_v50  ;;  %v3687_v11 = vadd.f32 %v3463_v53, %v3239_v47  ;;  %v3453_v24 = vld [vmem:[%s8344_s24 + $0x70] sm:$0xff]  ;;  %v3454_v23 = vld [vmem:[%s8344_s24 + $0x78] sm:$0xff] }
 0x365   : > { %v3688_v12 = vadd.f32 %v3464_v2, %v3240_v6  ;;  %v3689_v1 = vadd.f32 %v3465_v49, %v3241_v18  ;;  %v3690_v29 = vadd.f32 %v3466_v5, %v3242_v60  ;;  %v3908_v20 = vmax.f32 %v3684_v27, 0.0  ;;  %v3455_v2 = vld [vmem:[%s8344_s24 + $0x80] sm:$0xff]  ;;  %v3456_v49 = vld [vmem:[%s8344_s24 + $0x88] sm:$0xff]  ;;  %v3458_v8 = vld [vmem:[%s8344_s24 + $0x98] sm:$0xff] }
 0x366   : > { %v3909_v58 = vmax.f32 %v3685_v44, 0.0  ;;  %v3229_v62 = vadd.f32 %v3068_v28, %v9966_v15  ;;  %v3910_v39 = vmax.f32 %v3686_v59, 0.0  ;;  %v3911_v26 = vmax.f32 %v3687_v11, 0.0  ;;  %v3459_v5 = vld [vmem:[%s8344_s24 + $0xa0] sm:$0xff]  ;;  %v9970_v55 = vld [vmem:[#allocation112_spill] sm:$0xff]  ;;  %v9971_v60 = vld [vmem:[#allocation115_spill] sm:$0xff] }
 0x367   : > { %v3912_v19 = vmax.f32 %v3688_v12, 0.0  ;;  %v3913_v53 = vmax.f32 %v3689_v1, 0.0  ;;  %v3914_v10 = vmax.f32 %v3690_v29, 0.0  ;;  %4132 = vst [vmem:[%s8382_s27 + $0xa8] sm:$0xff] %v3908_v20  ;;  %v3230_v50 = vadd.f32 %v3068_v28, %v9967_v3  ;;  %v9972_v44 = vld [vmem:[#allocation181_spill] sm:$0xff]  ;;  %v3471_v3 = vld [vmem:[%s8344_s24 + $0x100] sm:$0xff] }
 0x368   : > { %4133 = vst [vmem:[%s8382_s27 + $0xb0] sm:$0xff] %v3909_v58  ;;  %v3231_v47 = vadd.f32 %v3068_v28, %v9968_v48  ;;  %v3232_v6 = vadd.f32 %v3068_v28, %v9969_v7  ;;  %4134 = vst [vmem:[%s8382_s27 + $0xb8] sm:$0xff] %v3910_v39  ;;  %v3233_v18 = vadd.f32 %v3068_v28, %v9970_v55  ;;  %v3078_v20 = vpop.permute.xlu0 %3077  ;;  %v9974_v55 = vld [vmem:[#allocation24_spill] sm:$0xff] }
 0x369   : > { %4135 = vst [vmem:[%s8382_s27 + $0xc0] sm:$0xff] %v3911_v26  ;;  %4136 = vst [vmem:[%s8382_s27 + $0xc8] sm:$0xff] %v3912_v19  ;;  %v3234_v27 = vadd.f32 %v3068_v28, %v9971_v60  ;;  %v3235_v59 = vadd.f32 %v3068_v28, %v9972_v44  ;;  %v3677_v11 = vadd.f32 %v3453_v24, %v3229_v62  ;;  %v3467_v24 = vld [vmem:[%s8344_s24 + $0xe0] sm:$0xff]  ;;  %v3469_v62 = vld [vmem:[%s8344_s24 + $0xf0] sm:$0xff] }
 0x36a   : > { %4137 = vst [vmem:[%s8382_s27 + $0xd0] sm:$0xff] %v3913_v53  ;;  %4138 = vst.msk [vmem:[%s8382_s27 + $0xd8] sm:$0xff] %vm1395_vm0, %v3914_v10  ;;  %v3678_v12 = vadd.f32 %v3454_v23, %v3230_v50  ;;  %v3679_v1 = vadd.f32 %v3455_v2, %v3231_v47  ;;  %v3680_v29 = vadd.f32 %v3456_v49, %v3232_v6  ;;  %v3468_v23 = vld [vmem:[%s8344_s24 + $0xe8] sm:$0xff]  ;;  %v3083_v49 = vpop.permute.xlu1 %3082  ;;  %v3473_v47 = vld [vmem:[%s8344_s24 + $0x110] sm:$0xff] }
 0x36b   : > { %v3681_v58 = vadd.f32 %v3457_v14, %v3233_v18  ;;  %v3682_v15 = vadd.f32 %v3458_v8, %v3234_v27  ;;  %v3683_v39 = vadd.f32 %v3459_v5, %v3235_v59  ;;  %v3901_v26 = vmax.f32 %v3677_v11, 0.0  ;;  %v3470_v5 = vld [vmem:[%s8344_s24 + $0xf8] sm:$0xff]  ;;  %v3472_v50 = vld [vmem:[%s8344_s24 + $0x108] sm:$0xff]  ;;  %v9975_v60 = vld [vmem:[#allocation26_spill] sm:$0xff] }
 0x36c   : > { %v3902_v19 = vmax.f32 %v3678_v12, 0.0  ;;  %v3903_v53 = vmax.f32 %v3679_v1, 0.0  ;;  %v3904_v28 = vmax.f32 %v3680_v29, 0.0  ;;  %v3243_v2 = vadd.f32 %v3078_v20, %v7754_v9  ;;  %v9973_v9 = vld [vmem:[#allocation183_spill] sm:$0xff]  ;;  %v9976_v11 = vld [vmem:[#allocation124_spill] sm:$0xff] }
 0x36d   : > { %v3905_v10 = vmax.f32 %v3681_v58, 0.0  ;;  %v3906_v14 = vmax.f32 %v3682_v15, 0.0  ;;  %v3907_v8 = vmax.f32 %v3683_v39, 0.0  ;;  %4125 = vst [vmem:[%s8382_s27 + $0x70] sm:$0xff] %v3901_v26  ;;  %v3244_v48 = vadd.f32 %v3078_v20, %v7757_v34 }
 0x36e   : > { %4126 = vst [vmem:[%s8382_s27 + $0x78] sm:$0xff] %v3902_v19  ;;  %4127 = vst [vmem:[%s8382_s27 + $0x80] sm:$0xff] %v3903_v53  ;;  %v3245_v7 = vadd.f32 %v3078_v20, %v7760_v57  ;;  %v3246_v6 = vadd.f32 %v3078_v20, %v9973_v9  ;;  %v3247_v18 = vadd.f32 %v3078_v20, %v9974_v55  ;;  %v3474_v19 = vld [vmem:[%s8344_s24 + $0x118] sm:$0xff]  ;;  %v3475_v53 = vld [vmem:[%s8344_s24 + $0x120] sm:$0xff] }
 0x36f   : > { %4128 = vst [vmem:[%s8382_s27 + $0x88] sm:$0xff] %v3904_v28  ;;  %v3248_v27 = vadd.f32 %v3078_v20, %v9975_v60  ;;  %4129 = vst [vmem:[%s8382_s27 + $0x90] sm:$0xff] %v3905_v10  ;;  %v3249_v34 = vadd.f32 %v3078_v20, %v7772_v63  ;;  %v3691_v44 = vadd.f32 %v3467_v24, %v3243_v2  ;;  %v3476_v63 = vld [vmem:[%s8344_s24 + $0x128] sm:$0xff]  ;;  %v3477_v10 = vld [vmem:[%s8344_s24 + $0x130] sm:$0xff] }
 0x370   : > { %4130 = vst [vmem:[%s8382_s27 + $0x98] sm:$0xff] %v3906_v14  ;;  %4131 = vst.msk [vmem:[%s8382_s27 + $0xa0] sm:$0xff] %vm1395_vm0, %v3907_v8  ;;  %v3692_v59 = vadd.f32 %v3468_v23, %v3244_v48  ;;  %v3250_v12 = vadd.f32 %v3083_v49, %v9976_v11  ;;  %v3693_v57 = vadd.f32 %v3469_v62, %v3245_v7  ;;  %v9977_v20 = vld [vmem:[#allocation15_spill] sm:$0xff]  ;;  %v3478_v14 = vld [vmem:[%s8344_s24 + $0x138] sm:$0xff]  ;;  %v3088_v8 = vpop.permute.xlu0 %3087 }
 0x371   : > { %v3694_v1 = vadd.f32 %v3470_v5, %v3246_v6  ;;  %v3695_v29 = vadd.f32 %v3471_v3, %v3247_v18  ;;  %v3696_v58 = vadd.f32 %v3472_v50, %v3248_v27  ;;  %v3697_v15 = vadd.f32 %v3473_v47, %v3249_v34  ;;  %v3479_v3 = vld [vmem:[%s8344_s24 + $0x140] sm:$0xff]  ;;  %v3480_v50 = vld [vmem:[%s8344_s24 + $0x148] sm:$0xff]  ;;  %v9978_v48 = vld [vmem:[#allocation17_spill] sm:$0xff] }
 0x372   : > { %v3915_v39 = vmax.f32 %v3691_v44, 0.0  ;;  %v3916_v26 = vmax.f32 %v3692_v59, 0.0  ;;  %v3251_v28 = vadd.f32 %v3083_v49, %v9977_v20  ;;  %v3917_v24 = vmax.f32 %v3693_v57, 0.0  ;;  %v9979_v7 = vld [vmem:[#allocation53_spill] sm:$0xff]  ;;  %v9980_v6 = vld [vmem:[#allocation55_spill] sm:$0xff]  ;;  %v9981_v18 = vld [vmem:[#allocation126_spill] sm:$0xff] }
 0x373   : > { %v3918_v23 = vmax.f32 %v3694_v1, 0.0  ;;  %v3919_v62 = vmax.f32 %v3695_v29, 0.0  ;;  %v3920_v2 = vmax.f32 %v3696_v58, 0.0  ;;  %v3921_v5 = vmax.f32 %v3697_v15, 0.0  ;;  %v9982_v27 = vld [vmem:[#allocation128_spill] sm:$0xff]  ;;  %v3483_v20 = vld [vmem:[%s8344_s24 + $0x160] sm:$0xff] }
 0x374   : > { %4139 = vst [vmem:[%s8382_s27 + $0xe0] sm:$0xff] %v3915_v39  ;;  %4140 = vst [vmem:[%s8382_s27 + $0xe8] sm:$0xff] %v3916_v26  ;;  %v3252_v47 = vadd.f32 %v3083_v49, %v9978_v48  ;;  %v3253_v9 = vadd.f32 %v3083_v49, %v9979_v7  ;;  %v3254_v55 = vadd.f32 %v3083_v49, %v9980_v6  ;;  %v9984_v48 = vld [vmem:[#allocation130_spill] sm:$0xff] }
 0x375   : > { %4141 = vst [vmem:[%s8382_s27 + $0xf0] sm:$0xff] %v3917_v24  ;;  %4142 = vst [vmem:[%s8382_s27 + $0xf8] sm:$0xff] %v3918_v23  ;;  %v3255_v60 = vadd.f32 %v3083_v49, %v9981_v18  ;;  %v3256_v34 = vadd.f32 %v3083_v49, %v9982_v27  ;;  %v3698_v44 = vadd.f32 %v3474_v19, %v3250_v12  ;;  %v3481_v12 = vld [vmem:[%s8344_s24 + $0x150] sm:$0xff]  ;;  %v3093_v24 = vpop.permute.xlu1 %3092 }
 0x376   : > { %4143 = vst [vmem:[%s8382_s27 + $0x100] sm:$0xff] %v3919_v62  ;;  %4144 = vst [vmem:[%s8382_s27 + $0x108] sm:$0xff] %v3920_v2  ;;  %v3699_v59 = vadd.f32 %v3475_v53, %v3251_v28  ;;  %v3700_v11 = vadd.f32 %v3476_v63, %v3252_v47  ;;  %v3701_v57 = vadd.f32 %v3477_v10, %v3253_v9  ;;  %v3482_v63 = vld [vmem:[%s8344_s24 + $0x158] sm:$0xff]  ;;  %v3484_v28 = vld [vmem:[%s8344_s24 + $0x168] sm:$0xff] }
 0x377   : > { %4145 = vst.msk [vmem:[%s8382_s27 + $0x110] sm:$0xff] %vm1395_vm0, %v3921_v5  ;;  %v3702_v1 = vadd.f32 %v3478_v14, %v3254_v55  ;;  %v3257_v29 = vadd.f32 %v3088_v8, %v7798_v36  ;;  %v3703_v58 = vadd.f32 %v3479_v3, %v3255_v60  ;;  %v3704_v15 = vadd.f32 %v3480_v50, %v3256_v34  ;;  %v3485_v2 = vld [vmem:[%s8344_s24 + $0x170] sm:$0xff]  ;;  %v3486_v10 = vld [vmem:[%s8344_s24 + $0x178] sm:$0xff]  ;;  %v3487_v14 = vld [vmem:[%s8344_s24 + $0x180] sm:$0xff] }
 0x378   : > { %v3922_v39 = vmax.f32 %v3698_v44, 0.0  ;;  %v3923_v49 = vmax.f32 %v3699_v59, 0.0  ;;  %v3924_v26 = vmax.f32 %v3700_v11, 0.0  ;;  %v3925_v19 = vmax.f32 %v3701_v57, 0.0  ;;  %v9983_v3 = vld [vmem:[#allocation59_spill] sm:$0xff]  ;;  %v9985_v47 = vld [vmem:[#allocation132_spill] sm:$0xff] }
 0x379   : > { %v3926_v53 = vmax.f32 %v3702_v1, 0.0  ;;  %v3258_v36 = vadd.f32 %v3088_v8, %v7801_v32  ;;  %v3927_v23 = vmax.f32 %v3703_v58, 0.0  ;;  %v3928_v62 = vmax.f32 %v3704_v15, 0.0  ;;  %v9986_v60 = vld [vmem:[#allocation61_spill] sm:$0xff]  ;;  %v3491_v15 = vld [vmem:[%s8344_s24 + $0x1a0] sm:$0xff] }
 0x37a   : > { %4146 = vst [vmem:[%s8382_s27 + $0x118] sm:$0xff] %v3922_v39  ;;  %4147 = vst [vmem:[%s8382_s27 + $0x120] sm:$0xff] %v3923_v49  ;;  %v3259_v5 = vadd.f32 %v3088_v8, %v7804_v54  ;;  %v3260_v50 = vadd.f32 %v3088_v8, %v9983_v3  ;;  %v3261_v32 = vadd.f32 %v3088_v8, %v9984_v48  ;;  %v3490_v58 = vld [vmem:[%s8344_s24 + $0x198] sm:$0xff]  ;;  %v9987_v39 = vld [vmem:[#allocation63_spill] sm:$0xff] }
 0x37b   : > { %4148 = vst [vmem:[%s8382_s27 + $0x128] sm:$0xff] %v3924_v26  ;;  %4149 = vst [vmem:[%s8382_s27 + $0x130] sm:$0xff] %v3925_v19  ;;  %v3262_v7 = vadd.f32 %v3088_v8, %v9985_v47  ;;  %v3263_v9 = vadd.f32 %v3088_v8, %v7816_v51  ;;  %v3705_v6 = vadd.f32 %v3481_v12, %v3257_v29  ;;  %v3488_v51 = vld [vmem:[%s8344_s24 + $0x188] sm:$0xff]  ;;  %v3489_v29 = vld [vmem:[%s8344_s24 + $0x190] sm:$0xff]  ;;  %v3098_v12 = vpop.permute.xlu0 %3097 }
 0x37c   : > { %4150 = vst [vmem:[%s8382_s27 + $0x138] sm:$0xff] %v3926_v53  ;;  %4151 = vst [vmem:[%s8382_s27 + $0x140] sm:$0xff] %v3927_v23  ;;  %v3706_v54 = vadd.f32 %v3482_v63, %v3258_v36  ;;  %v3707_v55 = vadd.f32 %v3483_v20, %v3259_v5  ;;  %v3708_v18 = vadd.f32 %v3484_v28, %v3260_v50  ;;  %v3492_v63 = vld [vmem:[%s8344_s24 + $0x1a8] sm:$0xff]  ;;  %v3493_v20 = vld [vmem:[%s8344_s24 + $0x1b0] sm:$0xff] }
 0x37d   : > { %4152 = vst.msk [vmem:[%s8382_s27 + $0x148] sm:$0xff] %vm1395_vm0, %v3928_v62  ;;  %v3264_v27 = vadd.f32 %v3093_v24, %v9986_v60  ;;  %v3709_v34 = vadd.f32 %v3485_v2, %v3261_v32  ;;  %v3710_v44 = vadd.f32 %v3486_v10, %v3262_v7  ;;  %v3711_v59 = vadd.f32 %v3487_v14, %v3263_v9  ;;  %v3494_v28 = vld [vmem:[%s8344_s24 + $0x1b8] sm:$0xff]  ;;  %v9988_v36 = vld [vmem:[#allocation134_spill] sm:$0xff]  ;;  %v9989_v62 = vld [vmem:[#allocation136_spill] sm:$0xff] }
 0x37e   : > { %v3929_v11 = vmax.f32 %v3705_v6, 0.0  ;;  %v3930_v8 = vmax.f32 %v3706_v54, 0.0  ;;  %v3931_v57 = vmax.f32 %v3707_v55, 0.0  ;;  %v3932_v1 = vmax.f32 %v3708_v18, 0.0  ;;  %v9990_v10 = vld [vmem:[#allocation19_spill] sm:$0xff]  ;;  %v9991_v5 = vld [vmem:[#allocation21_spill] sm:$0xff] }
 0x37f   : > { %v3265_v49 = vadd.f32 %v3093_v24, %v9987_v39  ;;  %v3933_v26 = vmax.f32 %v3709_v34, 0.0  ;;  %v3934_v19 = vmax.f32 %v3710_v44, 0.0  ;;  %v3935_v53 = vmax.f32 %v3711_v59, 0.0  ;;  %v9992_v50 = vld [vmem:[#allocation57_spill] sm:$0xff]  ;;  %v3496_v59 = vld [vmem:[%s8344_s24 + $0x1c8] sm:$0xff]  ;;  %v3501_v39 = vld [vmem:[%s8344_s24 + $0x1f0] sm:$0xff] }
 0x380   : > { %4153 = vst [vmem:[%s8382_s27 + $0x150] sm:$0xff] %v3929_v11  ;;  %v3266_v23 = vadd.f32 %v3093_v24, %v9988_v36  ;;  %4154 = vst [vmem:[%s8382_s27 + $0x158] sm:$0xff] %v3930_v8  ;;  %v3267_v2 = vadd.f32 %v3093_v24, %v9989_v62  ;;  %v3268_v14 = vadd.f32 %v3093_v24, %v9990_v10  ;;  %v3498_v11 = vld [vmem:[%s8344_s24 + $0x1d8] sm:$0xff]  ;;  %v9996_v62 = vld [vmem:[#allocation186_spill] sm:$0xff] }
 0x381   : > { %4155 = vst [vmem:[%s8382_s27 + $0x160] sm:$0xff] %v3931_v57  ;;  %4156 = vst [vmem:[%s8382_s27 + $0x168] sm:$0xff] %v3932_v1  ;;  %v3269_v3 = vadd.f32 %v3093_v24, %v9991_v5  ;;  %v3270_v48 = vadd.f32 %v3093_v24, %v9992_v50  ;;  %v3712_v32 = vadd.f32 %v3488_v51, %v3264_v27  ;;  %v3495_v24 = vld [vmem:[%s8344_s24 + $0x1c0] sm:$0xff]  ;;  %v3497_v27 = vld [vmem:[%s8344_s24 + $0x1d0] sm:$0xff] }
 0x382   : > { %4157 = vst [vmem:[%s8382_s27 + $0x170] sm:$0xff] %v3933_v26  ;;  %4158 = vst [vmem:[%s8382_s27 + $0x178] sm:$0xff] %v3934_v19  ;;  %v3713_v47 = vadd.f32 %v3489_v29, %v3265_v49  ;;  %v3714_v7 = vadd.f32 %v3490_v58, %v3266_v23  ;;  %v3271_v9 = vadd.f32 %v3098_v12, %v7842_v41  ;;  %v3103_v41 = vpop.permute.xlu1 %3102  ;;  %v3499_v58 = vld [vmem:[%s8344_s24 + $0x1e0] sm:$0xff] }
 0x383   : > { %4159 = vst.msk [vmem:[%s8382_s27 + $0x180] sm:$0xff] %vm1395_vm0, %v3935_v53  ;;  %v3715_v6 = vadd.f32 %v3491_v15, %v3267_v2  ;;  %v3716_v54 = vadd.f32 %v3492_v63, %v3268_v14  ;;  %v3717_v55 = vadd.f32 %v3493_v20, %v3269_v3  ;;  %v3718_v18 = vadd.f32 %v3494_v28, %v3270_v48  ;;  %v3500_v15 = vld [vmem:[%s8344_s24 + $0x1e8] sm:$0xff]  ;;  %v9993_v26 = vld [vmem:[#allocation30_spill] sm:$0xff]  ;;  %v9995_v63 = vld [vmem:[#allocation65_spill] sm:$0xff] }
 0x384   : > { %v3936_v60 = vmax.f32 %v3712_v32, 0.0  ;;  %v3937_v34 = vmax.f32 %v3713_v47, 0.0  ;;  %v3938_v44 = vmax.f32 %v3714_v7, 0.0  ;;  %v3272_v51 = vadd.f32 %v3098_v12, %v7845_v21  ;;  %v9994_v21 = vld [vmem:[#allocation32_spill] sm:$0xff]  ;;  %v3502_v32 = vld [vmem:[%s8344_s24 + $0x1f8] sm:$0xff]  ;;  %v3503_v47 = vld [vmem:[%s8344_s24 + $0x200] sm:$0xff] }
 0x385   : > { %v3939_v8 = vmax.f32 %v3715_v6, 0.0  ;;  %v3940_v57 = vmax.f32 %v3716_v54, 0.0  ;;  %v3941_v1 = vmax.f32 %v3717_v55, 0.0  ;;  %v3942_v29 = vmax.f32 %v3718_v18, 0.0  ;;  %v3505_v18 = vld [vmem:[%s8344_s24 + $0x210] sm:$0xff] }
 0x386   : > { %4160 = vst [vmem:[%s8382_s27 + $0x188] sm:$0xff] %v3936_v60  ;;  %4161 = vst [vmem:[%s8382_s27 + $0x190] sm:$0xff] %v3937_v34  ;;  %v3273_v49 = vadd.f32 %v3098_v12, %v7848_v37  ;;  %v3274_v19 = vadd.f32 %v3098_v12, %v9993_v26  ;;  %v3275_v53 = vadd.f32 %v3098_v12, %v9994_v21  ;;  %v3108_v60 = vpop.permute.xlu0 %3107 }
 0x387   : > { %4162 = vst [vmem:[%s8382_s27 + $0x198] sm:$0xff] %v3938_v44  ;;  %v3276_v20 = vadd.f32 %v3098_v12, %v9995_v63  ;;  %4163 = vst [vmem:[%s8382_s27 + $0x1a0] sm:$0xff] %v3939_v8  ;;  %v3277_v28 = vadd.f32 %v3098_v12, %v7860_v61  ;;  %v3719_v36 = vadd.f32 %v3495_v24, %v3271_v9  ;;  %v3504_v61 = vld [vmem:[%s8344_s24 + $0x208] sm:$0xff]  ;;  %v9997_v12 = vld [vmem:[#allocation36_spill] sm:$0xff] }
 0x388   : > { %4164 = vst [vmem:[%s8382_s27 + $0x1a8] sm:$0xff] %v3940_v57  ;;  %4165 = vst [vmem:[%s8382_s27 + $0x1b0] sm:$0xff] %v3941_v1  ;;  %v3720_v23 = vadd.f32 %v3496_v59, %v3272_v51  ;;  %v3278_v37 = vadd.f32 %v3103_v41, %v9996_v62  ;;  %v3721_v2 = vadd.f32 %v3497_v27, %v3273_v49  ;;  %v3506_v24 = vld [vmem:[%s8344_s24 + $0x218] sm:$0xff]  ;;  %v3507_v44 = vld [vmem:[%s8344_s24 + $0x220] sm:$0xff] }
 0x389   : > { %4166 = vst.msk [vmem:[%s8382_s27 + $0x1b8] sm:$0xff] %vm1395_vm0, %v3942_v29  ;;  %v3722_v10 = vadd.f32 %v3498_v11, %v3274_v19  ;;  %v3723_v14 = vadd.f32 %v3499_v58, %v3275_v53  ;;  %v3724_v5 = vadd.f32 %v3500_v15, %v3276_v20  ;;  %v3725_v3 = vadd.f32 %v3501_v39, %v3277_v28  ;;  %v3508_v59 = vld [vmem:[%s8344_s24 + $0x228] sm:$0xff]  ;;  %v9998_v27 = vld [vmem:[#allocation38_spill] sm:$0xff]  ;;  %v9999_v51 = vld [vmem:[#allocation69_spill] sm:$0xff] }
 0x38a   : > { %v3943_v50 = vmax.f32 %v3719_v36, 0.0  ;;  %v3944_v48 = vmax.f32 %v3720_v23, 0.0  ;;  %v3279_v7 = vadd.f32 %v3103_v41, %v9997_v12  ;;  %v3945_v9 = vmax.f32 %v3721_v2, 0.0  ;;  %v10000_v57 = vld [vmem:[#allocation71_spill] sm:$0xff]  ;;  %v10001_v29 = vld [vmem:[#allocation142_spill] sm:$0xff]  ;;  %v10002_v15 = vld [vmem:[#allocation144_spill] sm:$0xff] }
 0x38b   : > { %v3946_v6 = vmax.f32 %v3722_v10, 0.0  ;;  %v3947_v54 = vmax.f32 %v3723_v14, 0.0  ;;  %v3948_v55 = vmax.f32 %v3724_v5, 0.0  ;;  %v3949_v34 = vmax.f32 %v3725_v3, 0.0  ;;  %v3509_v23 = vld [vmem:[%s8344_s24 + $0x230] sm:$0xff]  ;;  %v3510_v10 = vld [vmem:[%s8344_s24 + $0x238] sm:$0xff]  ;;  %v3113_v3 = vpop.permute.xlu1 %3112 }
 0x38c   : > { %4167 = vst [vmem:[%s8382_s27 + $0x1c0] sm:$0xff] %v3943_v50  ;;  %4168 = vst [vmem:[%s8382_s27 + $0x1c8] sm:$0xff] %v3944_v48  ;;  %v3280_v11 = vadd.f32 %v3103_v41, %v9998_v27  ;;  %v3281_v8 = vadd.f32 %v3103_v41, %v9999_v51  ;;  %v3282_v1 = vadd.f32 %v3103_v41, %v10000_v57  ;;  %v3511_v14 = vld [vmem:[%s8344_s24 + $0x240] sm:$0xff]  ;;  %v3512_v5 = vld [vmem:[%s8344_s24 + $0x248] sm:$0xff] }
 0x38d   : > { %4169 = vst [vmem:[%s8382_s27 + $0x1d0] sm:$0xff] %v3945_v9  ;;  %4170 = vst [vmem:[%s8382_s27 + $0x1d8] sm:$0xff] %v3946_v6  ;;  %v3283_v58 = vadd.f32 %v3103_v41, %v10001_v29  ;;  %v3284_v39 = vadd.f32 %v3103_v41, %v10002_v15  ;;  %v3726_v49 = vadd.f32 %v3502_v32, %v3278_v37  ;;  %v3513_v32 = vld [vmem:[%s8344_s24 + $0x250] sm:$0xff]  ;;  %v10004_v6 = vld [vmem:[#allocation154_spill] sm:$0xff] }
 0x38e   : > { %4171 = vst [vmem:[%s8382_s27 + $0x1e0] sm:$0xff] %v3947_v54  ;;  %4172 = vst [vmem:[%s8382_s27 + $0x1e8] sm:$0xff] %v3948_v55  ;;  %v3727_v26 = vadd.f32 %v3503_v47, %v3279_v7  ;;  %v3728_v19 = vadd.f32 %v3504_v61, %v3280_v11  ;;  %v3729_v21 = vadd.f32 %v3505_v18, %v3281_v8  ;;  %v3514_v47 = vld [vmem:[%s8344_s24 + $0x258] sm:$0xff]  ;;  %v3515_v61 = vld [vmem:[%s8344_s24 + $0x260] sm:$0xff] }
 0x38f   : > { %4173 = vst.msk [vmem:[%s8382_s27 + $0x1f0] sm:$0xff] %vm1395_vm0, %v3949_v34  ;;  %v3730_v53 = vadd.f32 %v3506_v24, %v3282_v1  ;;  %v3285_v63 = vadd.f32 %v3108_v60, %v7886_v35  ;;  %v3731_v20 = vadd.f32 %v3507_v44, %v3283_v58  ;;  %v3732_v28 = vadd.f32 %v3508_v59, %v3284_v39  ;;  %v10003_v7 = vld [vmem:[#allocation151_spill] sm:$0xff]  ;;  %v10005_v54 = vld [vmem:[#allocation42_spill] sm:$0xff]  ;;  %v3517_v58 = vld [vmem:[%s8344_s24 + $0x270] sm:$0xff] }
 0x390   : > { %v3950_v36 = vmax.f32 %v3726_v49, 0.0  ;;  %v3951_v41 = vmax.f32 %v3727_v26, 0.0  ;;  %v3952_v62 = vmax.f32 %v3728_v19, 0.0  ;;  %v3953_v37 = vmax.f32 %v3729_v21, 0.0  ;;  %v10006_v59 = vld [vmem:[#allocation67_spill] sm:$0xff]  ;;  %v3518_v15 = vld [vmem:[%s8344_s24 + $0x278] sm:$0xff]  ;;  %v3118_v19 = vpop.permute.xlu0 %3117 }
 0x391   : > { %v3954_v2 = vmax.f32 %v3730_v53, 0.0  ;;  %v3286_v35 = vadd.f32 %v3108_v60, %v7889_v4  ;;  %v3955_v50 = vmax.f32 %v3731_v20, 0.0  ;;  %v3956_v48 = vmax.f32 %v3732_v28, 0.0  ;;  %v3519_v39 = vld [vmem:[%s8344_s24 + $0x280] sm:$0xff]  ;;  %v3520_v20 = vld [vmem:[%s8344_s24 + $0x288] sm:$0xff]  ;;  %v3521_v28 = vld [vmem:[%s8344_s24 + $0x290] sm:$0xff] }
 0x392   : > { %4174 = vst [vmem:[%s8382_s27 + $0x1f8] sm:$0xff] %v3950_v36  ;;  %4175 = vst [vmem:[%s8382_s27 + $0x200] sm:$0xff] %v3951_v41  ;;  %v3287_v12 = vadd.f32 %v3108_v60, %v7892_v33  ;;  %v3288_v9 = vadd.f32 %v3108_v60, %v10003_v7  ;;  %v3289_v4 = vadd.f32 %v3108_v60, %v10004_v6  ;;  %v10007_v49 = vld [vmem:[#allocation138_spill] sm:$0xff]  ;;  %v3522_v36 = vld [vmem:[%s8344_s24 + $0x298] sm:$0xff] }
 0x393   : > { %4176 = vst [vmem:[%s8382_s27 + $0x208] sm:$0xff] %v3952_v62  ;;  %4177 = vst [vmem:[%s8382_s27 + $0x210] sm:$0xff] %v3953_v37  ;;  %v3290_v55 = vadd.f32 %v3108_v60, %v10005_v54  ;;  %v3291_v18 = vadd.f32 %v3108_v60, %v7904_v31  ;;  %v3733_v24 = vadd.f32 %v3509_v23, %v3285_v63  ;;  %v3516_v31 = vld [vmem:[%s8344_s24 + $0x268] sm:$0xff]  ;;  %v10008_v41 = vld [vmem:[#allocation140_spill] sm:$0xff] }
 0x394   : > { %4178 = vst [vmem:[%s8382_s27 + $0x218] sm:$0xff] %v3954_v2  ;;  %4179 = vst [vmem:[%s8382_s27 + $0x220] sm:$0xff] %v3955_v50  ;;  %v3734_v33 = vadd.f32 %v3510_v10, %v3286_v35  ;;  %v3735_v34 = vadd.f32 %v3511_v14, %v3287_v12  ;;  %v3736_v44 = vadd.f32 %v3512_v5, %v3288_v9  ;;  %v10009_v62 = vld [vmem:[#allocation46_spill] sm:$0xff]  ;;  %v10010_v2 = vld [vmem:[#allocation48_spill] sm:$0xff] }
 0x395   : > { %4180 = vst.msk [vmem:[%s8382_s27 + $0x228] sm:$0xff] %vm1395_vm0, %v3956_v48  ;;  %v3292_v27 = vadd.f32 %v3113_v3, %v10006_v59  ;;  %v3737_v11 = vadd.f32 %v3513_v32, %v3289_v4  ;;  %v3738_v51 = vadd.f32 %v3514_v47, %v3290_v55  ;;  %v3739_v8 = vadd.f32 %v3515_v61, %v3291_v18  ;;  %v10011_v14 = vld [vmem:[#allocation77_spill] sm:$0xff]  ;;  %v10012_v35 = vld [vmem:[#allocation79_spill] sm:$0xff] }
 0x396   : > { %v3957_v57 = vmax.f32 %v3733_v24, 0.0  ;;  %v3958_v60 = vmax.f32 %v3734_v33, 0.0  ;;  %v3959_v1 = vmax.f32 %v3735_v34, 0.0  ;;  %v3960_v29 = vmax.f32 %v3736_v44, 0.0  ;;  %v3524_v18 = vld [vmem:[%s8344_s24 + $0x2a8] sm:$0xff]  ;;  %v3525_v24 = vld [vmem:[%s8344_s24 + $0x2b0] sm:$0xff] }
 0x397   : > { %v3293_v26 = vadd.f32 %v3113_v3, %v10007_v49  ;;  %v3961_v21 = vmax.f32 %v3737_v11, 0.0  ;;  %v3962_v53 = vmax.f32 %v3738_v51, 0.0  ;;  %v3963_v63 = vmax.f32 %v3739_v8, 0.0  ;;  %v3526_v33 = vld [vmem:[%s8344_s24 + $0x2b8] sm:$0xff]  ;;  %v3527_v51 = vld [vmem:[%s8344_s24 + $0x2c0] sm:$0xff]  ;;  %v3528_v8 = vld [vmem:[%s8344_s24 + $0x2c8] sm:$0xff] }
 0x398   : > { %4181 = vst [vmem:[%s8382_s27 + $0x230] sm:$0xff] %v3957_v57  ;;  %v3294_v23 = vadd.f32 %v3113_v3, %v10008_v41  ;;  %4182 = vst [vmem:[%s8382_s27 + $0x238] sm:$0xff] %v3958_v60  ;;  %v3295_v37 = vadd.f32 %v3113_v3, %v10009_v62  ;;  %v3296_v10 = vadd.f32 %v3113_v3, %v10010_v2  ;;  %v3529_v57 = vld [vmem:[%s8344_s24 + $0x2d0] sm:$0xff]  ;;  %v10013_v60 = vld [vmem:[#allocation85_spill] sm:$0xff] }
 0x399   : > { %4183 = vst [vmem:[%s8382_s27 + $0x240] sm:$0xff] %v3959_v1  ;;  %4184 = vst [vmem:[%s8382_s27 + $0x248] sm:$0xff] %v3960_v29  ;;  %v3297_v5 = vadd.f32 %v3113_v3, %v10011_v14  ;;  %v3298_v50 = vadd.f32 %v3113_v3, %v10012_v35  ;;  %v3740_v48 = vadd.f32 %v3516_v31, %v3292_v27  ;;  %v3523_v3 = vld [vmem:[%s8344_s24 + $0x2a0] sm:$0xff]  ;;  %v3530_v62 = vld [vmem:[%s8344_s24 + $0x2d8] sm:$0xff] }
 0x39a   : > { %4185 = vst [vmem:[%s8382_s27 + $0x250] sm:$0xff] %v3961_v21  ;;  %4186 = vst [vmem:[%s8382_s27 + $0x258] sm:$0xff] %v3962_v53  ;;  %v3741_v32 = vadd.f32 %v3517_v58, %v3293_v26  ;;  %v3742_v47 = vadd.f32 %v3518_v15, %v3294_v23  ;;  %v3299_v61 = vadd.f32 %v3118_v19, %v7930_v0  ;;  %v3123_v0 = vpop.permute.xlu1 %3122  ;;  %v10015_v58 = vld [vmem:[#allocation163_spill] sm:$0xff]  ;;  %v10016_v21 = vld [vmem:[#allocation44_spill] sm:$0xff] }
 0x39b   : > { %4187 = vst.msk [vmem:[%s8382_s27 + $0x260] sm:$0xff] %vm1395_vm0, %v3963_v63  ;;  %v3743_v12 = vadd.f32 %v3519_v39, %v3295_v37  ;;  %v3744_v7 = vadd.f32 %v3520_v20, %v3296_v10  ;;  %v3745_v9 = vadd.f32 %v3521_v28, %v3297_v5  ;;  %v3746_v6 = vadd.f32 %v3522_v36, %v3298_v50  ;;  %v3531_v37 = vld [vmem:[%s8344_s24 + $0x2e0] sm:$0xff]  ;;  %v3533_v50 = vld [vmem:[%s8344_s24 + $0x2f0] sm:$0xff] }
 0x39c   : > { %v3964_v4 = vmax.f32 %v3740_v48, 0.0  ;;  %v3965_v54 = vmax.f32 %v3741_v32, 0.0  ;;  %v3966_v55 = vmax.f32 %v3742_v47, 0.0  ;;  %v3300_v34 = vadd.f32 %v3118_v19, %v7933_v43  ;;  %v10014_v43 = vld [vmem:[#allocation87_spill] sm:$0xff]  ;;  %v3534_v48 = vld [vmem:[%s8344_s24 + $0x2f8] sm:$0xff]  ;;  %v3128_v32 = vpop.permute.xlu0 %3127 }
 0x39d   : > { %v3967_v44 = vmax.f32 %v3743_v12, 0.0  ;;  %v3968_v59 = vmax.f32 %v3744_v7, 0.0  ;;  %v3969_v27 = vmax.f32 %v3745_v9, 0.0  ;;  %v3970_v11 = vmax.f32 %v3746_v6, 0.0  ;;  %v3536_v12 = vld [vmem:[%s8344_s24 + $0x308] sm:$0xff]  ;;  %v10019_v6 = vld [vmem:[#allocation146_spill] sm:$0xff] }
 0x39e   : > { %4188 = vst [vmem:[%s8382_s27 + $0x268] sm:$0xff] %v3964_v4  ;;  %4189 = vst [vmem:[%s8382_s27 + $0x270] sm:$0xff] %v3965_v54  ;;  %v3301_v31 = vadd.f32 %v3118_v19, %v7936_v42  ;;  %v3302_v1 = vadd.f32 %v3118_v19, %v10013_v60  ;;  %v3303_v29 = vadd.f32 %v3118_v19, %v10014_v43  ;;  %v10018_v7 = vld [vmem:[#allocation75_spill] sm:$0xff]  ;;  %v10020_v4 = vld [vmem:[#allocation149_spill] sm:$0xff] }
 0x39f   : > { %4190 = vst [vmem:[%s8382_s27 + $0x278] sm:$0xff] %v3966_v55  ;;  %v3304_v15 = vadd.f32 %v3118_v19, %v10015_v58  ;;  %4191 = vst [vmem:[%s8382_s27 + $0x280] sm:$0xff] %v3967_v44  ;;  %v3305_v39 = vadd.f32 %v3118_v19, %v7948_v13  ;;  %v3747_v49 = vadd.f32 %v3523_v3, %v3299_v61  ;;  %v3532_v13 = vld [vmem:[%s8344_s24 + $0x2e8] sm:$0xff]  ;;  %v10017_v19 = vld [vmem:[#allocation73_spill] sm:$0xff] }
 0x3a0   : > { %4192 = vst [vmem:[%s8382_s27 + $0x288] sm:$0xff] %v3968_v59  ;;  %4193 = vst [vmem:[%s8382_s27 + $0x290] sm:$0xff] %v3969_v27  ;;  %v3748_v26 = vadd.f32 %v3524_v18, %v3300_v34  ;;  %v3306_v42 = vadd.f32 %v3123_v0, %v10016_v21  ;;  %v3749_v53 = vadd.f32 %v3525_v24, %v3301_v31  ;;  %v3535_v61 = vld [vmem:[%s8344_s24 + $0x300] sm:$0xff]  ;;  %v10022_v24 = vld [vmem:[#allocation56_spill] sm:$0xff] }
 0x3a1   : > { %4194 = vst.msk [vmem:[%s8382_s27 + $0x298] sm:$0xff] %vm1395_vm0, %v3970_v11  ;;  %v3750_v63 = vadd.f32 %v3526_v33, %v3302_v1  ;;  %v3751_v20 = vadd.f32 %v3527_v51, %v3303_v29  ;;  %v3752_v28 = vadd.f32 %v3528_v8, %v3304_v15  ;;  %v3753_v36 = vadd.f32 %v3529_v57, %v3305_v39  ;;  %v10021_v55 = vld [vmem:[#allocation54_spill] sm:$0xff]  ;;  %v3537_v60 = vld [vmem:[%s8344_s24 + $0x310] sm:$0xff]  ;;  %v3538_v58 = vld [vmem:[%s8344_s24 + $0x318] sm:$0xff] }
 0x3a2   : > { %v3971_v41 = vmax.f32 %v3747_v49, 0.0  ;;  %v3972_v23 = vmax.f32 %v3748_v26, 0.0  ;;  %v3307_v2 = vadd.f32 %v3123_v0, %v10017_v19  ;;  %v3973_v10 = vmax.f32 %v3749_v53, 0.0  ;;  %v3539_v15 = vld [vmem:[%s8344_s24 + $0x320] sm:$0xff]  ;;  %v3540_v39 = vld [vmem:[%s8344_s24 + $0x328] sm:$0xff]  ;;  %v3133_v26 = vpop.permute.xlu1 %3132  ;;  %v3541_v53 = vld [vmem:[%s8344_s24 + $0x330] sm:$0xff] }
 0x3a3   : > { %v3974_v14 = vmax.f32 %v3750_v63, 0.0  ;;  %v3975_v5 = vmax.f32 %v3751_v20, 0.0  ;;  %v3976_v35 = vmax.f32 %v3752_v28, 0.0  ;;  %v3977_v47 = vmax.f32 %v3753_v36, 0.0  ;;  %v3542_v63 = vld [vmem:[%s8344_s24 + $0x338] sm:$0xff]  ;;  %v3543_v20 = vld [vmem:[%s8344_s24 + $0x340] sm:$0xff] }
 0x3a4   : > { %4195 = vst [vmem:[%s8382_s27 + $0x2a0] sm:$0xff] %v3971_v41  ;;  %4196 = vst [vmem:[%s8382_s27 + $0x2a8] sm:$0xff] %v3972_v23  ;;  %v3308_v9 = vadd.f32 %v3123_v0, %v10018_v7  ;;  %v3309_v3 = vadd.f32 %v3123_v0, %v10019_v6  ;;  %v3310_v54 = vadd.f32 %v3123_v0, %v10020_v4  ;;  %v10024_v28 = vld [vmem:[#allocation64_spill] sm:$0xff]  ;;  %v10025_v41 = vld [vmem:[#allocation94_spill] sm:$0xff] }
 0x3a5   : > { %4197 = vst [vmem:[%s8382_s27 + $0x2b0] sm:$0xff] %v3973_v10  ;;  %4198 = vst [vmem:[%s8382_s27 + $0x2b8] sm:$0xff] %v3974_v14  ;;  %v3311_v18 = vadd.f32 %v3123_v0, %v10021_v55  ;;  %v3312_v33 = vadd.f32 %v3123_v0, %v10022_v24  ;;  %v3754_v34 = vadd.f32 %v3530_v62, %v3306_v42  ;;  %v10026_v62 = vld [vmem:[#allocation97_spill] sm:$0xff]  ;;  %v10029_v55 = vld [vmem:[#allocation50_spill] sm:$0xff]  ;;  %v3138_v24 = vpop.permute.xlu0 %3137 }
 0x3a6   : > { %4199 = vst [vmem:[%s8382_s27 + $0x2c0] sm:$0xff] %v3975_v5  ;;  %4200 = vst [vmem:[%s8382_s27 + $0x2c8] sm:$0xff] %v3976_v35  ;;  %v3755_v44 = vadd.f32 %v3531_v37, %v3307_v2  ;;  %v3756_v59 = vadd.f32 %v3532_v13, %v3308_v9  ;;  %v3757_v27 = vadd.f32 %v3533_v50, %v3309_v3  ;;  %v10027_v13 = vld [vmem:[#allocation173_spill] sm:$0xff]  ;;  %v10028_v50 = vld [vmem:[#allocation166_spill] sm:$0xff] }
 0x3a7   : > { %4201 = vst.msk [vmem:[%s8382_s27 + $0x2d0] sm:$0xff] %vm1395_vm0, %v3977_v47  ;;  %v3758_v11 = vadd.f32 %v3534_v48, %v3310_v54  ;;  %v3313_v51 = vadd.f32 %v3128_v32, %v7974_v46  ;;  %v3759_v8 = vadd.f32 %v3535_v61, %v3311_v18  ;;  %v3760_v57 = vadd.f32 %v3536_v12, %v3312_v33  ;;  %v10023_v46 = vld [vmem:[#allocation62_spill] sm:$0xff]  ;;  %v3545_v3 = vld [vmem:[%s8344_s24 + $0x350] sm:$0xff]  ;;  %v3546_v4 = vld [vmem:[%s8344_s24 + $0x358] sm:$0xff] }
 0x3a8   : > { %v3978_v31 = vmax.f32 %v3754_v34, 0.0  ;;  %v3979_v0 = vmax.f32 %v3755_v44, 0.0  ;;  %v3980_v1 = vmax.f32 %v3756_v59, 0.0  ;;  %v3981_v43 = vmax.f32 %v3757_v27, 0.0  ;;  %v3547_v54 = vld [vmem:[%s8344_s24 + $0x360] sm:$0xff]  ;;  %v3548_v59 = vld [vmem:[%s8344_s24 + $0x368] sm:$0xff] }
 0x3a9   : > { %v3982_v29 = vmax.f32 %v3758_v11, 0.0  ;;  %v3314_v49 = vadd.f32 %v3128_v32, %v10023_v46  ;;  %v3983_v21 = vmax.f32 %v3759_v8, 0.0  ;;  %v3984_v42 = vmax.f32 %v3760_v57, 0.0  ;;  %v3549_v27 = vld [vmem:[%s8344_s24 + $0x370] sm:$0xff]  ;;  %v3550_v11 = vld [vmem:[%s8344_s24 + $0x378] sm:$0xff] }
 0x3aa   : > { %4202 = vst [vmem:[%s8382_s27 + $0x2d8] sm:$0xff] %v3978_v31  ;;  %4203 = vst [vmem:[%s8382_s27 + $0x2e0] sm:$0xff] %v3979_v0  ;;  %v3315_v36 = vadd.f32 %v3128_v32, %v10024_v28  ;;  %v3316_v23 = vadd.f32 %v3128_v32, %v10025_v41  ;;  %v3317_v37 = vadd.f32 %v3128_v32, %v10026_v62  ;;  %v10031_v57 = vld [vmem:[#allocation81_spill] sm:$0xff]  ;;  %v10032_v0 = vld [vmem:[#allocation83_spill] sm:$0xff] }
 0x3ab   : > { %4204 = vst [vmem:[%s8382_s27 + $0x2e8] sm:$0xff] %v3980_v1  ;;  %4205 = vst [vmem:[%s8382_s27 + $0x2f0] sm:$0xff] %v3981_v43  ;;  %v3318_v19 = vadd.f32 %v3128_v32, %v10027_v13  ;;  %v3319_v2 = vadd.f32 %v3128_v32, %v7992_v40  ;;  %v3761_v10 = vadd.f32 %v3537_v60, %v3313_v51  ;;  %v3544_v40 = vld [vmem:[%s8344_s24 + $0x348] sm:$0xff]  ;;  %v10030_v51 = vld [vmem:[#allocation52_spill] sm:$0xff] }
 0x3ac   : > { %4206 = vst [vmem:[%s8382_s27 + $0x2f8] sm:$0xff] %v3982_v29  ;;  %4207 = vst [vmem:[%s8382_s27 + $0x300] sm:$0xff] %v3983_v21  ;;  %v3762_v14 = vadd.f32 %v3538_v58, %v3314_v49  ;;  %v3763_v5 = vadd.f32 %v3539_v15, %v3315_v36  ;;  %v3764_v35 = vadd.f32 %v3540_v39, %v3316_v23  ;;  %v10033_v1 = vld [vmem:[#allocation157_spill] sm:$0xff]  ;;  %v10034_v29 = vld [vmem:[#allocation160_spill] sm:$0xff] }
 0x3ad   : > { %4208 = vst.msk [vmem:[%s8382_s27 + $0x308] sm:$0xff] %vm1395_vm0, %v3984_v42  ;;  %v3320_v48 = vadd.f32 %v3133_v26, %v10028_v50  ;;  %v3765_v47 = vadd.f32 %v3541_v53, %v3317_v37  ;;  %v3766_v61 = vadd.f32 %v3542_v63, %v3318_v19  ;;  %v3767_v12 = vadd.f32 %v3543_v20, %v3319_v2  ;;  %v3552_v41 = vld [vmem:[%s8344_s24 + $0x388] sm:$0xff]  ;;  %v3553_v23 = vld [vmem:[%s8344_s24 + $0x390] sm:$0xff]  ;;  %v3554_v62 = vld [vmem:[%s8344_s24 + $0x398] sm:$0xff] }
 0x3ae   : > { %v3985_v7 = vmax.f32 %v3761_v10, 0.0  ;;  %v3986_v32 = vmax.f32 %v3762_v14, 0.0  ;;  %v3987_v9 = vmax.f32 %v3763_v5, 0.0  ;;  %v3988_v6 = vmax.f32 %v3764_v35, 0.0  ;;  %v10035_v37 = vld [vmem:[#allocation70_spill] sm:$0xff]  ;;  %v3556_v35 = vld [vmem:[%s8344_s24 + $0x3a8] sm:$0xff] }
 0x3af   : > { %v3321_v18 = vadd.f32 %v3133_v26, %v10029_v55  ;;  %v3989_v33 = vmax.f32 %v3765_v47, 0.0  ;;  %v3990_v34 = vmax.f32 %v3766_v61, 0.0  ;;  %v3991_v44 = vmax.f32 %v3767_v12, 0.0  ;;  %v3555_v5 = vld [vmem:[%s8344_s24 + $0x3a0] sm:$0xff]  ;;  %v3557_v50 = vld [vmem:[%s8344_s24 + $0x3b0] sm:$0xff] }
 0x3b0   : > { %4209 = vst [vmem:[%s8382_s27 + $0x310] sm:$0xff] %v3985_v7  ;;  %v3322_v8 = vadd.f32 %v3133_v26, %v10030_v51  ;;  %4210 = vst [vmem:[%s8382_s27 + $0x318] sm:$0xff] %v3986_v32  ;;  %v3323_v31 = vadd.f32 %v3133_v26, %v10031_v57  ;;  %v3324_v60 = vadd.f32 %v3133_v26, %v10032_v0  ;;  %v10037_v61 = vld [vmem:[#allocation106_spill] sm:$0xff]  ;;  %v10038_v7 = vld [vmem:[#allocation109_spill] sm:$0xff] }
 0x3b1   : > { %4211 = vst [vmem:[%s8382_s27 + $0x320] sm:$0xff] %v3987_v9  ;;  %4212 = vst [vmem:[%s8382_s27 + $0x328] sm:$0xff] %v3988_v6  ;;  %v3325_v43 = vadd.f32 %v3133_v26, %v10033_v1  ;;  %v3326_v58 = vadd.f32 %v3133_v26, %v10034_v29  ;;  %v3768_v15 = vadd.f32 %v3544_v40, %v3320_v48  ;;  %v3551_v26 = vld [vmem:[%s8344_s24 + $0x380] sm:$0xff]  ;;  %v10036_v48 = vld [vmem:[#allocation72_spill] sm:$0xff] }
 0x3b2   : > { %4213 = vst [vmem:[%s8382_s27 + $0x330] sm:$0xff] %v3989_v33  ;;  %4214 = vst [vmem:[%s8382_s27 + $0x338] sm:$0xff] %v3990_v34  ;;  %v3769_v39 = vadd.f32 %v3545_v3, %v3321_v18  ;;  %v3770_v46 = vadd.f32 %v3546_v4, %v3322_v8  ;;  %v3327_v49 = vadd.f32 %v3138_v24, %v8018_v38  ;;  %v3143_v38 = vpop.permute.xlu1 %3142  ;;  %v10039_v32 = vld [vmem:[#allocation177_spill] sm:$0xff]  ;;  %v3559_v8 = vld [vmem:[%s8344_s24 + $0x3c0] sm:$0xff] }
 0x3b3   : > { %4215 = vst.msk [vmem:[%s8382_s27 + $0x340] sm:$0xff] %vm1395_vm0, %v3991_v44  ;;  %v3771_v21 = vadd.f32 %v3547_v54, %v3323_v31  ;;  %v3772_v42 = vadd.f32 %v3548_v59, %v3324_v60  ;;  %v3773_v53 = vadd.f32 %v3549_v27, %v3325_v43  ;;  %v3774_v63 = vadd.f32 %v3550_v11, %v3326_v58  ;;  %v10040_v54 = vld [vmem:[#allocation99_spill] sm:$0xff]  ;;  %v3558_v51 = vld [vmem:[%s8344_s24 + $0x3b8] sm:$0xff]  ;;  %v3561_v43 = vld [vmem:[%s8344_s24 + $0x3d0] sm:$0xff]  ;;  %v3148_v58 = vpop.permute.xlu0 %3147 }
 0x3b4   : > { %v3992_v20 = vmax.f32 %v3768_v15, 0.0  ;;  %v3993_v28 = vmax.f32 %v3769_v39, 0.0  ;;  %v3994_v36 = vmax.f32 %v3770_v46, 0.0  ;;  %v3328_v13 = vadd.f32 %v3138_v24, %v10035_v37  ;;  %v3562_v29 = vld [vmem:[%s8344_s24 + $0x3d8] sm:$0xff]  ;;  %v3563_v39 = vld [vmem:[%s8344_s24 + $0x3e0] sm:$0xff]  ;;  %v3564_v46 = vld [vmem:[%s8344_s24 + $0x3e8] sm:$0xff] }
 0x3b5   : > { %v3995_v19 = vmax.f32 %v3771_v21, 0.0  ;;  %v3996_v2 = vmax.f32 %v3772_v42, 0.0  ;;  %v3997_v10 = vmax.f32 %v3773_v53, 0.0  ;;  %v3998_v14 = vmax.f32 %v3774_v63, 0.0  ;;  %v10043_v42 = vld [vmem:[#allocation89_spill] sm:$0xff]  ;;  %v10044_v63 = vld [vmem:[#allocation91_spill] sm:$0xff] }
 0x3b6   : > { %4216 = vst [vmem:[%s8382_s27 + $0x348] sm:$0xff] %v3992_v20  ;;  %4217 = vst [vmem:[%s8382_s27 + $0x350] sm:$0xff] %v3993_v28  ;;  %v3329_v47 = vadd.f32 %v3138_v24, %v10036_v48  ;;  %v3330_v12 = vadd.f32 %v3138_v24, %v10037_v61  ;;  %v3331_v40 = vadd.f32 %v3138_v24, %v10038_v7  ;;  %v10045_v20 = vld [vmem:[#allocation169_spill] sm:$0xff]  ;;  %v3568_v7 = vld [vmem:[%s8344_s24 + $0x408] sm:$0xff] }
 0x3b7   : > { %4218 = vst [vmem:[%s8382_s27 + $0x358] sm:$0xff] %v3994_v36  ;;  %v3332_v9 = vadd.f32 %v3138_v24, %v10039_v32  ;;  %4219 = vst [vmem:[%s8382_s27 + $0x360] sm:$0xff] %v3995_v19  ;;  %v3333_v6 = vadd.f32 %v3138_v24, %v8036_v56  ;;  %v3775_v3 = vadd.f32 %v3551_v26, %v3327_v49  ;;  %v3560_v56 = vld [vmem:[%s8344_s24 + $0x3c8] sm:$0xff]  ;;  %v10041_v24 = vld [vmem:[#allocation58_spill] sm:$0xff]  ;;  %v3153_v32 = vpop.permute.xlu1 %3152 }
 0x3b8   : > { %4220 = vst [vmem:[%s8382_s27 + $0x368] sm:$0xff] %v3996_v2  ;;  %4221 = vst [vmem:[%s8382_s27 + $0x370] sm:$0xff] %v3997_v10  ;;  %v3776_v4 = vadd.f32 %v3552_v41, %v3328_v13  ;;  %v3334_v55 = vadd.f32 %v3143_v38, %v10040_v54  ;;  %v3777_v18 = vadd.f32 %v3553_v23, %v3329_v47  ;;  %v10042_v49 = vld [vmem:[#allocation60_spill] sm:$0xff]  ;;  %v10046_v36 = vld [vmem:[#allocation171_spill] sm:$0xff] }
 0x3b9   : > { %4222 = vst.msk [vmem:[%s8382_s27 + $0x378] sm:$0xff] %vm1395_vm0, %v3998_v14  ;;  %v3778_v33 = vadd.f32 %v3554_v62, %v3330_v12  ;;  %v3779_v34 = vadd.f32 %v3555_v5, %v3331_v40  ;;  %v3780_v44 = vadd.f32 %v3556_v35, %v3332_v9  ;;  %v3781_v59 = vadd.f32 %v3557_v50, %v3333_v6  ;;  %v3565_v35 = vld [vmem:[%s8344_s24 + $0x3f0] sm:$0xff]  ;;  %v3566_v61 = vld [vmem:[%s8344_s24 + $0x3f8] sm:$0xff]  ;;  %v3567_v12 = vld [vmem:[%s8344_s24 + $0x400] sm:$0xff] }
 0x3ba   : > { %v3999_v27 = vmax.f32 %v3775_v3, 0.0  ;;  %v4000_v11 = vmax.f32 %v3776_v4, 0.0  ;;  %v3335_v57 = vadd.f32 %v3143_v38, %v10041_v24  ;;  %v4001_v31 = vmax.f32 %v3777_v18, 0.0  ;;  %v3569_v3 = vld [vmem:[%s8344_s24 + $0x410] sm:$0xff]  ;;  %v3570_v4 = vld [vmem:[%s8344_s24 + $0x418] sm:$0xff]  ;;  %v3571_v54 = vld [vmem:[%s8344_s24 + $0x420] sm:$0xff] }
 0x3bb   : > { %v4002_v0 = vmax.f32 %v3778_v33, 0.0  ;;  %v4003_v60 = vmax.f32 %v3779_v34, 0.0  ;;  %v4004_v1 = vmax.f32 %v3780_v44, 0.0  ;;  %v4005_v15 = vmax.f32 %v3781_v59, 0.0  ;;  %v10049_v33 = vld [vmem:[#allocation78_spill] sm:$0xff]  ;;  %v10050_v44 = vld [vmem:[#allocation80_spill] sm:$0xff] }
 0x3bc   : > { %4223 = vst [vmem:[%s8382_s27 + $0x380] sm:$0xff] %v3999_v27  ;;  %4224 = vst [vmem:[%s8382_s27 + $0x388] sm:$0xff] %v4000_v11  ;;  %v3336_v21 = vadd.f32 %v3143_v38, %v10042_v49  ;;  %v3337_v53 = vadd.f32 %v3143_v38, %v10043_v42  ;;  %v3338_v26 = vadd.f32 %v3143_v38, %v10044_v63  ;;  %v10051_v27 = vld [vmem:[#allocation117_spill] sm:$0xff]  ;;  %v10053_v42 = vld [vmem:[#allocation196_spill] sm:$0xff]  ;;  %v3158_v63 = vpop.permute.xlu0 %3157 }
 0x3bd   : > { %4225 = vst [vmem:[%s8382_s27 + $0x390] sm:$0xff] %v4001_v31  ;;  %4226 = vst [vmem:[%s8382_s27 + $0x398] sm:$0xff] %v4002_v0  ;;  %v3339_v28 = vadd.f32 %v3143_v38, %v10045_v20  ;;  %v3340_v41 = vadd.f32 %v3143_v38, %v10046_v36  ;;  %v3782_v23 = vadd.f32 %v3558_v51, %v3334_v55  ;;  %v10048_v55 = vld [vmem:[#allocation198_spill] sm:$0xff]  ;;  %v3574_v49 = vld [vmem:[%s8344_s24 + $0x438] sm:$0xff] }
 0x3be   : > { %4227 = vst [vmem:[%s8382_s27 + $0x3a0] sm:$0xff] %v4003_v60  ;;  %4228 = vst [vmem:[%s8382_s27 + $0x3a8] sm:$0xff] %v4004_v1  ;;  %v3783_v62 = vadd.f32 %v3559_v8, %v3335_v57  ;;  %v3784_v37 = vadd.f32 %v3560_v56, %v3336_v21  ;;  %v3785_v13 = vadd.f32 %v3561_v43, %v3337_v53  ;;  %v10052_v31 = vld [vmem:[#allocation178_spill] sm:$0xff]  ;;  %v3576_v36 = vld [vmem:[%s8344_s24 + $0x448] sm:$0xff] }
 0x3bf   : > { %4229 = vst.msk [vmem:[%s8382_s27 + $0x3b0] sm:$0xff] %vm1395_vm0, %v4005_v15  ;;  %v3786_v19 = vadd.f32 %v3562_v29, %v3338_v26  ;;  %v3341_v2 = vadd.f32 %v3148_v58, %v8062_v45  ;;  %v3787_v10 = vadd.f32 %v3563_v39, %v3339_v28  ;;  %v3788_v14 = vadd.f32 %v3564_v46, %v3340_v41  ;;  %v10047_v45 = vld [vmem:[#allocation105_spill] sm:$0xff]  ;;  %v3573_v46 = vld [vmem:[%s8344_s24 + $0x430] sm:$0xff]  ;;  %v3575_v21 = vld [vmem:[%s8344_s24 + $0x440] sm:$0xff] }
 0x3c0   : > { %v4006_v5 = vmax.f32 %v3782_v23, 0.0  ;;  %v4007_v38 = vmax.f32 %v3783_v62, 0.0  ;;  %v4008_v50 = vmax.f32 %v3784_v37, 0.0  ;;  %v4009_v48 = vmax.f32 %v3785_v13, 0.0  ;;  %v3577_v41 = vld [vmem:[%s8344_s24 + $0x450] sm:$0xff]  ;;  %v3578_v23 = vld [vmem:[%s8344_s24 + $0x458] sm:$0xff] }
 0x3c1   : > { %v4010_v47 = vmax.f32 %v3786_v19, 0.0  ;;  %v3342_v40 = vadd.f32 %v3148_v58, %v10047_v45  ;;  %v4011_v9 = vmax.f32 %v3787_v10, 0.0  ;;  %v4012_v6 = vmax.f32 %v3788_v14, 0.0  ;;  %v10054_v62 = vld [vmem:[#allocation66_spill] sm:$0xff]  ;;  %v10055_v13 = vld [vmem:[#allocation68_spill] sm:$0xff]  ;;  %v10057_v14 = vld [vmem:[#allocation103_spill] sm:$0xff] }
 0x3c2   : > { %4230 = vst [vmem:[%s8382_s27 + $0x3b8] sm:$0xff] %v4006_v5  ;;  %4231 = vst [vmem:[%s8382_s27 + $0x3c0] sm:$0xff] %v4007_v38  ;;  %v3343_v18 = vadd.f32 %v3148_v58, %v10048_v55  ;;  %v3344_v34 = vadd.f32 %v3148_v58, %v10049_v33  ;;  %v3345_v59 = vadd.f32 %v3148_v58, %v10050_v44  ;;  %v10058_v38 = vld [vmem:[#allocation175_spill] sm:$0xff]  ;;  %v3582_v55 = vld [vmem:[%s8344_s24 + $0x478] sm:$0xff] }
 0x3c3   : > { %4232 = vst [vmem:[%s8382_s27 + $0x3c8] sm:$0xff] %v4008_v50  ;;  %4233 = vst [vmem:[%s8382_s27 + $0x3d0] sm:$0xff] %v4009_v48  ;;  %v3346_v11 = vadd.f32 %v3148_v58, %v10051_v27  ;;  %v3347_v51 = vadd.f32 %v3148_v58, %v8080_v16  ;;  %v3789_v8 = vadd.f32 %v3565_v35, %v3341_v2  ;;  %v3572_v16 = vld [vmem:[%s8344_s24 + $0x428] sm:$0xff]  ;;  %v10056_v2 = vld [vmem:[#allocation100_spill] sm:$0xff] }
 0x3c4   : > { %4234 = vst [vmem:[%s8382_s27 + $0x3d8] sm:$0xff] %v4010_v47  ;;  %4235 = vst [vmem:[%s8382_s27 + $0x3e0] sm:$0xff] %v4011_v9  ;;  %v3790_v56 = vadd.f32 %v3566_v61, %v3342_v40  ;;  %v3791_v24 = vadd.f32 %v3567_v12, %v3343_v18  ;;  %v3792_v57 = vadd.f32 %v3568_v7, %v3344_v34  ;;  %v10059_v18 = vld [vmem:[#allocation114_spill] sm:$0xff] }
 0x3c5   : > { %4236 = vst.msk [vmem:[%s8382_s27 + $0x3e8] sm:$0xff] %vm1395_vm0, %v4012_v6  ;;  %v3348_v0 = vadd.f32 %v3153_v32, %v10052_v31  ;;  %v3793_v60 = vadd.f32 %v3569_v3, %v3345_v59  ;;  %v3794_v1 = vadd.f32 %v3570_v4, %v3346_v11  ;;  %v3795_v43 = vadd.f32 %v3571_v54, %v3347_v51  ;;  %v3580_v4 = vld [vmem:[%s8344_s24 + $0x468] sm:$0xff]  ;;  %v3581_v54 = vld [vmem:[%s8344_s24 + $0x470] sm:$0xff]  ;;  %v3583_v11 = vld [vmem:[%s8344_s24 + $0x480] sm:$0xff] }
 0x3c6   : > { %v4013_v29 = vmax.f32 %v3789_v8, 0.0  ;;  %v4014_v58 = vmax.f32 %v3790_v56, 0.0  ;;  %v4015_v15 = vmax.f32 %v3791_v24, 0.0  ;;  %v4016_v39 = vmax.f32 %v3792_v57, 0.0  ;;  %v3584_v51 = vld [vmem:[%s8344_s24 + $0x488] sm:$0xff]  ;;  %v3585_v8 = vld [vmem:[%s8344_s24 + $0x490] sm:$0xff] }
 0x3c7   : > { %v3349_v53 = vadd.f32 %v3153_v32, %v10053_v42  ;;  %v4017_v26 = vmax.f32 %v3793_v60, 0.0  ;;  %v4018_v20 = vmax.f32 %v3794_v1, 0.0  ;;  %v4019_v28 = vmax.f32 %v3795_v43, 0.0  ;;  %v10060_v56 = vld [vmem:[#allocation179_spill] sm:$0xff]  ;;  %v10061_v57 = vld [vmem:[#allocation182_spill] sm:$0xff] }
 0x3c8   : > { %4237 = vst [vmem:[%s8382_s27 + $0x3f0] sm:$0xff] %v4013_v29  ;;  %v3350_v37 = vadd.f32 %v3153_v32, %v10054_v62  ;;  %4238 = vst [vmem:[%s8382_s27 + $0x3f8] sm:$0xff] %v4014_v58  ;;  %v3351_v19 = vadd.f32 %v3153_v32, %v10055_v13  ;;  %v3352_v10 = vadd.f32 %v3153_v32, %v10056_v2  ;;  %v10063_v1 = vld [vmem:[#allocation86_spill] sm:$0xff]  ;;  %v3590_v2 = vld [vmem:[%s8344_s24 + $0x4b8] sm:$0xff] }
 0x3c9   : > { %4239 = vst [vmem:[%s8382_s27 + $0x400] sm:$0xff] %v4015_v15  ;;  %4240 = vst [vmem:[%s8382_s27 + $0x408] sm:$0xff] %v4016_v39  ;;  %v3353_v5 = vadd.f32 %v3153_v32, %v10057_v14  ;;  %v3354_v35 = vadd.f32 %v3153_v32, %v10058_v38  ;;  %v3796_v50 = vadd.f32 %v3572_v16, %v3348_v0  ;;  %v3579_v32 = vld [vmem:[%s8344_s24 + $0x460] sm:$0xff]  ;;  %v10064_v15 = vld [vmem:[#allocation119_spill] sm:$0xff] }
 0x3ca   : > { %4241 = vst [vmem:[%s8382_s27 + $0x410] sm:$0xff] %v4017_v26  ;;  %4242 = vst [vmem:[%s8382_s27 + $0x418] sm:$0xff] %v4018_v20  ;;  %v3797_v48 = vadd.f32 %v3573_v46, %v3349_v53  ;;  %v3798_v47 = vadd.f32 %v3574_v49, %v3350_v37  ;;  %v3355_v61 = vadd.f32 %v3158_v63, %v8106_v52  ;;  %v3163_v52 = vpop.permute.xlu1 %3162  ;;  %v10062_v0 = vld [vmem:[#allocation202_spill] sm:$0xff]  ;;  %v3592_v38 = vld [vmem:[%s8344_s24 + $0x4c8] sm:$0xff] }
 0x3cb   : > { %4243 = vst.msk [vmem:[%s8382_s27 + $0x420] sm:$0xff] %vm1395_vm0, %v4019_v28  ;;  %v3799_v12 = vadd.f32 %v3575_v21, %v3351_v19  ;;  %v3800_v7 = vadd.f32 %v3576_v36, %v3352_v10  ;;  %v3801_v45 = vadd.f32 %v3577_v41, %v3353_v5  ;;  %v3802_v40 = vadd.f32 %v3578_v23, %v3354_v35  ;;  %v3586_v28 = vld [vmem:[%s8344_s24 + $0x498] sm:$0xff]  ;;  %v3587_v36 = vld [vmem:[%s8344_s24 + $0x4a0] sm:$0xff]  ;;  %v3589_v19 = vld [vmem:[%s8344_s24 + $0x4b0] sm:$0xff]  ;;  %v3168_v10 = vpop.permute.xlu0 %3167 }
 0x3cc   : > { %v4020_v9 = vmax.f32 %v3796_v50, 0.0  ;;  %v4021_v6 = vmax.f32 %v3797_v48, 0.0  ;;  %v4022_v3 = vmax.f32 %v3798_v47, 0.0  ;;  %v3356_v33 = vadd.f32 %v3158_v63, %v10059_v18  ;;  %v3591_v5 = vld [vmem:[%s8344_s24 + $0x4c0] sm:$0xff]  ;;  %v10066_v35 = vld [vmem:[#allocation116_spill] sm:$0xff] }
 0x3cd   : > { %v4023_v34 = vmax.f32 %v3799_v12, 0.0  ;;  %v4024_v44 = vmax.f32 %v3800_v7, 0.0  ;;  %v4025_v59 = vmax.f32 %v3801_v45, 0.0  ;;  %v4026_v27 = vmax.f32 %v3802_v40, 0.0  ;;  %v10067_v48 = vld [vmem:[#allocation200_spill] sm:$0xff]  ;;  %v10070_v40 = vld [vmem:[#allocation111_spill] sm:$0xff] }
 0x3ce   : > { %4244 = vst [vmem:[%s8382_s27 + $0x428] sm:$0xff] %v4020_v9  ;;  %4245 = vst [vmem:[%s8382_s27 + $0x430] sm:$0xff] %v4021_v6  ;;  %v3357_v24 = vadd.f32 %v3158_v63, %v10060_v56  ;;  %v3358_v31 = vadd.f32 %v3158_v63, %v10061_v57  ;;  %v3359_v60 = vadd.f32 %v3158_v63, %v10062_v0  ;;  %v10069_v7 = vld [vmem:[#allocation76_spill] sm:$0xff]  ;;  %v3596_v56 = vld [vmem:[%s8344_s24 + $0x4e8] sm:$0xff]  ;;  %v3173_v57 = vpop.permute.xlu1 %3172 }
 0x3cf   : > { %4246 = vst [vmem:[%s8382_s27 + $0x438] sm:$0xff] %v4022_v3  ;;  %v3360_v43 = vadd.f32 %v3158_v63, %v10063_v1  ;;  %4247 = vst [vmem:[%s8382_s27 + $0x440] sm:$0xff] %v4023_v34  ;;  %v3361_v29 = vadd.f32 %v3158_v63, %v8124_v22  ;;  %v3803_v16 = vadd.f32 %v3579_v32, %v3355_v61  ;;  %v3588_v22 = vld [vmem:[%s8344_s24 + $0x4a8] sm:$0xff]  ;;  %v10065_v63 = vld [vmem:[#allocation184_spill] sm:$0xff] }
 0x3d0   : > { %4248 = vst [vmem:[%s8382_s27 + $0x448] sm:$0xff] %v4024_v44  ;;  %4249 = vst [vmem:[%s8382_s27 + $0x450] sm:$0xff] %v4025_v59  ;;  %v3804_v58 = vadd.f32 %v3580_v4, %v3356_v33  ;;  %v3362_v39 = vadd.f32 %v3163_v52, %v10064_v15  ;;  %v3805_v46 = vadd.f32 %v3581_v54, %v3357_v24  ;;  %v10068_v61 = vld [vmem:[#allocation74_spill] sm:$0xff]  ;;  %v3593_v44 = vld [vmem:[%s8344_s24 + $0x4d0] sm:$0xff] }
 0x3d1   : > { %4250 = vst.msk [vmem:[%s8382_s27 + $0x458] sm:$0xff] %vm1395_vm0, %v4026_v27  ;;  %v3806_v49 = vadd.f32 %v3582_v55, %v3358_v31  ;;  %v3807_v21 = vadd.f32 %v3583_v11, %v3359_v60  ;;  %v3808_v42 = vadd.f32 %v3584_v51, %v3360_v43  ;;  %v3809_v53 = vadd.f32 %v3585_v8, %v3361_v29  ;;  %v3594_v51 = vld [vmem:[%s8344_s24 + $0x4d8] sm:$0xff]  ;;  %v3595_v8 = vld [vmem:[%s8344_s24 + $0x4e0] sm:$0xff]  ;;  %v3597_v60 = vld [vmem:[%s8344_s24 + $0x4f0] sm:$0xff] }
 0x3d2   : > { %v4027_v26 = vmax.f32 %v3803_v16, 0.0  ;;  %v4028_v20 = vmax.f32 %v3804_v58, 0.0  ;;  %v3363_v41 = vadd.f32 %v3163_v52, %v10065_v63  ;;  %v4029_v23 = vmax.f32 %v3805_v46, 0.0  ;;  %v3598_v1 = vld [vmem:[%s8344_s24 + $0x4f8] sm:$0xff]  ;;  %v3599_v43 = vld [vmem:[%s8344_s24 + $0x500] sm:$0xff]  ;;  %v10073_v58 = vld [vmem:[#allocation123_spill] sm:$0xff] }
 0x3d3   : > { %v4030_v62 = vmax.f32 %v3806_v49, 0.0  ;;  %v4031_v37 = vmax.f32 %v3807_v21, 0.0  ;;  %v4032_v13 = vmax.f32 %v3808_v42, 0.0  ;;  %v4033_v14 = vmax.f32 %v3809_v53, 0.0  ;;  %v10072_v29 = vld [vmem:[#allocation121_spill] sm:$0xff]  ;;  %v10075_v49 = vld [vmem:[#allocation187_spill] sm:$0xff] }
 0x3d4   : > { %4251 = vst [vmem:[%s8382_s27 + $0x460] sm:$0xff] %v4027_v26  ;;  %4252 = vst [vmem:[%s8382_s27 + $0x468] sm:$0xff] %v4028_v20  ;;  %v3364_v50 = vadd.f32 %v3163_v52, %v10066_v35  ;;  %v3365_v47 = vadd.f32 %v3163_v52, %v10067_v48  ;;  %v3366_v12 = vadd.f32 %v3163_v52, %v10068_v61  ;;  %v3178_v35 = vpop.permute.xlu0 %3177  ;;  %v3604_v61 = vld [vmem:[%s8344_s24 + $0x528] sm:$0xff] }
 0x3d5   : > { %4253 = vst [vmem:[%s8382_s27 + $0x470] sm:$0xff] %v4029_v23  ;;  %4254 = vst [vmem:[%s8382_s27 + $0x478] sm:$0xff] %v4030_v62  ;;  %v3367_v45 = vadd.f32 %v3163_v52, %v10069_v7  ;;  %v3368_v32 = vadd.f32 %v3163_v52, %v10070_v40  ;;  %v3810_v9 = vadd.f32 %v3586_v28, %v3362_v39  ;;  %v10074_v39 = vld [vmem:[#allocation185_spill] sm:$0xff] }
 0x3d6   : > { %4255 = vst [vmem:[%s8382_s27 + $0x480] sm:$0xff] %v4031_v37  ;;  %4256 = vst [vmem:[%s8382_s27 + $0x488] sm:$0xff] %v4032_v13  ;;  %v3811_v6 = vadd.f32 %v3587_v36, %v3363_v41  ;;  %v3812_v3 = vadd.f32 %v3588_v22, %v3364_v50  ;;  %v3813_v4 = vadd.f32 %v3589_v19, %v3365_v47  ;;  %v10076_v36 = vld [vmem:[#allocation88_spill] sm:$0xff]  ;;  %v3606_v7 = vld [vmem:[%s8344_s24 + $0x538] sm:$0xff] }
 0x3d7   : > { %4257 = vst.msk [vmem:[%s8382_s27 + $0x490] sm:$0xff] %vm1395_vm0, %v4033_v14  ;;  %v3814_v54 = vadd.f32 %v3590_v2, %v3366_v12  ;;  %v3369_v55 = vadd.f32 %v3168_v10, %v8150_v25  ;;  %v3815_v18 = vadd.f32 %v3591_v5, %v3367_v45  ;;  %v3816_v33 = vadd.f32 %v3592_v38, %v3368_v32  ;;  %v10071_v25 = vld [vmem:[#allocation84_spill] sm:$0xff]  ;;  %v3603_v14 = vld [vmem:[%s8344_s24 + $0x520] sm:$0xff]  ;;  %v10077_v5 = vld [vmem:[#allocation125_spill] sm:$0xff] }
 0x3d8   : > { %v4034_v34 = vmax.f32 %v3810_v9, 0.0  ;;  %v4035_v52 = vmax.f32 %v3811_v6, 0.0  ;;  %v4036_v59 = vmax.f32 %v3812_v3, 0.0  ;;  %v4037_v27 = vmax.f32 %v3813_v4, 0.0  ;;  %v3601_v2 = vld [vmem:[%s8344_s24 + $0x510] sm:$0xff]  ;;  %v10078_v45 = vld [vmem:[#allocation127_spill] sm:$0xff] }
 0x3d9   : > { %v4038_v11 = vmax.f32 %v3814_v54, 0.0  ;;  %v3370_v24 = vadd.f32 %v3168_v10, %v10071_v25  ;;  %v4039_v31 = vmax.f32 %v3815_v18, 0.0  ;;  %v4040_v0 = vmax.f32 %v3816_v33, 0.0  ;;  %v3605_v12 = vld [vmem:[%s8344_s24 + $0x530] sm:$0xff]  ;;  %v10080_v6 = vld [vmem:[#allocation189_spill] sm:$0xff]  ;;  %v10081_v4 = vld [vmem:[#allocation147_spill] sm:$0xff] }
 0x3da   : > { %4258 = vst [vmem:[%s8382_s27 + $0x498] sm:$0xff] %v4034_v34  ;;  %4259 = vst [vmem:[%s8382_s27 + $0x4a0] sm:$0xff] %v4035_v52  ;;  %v3371_v16 = vadd.f32 %v3168_v10, %v10072_v29  ;;  %v3372_v15 = vadd.f32 %v3168_v10, %v10073_v58  ;;  %v3373_v46 = vadd.f32 %v3168_v10, %v10074_v39  ;;  %v10079_v32 = vld [vmem:[#allocation188_spill] sm:$0xff]  ;;  %v3612_v39 = vld [vmem:[%s8344_s24 + $0x568] sm:$0xff] }
 0x3db   : > { %4260 = vst [vmem:[%s8382_s27 + $0x4a8] sm:$0xff] %v4036_v59  ;;  %4261 = vst [vmem:[%s8382_s27 + $0x4b0] sm:$0xff] %v4037_v27  ;;  %v3374_v21 = vadd.f32 %v3168_v10, %v10075_v49  ;;  %v3375_v42 = vadd.f32 %v3168_v10, %v8168_v30  ;;  %v3817_v53 = vadd.f32 %v3593_v44, %v3369_v55  ;;  %v3600_v30 = vld [vmem:[%s8344_s24 + $0x508] sm:$0xff]  ;;  %v3602_v10 = vld [vmem:[%s8344_s24 + $0x518] sm:$0xff] }
 0x3dc   : > { %4262 = vst [vmem:[%s8382_s27 + $0x4b8] sm:$0xff] %v4038_v11  ;;  %4263 = vst [vmem:[%s8382_s27 + $0x4c0] sm:$0xff] %v4039_v31  ;;  %v3818_v26 = vadd.f32 %v3594_v51, %v3370_v24  ;;  %v3819_v20 = vadd.f32 %v3595_v8, %v3371_v16  ;;  %v3820_v28 = vadd.f32 %v3596_v56, %v3372_v15  ;;  %v10082_v55 = vld [vmem:[#allocation82_spill] sm:$0xff]  ;;  %v3609_v31 = vld [vmem:[%s8344_s24 + $0x550] sm:$0xff] }
 0x3dd   : > { %4264 = vst.msk [vmem:[%s8382_s27 + $0x4c8] sm:$0xff] %vm1395_vm0, %v4040_v0  ;;  %v3376_v22 = vadd.f32 %v3173_v57, %v10076_v36  ;;  %v3821_v63 = vadd.f32 %v3597_v60, %v3373_v46  ;;  %v3822_v41 = vadd.f32 %v3598_v1, %v3374_v21  ;;  %v3823_v23 = vadd.f32 %v3599_v43, %v3375_v42  ;;  %v3607_v8 = vld [vmem:[%s8344_s24 + $0x540] sm:$0xff]  ;;  %v3610_v0 = vld [vmem:[%s8344_s24 + $0x558] sm:$0xff]  ;;  %v3613_v46 = vld [vmem:[%s8344_s24 + $0x570] sm:$0xff] }
 0x3de   : > { %v4041_v62 = vmax.f32 %v3817_v53, 0.0  ;;  %v4042_v37 = vmax.f32 %v3818_v26, 0.0  ;;  %v4043_v13 = vmax.f32 %v3819_v20, 0.0  ;;  %v4044_v19 = vmax.f32 %v3820_v28, 0.0  ;;  %v10083_v60 = vld [vmem:[#allocation205_spill] sm:$0xff]  ;;  %v3611_v15 = vld [vmem:[%s8344_s24 + $0x560] sm:$0xff] }
 0x3df   : > { %v3377_v38 = vadd.f32 %v3173_v57, %v10077_v5  ;;  %v4045_v50 = vmax.f32 %v3821_v63, 0.0  ;;  %v4046_v48 = vmax.f32 %v3822_v41, 0.0  ;;  %v4047_v47 = vmax.f32 %v3823_v23, 0.0  ;;  %v10084_v49 = vld [vmem:[#allocation90_spill] sm:$0xff]  ;;  %v10085_v42 = vld [vmem:[#allocation92_spill] sm:$0xff]  ;;  %v10086_v26 = vld [vmem:[#allocation129_spill] sm:$0xff] }
 0x3e0   : > { %4265 = vst [vmem:[%s8382_s27 + $0x4d0] sm:$0xff] %v4041_v62  ;;  %v3378_v40 = vadd.f32 %v3173_v57, %v10078_v45  ;;  %4266 = vst [vmem:[%s8382_s27 + $0x4d8] sm:$0xff] %v4042_v37  ;;  %v3379_v9 = vadd.f32 %v3173_v57, %v10079_v32  ;;  %v3380_v3 = vadd.f32 %v3173_v57, %v10080_v6  ;;  %v10087_v28 = vld [vmem:[#allocation131_spill] sm:$0xff]  ;;  %v10089_v62 = vld [vmem:[#allocation152_spill] sm:$0xff] }
 0x3e1   : > { %4267 = vst [vmem:[%s8382_s27 + $0x4e0] sm:$0xff] %v4043_v13  ;;  %4268 = vst [vmem:[%s8382_s27 + $0x4e8] sm:$0xff] %v4044_v19  ;;  %v3381_v54 = vadd.f32 %v3173_v57, %v10081_v4  ;;  %v3382_v18 = vadd.f32 %v3173_v57, %v10082_v55  ;;  %v3824_v33 = vadd.f32 %v3600_v30, %v3376_v22  ;;  %v3608_v57 = vld [vmem:[%s8344_s24 + $0x548] sm:$0xff]  ;;  %v10088_v22 = vld [vmem:[#allocation190_spill] sm:$0xff] }
 0x3e2   : > { %4269 = vst [vmem:[%s8382_s27 + $0x4f0] sm:$0xff] %v4045_v50  ;;  %4270 = vst [vmem:[%s8382_s27 + $0x4f8] sm:$0xff] %v4046_v48  ;;  %v3825_v34 = vadd.f32 %v3601_v2, %v3377_v38  ;;  %v3826_v52 = vadd.f32 %v3602_v10, %v3378_v40  ;;  %v3383_v44 = vadd.f32 %v3178_v35, %v8194_v17  ;;  %v3183_v17 = vpop.permute.xlu1 %3182  ;;  %v3614_v38 = vld [vmem:[%s8344_s24 + $0x578] sm:$0xff]  ;;  %v3615_v50 = vld [vmem:[%s8344_s24 + $0x580] sm:$0xff] }
 0x3e3   : > { %4271 = vst.msk [vmem:[%s8382_s27 + $0x500] sm:$0xff] %vm1395_vm0, %v4047_v47  ;;  %v3827_v59 = vadd.f32 %v3603_v14, %v3379_v9  ;;  %v3828_v27 = vadd.f32 %v3604_v61, %v3380_v3  ;;  %v3829_v11 = vadd.f32 %v3605_v12, %v3381_v54  ;;  %v3830_v51 = vadd.f32 %v3606_v7, %v3382_v18  ;;  %v10090_v48 = vld [vmem:[#allocation95_spill] sm:$0xff]  ;;  %v3617_v40 = vld [vmem:[%s8344_s24 + $0x590] sm:$0xff]  ;;  %v3618_v32 = vld [vmem:[%s8344_s24 + $0x598] sm:$0xff]  ;;  %v3188_v9 = vpop.permute.xlu0 %3187 }
 0x3e4   : > { %v4048_v56 = vmax.f32 %v3824_v33, 0.0  ;;  %v4049_v25 = vmax.f32 %v3825_v34, 0.0  ;;  %v4050_v24 = vmax.f32 %v3826_v52, 0.0  ;;  %v3384_v1 = vadd.f32 %v3178_v35, %v10083_v60  ;;  %v3619_v3 = vld [vmem:[%s8344_s24 + $0x5a0] sm:$0xff]  ;;  %v3620_v4 = vld [vmem:[%s8344_s24 + $0x5a8] sm:$0xff]  ;;  %v10092_v18 = vld [vmem:[#allocation133_spill] sm:$0xff] }
 0x3e5   : > { %v4051_v43 = vmax.f32 %v3827_v59, 0.0  ;;  %v4052_v29 = vmax.f32 %v3828_v27, 0.0  ;;  %v4053_v16 = vmax.f32 %v3829_v11, 0.0  ;;  %v4054_v58 = vmax.f32 %v3830_v51, 0.0  ;;  %v10091_v54 = vld [vmem:[#allocation98_spill] sm:$0xff]  ;;  %v10093_v34 = vld [vmem:[#allocation135_spill] sm:$0xff] }
 0x3e6   : > { %4272 = vst [vmem:[%s8382_s27 + $0x508] sm:$0xff] %v4048_v56  ;;  %4273 = vst [vmem:[%s8382_s27 + $0x510] sm:$0xff] %v4049_v25  ;;  %v3385_v21 = vadd.f32 %v3178_v35, %v10084_v49  ;;  %v3386_v53 = vadd.f32 %v3178_v35, %v10085_v42  ;;  %v3387_v20 = vadd.f32 %v3178_v35, %v10086_v26  ;;  %v10095_v27 = vld [vmem:[#allocation193_spill] sm:$0xff]  ;;  %v10097_v49 = vld [vmem:[#allocation158_spill] sm:$0xff]  ;;  %v3193_v42 = vpop.permute.xlu1 %3192 }
 0x3e7   : > { %4274 = vst [vmem:[%s8382_s27 + $0x518] sm:$0xff] %v4050_v24  ;;  %v3388_v36 = vadd.f32 %v3178_v35, %v10087_v28  ;;  %4275 = vst [vmem:[%s8382_s27 + $0x520] sm:$0xff] %v4051_v43  ;;  %v3389_v63 = vadd.f32 %v3178_v35, %v10088_v22  ;;  %v3831_v41 = vadd.f32 %v3607_v8, %v3383_v44  ;;  %v3616_v35 = vld [vmem:[%s8344_s24 + $0x588] sm:$0xff]  ;;  %v10094_v44 = vld [vmem:[#allocation192_spill] sm:$0xff] }
 0x3e8   : > { %4276 = vst [vmem:[%s8382_s27 + $0x528] sm:$0xff] %v4052_v29  ;;  %4277 = vst [vmem:[%s8382_s27 + $0x530] sm:$0xff] %v4053_v16  ;;  %v3832_v23 = vadd.f32 %v3608_v57, %v3384_v1  ;;  %v3390_v30 = vadd.f32 %v3183_v17, %v10089_v62  ;;  %v3833_v37 = vadd.f32 %v3609_v31, %v3385_v21  ;;  %v10096_v57 = vld [vmem:[#allocation199_spill] sm:$0xff]  ;;  %v3621_v43 = vld [vmem:[%s8344_s24 + $0x5b0] sm:$0xff] }
 0x3e9   : > { %4278 = vst.msk [vmem:[%s8382_s27 + $0x538] sm:$0xff] %vm1395_vm0, %v4054_v58  ;;  %v3834_v13 = vadd.f32 %v3610_v0, %v3386_v53  ;;  %v3835_v19 = vadd.f32 %v3611_v15, %v3387_v20  ;;  %v3836_v2 = vadd.f32 %v3612_v39, %v3388_v36  ;;  %v3837_v10 = vadd.f32 %v3613_v46, %v3389_v63  ;;  %v3622_v15 = vld [vmem:[%s8344_s24 + $0x5b8] sm:$0xff]  ;;  %v3623_v39 = vld [vmem:[%s8344_s24 + $0x5c0] sm:$0xff]  ;;  %v3624_v46 = vld [vmem:[%s8344_s24 + $0x5c8] sm:$0xff] }
 0x3ea   : > { %v4055_v14 = vmax.f32 %v3831_v41, 0.0  ;;  %v4056_v5 = vmax.f32 %v3832_v23, 0.0  ;;  %v3391_v47 = vadd.f32 %v3183_v17, %v10090_v48  ;;  %v4057_v61 = vmax.f32 %v3833_v37, 0.0  ;;  %v3625_v20 = vld [vmem:[%s8344_s24 + $0x5d0] sm:$0xff]  ;;  %v3626_v28 = vld [vmem:[%s8344_s24 + $0x5d8] sm:$0xff]  ;;  %v3627_v36 = vld [vmem:[%s8344_s24 + $0x5e0] sm:$0xff] }
 0x3eb   : > { %v4058_v12 = vmax.f32 %v3834_v13, 0.0  ;;  %v4059_v7 = vmax.f32 %v3835_v19, 0.0  ;;  %v4060_v45 = vmax.f32 %v3836_v2, 0.0  ;;  %v4061_v6 = vmax.f32 %v3837_v10, 0.0  ;;  %v10098_v22 = vld [vmem:[#allocation101_spill] sm:$0xff]  ;;  %v10099_v41 = vld [vmem:[#allocation104_spill] sm:$0xff] }
 0x3ec   : > { %4279 = vst [vmem:[%s8382_s27 + $0x540] sm:$0xff] %v4055_v14  ;;  %4280 = vst [vmem:[%s8382_s27 + $0x548] sm:$0xff] %v4056_v5  ;;  %v3392_v55 = vadd.f32 %v3183_v17, %v10091_v54  ;;  %v3393_v33 = vadd.f32 %v3183_v17, %v10092_v18  ;;  %v3394_v52 = vadd.f32 %v3183_v17, %v10093_v34  ;;  %v10100_v62 = vld [vmem:[#allocation137_spill] sm:$0xff]  ;;  %v10101_v37 = vld [vmem:[#allocation139_spill] sm:$0xff] }
 0x3ed   : > { %4281 = vst [vmem:[%s8382_s27 + $0x550] sm:$0xff] %v4057_v61  ;;  %4282 = vst [vmem:[%s8382_s27 + $0x558] sm:$0xff] %v4058_v12  ;;  %v3395_v59 = vadd.f32 %v3183_v17, %v10094_v44  ;;  %v3396_v11 = vadd.f32 %v3183_v17, %v10095_v27  ;;  %v3838_v51 = vadd.f32 %v3614_v38, %v3390_v30  ;;  %v10102_v19 = vld [vmem:[#allocation194_spill] sm:$0xff]  ;;  %v3633_v44 = vld [vmem:[%s8344_s24 + $0x610] sm:$0xff] }
 0x3ee   : > { %4283 = vst [vmem:[%s8382_s27 + $0x560] sm:$0xff] %v4059_v7  ;;  %4284 = vst [vmem:[%s8382_s27 + $0x568] sm:$0xff] %v4060_v45  ;;  %v3839_v8 = vadd.f32 %v3615_v50, %v3391_v47  ;;  %v3840_v56 = vadd.f32 %v3616_v35, %v3392_v55  ;;  %v3841_v25 = vadd.f32 %v3617_v40, %v3393_v33  ;;  %v10103_v50 = vld [vmem:[#allocation191_spill] sm:$0xff]  ;;  %v3198_v55 = vpop.permute.xlu0 %3197 }
 0x3ef   : > { %4285 = vst.msk [vmem:[%s8382_s27 + $0x570] sm:$0xff] %vm1395_vm0, %v4061_v6  ;;  %v3842_v24 = vadd.f32 %v3618_v32, %v3394_v52  ;;  %v3397_v31 = vadd.f32 %v3188_v9, %v10096_v57  ;;  %v3843_v0 = vadd.f32 %v3619_v3, %v3395_v59  ;;  %v3844_v60 = vadd.f32 %v3620_v4, %v3396_v11  ;;  %v3628_v7 = vld [vmem:[%s8344_s24 + $0x5e8] sm:$0xff]  ;;  %v3630_v6 = vld [vmem:[%s8344_s24 + $0x5f8] sm:$0xff]  ;;  %v3631_v3 = vld [vmem:[%s8344_s24 + $0x600] sm:$0xff] }
 0x3f0   : > { %v4062_v1 = vmax.f32 %v3838_v51, 0.0  ;;  %v4063_v17 = vmax.f32 %v3839_v8, 0.0  ;;  %v4064_v29 = vmax.f32 %v3840_v56, 0.0  ;;  %v4065_v16 = vmax.f32 %v3841_v25, 0.0  ;;  %v10104_v4 = vld [vmem:[#allocation161_spill] sm:$0xff]  ;;  %v3632_v52 = vld [vmem:[%s8344_s24 + $0x608] sm:$0xff] }
 0x3f1   : > { %v4066_v58 = vmax.f32 %v3842_v24, 0.0  ;;  %v3398_v21 = vadd.f32 %v3188_v9, %v10097_v49  ;;  %v4067_v53 = vmax.f32 %v3843_v0, 0.0  ;;  %v4068_v26 = vmax.f32 %v3844_v60, 0.0  ;;  %v3634_v59 = vld [vmem:[%s8344_s24 + $0x618] sm:$0xff]  ;;  %v10105_v27 = vld [vmem:[#allocation107_spill] sm:$0xff]  ;;  %v10106_v51 = vld [vmem:[#allocation110_spill] sm:$0xff] }
 0x3f2   : > { %4286 = vst [vmem:[%s8382_s27 + $0x578] sm:$0xff] %v4062_v1  ;;  %4287 = vst [vmem:[%s8382_s27 + $0x580] sm:$0xff] %v4063_v17  ;;  %v3399_v63 = vadd.f32 %v3188_v9, %v10098_v22  ;;  %v3400_v23 = vadd.f32 %v3188_v9, %v10099_v41  ;;  %v3401_v30 = vadd.f32 %v3188_v9, %v10100_v62  ;;  %v10107_v56 = vld [vmem:[#allocation141_spill] sm:$0xff]  ;;  %v10108_v24 = vld [vmem:[#allocation143_spill] sm:$0xff]  ;;  %v3203_v22 = vpop.permute.xlu1 %3202 }
 0x3f3   : > { %4288 = vst [vmem:[%s8382_s27 + $0x588] sm:$0xff] %v4064_v29  ;;  %4289 = vst [vmem:[%s8382_s27 + $0x590] sm:$0xff] %v4065_v16  ;;  %v3402_v13 = vadd.f32 %v3188_v9, %v10101_v37  ;;  %v3403_v2 = vadd.f32 %v3188_v9, %v10102_v19  ;;  %v3845_v10 = vadd.f32 %v3621_v43, %v3397_v31  ;;  %v3629_v9 = vld [vmem:[%s8344_s24 + $0x5f0] sm:$0xff]  ;;  %v10109_v31 = vld [vmem:[#allocation197_spill] sm:$0xff] }
 0x3f4   : > { %4290 = vst [vmem:[%s8382_s27 + $0x598] sm:$0xff] %v4066_v58  ;;  %4291 = vst [vmem:[%s8382_s27 + $0x5a0] sm:$0xff] %v4067_v53  ;;  %v3846_v14 = vadd.f32 %v3622_v15, %v3398_v21  ;;  %v3847_v5 = vadd.f32 %v3623_v39, %v3399_v63  ;;  %v3848_v38 = vadd.f32 %v3624_v46, %v3400_v23  ;;  %v10110_v43 = vld [vmem:[#allocation155_spill] sm:$0xff]  ;;  %v3635_v46 = vld [vmem:[%s8344_s24 + $0x620] sm:$0xff] }
 0x3f5   : > { %4292 = vst.msk [vmem:[%s8382_s27 + $0x5a8] sm:$0xff] %vm1395_vm0, %v4068_v26  ;;  %v3404_v35 = vadd.f32 %v3193_v42, %v10103_v50  ;;  %v3849_v48 = vadd.f32 %v3625_v20, %v3401_v30  ;;  %v3850_v47 = vadd.f32 %v3626_v28, %v3402_v13  ;;  %v3851_v61 = vadd.f32 %v3627_v36, %v3403_v2  ;;  %v3636_v53 = vld [vmem:[%s8344_s24 + $0x628] sm:$0xff]  ;;  %v3637_v26 = vld [vmem:[%s8344_s24 + $0x630] sm:$0xff]  ;;  %v3638_v20 = vld [vmem:[%s8344_s24 + $0x638] sm:$0xff] }
 0x3f6   : > { %v4069_v12 = vmax.f32 %v3845_v10, 0.0  ;;  %v4070_v45 = vmax.f32 %v3846_v14, 0.0  ;;  %v4071_v40 = vmax.f32 %v3847_v5, 0.0  ;;  %v4072_v32 = vmax.f32 %v3848_v38, 0.0  ;;  %v10111_v28 = vld [vmem:[#allocation209_spill] sm:$0xff]  ;;  %v3639_v30 = vld [vmem:[%s8344_s24 + $0x640] sm:$0xff] }
 0x3f7   : > { %v3405_v54 = vadd.f32 %v3193_v42, %v10104_v4  ;;  %v4073_v18 = vmax.f32 %v3849_v48, 0.0  ;;  %v4074_v33 = vmax.f32 %v3850_v47, 0.0  ;;  %v4075_v34 = vmax.f32 %v3851_v61, 0.0  ;;  %v3640_v37 = vld [vmem:[%s8344_s24 + $0x648] sm:$0xff]  ;;  %v3641_v13 = vld [vmem:[%s8344_s24 + $0x650] sm:$0xff]  ;;  %v10112_v19 = vld [vmem:[#allocation2_spill] sm:$0xff] }
 0x3f8   : > { %4293 = vst [vmem:[%s8382_s27 + $0x5b0] sm:$0xff] %v4069_v12  ;;  %v3406_v11 = vadd.f32 %v3193_v42, %v10105_v27  ;;  %4294 = vst [vmem:[%s8382_s27 + $0x5b8] sm:$0xff] %v4070_v45  ;;  %v3407_v8 = vadd.f32 %v3193_v42, %v10106_v51  ;;  %v3408_v25 = vadd.f32 %v3193_v42, %v10107_v56  ;;  %v10113_v10 = vld [vmem:[#allocation4_spill] sm:$0xff]  ;;  %v10114_v5 = vld [vmem:[#allocation145_spill] sm:$0xff]  ;;  %v3208_v56 = vpop.permute.xlu0 %3207 }
 0x3f9   : > { %4295 = vst [vmem:[%s8382_s27 + $0x5c0] sm:$0xff] %v4071_v40  ;;  %4296 = vst [vmem:[%s8382_s27 + $0x5c8] sm:$0xff] %v4072_v32  ;;  %v3409_v57 = vadd.f32 %v3193_v42, %v10108_v24  ;;  %v3410_v0 = vadd.f32 %v3193_v42, %v10109_v31  ;;  %v3852_v60 = vadd.f32 %v3628_v7, %v3404_v35  ;;  %v10115_v50 = vld [vmem:[#allocation148_spill] sm:$0xff]  ;;  %v10116_v48 = vld [vmem:[#allocation201_spill] sm:$0xff] }
 0x3fa   : > { %4297 = vst [vmem:[%s8382_s27 + $0x5d0] sm:$0xff] %v4073_v18  ;;  %4298 = vst [vmem:[%s8382_s27 + $0x5d8] sm:$0xff] %v4074_v33  ;;  %v3853_v1 = vadd.f32 %v3629_v9, %v3405_v54  ;;  %v3854_v17 = vadd.f32 %v3630_v6, %v3406_v11  ;;  %v3411_v29 = vadd.f32 %v3198_v55, %v10110_v43  ;;  %v10117_v7 = vld [vmem:[#allocation195_spill] sm:$0xff]  ;;  %v3642_v18 = vld [vmem:[%s8344_s24 + $0x658] sm:$0xff] }
 0x3fb   : > { %4299 = vst.msk [vmem:[%s8382_s27 + $0x5e0] sm:$0xff] %vm1395_vm0, %v4075_v34  ;;  %v3855_v16 = vadd.f32 %v3631_v3, %v3407_v8  ;;  %v3856_v58 = vadd.f32 %v3632_v52, %v3408_v25  ;;  %v3857_v15 = vadd.f32 %v3633_v44, %v3409_v57  ;;  %v3858_v39 = vadd.f32 %v3634_v59, %v3410_v0  ;;  %v3643_v33 = vld [vmem:[%s8344_s24 + $0x660] sm:$0xff]  ;;  %v10118_v34 = vld [vmem:[#allocation164_spill] sm:$0xff]  ;;  %v3646_v8 = vld [vmem:[%s8344_s24 + $0x678] sm:$0xff] }
 0x3fc   : > { %v4076_v49 = vmax.f32 %v3852_v60, 0.0  ;;  %v4077_v21 = vmax.f32 %v3853_v1, 0.0  ;;  %v4078_v42 = vmax.f32 %v3854_v17, 0.0  ;;  %v3412_v36 = vadd.f32 %v3198_v55, %v10111_v28  ;;  %v3645_v51 = vld [vmem:[%s8344_s24 + $0x670] sm:$0xff]  ;;  %v3647_v24 = vld [vmem:[%s8344_s24 + $0x680] sm:$0xff]  ;;  %v3648_v57 = vld [vmem:[%s8344_s24 + $0x688] sm:$0xff] }
 0x3fd   : > { %v4079_v63 = vmax.f32 %v3855_v16, 0.0  ;;  %v4080_v41 = vmax.f32 %v3856_v58, 0.0  ;;  %v4081_v23 = vmax.f32 %v3857_v15, 0.0  ;;  %v4082_v62 = vmax.f32 %v3858_v39, 0.0  ;;  %v10119_v31 = vld [vmem:[#allocation6_spill] sm:$0xff]  ;;  %v10120_v60 = vld [vmem:[#allocation8_spill] sm:$0xff] }
 0x3fe   : > { %4300 = vst [vmem:[%s8382_s27 + $0x5e8] sm:$0xff] %v4076_v49  ;;  %4301 = vst [vmem:[%s8382_s27 + $0x5f0] sm:$0xff] %v4077_v21  ;;  %v3413_v2 = vadd.f32 %v3198_v55, %v10112_v19  ;;  %v3414_v14 = vadd.f32 %v3198_v55, %v10113_v10  ;;  %v3415_v38 = vadd.f32 %v3198_v55, %v10114_v5  ;;  %v10121_v17 = vld [vmem:[#allocation150_spill] sm:$0xff]  ;;  %v10123_v58 = vld [vmem:[#allocation204_spill] sm:$0xff]  ;;  %v3213_v10 = vpop.permute.xlu1 %3212 }
 0x3ff   : > { %4302 = vst [vmem:[%s8382_s27 + $0x5f8] sm:$0xff] %v4078_v42  ;;  %v3416_v35 = vadd.f32 %v3198_v55, %v10115_v50  ;;  %4303 = vst [vmem:[%s8382_s27 + $0x600] sm:$0xff] %v4079_v63  ;;  %v3417_v47 = vadd.f32 %v3198_v55, %v10116_v48  ;;  %v3859_v61 = vadd.f32 %v3635_v46, %v3411_v29  ;;  %v3644_v55 = vld [vmem:[%s8344_s24 + $0x668] sm:$0xff]  ;;  %v10122_v29 = vld [vmem:[#allocation153_spill] sm:$0xff] }
 0x400   : > { %4304 = vst [vmem:[%s8382_s27 + $0x608] sm:$0xff] %v4080_v41  ;;  %4305 = vst [vmem:[%s8382_s27 + $0x610] sm:$0xff] %v4081_v23  ;;  %v3860_v12 = vadd.f32 %v3636_v53, %v3412_v36  ;;  %v3418_v45 = vadd.f32 %v3203_v22, %v10117_v7  ;;  %v3861_v40 = vadd.f32 %v3637_v26, %v3413_v2  ;;  %v10124_v53 = vld [vmem:[#allocation203_spill] sm:$0xff]  ;;  %v3649_v63 = vld [vmem:[%s8344_s24 + $0x690] sm:$0xff] }
 0x401   : > { %4306 = vst.msk [vmem:[%s8382_s27 + $0x618] sm:$0xff] %vm1395_vm0, %v4082_v62  ;;  %v3862_v32 = vadd.f32 %v3638_v20, %v3414_v14  ;;  %v3863_v9 = vadd.f32 %v3639_v30, %v3415_v38  ;;  %v3864_v6 = vadd.f32 %v3640_v37, %v3416_v35  ;;  %v3865_v3 = vadd.f32 %v3641_v13, %v3417_v47  ;;  %v3650_v30 = vld [vmem:[%s8344_s24 + $0x698] sm:$0xff]  ;;  %v3651_v37 = vld [vmem:[%s8344_s24 + $0x6a0] sm:$0xff]  ;;  %v3652_v13 = vld [vmem:[%s8344_s24 + $0x6a8] sm:$0xff] }
 0x402   : > { %v4083_v4 = vmax.f32 %v3859_v61, 0.0  ;;  %v4084_v54 = vmax.f32 %v3860_v12, 0.0  ;;  %v3419_v52 = vadd.f32 %v3203_v22, %v10118_v34  ;;  %v4085_v44 = vmax.f32 %v3861_v40, 0.0  ;;  %v10125_v19 = vld [vmem:[#allocation22_spill] sm:$0xff]  ;;  %v3653_v38 = vld [vmem:[%s8344_s24 + $0x6b0] sm:$0xff]  ;;  %v3654_v50 = vld [vmem:[%s8344_s24 + $0x6b8] sm:$0xff] }
 0x403   : > { %v4086_v59 = vmax.f32 %v3862_v32, 0.0  ;;  %v4087_v27 = vmax.f32 %v3863_v9, 0.0  ;;  %v4088_v11 = vmax.f32 %v3864_v6, 0.0  ;;  %v4089_v25 = vmax.f32 %v3865_v3, 0.0  ;;  %v3655_v35 = vld [vmem:[%s8344_s24 + $0x6c0] sm:$0xff]  ;;  %v10127_v61 = vld [vmem:[#allocation16_spill] sm:$0xff] }
 0x404   : > { %4307 = vst [vmem:[%s8382_s27 + $0x620] sm:$0xff] %v4083_v4  ;;  %4308 = vst [vmem:[%s8382_s27 + $0x628] sm:$0xff] %v4084_v54  ;;  %v3420_v0 = vadd.f32 %v3203_v22, %v10119_v31  ;;  %v3421_v1 = vadd.f32 %v3203_v22, %v10120_v60  ;;  %v3422_v43 = vadd.f32 %v3203_v22, %v10121_v17  ;;  %v10126_v48 = vld [vmem:[#allocation14_spill] sm:$0xff]  ;;  %v10129_v40 = vld [vmem:[#allocation165_spill] sm:$0xff] }
 0x405   : > { %4309 = vst [vmem:[%s8382_s27 + $0x630] sm:$0xff] %v4085_v44  ;;  %4310 = vst [vmem:[%s8382_s27 + $0x638] sm:$0xff] %v4086_v59  ;;  %v3423_v16 = vadd.f32 %v3203_v22, %v10122_v29  ;;  %v3424_v15 = vadd.f32 %v3203_v22, %v10123_v58  ;;  %v3866_v39 = vadd.f32 %v3642_v18, %v3418_v45  ;;  %v10128_v7 = vld [vmem:[#allocation162_spill] sm:$0xff]  ;;  %v10130_v9 = vld [vmem:[#allocation208_spill] sm:$0xff] }
 0x406   : > { %4311 = vst [vmem:[%s8382_s27 + $0x640] sm:$0xff] %v4087_v27  ;;  %4312 = vst [vmem:[%s8382_s27 + $0x648] sm:$0xff] %v4088_v11  ;;  %v3867_v46 = vadd.f32 %v3643_v33, %v3419_v52  ;;  %v3868_v49 = vadd.f32 %v3644_v55, %v3420_v0  ;;  %v3869_v21 = vadd.f32 %v3645_v51, %v3421_v1  ;;  %v10131_v33 = vld [vmem:[#allocation167_spill] sm:$0xff]  ;;  %v3662_v29 = vld [vmem:[%s8344_s24 + $0x6f8] sm:$0xff] }
 0x407   : > { %4313 = vst.msk [vmem:[%s8382_s27 + $0x650] sm:$0xff] %vm1395_vm0, %v4089_v25  ;;  %v3870_v42 = vadd.f32 %v3646_v8, %v3422_v43  ;;  %v3425_v26 = vadd.f32 %v3208_v56, %v10124_v53  ;;  %v3871_v20 = vadd.f32 %v3647_v24, %v3423_v16  ;;  %v3872_v28 = vadd.f32 %v3648_v57, %v3424_v15  ;;  %v3656_v27 = vld [vmem:[%s8344_s24 + $0x6c8] sm:$0xff]  ;;  %v3658_v25 = vld [vmem:[%s8344_s24 + $0x6d8] sm:$0xff]  ;;  %v3659_v24 = vld [vmem:[%s8344_s24 + $0x6e0] sm:$0xff] }
 0x408   : > { %v4090_v36 = vmax.f32 %v3866_v39, 0.0  ;;  %v4091_v22 = vmax.f32 %v3867_v46, 0.0  ;;  %v4092_v41 = vmax.f32 %v3868_v49, 0.0  ;;  %v4093_v23 = vmax.f32 %v3869_v21, 0.0  ;;  %v10132_v57 = vld [vmem:[#allocation170_spill] sm:$0xff]  ;;  %v3660_v17 = vld [vmem:[%s8344_s24 + $0x6e8] sm:$0xff] }
 0x409   : > { %v4094_v62 = vmax.f32 %v3870_v42, 0.0  ;;  %v3426_v2 = vadd.f32 %v3208_v56, %v10125_v19  ;;  %v4095_v14 = vmax.f32 %v3871_v20, 0.0  ;;  %v4096_v5 = vmax.f32 %v3872_v28, 0.0  ;;  %v3661_v43 = vld [vmem:[%s8344_s24 + $0x6f0] sm:$0xff]  ;;  %v10133_v16 = vld [vmem:[#allocation10_spill] sm:$0xff]  ;;  %v10136_v21 = vld [vmem:[#allocation159_spill] sm:$0xff] }
 0x40a   : > { %4314 = vst [vmem:[%s8382_s27 + $0x658] sm:$0xff] %v4090_v36  ;;  %4315 = vst [vmem:[%s8382_s27 + $0x660] sm:$0xff] %v4091_v22  ;;  %v3427_v47 = vadd.f32 %v3208_v56, %v10126_v48  ;;  %v3428_v12 = vadd.f32 %v3208_v56, %v10127_v61  ;;  %v3429_v45 = vadd.f32 %v3208_v56, %v10128_v7  ;;  %v10134_v15 = vld [vmem:[#allocation12_spill] sm:$0xff]  ;;  %v10137_v53 = vld [vmem:[#allocation206_spill] sm:$0xff] }
 0x40b   : > { %4316 = vst [vmem:[%s8382_s27 + $0x668] sm:$0xff] %v4092_v41  ;;  %4317 = vst [vmem:[%s8382_s27 + $0x670] sm:$0xff] %v4093_v23  ;;  %v3430_v32 = vadd.f32 %v3208_v56, %v10129_v40  ;;  %v3431_v6 = vadd.f32 %v3208_v56, %v10130_v9  ;;  %v3873_v3 = vadd.f32 %v3649_v63, %v3425_v26  ;;  %v3657_v56 = vld [vmem:[%s8344_s24 + $0x6d0] sm:$0xff] }
 0x40c   : > { %4318 = vst [vmem:[%s8382_s27 + $0x678] sm:$0xff] %v4094_v62  ;;  %4319 = vst [vmem:[%s8382_s27 + $0x680] sm:$0xff] %v4095_v14  ;;  %v3874_v4 = vadd.f32 %v3650_v30, %v3426_v2  ;;  %v3875_v54 = vadd.f32 %v3651_v37, %v3427_v47  ;;  %v3876_v18 = vadd.f32 %v3652_v13, %v3428_v12  ;;  %v10135_v46 = vld [vmem:[#allocation156_spill] sm:$0xff] }
 0x40d   : > { %4320 = vst.msk [vmem:[%s8382_s27 + $0x688] sm:$0xff] %vm1395_vm0, %v4096_v5  ;;  %v3432_v55 = vadd.f32 %v3213_v10, %v10131_v33  ;;  %v3877_v34 = vadd.f32 %v3653_v38, %v3429_v45  ;;  %v3878_v52 = vadd.f32 %v3654_v50, %v3430_v32  ;;  %v3879_v44 = vadd.f32 %v3655_v35, %v3431_v6 }
 0x40e   : > { %v4097_v59 = vmax.f32 %v3873_v3, 0.0  ;;  %v4098_v11 = vmax.f32 %v3874_v4, 0.0  ;;  %v4099_v51 = vmax.f32 %v3875_v54, 0.0  ;;  %v4100_v8 = vmax.f32 %v3876_v18, 0.0 }
 0x40f   : > { %v3433_v31 = vadd.f32 %v3213_v10, %v10132_v57  ;;  %v4101_v0 = vmax.f32 %v3877_v34, 0.0  ;;  %v4102_v60 = vmax.f32 %v3878_v52, 0.0  ;;  %v4103_v1 = vmax.f32 %v3879_v44, 0.0 }
 0x410   : > { %4321 = vst [vmem:[%s8382_s27 + $0x690] sm:$0xff] %v4097_v59  ;;  %v3434_v58 = vadd.f32 %v3213_v10, %v10133_v16  ;;  %4322 = vst [vmem:[%s8382_s27 + $0x698] sm:$0xff] %v4098_v11  ;;  %v3435_v39 = vadd.f32 %v3213_v10, %v10134_v15  ;;  %v3436_v49 = vadd.f32 %v3213_v10, %v10135_v46 }
 0x411   : > { %4323 = vst [vmem:[%s8382_s27 + $0x6a0] sm:$0xff] %v4099_v51  ;;  %4324 = vst [vmem:[%s8382_s27 + $0x6a8] sm:$0xff] %v4100_v8  ;;  %v3437_v42 = vadd.f32 %v3213_v10, %v10136_v21  ;;  %v3438_v26 = vadd.f32 %v3213_v10, %v10137_v53  ;;  %v3880_v20 = vadd.f32 %v3656_v27, %v3432_v55 }
 0x412   : > { %4325 = vst [vmem:[%s8382_s27 + $0x6b0] sm:$0xff] %v4101_v0  ;;  %4326 = vst [vmem:[%s8382_s27 + $0x6b8] sm:$0xff] %v4102_v60  ;;  %v3881_v28 = vadd.f32 %v3657_v56, %v3433_v31  ;;  %v3882_v36 = vadd.f32 %v3658_v25, %v3434_v58  ;;  %v3883_v22 = vadd.f32 %v3659_v24, %v3435_v39 }
 0x413   : > { %4327 = vst.msk [vmem:[%s8382_s27 + $0x6c0] sm:$0xff] %vm1395_vm0, %v4103_v1  ;;  %v3884_v63 = vadd.f32 %v3660_v17, %v3436_v49  ;;  %v3885_v41 = vadd.f32 %v3661_v43, %v3437_v42  ;;  %v3886_v23 = vadd.f32 %v3662_v29, %v3438_v26  ;;  %v4104_v62 = vmax.f32 %v3880_v20, 0.0 }
 0x414   : > { %v4105_v30 = vmax.f32 %v3881_v28, 0.0  ;;  %v4106_v37 = vmax.f32 %v3882_v36, 0.0  ;;  %v4107_v13 = vmax.f32 %v3883_v22, 0.0 }
 0x415   : > { %v4108_v19 = vmax.f32 %v3884_v63, 0.0  ;;  %v4109_v2 = vmax.f32 %v3885_v41, 0.0  ;;  %v4110_v10 = vmax.f32 %v3886_v23, 0.0  ;;  %4328 = vst [vmem:[%s8382_s27 + $0x6c8] sm:$0xff] %v4104_v62 }
 0x416   : > { %4329 = vst [vmem:[%s8382_s27 + $0x6d0] sm:$0xff] %v4105_v30  ;;  %4330 = vst [vmem:[%s8382_s27 + $0x6d8] sm:$0xff] %v4106_v37 }
 0x417   : > { %4331 = vst [vmem:[%s8382_s27 + $0x6e0] sm:$0xff] %v4107_v13  ;;  %4332 = vst [vmem:[%s8382_s27 + $0x6e8] sm:$0xff] %v4108_v19 }
 0x418   : > { %4333 = vst [vmem:[%s8382_s27 + $0x6f0] sm:$0xff] %v4109_v2  ;;  %4334 = vst.msk [vmem:[%s8382_s27 + $0x6f8] sm:$0xff] %vm1395_vm0, %v4110_v10 }
 0x419 PF: > { %s14_s15 = sadd.s32 1, %s4791_s15  }
 0x41a   : > { %p11_p4 = scmp.ge.s32.totalorder %s14_s15, 4  }
 0x41c   :  { %13 = sbr.rel (!%p11_p4) target bundleno = 1 (0x1), region = 72 }

</bundles_post_ra>
